<compile_context>
chip_gen: v7x
topology: tpu7x:2x2x1
jax: 0.10.0
libtpu: 0.0.40
codegen_flags: <defaults>
</compile_context>

<pallas_src>
import functools
import math

import jax
import jax.numpy as jnp
from jax import lax
from jax.experimental import pallas as pl
from jax.experimental.pallas import tpu as pltpu


def _round_up(x, m):
    return ((x + m - 1) // m) * m


_CONV_CFG = ((3, 16), (16, 32), (32, 32))   # (Cin, Cout) for conv1..conv3
_D_MODEL = 512
_N_HEADS = 2
_D_FF = 2048
_LSTM_HIDDEN = 2


# ----------------------------------------------------------------------------
# Kernel 1: conv-as-matmul  Y = relu((X @ W) * scale + shift)
# (conv bias and BatchNorm pre-folded into scale/shift at init; weight is
#  pre-padded to 128 output lanes with scale=shift=0 so padded channels are 0.)
# ----------------------------------------------------------------------------
def _conv_mm_kernel(x_ref, w_ref, scale_ref, shift_ref, o_ref):
    y = jnp.dot(x_ref[...], w_ref[...], preferred_element_type=jnp.float32)
    o_ref[...] = jnp.maximum(y * scale_ref[...] + shift_ref[...], 0.0)


def conv_matmul(x, wp, scale_p, shift_p):
    """x: (M, K) unpadded patches; wp: (K, Np) lane-padded weight.

    No host-side pad of x and no output slice: K blocks use the full extent
    (legal even when K % 128 != 0), the last row-block of a 2-step grid may
    overrun M (reads unspecified, writes masked -- rows are independent).
    """
    M, K = x.shape
    Kw, Np = wp.shape
    assert Kw == K and Np % 128 == 0
    if M >= 512:
        tm = _round_up(-(-M // 2), 8)     # 2 even steps -> both v7x cores busy
    else:
        tm = M                            # single full-extent block, 1 launch step
    grid = -(-M // tm)
    return pl.pallas_call(
        _conv_mm_kernel,
        out_shape=jax.ShapeDtypeStruct((M, Np), jnp.float32),
        grid=(grid,),
        in_specs=[
            pl.BlockSpec((tm, K), lambda i: (i, 0)),
            pl.BlockSpec((K, Np), lambda i: (0, 0)),
            pl.BlockSpec((1, Np), lambda i: (0, 0)),
            pl.BlockSpec((1, Np), lambda i: (0, 0)),
        ],
        out_specs=pl.BlockSpec((tm, Np), lambda i: (i, 0)),
        compiler_params=pltpu.CompilerParams(dimension_semantics=("parallel",)),
    )(x, wp, scale_p, shift_p)


# ----------------------------------------------------------------------------
# Kernel 2: fused Transformer encoder layer + 2-layer LSTM, one launch.
#   qkv proj (single dot) -> per-head softmax(QK^T/sqrt(dh))V -> single output
#   proj -> +residual -> LN1 -> FFN(relu) -> +residual -> LN2 -> LSTM.
#   Matmul weights are bf16 (HBM-traffic bound); accumulation/epilogues f32.
# ----------------------------------------------------------------------------
def _encoder_lstm_kernel(feat_ref, wqkv_ref, bqkv_ref, wo_ref, bo_ref,
                         ln1g_ref, ln1b_ref, w1_ref, b1_ref, w2_ref, b2_ref,
                         ln2g_ref, ln2b_ref,
                         wih0_ref, b0_ref, whh0_ref, wih1_ref, whh1_ref, b1l_ref,
                         h0_ref, c0_ref, o_ref,
                         *, n_heads, d_head, seq_len, scale, eps, hidden):
    feat = feat_ref[...]                          # (Sp, D) f32; rows >= seq_len are zero pad
    Sp, D = feat.shape
    feat_lp = feat.astype(jnp.bfloat16)

    # --- single QKV projection (one MXU pass instead of three) ---
    qkv = jnp.dot(feat_lp, wqkv_ref[...],
                  preferred_element_type=jnp.float32) + bqkv_ref[...]   # (Sp, 3D)

    # additive mask over padded KEY columns (padded QUERY rows stay finite and
    # are never read downstream -- the LSTM loop only touches rows < seq_len).
    col = lax.broadcasted_iota(jnp.int32, (Sp, Sp), 1)
    neg = jnp.where(col < seq_len, 0.0, -1e30).astype(jnp.float32)

    ctx_heads = []
    for h in range(n_heads):                      # n_heads == 2, static loop
        q = qkv[:, h * d_head:(h + 1) * d_head]
        k = qkv[:, D + h * d_head:D + (h + 1) * d_head]
        v = qkv[:, 2 * D + h * d_head:2 * D + (h + 1) * d_head]
        s = lax.dot_general(q, k, (((1,), (1,)), ((), ())),
                            preferred_element_type=jnp.float32) * scale + neg
        m = jnp.max(s, axis=-1, keepdims=True)
        p = jnp.exp(s - m)
        p = p * pl.reciprocal(jnp.sum(p, axis=-1, keepdims=True), approx=True)
        ctx_heads.append(jnp.dot(p, v, preferred_element_type=jnp.float32))
    ctx = jnp.concatenate(ctx_heads, axis=-1)     # (Sp, D)

    # --- single output projection against the full Wo ---
    attn = jnp.dot(ctx.astype(jnp.bfloat16), wo_ref[...],
                   preferred_element_type=jnp.float32) + bo_ref[...]

    y = attn + feat                               # residual (f32)
    mean = jnp.mean(y, axis=-1, keepdims=True)
    var = jnp.mean((y - mean) ** 2, axis=-1, keepdims=True)
    x1 = (y - mean) * lax.rsqrt(var + eps) * ln1g_ref[...] + ln1b_ref[...]

    # --- FFN: the (Sp, 2048) intermediate never leaves VMEM ---
    h1 = jnp.dot(x1.astype(jnp.bfloat16), w1_ref[...],
                 preferred_element_type=jnp.float32) + b1_ref[...]
    h1 = jnp.maximum(h1, 0.0)
    y2 = jnp.dot(h1.astype(jnp.bfloat16), w2_ref[...],
                 preferred_element_type=jnp.float32) + b2_ref[...] + x1
    mean2 = jnp.mean(y2, axis=-1, keepdims=True)
    var2 = jnp.mean((y2 - mean2) ** 2, axis=-1, keepdims=True)
    x2 = (y2 - mean2) * lax.rsqrt(var2 + eps) * ln2g_ref[...] + ln2b_ref[...]

    # --- LSTM (2 layers, hidden=2, batch=1) with input projection fused ---
    Hn = hidden
    xg0 = jnp.dot(x2, wih0_ref[...],
                  preferred_element_type=jnp.float32) + b0_ref[...]     # (Sp, 4*Hn)

    def smm(hvec, w_ref):
        # (1, Hn) @ (Hn, 4*Hn) as broadcast-mul-adds (K is tiny).
        acc = hvec[:, 0:1] * w_ref[0:1, :]
        for r in range(1, Hn):
            acc = acc + hvec[:, r:r + 1] * w_ref[r:r + 1, :]
        return acc

    def cell(gates, c):
        i = jax.nn.sigmoid(gates[:, 0 * Hn:1 * Hn])
        f = jax.nn.sigmoid(gates[:, 1 * Hn:2 * Hn])
        g = jnp.tanh(gates[:, 2 * Hn:3 * Hn])
        o = jax.nn.sigmoid(gates[:, 3 * Hn:4 * Hn])
        c_new = f * c + i * g
        h_new = o * jnp.tanh(c_new)
        return h_new, c_new

    h_l0 = h0_ref[0:1, :]
    c_l0 = c0_ref[0:1, :]
    h_l1 = h0_ref[1:2, :]
    c_l1 = c0_ref[1:2, :]
    for t in range(seq_len):                      # seq_len static and tiny
        g0 = xg0[t:t + 1, :] + smm(h_l0, whh0_ref)
        h_l0, c_l0 = cell(g0, c_l0)
        # TODO(synk): nn.LSTM inter-layer dropout(0.2) is training-mode only; identity here.
        g1 = smm(h_l0, wih1_ref) + smm(h_l1, whh1_ref) + b1l_ref[...]
        h_l1, c_l1 = cell(g1, c_l1)
        o_ref[t:t + 1, :] = h_l1


def encoder_lstm(featp, pp, *, seq_len, n_heads=_N_HEADS, eps=1e-5):
    Sp, D = featp.shape
    d_head = D // n_heads
    hidden = pp["whh0"].shape[0]
    V = pl.BlockSpec(memory_space=pltpu.MemorySpace.VMEM)
    args = (featp, pp["wqkv"], pp["bqkv"], pp["wo"], pp["bo"],
            pp["ln1_g"], pp["ln1_b"],
            pp["ffn_w1"], pp["ffn_b1"], pp["ffn_w2"], pp["ffn_b2"],
            pp["ln2_g"], pp["ln2_b"],
            pp["wih0"], pp["b0"], pp["whh0"], pp["wih1"], pp["whh1"], pp["b1"],
            pp["h0"], pp["c0"])
    return pl.pallas_call(
        functools.partial(_encoder_lstm_kernel, n_heads=n_heads, d_head=d_head,
                          seq_len=seq_len, scale=1.0 / math.sqrt(d_head),
                          eps=eps, hidden=hidden),
        out_shape=jax.ShapeDtypeStruct((seq_len, hidden), jnp.float32),
        in_specs=[V] * len(args),
        out_specs=V,
        compiler_params=pltpu.CompilerParams(vmem_limit_bytes=32 * 1024 * 1024),
    )(*args)


# ----------------------------------------------------------------------------
# Glue: im2col patch extraction (pure reshuffling, stays in JAX/XLA)
# TODO(synk): fusing conv2+conv3 with in-kernel 5x5/stride-2 window extraction
# would remove two small im2col HBM materializations; kept XLA-side for
# lowering robustness.
# ----------------------------------------------------------------------------
def im2col(x_nhwc, k, stride):
    B, H, W, C = x_nhwc.shape
    OH = (H - k) // stride + 1
    OW = (W - k) // stride + 1
    patches = []
    for di in range(k):
        for dj in range(k):
            patches.append(
                x_nhwc[:, di:di + stride * (OH - 1) + 1:stride,
                       dj:dj + stride * (OW - 1) + 1:stride, :])
    p = jnp.stack(patches, axis=3)               # (B, OH, OW, k*k, C)
    return p.reshape(B * OH * OW, k * k * C), (B, OH, OW)


# ----------------------------------------------------------------------------
# Full DARQN forward (takes PRE-PROCESSED params from prepare_params)
# ----------------------------------------------------------------------------
def darqn_forward(x_nchw, pp):
    x = jnp.transpose(x_nchw, (0, 2, 3, 1))      # NCHW -> NHWC

    # conv/bn/relu x3; conv output stays lane-padded to 128 channels (zeros in
    # the pad), the next im2col reads only the first Cin real channels.
    for i, (cin, cout) in enumerate(_CONV_CFG, start=1):
        patches, (B, OH, OW) = im2col(x[..., :cin], 5, 2)
        y = conv_matmul(patches, pp[f"conv{i}_wp"],
                        pp[f"conv{i}_scale"], pp[f"conv{i}_shift"])
        x = y.reshape(B, OH, OW, y.shape[-1])

    # flatten in NCHW order to match torch's x.view(B, -1); then unsqueeze(0)
    B = x.shape[0]
    cout3 = _CONV_CFG[-1][1]
    feat = jnp.transpose(x[..., :cout3], (0, 3, 1, 2)).reshape(B, -1)  # (S, 512)
    S, D = feat.shape                                                  # seq = B, batch = 1
    Sp = _round_up(max(S, 8), 8)
    featp = jnp.pad(feat, ((0, Sp - S), (0, 0)))

    # Transformer encoder layer (post-norm, nhead=2, dropout=identity) + LSTM,
    # all fused into one pallas_call.
    out = encoder_lstm(featp, pp, seq_len=S)
    return out  # == output.squeeze(0) in the torch module: shape (S, 2) == (B, 2)


# ----------------------------------------------------------------------------
# Deterministic parameter init (shapes from DARQN.__init__)
# ----------------------------------------------------------------------------
def init_params(key):
    keys = iter(jax.random.split(key, 48))

    def nrm(shape, s=0.05):
        return (s * jax.random.normal(next(keys), shape)).astype(jnp.float32)

    p = {}
    for idx, (cin, cout) in enumerate(_CONV_CFG, start=1):
        p[f"conv{idx}_w"] = nrm((5, 5, cin, cout))
        p[f"conv{idx}_b"] = nrm((cout,))
        p[f"bn{idx}_g"] = 1.0 + nrm((cout,), 0.1)
        p[f"bn{idx}_b"] = nrm((cout,), 0.1)
        p[f"bn{idx}_m"] = nrm((cout,), 0.1)
        p[f"bn{idx}_v"] = 1.0 + jnp.abs(nrm((cout,), 0.1))

    D = _D_MODEL
    for name in ("wq", "wk", "wv", "wo"):
        p[name] = nrm((D, D))
    for name in ("bq", "bk", "bv", "bo"):
        p[name] = nrm((D,))
    p["ln1_g"] = jnp.ones((D,), jnp.float32)
    p["ln1_b"] = jnp.zeros((D,), jnp.float32)
    p["ln2_g"] = jnp.ones((D,), jnp.float32)
    p["ln2_b"] = jnp.zeros((D,), jnp.float32)
    p["ffn_w1"] = nrm((D, _D_FF))
    p["ffn_b1"] = nrm((_D_FF,))
    p["ffn_w2"] = nrm((_D_FF, D))
    p["ffn_b2"] = nrm((D,))

    Hh = _LSTM_HIDDEN
    p["wih0"] = nrm((D, 4 * Hh))     # transposed weight_ih_l0
    p["whh0"] = nrm((Hh, 4 * Hh))    # transposed weight_hh_l0
    p["bih0"] = nrm((4 * Hh,))
    p["bhh0"] = nrm((4 * Hh,))
    p["wih1"] = nrm((Hh, 4 * Hh))
    p["whh1"] = nrm((Hh, 4 * Hh))
    p["bih1"] = nrm((4 * Hh,))
    p["bhh1"] = nrm((4 * Hh,))
    # h_0 / c_0 from forward(): torch.randn(2, 1, 2) -> deterministic here.
    p["h0"] = jax.random.normal(next(keys), (2, 1, Hh), dtype=jnp.float32).reshape(2, Hh)
    p["c0"] = jax.random.normal(next(keys), (2, 1, Hh), dtype=jnp.float32).reshape(2, Hh)
    return p


# ----------------------------------------------------------------------------
# One-time parameter preprocessing (hoisted out of the traced forward):
# BN fold, weight reshape/lane-pad, QKV concat, bias reshapes, bf16 casts.
# ----------------------------------------------------------------------------
def prepare_params(p, eps_bn=1e-5):
    pp = {}
    for i, (cin, cout) in enumerate(_CONV_CFG, start=1):
        w = p[f"conv{i}_w"].reshape(-1, cout).astype(jnp.float32)   # (25*Cin, Cout)
        Np = _round_up(cout, 128)
        scale = p[f"bn{i}_g"] / jnp.sqrt(p[f"bn{i}_v"] + eps_bn)
        shift = p[f"bn{i}_b"] - p[f"bn{i}_m"] * scale + p[f"conv{i}_b"] * scale
        pp[f"conv{i}_wp"] = jnp.pad(w, ((0, 0), (0, Np - cout)))
        pp[f"conv{i}_scale"] = jnp.pad(scale.astype(jnp.float32), (0, Np - cout)).reshape(1, Np)
        pp[f"conv{i}_shift"] = jnp.pad(shift.astype(jnp.float32), (0, Np - cout)).reshape(1, Np)

    D = _D_MODEL
    pp["wqkv"] = jnp.concatenate([p["wq"], p["wk"], p["wv"]], axis=1).astype(jnp.bfloat16)
    pp["bqkv"] = jnp.concatenate([p["bq"], p["bk"], p["bv"]]).reshape(1, 3 * D).astype(jnp.float32)
    pp["wo"] = p["wo"].astype(jnp.bfloat16)
    pp["bo"] = p["bo"].reshape(1, D).astype(jnp.float32)
    pp["ln1_g"] = p["ln1_g"].reshape(1, D).astype(jnp.float32)
    pp["ln1_b"] = p["ln1_b"].reshape(1, D).astype(jnp.float32)
    pp["ln2_g"] = p["ln2_g"].reshape(1, D).astype(jnp.float32)
    pp["ln2_b"] = p["ln2_b"].reshape(1, D).astype(jnp.float32)
    pp["ffn_w1"] = p["ffn_w1"].astype(jnp.bfloat16)
    pp["ffn_b1"] = p["ffn_b1"].reshape(1, _D_FF).astype(jnp.float32)
    pp["ffn_w2"] = p["ffn_w2"].astype(jnp.bfloat16)
    pp["ffn_b2"] = p["ffn_b2"].reshape(1, D).astype(jnp.float32)

    pp["wih0"] = p["wih0"].astype(jnp.float32)
    pp["whh0"] = p["whh0"].astype(jnp.float32)
    pp["b0"] = (p["bih0"] + p["bhh0"]).reshape(1, -1).astype(jnp.float32)
    pp["wih1"] = p["wih1"].astype(jnp.float32)
    pp["whh1"] = p["whh1"].astype(jnp.float32)
    pp["b1"] = (p["bih1"] + p["bhh1"]).reshape(1, -1).astype(jnp.float32)
    pp["h0"] = p["h0"].astype(jnp.float32)
    pp["c0"] = p["c0"].astype(jnp.float32)
    return pp


if __name__ == "__main__":
    # h = w = 53 so that conv2d_size_out^3(53) = 4 and 4*4*32 = 512 = d_model.
    B, C, Hin, Win = 2, 3, 53, 53
    key = jax.random.PRNGKey(0)
    kx, kp = jax.random.split(key)
    x = jax.random.normal(kx, (B, C, Hin, Win), dtype=jnp.float32)

    raw_params = init_params(kp)
    params = prepare_params(raw_params)   # hoisted one-time preprocessing

    fwd = jax.jit(darqn_forward)
    out = jax.block_until_ready(fwd(x, params))
    assert out.shape == (B, 2), out.shape
    assert bool(jnp.all(jnp.isfinite(out)))
    print("KERNEL_OK")
</pallas_src>

<mosaic_0001>
module attributes {stable_mosaic.version = 11 : i64} {
  func.func @_conv_mm_kernel(%arg0: i32, %arg1: memref<632x75xf32, #tpu.memory_space<vmem>>, %arg2: memref<75x128xf32, #tpu.memory_space<vmem>>, %arg3: memref<1x128xf32, #tpu.memory_space<vmem>>, %arg4: memref<1x128xf32, #tpu.memory_space<vmem>>, %arg5: memref<632x128xf32, #tpu.memory_space<vmem>>) attributes {dimension_semantics = [#tpu.dimension_semantics<parallel>], iteration_bounds = array<i64: 2>, scalar_prefetch = 0 : i64, scratch_operands = 0 : i64, tpu.core_type = #tpu.core_type<tc>, window_params = [{transform_indices = @transform_0, window_bounds = array<i64: 632, 75>}, {pipeline_mode = #tpu.pipeline_mode<synchronous>, transform_indices = @transform_1, window_bounds = array<i64: 75, 128>}, {pipeline_mode = #tpu.pipeline_mode<synchronous>, transform_indices = @transform_2, window_bounds = array<i64: 1, 128>}, {pipeline_mode = #tpu.pipeline_mode<synchronous>, transform_indices = @transform_3, window_bounds = array<i64: 1, 128>}, {transform_indices = @transform_4, window_bounds = array<i64: 632, 128>}]} {
    %c0 = arith.constant 0 : index
    %c0_0 = arith.constant 0 : index
    %0 = vector.load %arg1[%c0, %c0_0] : memref<632x75xf32, #tpu.memory_space<vmem>>, vector<632x75xf32>
    %c0_1 = arith.constant 0 : index
    %c0_2 = arith.constant 0 : index
    %1 = vector.load %arg2[%c0_1, %c0_2] : memref<75x128xf32, #tpu.memory_space<vmem>>, vector<75x128xf32>
    %cst = arith.constant dense<0.000000e+00> : vector<632x128xf32>
    %2 = tpu.matmul %0, %1, %cst {dimension_numbers = #tpu.dot_dimension_numbers<[1], [0], [0], [1], [0, 0, 1, 1], [], []>} : vector<632x75xf32>, vector<75x128xf32>, vector<632x128xf32> -> vector<632x128xf32>
    %c0_3 = arith.constant 0 : index
    %c0_4 = arith.constant 0 : index
    %3 = vector.load %arg3[%c0_3, %c0_4] : memref<1x128xf32, #tpu.memory_space<vmem>>, vector<1x128xf32>
    %4 = vector.broadcast %3 : vector<1x128xf32> to vector<632x128xf32>
    %5 = arith.mulf %2, %4 : vector<632x128xf32>
    %c0_5 = arith.constant 0 : index
    %c0_6 = arith.constant 0 : index
    %6 = vector.load %arg4[%c0_5, %c0_6] : memref<1x128xf32, #tpu.memory_space<vmem>>, vector<1x128xf32>
    %7 = vector.broadcast %6 : vector<1x128xf32> to vector<632x128xf32>
    %8 = arith.addf %5, %7 : vector<632x128xf32>
    %cst_7 = arith.constant 0.000000e+00 : f32
    %9 = vector.broadcast %cst_7 : f32 to vector<632x128xf32>
    %10 = arith.maximumf %8, %9 : vector<632x128xf32>
    %c0_8 = arith.constant 0 : index
    %c0_9 = arith.constant 0 : index
    %11 = vector.load %arg5[%c0_8, %c0_9] : memref<632x128xf32, #tpu.memory_space<vmem>>, vector<632x128xf32>
    tpu.vector_store %arg5[%c0_8, %c0_9], %10 {strides = array<i32>} : memref<632x128xf32, #tpu.memory_space<vmem>>, vector<632x128xf32>,
    return
  }
  func.func @transform_0(%arg0: i32) -> (i32, i32) {
    %c0_i32 = arith.constant 0 : i32
    %c0_i32_0 = arith.constant 0 : i32
    return %arg0, %c0_i32 : i32, i32
  }
  func.func @transform_1(%arg0: i32) -> (i32, i32) {
    %c0_i32 = arith.constant 0 : i32
    %c0_i32_0 = arith.constant 0 : i32
    %c0_i32_1 = arith.constant 0 : i32
    return %c0_i32, %c0_i32_0 : i32, i32
  }
  func.func @transform_2(%arg0: i32) -> (i32, i32) {
    %c0_i32 = arith.constant 0 : i32
    %c0_i32_0 = arith.constant 0 : i32
    %c0_i32_1 = arith.constant 0 : i32
    return %c0_i32, %c0_i32_0 : i32, i32
  }
  func.func @transform_3(%arg0: i32) -> (i32, i32) {
    %c0_i32 = arith.constant 0 : i32
    %c0_i32_0 = arith.constant 0 : i32
    %c0_i32_1 = arith.constant 0 : i32
    return %c0_i32, %c0_i32_0 : i32, i32
  }
  func.func @transform_4(%arg0: i32) -> (i32, i32) {
    %c0_i32 = arith.constant 0 : i32
    %c0_i32_0 = arith.constant 0 : i32
    return %arg0, %c0_i32 : i32, i32
  }
}

module attributes {stable_mosaic.version = 11 : i64} {
  func.func @_conv_mm_kernel(%arg0: i32, %arg1: memref<242x400xf32, #tpu.memory_space<vmem>>, %arg2: memref<400x128xf32, #tpu.memory_space<vmem>>, %arg3: memref<1x128xf32, #tpu.memory_space<vmem>>, %arg4: memref<1x128xf32, #tpu.memory_space<vmem>>, %arg5: memref<242x128xf32, #tpu.memory_space<vmem>>) attributes {dimension_semantics = [#tpu.dimension_semantics<parallel>], iteration_bounds = array<i64: 1>, scalar_prefetch = 0 : i64, scratch_operands = 0 : i64, tpu.core_type = #tpu.core_type<tc>, window_params = [{transform_indices = @transform_0, window_bounds = array<i64: 242, 400>}, {pipeline_mode = #tpu.pipeline_mode<synchronous>, transform_indices = @transform_1, window_bounds = array<i64: 400, 128>}, {pipeline_mode = #tpu.pipeline_mode<synchronous>, transform_indices = @transform_2, window_bounds = array<i64: 1, 128>}, {pipeline_mode = #tpu.pipeline_mode<synchronous>, transform_indices = @transform_3, window_bounds = array<i64: 1, 128>}, {transform_indices = @transform_4, window_bounds = array<i64: 242, 128>}]} {
    %c0 = arith.constant 0 : index
    %c0_0 = arith.constant 0 : index
    %0 = vector.load %arg1[%c0, %c0_0] : memref<242x400xf32, #tpu.memory_space<vmem>>, vector<242x400xf32>
    %c0_1 = arith.constant 0 : index
    %c0_2 = arith.constant 0 : index
    %1 = vector.load %arg2[%c0_1, %c0_2] : memref<400x128xf32, #tpu.memory_space<vmem>>, vector<400x128xf32>
    %cst = arith.constant dense<0.000000e+00> : vector<242x128xf32>
    %2 = tpu.matmul %0, %1, %cst {dimension_numbers = #tpu.dot_dimension_numbers<[1], [0], [0], [1], [0, 0, 1, 1], [], []>} : vector<242x400xf32>, vector<400x128xf32>, vector<242x128xf32> -> vector<242x128xf32>
    %c0_3 = arith.constant 0 : index
    %c0_4 = arith.constant 0 : index
    %3 = vector.load %arg3[%c0_3, %c0_4] : memref<1x128xf32, #tpu.memory_space<vmem>>, vector<1x128xf32>
    %4 = vector.broadcast %3 : vector<1x128xf32> to vector<242x128xf32>
    %5 = arith.mulf %2, %4 : vector<242x128xf32>
    %c0_5 = arith.constant 0 : index
    %c0_6 = arith.constant 0 : index
    %6 = vector.load %arg4[%c0_5, %c0_6] : memref<1x128xf32, #tpu.memory_space<vmem>>, vector<1x128xf32>
    %7 = vector.broadcast %6 : vector<1x128xf32> to vector<242x128xf32>
    %8 = arith.addf %5, %7 : vector<242x128xf32>
    %cst_7 = arith.constant 0.000000e+00 : f32
    %9 = vector.broadcast %cst_7 : f32 to vector<242x128xf32>
    %10 = arith.maximumf %8, %9 : vector<242x128xf32>
    %c0_8 = arith.constant 0 : index
    %c0_9 = arith.constant 0 : index
    %11 = vector.load %arg5[%c0_8, %c0_9] : memref<242x128xf32, #tpu.memory_space<vmem>>, vector<242x128xf32>
    tpu.vector_store %arg5[%c0_8, %c0_9], %10 {strides = array<i32>} : memref<242x128xf32, #tpu.memory_space<vmem>>, vector<242x128xf32>,
    return
  }
  func.func @transform_0(%arg0: i32) -> (i32, i32) {
    %c0_i32 = arith.constant 0 : i32
    %c0_i32_0 = arith.constant 0 : i32
    return %arg0, %c0_i32 : i32, i32
  }
  func.func @transform_1(%arg0: i32) -> (i32, i32) {
    %c0_i32 = arith.constant 0 : i32
    %c0_i32_0 = arith.constant 0 : i32
    %c0_i32_1 = arith.constant 0 : i32
    return %c0_i32, %c0_i32_0 : i32, i32
  }
  func.func @transform_2(%arg0: i32) -> (i32, i32) {
    %c0_i32 = arith.constant 0 : i32
    %c0_i32_0 = arith.constant 0 : i32
    %c0_i32_1 = arith.constant 0 : i32
    return %c0_i32, %c0_i32_0 : i32, i32
  }
  func.func @transform_3(%arg0: i32) -> (i32, i32) {
    %c0_i32 = arith.constant 0 : i32
    %c0_i32_0 = arith.constant 0 : i32
    %c0_i32_1 = arith.constant 0 : i32
    return %c0_i32, %c0_i32_0 : i32, i32
  }
  func.func @transform_4(%arg0: i32) -> (i32, i32) {
    %c0_i32 = arith.constant 0 : i32
    %c0_i32_0 = arith.constant 0 : i32
    return %arg0, %c0_i32 : i32, i32
  }
}

module attributes {stable_mosaic.version = 11 : i64} {
  func.func @_conv_mm_kernel(%arg0: i32, %arg1: memref<32x800xf32, #tpu.memory_space<vmem>>, %arg2: memref<800x128xf32, #tpu.memory_space<vmem>>, %arg3: memref<1x128xf32, #tpu.memory_space<vmem>>, %arg4: memref<1x128xf32, #tpu.memory_space<vmem>>, %arg5: memref<32x128xf32, #tpu.memory_space<vmem>>) attributes {dimension_semantics = [#tpu.dimension_semantics<parallel>], iteration_bounds = array<i64: 1>, scalar_prefetch = 0 : i64, scratch_operands = 0 : i64, tpu.core_type = #tpu.core_type<tc>, window_params = [{transform_indices = @transform_0, window_bounds = array<i64: 32, 800>}, {pipeline_mode = #tpu.pipeline_mode<synchronous>, transform_indices = @transform_1, window_bounds = array<i64: 800, 128>}, {pipeline_mode = #tpu.pipeline_mode<synchronous>, transform_indices = @transform_2, window_bounds = array<i64: 1, 128>}, {pipeline_mode = #tpu.pipeline_mode<synchronous>, transform_indices = @transform_3, window_bounds = array<i64: 1, 128>}, {transform_indices = @transform_4, window_bounds = array<i64: 32, 128>}]} {
    %c0 = arith.constant 0 : index
    %c0_0 = arith.constant 0 : index
    %0 = vector.load %arg1[%c0, %c0_0] : memref<32x800xf32, #tpu.memory_space<vmem>>, vector<32x800xf32>
    %c0_1 = arith.constant 0 : index
    %c0_2 = arith.constant 0 : index
    %1 = vector.load %arg2[%c0_1, %c0_2] : memref<800x128xf32, #tpu.memory_space<vmem>>, vector<800x128xf32>
    %cst = arith.constant dense<0.000000e+00> : vector<32x128xf32>
    %2 = tpu.matmul %0, %1, %cst {dimension_numbers = #tpu.dot_dimension_numbers<[1], [0], [0], [1], [0, 0, 1, 1], [], []>} : vector<32x800xf32>, vector<800x128xf32>, vector<32x128xf32> -> vector<32x128xf32>
    %c0_3 = arith.constant 0 : index
    %c0_4 = arith.constant 0 : index
    %3 = vector.load %arg3[%c0_3, %c0_4] : memref<1x128xf32, #tpu.memory_space<vmem>>, vector<1x128xf32>
    %4 = vector.broadcast %3 : vector<1x128xf32> to vector<32x128xf32>
    %5 = arith.mulf %2, %4 : vector<32x128xf32>
    %c0_5 = arith.constant 0 : index
    %c0_6 = arith.constant 0 : index
    %6 = vector.load %arg4[%c0_5, %c0_6] : memref<1x128xf32, #tpu.memory_space<vmem>>, vector<1x128xf32>
    %7 = vector.broadcast %6 : vector<1x128xf32> to vector<32x128xf32>
    %8 = arith.addf %5, %7 : vector<32x128xf32>
    %cst_7 = arith.constant 0.000000e+00 : f32
    %9 = vector.broadcast %cst_7 : f32 to vector<32x128xf32>
    %10 = arith.maximumf %8, %9 : vector<32x128xf32>
    %c0_8 = arith.constant 0 : index
    %c0_9 = arith.constant 0 : index
    %11 = vector.load %arg5[%c0_8, %c0_9] : memref<32x128xf32, #tpu.memory_space<vmem>>, vector<32x128xf32>
    tpu.vector_store %arg5[%c0_8, %c0_9], %10 {strides = array<i32>} : memref<32x128xf32, #tpu.memory_space<vmem>>, vector<32x128xf32>,
    return
  }
  func.func @transform_0(%arg0: i32) -> (i32, i32) {
    %c0_i32 = arith.constant 0 : i32
    %c0_i32_0 = arith.constant 0 : i32
    return %arg0, %c0_i32 : i32, i32
  }
  func.func @transform_1(%arg0: i32) -> (i32, i32) {
    %c0_i32 = arith.constant 0 : i32
    %c0_i32_0 = arith.constant 0 : i32
    %c0_i32_1 = arith.constant 0 : i32
    return %c0_i32, %c0_i32_0 : i32, i32
  }
  func.func @transform_2(%arg0: i32) -> (i32, i32) {
    %c0_i32 = arith.constant 0 : i32
    %c0_i32_0 = arith.constant 0 : i32
    %c0_i32_1 = arith.constant 0 : i32
    return %c0_i32, %c0_i32_0 : i32, i32
  }
  func.func @transform_3(%arg0: i32) -> (i32, i32) {
    %c0_i32 = arith.constant 0 : i32
    %c0_i32_0 = arith.constant 0 : i32
    %c0_i32_1 = arith.constant 0 : i32
    return %c0_i32, %c0_i32_0 : i32, i32
  }
  func.func @transform_4(%arg0: i32) -> (i32, i32) {
    %c0_i32 = arith.constant 0 : i32
    %c0_i32_0 = arith.constant 0 : i32
    return %arg0, %c0_i32 : i32, i32
  }
}

module attributes {stable_mosaic.version = 11 : i64} {
  func.func @_encoder_lstm_kernel(%arg0: memref<8x512xf32, #tpu.memory_space<vmem>>, %arg1: memref<512x1536xbf16, #tpu.memory_space<vmem>>, %arg2: memref<1x1536xf32, #tpu.memory_space<vmem>>, %arg3: memref<512x512xbf16, #tpu.memory_space<vmem>>, %arg4: memref<1x512xf32, #tpu.memory_space<vmem>>, %arg5: memref<1x512xf32, #tpu.memory_space<vmem>>, %arg6: memref<1x512xf32, #tpu.memory_space<vmem>>, %arg7: memref<512x2048xbf16, #tpu.memory_space<vmem>>, %arg8: memref<1x2048xf32, #tpu.memory_space<vmem>>, %arg9: memref<2048x512xbf16, #tpu.memory_space<vmem>>, %arg10: memref<1x512xf32, #tpu.memory_space<vmem>>, %arg11: memref<1x512xf32, #tpu.memory_space<vmem>>, %arg12: memref<1x512xf32, #tpu.memory_space<vmem>>, %arg13: memref<512x8xf32, #tpu.memory_space<vmem>>, %arg14: memref<1x8xf32, #tpu.memory_space<vmem>>, %arg15: memref<2x8xf32, #tpu.memory_space<vmem>>, %arg16: memref<2x8xf32, #tpu.memory_space<vmem>>, %arg17: memref<2x8xf32, #tpu.memory_space<vmem>>, %arg18: memref<1x8xf32, #tpu.memory_space<vmem>>, %arg19: memref<2x2xf32, #tpu.memory_space<vmem>>, %arg20: memref<2x2xf32, #tpu.memory_space<vmem>>, %arg21: memref<2x2xf32, #tpu.memory_space<vmem>>) attributes {dimension_semantics = [], scalar_prefetch = 0 : i64, scratch_operands = 0 : i64, tpu.core_type = #tpu.core_type<tc>} {
    %c0 = arith.constant 0 : index
    %c0_0 = arith.constant 0 : index
    %0 = vector.load %arg0[%c0, %c0_0] : memref<8x512xf32, #tpu.memory_space<vmem>>, vector<8x512xf32>
    %1 = arith.truncf %0 : vector<8x512xf32> to vector<8x512xbf16>
    %c0_1 = arith.constant 0 : index
    %c0_2 = arith.constant 0 : index
    %2 = vector.load %arg1[%c0_1, %c0_2] : memref<512x1536xbf16, #tpu.memory_space<vmem>>, vector<512x1536xbf16>
    %cst = arith.constant dense<0.000000e+00> : vector<8x1536xf32>
    %3 = tpu.matmul %1, %2, %cst {dimension_numbers = #tpu.dot_dimension_numbers<[1], [0], [0], [1], [0, 0, 1, 1], [], []>} : vector<8x512xbf16>, vector<512x1536xbf16>, vector<8x1536xf32> -> vector<8x1536xf32>
    %c0_3 = arith.constant 0 : index
    %c0_4 = arith.constant 0 : index
    %4 = vector.load %arg2[%c0_3, %c0_4] : memref<1x1536xf32, #tpu.memory_space<vmem>>, vector<1x1536xf32>
    %5 = vector.broadcast %4 : vector<1x1536xf32> to vector<8x1536xf32>
    %6 = arith.addf %3, %5 : vector<8x1536xf32>
    %7 = tpu.iota {dimensions = array<i32: 1>} : vector<8x8xi32>
    %c2_i32 = arith.constant 2 : i32
    %8 = vector.broadcast %c2_i32 : i32 to vector<8x8xi32>
    %9 = arith.cmpi slt, %7, %8 : vector<8x8xi32>
    %cst_5 = arith.constant 0.000000e+00 : f32
    %cst_6 = arith.constant -1.000000e+30 : f32
    %10 = vector.broadcast %cst_5 : f32 to vector<8x8xf32>
    %11 = vector.broadcast %cst_6 : f32 to vector<8x8xf32>
    %12 = arith.select %9, %10, %11 : vector<8x8xi1>, vector<8x8xf32>
    %13 = vector.extract_strided_slice %6 {offsets = [0, 0], sizes = [8, 256], strides = [1, 1]} : vector<8x1536xf32> to vector<8x256xf32>
    %14 = vector.extract_strided_slice %6 {offsets = [0, 512], sizes = [8, 256], strides = [1, 1]} : vector<8x1536xf32> to vector<8x256xf32>
    %15 = vector.extract_strided_slice %6 {offsets = [0, 1024], sizes = [8, 256], strides = [1, 1]} : vector<8x1536xf32> to vector<8x256xf32>
    %cst_7 = arith.constant dense<0.000000e+00> : vector<8x8xf32>
    %16 = tpu.matmul %13, %14, %cst_7 {dimension_numbers = #tpu.dot_dimension_numbers<[1], [1], [0], [0], [0, 0, 1, 0], [], []>} : vector<8x256xf32>, vector<8x256xf32>, vector<8x8xf32> -> vector<8x8xf32>
    %cst_8 = arith.constant 6.250000e-02 : f32
    %17 = vector.broadcast %cst_8 : f32 to vector<8x8xf32>
    %18 = arith.mulf %16, %17 : vector<8x8xf32>
    %19 = arith.addf %18, %12 : vector<8x8xf32>
    %cst_9 = arith.constant dense<0xFF800000> : vector<8xf32>
    %20 = vector.multi_reduction <maximumf>, %19, %cst_9 [1] : vector<8x8xf32> to vector<8xf32>
    %21 = vector.shape_cast %20 : vector<8xf32> to vector<8x1xf32>
    %22 = vector.broadcast %21 : vector<8x1xf32> to vector<8x8xf32>
    %23 = arith.subf %19, %22 : vector<8x8xf32>
    %24 = math.exp %23 : vector<8x8xf32>
    %cst_10 = arith.constant dense<0.000000e+00> : vector<8xf32>
    %25 = vector.multi_reduction <add>, %24, %cst_10 [1] : vector<8x8xf32> to vector<8xf32>
    %26 = vector.shape_cast %25 : vector<8xf32> to vector<8x1xf32>
    %27 = tpu.reciprocal %26 {approx = true} : vector<8x1xf32> -> vector<8x1xf32>
    %28 = vector.broadcast %27 : vector<8x1xf32> to vector<8x8xf32>
    %29 = arith.mulf %24, %28 : vector<8x8xf32>
    %cst_11 = arith.constant dense<0.000000e+00> : vector<8x256xf32>
    %30 = tpu.matmul %29, %15, %cst_11 {dimension_numbers = #tpu.dot_dimension_numbers<[1], [0], [0], [1], [0, 0, 1, 1], [], []>} : vector<8x8xf32>, vector<8x256xf32>, vector<8x256xf32> -> vector<8x256xf32>
    %31 = vector.extract_strided_slice %6 {offsets = [0, 256], sizes = [8, 256], strides = [1, 1]} : vector<8x1536xf32> to vector<8x256xf32>
    %32 = vector.extract_strided_slice %6 {offsets = [0, 768], sizes = [8, 256], strides = [1, 1]} : vector<8x1536xf32> to vector<8x256xf32>
    %33 = vector.extract_strided_slice %6 {offsets = [0, 1280], sizes = [8, 256], strides = [1, 1]} : vector<8x1536xf32> to vector<8x256xf32>
    %cst_12 = arith.constant dense<0.000000e+00> : vector<8x8xf32>
    %34 = tpu.matmul %31, %32, %cst_12 {dimension_numbers = #tpu.dot_dimension_numbers<[1], [1], [0], [0], [0, 0, 1, 0], [], []>} : vector<8x256xf32>, vector<8x256xf32>, vector<8x8xf32> -> vector<8x8xf32>
    %cst_13 = arith.constant 6.250000e-02 : f32
    %35 = vector.broadcast %cst_13 : f32 to vector<8x8xf32>
    %36 = arith.mulf %34, %35 : vector<8x8xf32>
    %37 = arith.addf %36, %12 : vector<8x8xf32>
    %cst_14 = arith.constant dense<0xFF800000> : vector<8xf32>
    %38 = vector.multi_reduction <maximumf>, %37, %cst_14 [1] : vector<8x8xf32> to vector<8xf32>
    %39 = vector.shape_cast %38 : vector<8xf32> to vector<8x1xf32>
    %40 = vector.broadcast %39 : vector<8x1xf32> to vector<8x8xf32>
    %41 = arith.subf %37, %40 : vector<8x8xf32>
    %42 = math.exp %41 : vector<8x8xf32>
    %cst_15 = arith.constant dense<0.000000e+00> : vector<8xf32>
    %43 = vector.multi_reduction <add>, %42, %cst_15 [1] : vector<8x8xf32> to vector<8xf32>
    %44 = vector.shape_cast %43 : vector<8xf32> to vector<8x1xf32>
    %45 = tpu.reciprocal %44 {approx = true} : vector<8x1xf32> -> vector<8x1xf32>
    %46 = vector.broadcast %45 : vector<8x1xf32> to vector<8x8xf32>
    %47 = arith.mulf %42, %46 : vector<8x8xf32>
    %cst_16 = arith.constant dense<0.000000e+00> : vector<8x256xf32>
    %48 = tpu.matmul %47, %33, %cst_16 {dimension_numbers = #tpu.dot_dimension_numbers<[1], [0], [0], [1], [0, 0, 1, 1], [], []>} : vector<8x8xf32>, vector<8x256xf32>, vector<8x256xf32> -> vector<8x256xf32>
    %49 = tpu.concatenate %30, %48 in 1 : vector<8x256xf32>, vector<8x256xf32> -> vector<8x512xf32>
    %50 = arith.truncf %49 : vector<8x512xf32> to vector<8x512xbf16>
    %c0_17 = arith.constant 0 : index
    %c0_18 = arith.constant 0 : index
    %51 = vector.load %arg3[%c0_17, %c0_18] : memref<512x512xbf16, #tpu.memory_space<vmem>>, vector<512x512xbf16>
    %cst_19 = arith.constant dense<0.000000e+00> : vector<8x512xf32>
    %52 = tpu.matmul %50, %51, %cst_19 {dimension_numbers = #tpu.dot_dimension_numbers<[1], [0], [0], [1], [0, 0, 1, 1], [], []>} : vector<8x512xbf16>, vector<512x512xbf16>, vector<8x512xf32> -> vector<8x512xf32>
    %c0_20 = arith.constant 0 : index
    %c0_21 = arith.constant 0 : index
    %53 = vector.load %arg4[%c0_20, %c0_21] : memref<1x512xf32, #tpu.memory_space<vmem>>, vector<1x512xf32>
    %54 = vector.broadcast %53 : vector<1x512xf32> to vector<8x512xf32>
    %55 = arith.addf %52, %54 : vector<8x512xf32>
    %56 = arith.addf %55, %0 : vector<8x512xf32>
    %cst_22 = arith.constant dense<0.000000e+00> : vector<8xf32>
    %57 = vector.multi_reduction <add>, %56, %cst_22 [1] : vector<8x512xf32> to vector<8xf32>
    %58 = vector.shape_cast %57 : vector<8xf32> to vector<8x1xf32>
    %cst_23 = arith.constant 5.120000e+02 : f32
    %59 = vector.broadcast %cst_23 : f32 to vector<8x1xf32>
    %60 = arith.divf %58, %59 : vector<8x1xf32>
    %61 = vector.broadcast %60 : vector<8x1xf32> to vector<8x512xf32>
    %62 = arith.subf %56, %61 : vector<8x512xf32>
    %63 = arith.mulf %62, %62 : vector<8x512xf32>
    %cst_24 = arith.constant dense<0.000000e+00> : vector<8xf32>
    %64 = vector.multi_reduction <add>, %63, %cst_24 [1] : vector<8x512xf32> to vector<8xf32>
    %65 = vector.shape_cast %64 : vector<8xf32> to vector<8x1xf32>
    %cst_25 = arith.constant 5.120000e+02 : f32
    %66 = vector.broadcast %cst_25 : f32 to vector<8x1xf32>
    %67 = arith.divf %65, %66 : vector<8x1xf32>
    %68 = vector.broadcast %60 : vector<8x1xf32> to vector<8x512xf32>
    %69 = arith.subf %56, %68 : vector<8x512xf32>
    %cst_26 = arith.constant 9.99999974E-6 : f32
    %70 = vector.broadcast %cst_26 : f32 to vector<8x1xf32>
    %71 = arith.addf %67, %70 : vector<8x1xf32>
    %72 = math.rsqrt %71 : vector<8x1xf32>
    %73 = vector.broadcast %72 : vector<8x1xf32> to vector<8x512xf32>
    %74 = arith.mulf %69, %73 : vector<8x512xf32>
    %c0_27 = arith.constant 0 : index
    %c0_28 = arith.constant 0 : index
    %75 = vector.load %arg5[%c0_27, %c0_28] : memref<1x512xf32, #tpu.memory_space<vmem>>, vector<1x512xf32>
    %76 = vector.broadcast %75 : vector<1x512xf32> to vector<8x512xf32>
    %77 = arith.mulf %74, %76 : vector<8x512xf32>
    %c0_29 = arith.constant 0 : index
    %c0_30 = arith.constant 0 : index
    %78 = vector.load %arg6[%c0_29, %c0_30] : memref<1x512xf32, #tpu.memory_space<vmem>>, vector<1x512xf32>
    %79 = vector.broadcast %78 : vector<1x512xf32> to vector<8x512xf32>
    %80 = arith.addf %77, %79 : vector<8x512xf32>
    %81 = arith.truncf %80 : vector<8x512xf32> to vector<8x512xbf16>
    %c0_31 = arith.constant 0 : index
    %c0_32 = arith.constant 0 : index
    %82 = vector.load %arg7[%c0_31, %c0_32] : memref<512x2048xbf16, #tpu.memory_space<vmem>>, vector<512x2048xbf16>
    %cst_33 = arith.constant dense<0.000000e+00> : vector<8x2048xf32>
    %83 = tpu.matmul %81, %82, %cst_33 {dimension_numbers = #tpu.dot_dimension_numbers<[1], [0], [0], [1], [0, 0, 1, 1], [], []>} : vector<8x512xbf16>, vector<512x2048xbf16>, vector<8x2048xf32> -> vector<8x2048xf32>
    %c0_34 = arith.constant 0 : index
    %c0_35 = arith.constant 0 : index
    %84 = vector.load %arg8[%c0_34, %c0_35] : memref<1x2048xf32, #tpu.memory_space<vmem>>, vector<1x2048xf32>
    %85 = vector.broadcast %84 : vector<1x2048xf32> to vector<8x2048xf32>
    %86 = arith.addf %83, %85 : vector<8x2048xf32>
    %cst_36 = arith.constant 0.000000e+00 : f32
    %87 = vector.broadcast %cst_36 : f32 to vector<8x2048xf32>
    %88 = arith.maximumf %86, %87 : vector<8x2048xf32>
    %89 = arith.truncf %88 : vector<8x2048xf32> to vector<8x2048xbf16>
    %c0_37 = arith.constant 0 : index
    %c0_38 = arith.constant 0 : index
    %90 = vector.load %arg9[%c0_37, %c0_38] : memref<2048x512xbf16, #tpu.memory_space<vmem>>, vector<2048x512xbf16>
    %cst_39 = arith.constant dense<0.000000e+00> : vector<8x512xf32>
    %91 = tpu.matmul %89, %90, %cst_39 {dimension_numbers = #tpu.dot_dimension_numbers<[1], [0], [0], [1], [0, 0, 1, 1], [], []>} : vector<8x2048xbf16>, vector<2048x512xbf16>, vector<8x512xf32> -> vector<8x512xf32>
    %c0_40 = arith.constant 0 : index
    %c0_41 = arith.constant 0 : index
    %92 = vector.load %arg10[%c0_40, %c0_41] : memref<1x512xf32, #tpu.memory_space<vmem>>, vector<1x512xf32>
    %93 = vector.broadcast %92 : vector<1x512xf32> to vector<8x512xf32>
    %94 = arith.addf %91, %93 : vector<8x512xf32>
    %95 = arith.addf %94, %80 : vector<8x512xf32>
    %cst_42 = arith.constant dense<0.000000e+00> : vector<8xf32>
    %96 = vector.multi_reduction <add>, %95, %cst_42 [1] : vector<8x512xf32> to vector<8xf32>
    %97 = vector.shape_cast %96 : vector<8xf32> to vector<8x1xf32>
    %cst_43 = arith.constant 5.120000e+02 : f32
    %98 = vector.broadcast %cst_43 : f32 to vector<8x1xf32>
    %99 = arith.divf %97, %98 : vector<8x1xf32>
    %100 = vector.broadcast %99 : vector<8x1xf32> to vector<8x512xf32>
    %101 = arith.subf %95, %100 : vector<8x512xf32>
    %102 = arith.mulf %101, %101 : vector<8x512xf32>
    %cst_44 = arith.constant dense<0.000000e+00> : vector<8xf32>
    %103 = vector.multi_reduction <add>, %102, %cst_44 [1] : vector<8x512xf32> to vector<8xf32>
    %104 = vector.shape_cast %103 : vector<8xf32> to vector<8x1xf32>
    %cst_45 = arith.constant 5.120000e+02 : f32
    %105 = vector.broadcast %cst_45 : f32 to vector<8x1xf32>
    %106 = arith.divf %104, %105 : vector<8x1xf32>
    %107 = vector.broadcast %99 : vector<8x1xf32> to vector<8x512xf32>
    %108 = arith.subf %95, %107 : vector<8x512xf32>
    %cst_46 = arith.constant 9.99999974E-6 : f32
    %109 = vector.broadcast %cst_46 : f32 to vector<8x1xf32>
    %110 = arith.addf %106, %109 : vector<8x1xf32>
    %111 = math.rsqrt %110 : vector<8x1xf32>
    %112 = vector.broadcast %111 : vector<8x1xf32> to vector<8x512xf32>
    %113 = arith.mulf %108, %112 : vector<8x512xf32>
    %c0_47 = arith.constant 0 : index
    %c0_48 = arith.constant 0 : index
    %114 = vector.load %arg11[%c0_47, %c0_48] : memref<1x512xf32, #tpu.memory_space<vmem>>, vector<1x512xf32>
    %115 = vector.broadcast %114 : vector<1x512xf32> to vector<8x512xf32>
    %116 = arith.mulf %113, %115 : vector<8x512xf32>
    %c0_49 = arith.constant 0 : index
    %c0_50 = arith.constant 0 : index
    %117 = vector.load %arg12[%c0_49, %c0_50] : memref<1x512xf32, #tpu.memory_space<vmem>>, vector<1x512xf32>
    %118 = vector.broadcast %117 : vector<1x512xf32> to vector<8x512xf32>
    %119 = arith.addf %116, %118 : vector<8x512xf32>
    %c0_51 = arith.constant 0 : index
    %c0_52 = arith.constant 0 : index
    %120 = vector.load %arg13[%c0_51, %c0_52] : memref<512x8xf32, #tpu.memory_space<vmem>>, vector<512x8xf32>
    %cst_53 = arith.constant dense<0.000000e+00> : vector<8x8xf32>
    %121 = tpu.matmul %119, %120, %cst_53 {dimension_numbers = #tpu.dot_dimension_numbers<[1], [0], [0], [1], [0, 0, 1, 1], [], []>} : vector<8x512xf32>, vector<512x8xf32>, vector<8x8xf32> -> vector<8x8xf32>
    %c0_54 = arith.constant 0 : index
    %c0_55 = arith.constant 0 : index
    %122 = vector.load %arg14[%c0_54, %c0_55] : memref<1x8xf32, #tpu.memory_space<vmem>>, vector<1x8xf32>
    %123 = vector.broadcast %122 : vector<1x8xf32> to vector<8x8xf32>
    %124 = arith.addf %121, %123 : vector<8x8xf32>
    %c0_56 = arith.constant 0 : index
    %c0_57 = arith.constant 0 : index
    %125 = vector.load %arg19[%c0_56, %c0_57] : memref<2x2xf32, #tpu.memory_space<vmem>>, vector<1x2xf32>
    %c0_58 = arith.constant 0 : index
    %c0_59 = arith.constant 0 : index
    %126 = vector.load %arg20[%c0_58, %c0_59] : memref<2x2xf32, #tpu.memory_space<vmem>>, vector<1x2xf32>
    %c1 = arith.constant 1 : index
    %c0_60 = arith.constant 0 : index
    %127 = vector.load %arg19[%c1, %c0_60] : memref<2x2xf32, #tpu.memory_space<vmem>>, vector<1x2xf32>
    %c1_61 = arith.constant 1 : index
    %c0_62 = arith.constant 0 : index
    %128 = vector.load %arg20[%c1_61, %c0_62] : memref<2x2xf32, #tpu.memory_space<vmem>>, vector<1x2xf32>
    %129 = vector.extract_strided_slice %124 {offsets = [0, 0], sizes = [1, 8], strides = [1, 1]} : vector<8x8xf32> to vector<1x8xf32>
    %130 = vector.extract_strided_slice %125 {offsets = [0, 0], sizes = [1, 1], strides = [1, 1]} : vector<1x2xf32> to vector<1x1xf32>
    %c0_63 = arith.constant 0 : index
    %c0_64 = arith.constant 0 : index
    %131 = vector.load %arg15[%c0_63, %c0_64] : memref<2x8xf32, #tpu.memory_space<vmem>>, vector<1x8xf32>
    %132 = vector.broadcast %130 : vector<1x1xf32> to vector<1x8xf32>
    %133 = arith.mulf %132, %131 : vector<1x8xf32>
    %134 = vector.extract_strided_slice %125 {offsets = [0, 1], sizes = [1, 1], strides = [1, 1]} : vector<1x2xf32> to vector<1x1xf32>
    %c1_65 = arith.constant 1 : index
    %c0_66 = arith.constant 0 : index
    %135 = vector.load %arg15[%c1_65, %c0_66] : memref<2x8xf32, #tpu.memory_space<vmem>>, vector<1x8xf32>
    %136 = vector.broadcast %134 : vector<1x1xf32> to vector<1x8xf32>
    %137 = arith.mulf %136, %135 : vector<1x8xf32>
    %138 = arith.addf %133, %137 : vector<1x8xf32>
    %139 = arith.addf %129, %138 : vector<1x8xf32>
    %140 = vector.extract_strided_slice %139 {offsets = [0, 0], sizes = [1, 2], strides = [1, 1]} : vector<1x8xf32> to vector<1x2xf32>
    %141 = arith.negf %140 : vector<1x2xf32>
    %142 = math.exp %141 : vector<1x2xf32>
    %cst_67 = arith.constant 1.000000e+00 : f32
    %143 = vector.broadcast %cst_67 : f32 to vector<1x2xf32>
    %144 = arith.addf %143, %142 : vector<1x2xf32>
    %145 = arith.divf %143, %144 : vector<1x2xf32>
    %146 = vector.extract_strided_slice %139 {offsets = [0, 2], sizes = [1, 2], strides = [1, 1]} : vector<1x8xf32> to vector<1x2xf32>
    %147 = arith.negf %146 : vector<1x2xf32>
    %148 = math.exp %147 : vector<1x2xf32>
    %cst_68 = arith.constant 1.000000e+00 : f32
    %149 = vector.broadcast %cst_68 : f32 to vector<1x2xf32>
    %150 = arith.addf %149, %148 : vector<1x2xf32>
    %151 = arith.divf %149, %150 : vector<1x2xf32>
    %152 = vector.extract_strided_slice %139 {offsets = [0, 4], sizes = [1, 2], strides = [1, 1]} : vector<1x8xf32> to vector<1x2xf32>
    %153 = math.tanh %152 : vector<1x2xf32>
    %154 = vector.extract_strided_slice %139 {offsets = [0, 6], sizes = [1, 2], strides = [1, 1]} : vector<1x8xf32> to vector<1x2xf32>
    %155 = arith.negf %154 : vector<1x2xf32>
    %156 = math.exp %155 : vector<1x2xf32>
    %cst_69 = arith.constant 1.000000e+00 : f32
    %157 = vector.broadcast %cst_69 : f32 to vector<1x2xf32>
    %158 = arith.addf %157, %156 : vector<1x2xf32>
    %159 = arith.divf %157, %158 : vector<1x2xf32>
    %160 = arith.mulf %151, %126 : vector<1x2xf32>
    %161 = arith.mulf %145, %153 : vector<1x2xf32>
    %162 = arith.addf %160, %161 : vector<1x2xf32>
    %163 = math.tanh %162 : vector<1x2xf32>
    %164 = arith.mulf %159, %163 : vector<1x2xf32>
    %165 = vector.extract_strided_slice %164 {offsets = [0, 0], sizes = [1, 1], strides = [1, 1]} : vector<1x2xf32> to vector<1x1xf32>
    %c0_70 = arith.constant 0 : index
    %c0_71 = arith.constant 0 : index
    %166 = vector.load %arg16[%c0_70, %c0_71] : memref<2x8xf32, #tpu.memory_space<vmem>>, vector<1x8xf32>
    %167 = vector.broadcast %165 : vector<1x1xf32> to vector<1x8xf32>
    %168 = arith.mulf %167, %166 : vector<1x8xf32>
    %169 = vector.extract_strided_slice %164 {offsets = [0, 1], sizes = [1, 1], strides = [1, 1]} : vector<1x2xf32> to vector<1x1xf32>
    %c1_72 = arith.constant 1 : index
    %c0_73 = arith.constant 0 : index
    %170 = vector.load %arg16[%c1_72, %c0_73] : memref<2x8xf32, #tpu.memory_space<vmem>>, vector<1x8xf32>
    %171 = vector.broadcast %169 : vector<1x1xf32> to vector<1x8xf32>
    %172 = arith.mulf %171, %170 : vector<1x8xf32>
    %173 = arith.addf %168, %172 : vector<1x8xf32>
    %174 = vector.extract_strided_slice %127 {offsets = [0, 0], sizes = [1, 1], strides = [1, 1]} : vector<1x2xf32> to vector<1x1xf32>
    %c0_74 = arith.constant 0 : index
    %c0_75 = arith.constant 0 : index
    %175 = vector.load %arg17[%c0_74, %c0_75] : memref<2x8xf32, #tpu.memory_space<vmem>>, vector<1x8xf32>
    %176 = vector.broadcast %174 : vector<1x1xf32> to vector<1x8xf32>
    %177 = arith.mulf %176, %175 : vector<1x8xf32>
    %178 = vector.extract_strided_slice %127 {offsets = [0, 1], sizes = [1, 1], strides = [1, 1]} : vector<1x2xf32> to vector<1x1xf32>
    %c1_76 = arith.constant 1 : index
    %c0_77 = arith.constant 0 : index
    %179 = vector.load %arg17[%c1_76, %c0_77] : memref<2x8xf32, #tpu.memory_space<vmem>>, vector<1x8xf32>
    %180 = vector.broadcast %178 : vector<1x1xf32> to vector<1x8xf32>
    %181 = arith.mulf %180, %179 : vector<1x8xf32>
    %182 = arith.addf %177, %181 : vector<1x8xf32>
    %183 = arith.addf %173, %182 : vector<1x8xf32>
    %c0_78 = arith.constant 0 : index
    %c0_79 = arith.constant 0 : index
    %184 = vector.load %arg18[%c0_78, %c0_79] : memref<1x8xf32, #tpu.memory_space<vmem>>, vector<1x8xf32>
    %185 = arith.addf %183, %184 : vector<1x8xf32>
    %186 = vector.extract_strided_slice %185 {offsets = [0, 0], sizes = [1, 2], strides = [1, 1]} : vector<1x8xf32> to vector<1x2xf32>
    %187 = arith.negf %186 : vector<1x2xf32>
    %188 = math.exp %187 : vector<1x2xf32>
    %cst_80 = arith.constant 1.000000e+00 : f32
    %189 = vector.broadcast %cst_80 : f32 to vector<1x2xf32>
    %190 = arith.addf %189, %188 : vector<1x2xf32>
    %191 = arith.divf %189, %190 : vector<1x2xf32>
    %192 = vector.extract_strided_slice %185 {offsets = [0, 2], sizes = [1, 2], strides = [1, 1]} : vector<1x8xf32> to vector<1x2xf32>
    %193 = arith.negf %192 : vector<1x2xf32>
    %194 = math.exp %193 : vector<1x2xf32>
    %cst_81 = arith.constant 1.000000e+00 : f32
    %195 = vector.broadcast %cst_81 : f32 to vector<1x2xf32>
    %196 = arith.addf %195, %194 : vector<1x2xf32>
    %197 = arith.divf %195, %196 : vector<1x2xf32>
    %198 = vector.extract_strided_slice %185 {offsets = [0, 4], sizes = [1, 2], strides = [1, 1]} : vector<1x8xf32> to vector<1x2xf32>
    %199 = math.tanh %198 : vector<1x2xf32>
    %200 = vector.extract_strided_slice %185 {offsets = [0, 6], sizes = [1, 2], strides = [1, 1]} : vector<1x8xf32> to vector<1x2xf32>
    %201 = arith.negf %200 : vector<1x2xf32>
    %202 = math.exp %201 : vector<1x2xf32>
    %cst_82 = arith.constant 1.000000e+00 : f32
    %203 = vector.broadcast %cst_82 : f32 to vector<1x2xf32>
    %204 = arith.addf %203, %202 : vector<1x2xf32>
    %205 = arith.divf %203, %204 : vector<1x2xf32>
    %206 = arith.mulf %197, %128 : vector<1x2xf32>
    %207 = arith.mulf %191, %199 : vector<1x2xf32>
    %208 = arith.addf %206, %207 : vector<1x2xf32>
    %209 = math.tanh %208 : vector<1x2xf32>
    %210 = arith.mulf %205, %209 : vector<1x2xf32>
    %c0_83 = arith.constant 0 : index
    %c0_84 = arith.constant 0 : index
    %211 = vector.load %arg21[%c0_83, %c0_84] : memref<2x2xf32, #tpu.memory_space<vmem>>, vector<1x2xf32>
    tpu.vector_store %arg21[%c0_83, %c0_84], %210 {strides = array<i32>} : memref<2x2xf32, #tpu.memory_space<vmem>>, vector<1x2xf32>,
    %212 = vector.extract_strided_slice %124 {offsets = [1, 0], sizes = [1, 8], strides = [1, 1]} : vector<8x8xf32> to vector<1x8xf32>
    %213 = vector.extract_strided_slice %164 {offsets = [0, 0], sizes = [1, 1], strides = [1, 1]} : vector<1x2xf32> to vector<1x1xf32>
    %c0_85 = arith.constant 0 : index
    %c0_86 = arith.constant 0 : index
    %214 = vector.load %arg15[%c0_85, %c0_86] : memref<2x8xf32, #tpu.memory_space<vmem>>, vector<1x8xf32>
    %215 = vector.broadcast %213 : vector<1x1xf32> to vector<1x8xf32>
    %216 = arith.mulf %215, %214 : vector<1x8xf32>
    %217 = vector.extract_strided_slice %164 {offsets = [0, 1], sizes = [1, 1], strides = [1, 1]} : vector<1x2xf32> to vector<1x1xf32>
    %c1_87 = arith.constant 1 : index
    %c0_88 = arith.constant 0 : index
    %218 = vector.load %arg15[%c1_87, %c0_88] : memref<2x8xf32, #tpu.memory_space<vmem>>, vector<1x8xf32>
    %219 = vector.broadcast %217 : vector<1x1xf32> to vector<1x8xf32>
    %220 = arith.mulf %219, %218 : vector<1x8xf32>
    %221 = arith.addf %216, %220 : vector<1x8xf32>
    %222 = arith.addf %212, %221 : vector<1x8xf32>
    %223 = vector.extract_strided_slice %222 {offsets = [0, 0], sizes = [1, 2], strides = [1, 1]} : vector<1x8xf32> to vector<1x2xf32>
    %224 = arith.negf %223 : vector<1x2xf32>
    %225 = math.exp %224 : vector<1x2xf32>
    %cst_89 = arith.constant 1.000000e+00 : f32
    %226 = vector.broadcast %cst_89 : f32 to vector<1x2xf32>
    %227 = arith.addf %226, %225 : vector<1x2xf32>
    %228 = arith.divf %226, %227 : vector<1x2xf32>
    %229 = vector.extract_strided_slice %222 {offsets = [0, 2], sizes = [1, 2], strides = [1, 1]} : vector<1x8xf32> to vector<1x2xf32>
    %230 = arith.negf %229 : vector<1x2xf32>
    %231 = math.exp %230 : vector<1x2xf32>
    %cst_90 = arith.constant 1.000000e+00 : f32
    %232 = vector.broadcast %cst_90 : f32 to vector<1x2xf32>
    %233 = arith.addf %232, %231 : vector<1x2xf32>
    %234 = arith.divf %232, %233 : vector<1x2xf32>
    %235 = vector.extract_strided_slice %222 {offsets = [0, 4], sizes = [1, 2], strides = [1, 1]} : vector<1x8xf32> to vector<1x2xf32>
    %236 = math.tanh %235 : vector<1x2xf32>
    %237 = vector.extract_strided_slice %222 {offsets = [0, 6], sizes = [1, 2], strides = [1, 1]} : vector<1x8xf32> to vector<1x2xf32>
    %238 = arith.negf %237 : vector<1x2xf32>
    %239 = math.exp %238 : vector<1x2xf32>
    %cst_91 = arith.constant 1.000000e+00 : f32
    %240 = vector.broadcast %cst_91 : f32 to vector<1x2xf32>
    %241 = arith.addf %240, %239 : vector<1x2xf32>
    %242 = arith.divf %240, %241 : vector<1x2xf32>
    %243 = arith.mulf %234, %162 : vector<1x2xf32>
    %244 = arith.mulf %228, %236 : vector<1x2xf32>
    %245 = arith.addf %243, %244 : vector<1x2xf32>
    %246 = math.tanh %245 : vector<1x2xf32>
    %247 = arith.mulf %242, %246 : vector<1x2xf32>
    %248 = vector.extract_strided_slice %247 {offsets = [0, 0], sizes = [1, 1], strides = [1, 1]} : vector<1x2xf32> to vector<1x1xf32>
    %c0_92 = arith.constant 0 : index
    %c0_93 = arith.constant 0 : index
    %249 = vector.load %arg16[%c0_92, %c0_93] : memref<2x8xf32, #tpu.memory_space<vmem>>, vector<1x8xf32>
    %250 = vector.broadcast %248 : vector<1x1xf32> to vector<1x8xf32>
    %251 = arith.mulf %250, %249 : vector<1x8xf32>
    %252 = vector.extract_strided_slice %247 {offsets = [0, 1], sizes = [1, 1], strides = [1, 1]} : vector<1x2xf32> to vector<1x1xf32>
    %c1_94 = arith.constant 1 : index
    %c0_95 = arith.constant 0 : index
    %253 = vector.load %arg16[%c1_94, %c0_95] : memref<2x8xf32, #tpu.memory_space<vmem>>, vector<1x8xf32>
    %254 = vector.broadcast %252 : vector<1x1xf32> to vector<1x8xf32>
    %255 = arith.mulf %254, %253 : vector<1x8xf32>
    %256 = arith.addf %251, %255 : vector<1x8xf32>
    %257 = vector.extract_strided_slice %210 {offsets = [0, 0], sizes = [1, 1], strides = [1, 1]} : vector<1x2xf32> to vector<1x1xf32>
    %c0_96 = arith.constant 0 : index
    %c0_97 = arith.constant 0 : index
    %258 = vector.load %arg17[%c0_96, %c0_97] : memref<2x8xf32, #tpu.memory_space<vmem>>, vector<1x8xf32>
    %259 = vector.broadcast %257 : vector<1x1xf32> to vector<1x8xf32>
    %260 = arith.mulf %259, %258 : vector<1x8xf32>
    %261 = vector.extract_strided_slice %210 {offsets = [0, 1], sizes = [1, 1], strides = [1, 1]} : vector<1x2xf32> to vector<1x1xf32>
    %c1_98 = arith.constant 1 : index
    %c0_99 = arith.constant 0 : index
    %262 = vector.load %arg17[%c1_98, %c0_99] : memref<2x8xf32, #tpu.memory_space<vmem>>, vector<1x8xf32>
    %263 = vector.broadcast %261 : vector<1x1xf32> to vector<1x8xf32>
    %264 = arith.mulf %263, %262 : vector<1x8xf32>
    %265 = arith.addf %260, %264 : vector<1x8xf32>
    %266 = arith.addf %256, %265 : vector<1x8xf32>
    %c0_100 = arith.constant 0 : index
    %c0_101 = arith.constant 0 : index
    %267 = vector.load %arg18[%c0_100, %c0_101] : memref<1x8xf32, #tpu.memory_space<vmem>>, vector<1x8xf32>
    %268 = arith.addf %266, %267 : vector<1x8xf32>
    %269 = vector.extract_strided_slice %268 {offsets = [0, 0], sizes = [1, 2], strides = [1, 1]} : vector<1x8xf32> to vector<1x2xf32>
    %270 = arith.negf %269 : vector<1x2xf32>
    %271 = math.exp %270 : vector<1x2xf32>
    %cst_102 = arith.constant 1.000000e+00 : f32
    %272 = vector.broadcast %cst_102 : f32 to vector<1x2xf32>
    %273 = arith.addf %272, %271 : vector<1x2xf32>
    %274 = arith.divf %272, %273 : vector<1x2xf32>
    %275 = vector.extract_strided_slice %268 {offsets = [0, 2], sizes = [1, 2], strides = [1, 1]} : vector<1x8xf32> to vector<1x2xf32>
    %276 = arith.negf %275 : vector<1x2xf32>
    %277 = math.exp %276 : vector<1x2xf32>
    %cst_103 = arith.constant 1.000000e+00 : f32
    %278 = vector.broadcast %cst_103 : f32 to vector<1x2xf32>
    %279 = arith.addf %278, %277 : vector<1x2xf32>
    %280 = arith.divf %278, %279 : vector<1x2xf32>
    %281 = vector.extract_strided_slice %268 {offsets = [0, 4], sizes = [1, 2], strides = [1, 1]} : vector<1x8xf32> to vector<1x2xf32>
    %282 = math.tanh %281 : vector<1x2xf32>
    %283 = vector.extract_strided_slice %268 {offsets = [0, 6], sizes = [1, 2], strides = [1, 1]} : vector<1x8xf32> to vector<1x2xf32>
    %284 = arith.negf %283 : vector<1x2xf32>
    %285 = math.exp %284 : vector<1x2xf32>
    %cst_104 = arith.constant 1.000000e+00 : f32
    %286 = vector.broadcast %cst_104 : f32 to vector<1x2xf32>
    %287 = arith.addf %286, %285 : vector<1x2xf32>
    %288 = arith.divf %286, %287 : vector<1x2xf32>
    %289 = arith.mulf %280, %208 : vector<1x2xf32>
    %290 = arith.mulf %274, %282 : vector<1x2xf32>
    %291 = arith.addf %289, %290 : vector<1x2xf32>
    %292 = math.tanh %291 : vector<1x2xf32>
    %293 = arith.mulf %288, %292 : vector<1x2xf32>
    %c1_105 = arith.constant 1 : index
    %c0_106 = arith.constant 0 : index
    %294 = vector.load %arg21[%c1_105, %c0_106] : memref<2x2xf32, #tpu.memory_space<vmem>>, vector<1x2xf32>
    tpu.vector_store %arg21[%c1_105, %c0_106], %293 {strides = array<i32>} : memref<2x2xf32, #tpu.memory_space<vmem>>, vector<1x2xf32>,
    return
  }
}

</mosaic_0001>

<bundles_post_ra>
// kernel: darqn_forward.4
= control target key start
LH: loop header
LB: loop body
LE: loop exit
PB: predicated region body
PF: predicated region fallthrough
CT: control target
= control target key end

     0   :  { %s2494_s15 = smov 0   ;;  %s2496_s16 = smov 0   ;;  %s3335_s0 = inlined_call_operand.vmem [shape: f32[1250,75], index: 0, kind: input, shape index: {}]   ;;  %s3336_s1 = inlined_call_operand.vmem [shape: f32[75,128], index: 1, kind: input, shape index: {}]   ;;  %s3337_s2 = inlined_call_operand.vmem [shape: f32[1,128], index: 2, kind: input, shape index: {}]   ;;  %s3338_s3 = inlined_call_operand.vmem [shape: f32[1,128], index: 3, kind: input, shape index: {}]   ;;  %s3339_s4 = inlined_call_operand.vmem [shape: f32[1250,128], index: 4, kind: output, shape index: {}]  }
   0x1   :  { %s2498_s17 = smov 0  }
   0x2 LB: > { %s2507_s18 = sadd.s32 4294967295, %s2431_s17   ;;  %s2509_s19 = sadd.s32 1, %s2431_s17   ;;  %s2431_s17 = sphi %s2498_s17, %s3348_s17   ;;  %s2427_s16 = sphi %s2496_s16, %s3347_s16   ;;  %s2423_s15 = sphi %s2494_s15, %s3346_s15  }
   0x3   : > { %s107_s20 = ssub.s32 %s2431_s17, %s2509_s19  ;;  %s110_s21 = sadd.s32 1, %s2427_s16 }
   0x4   : > { %p108_p0 = scmp.eq.s32.totalorder %s107_s20, 0  ;;  %p120_p1 = scmp.ne.s32.totalorder %s2427_s16, %s2423_s15 }
   0x5   : > { %p121_p2 = scmp.eq.s32.totalorder %s2507_s18, 1  ;;  %p1810_p3 = scmp.ge.s32.totalorder %s2431_s17, 1 }
   0x6   : > { %s2517_s22 = scalar_select %p108_p0, %s2427_s16, %s110_s21  }
   0x7   : > { %p2519_p4 = por %p121_p2, %p120_p1  ;;  %p171_p5 = scmp.lt.s32.totalorder %s2431_s17, 3 }
   0x9   : > { %p172_p6 = pnand %p1810_p3, %p171_p5 }
   0xa   : > { %v298_v0 = vld [vmem:[%s3336_s1] sm:$0xff] (!%p172_p6)  ;;  %v299_v1 = vld [vmem:[%s3336_s1 + $0x8] sm:$0xff] (!%p172_p6)  ;;  %v300_v2 = vld [vmem:[%s3336_s1 + $0x10] sm:$0xff] (!%p172_p6)  ;;  %v2465_v3 = vmov (!%p172_p6), 0.0|0.0   ;;  %s2536_s6 = smul.u32 (!%p172_p6), 79, %s2507_s18  ;;  %vm2466_vm0 = vmmov (!%p172_p6), 0  }
   0xb   : > { %175 = sbr.rel (%p172_p6) target bundleno = 479 (0x1df), region = 36  ;;  %2258 = vmatprep.subr.bf16.mxu0 (!%p172_p6), %v2465_v3  ;;  %v2259_v4 = vpack.c.bf16 (!%p172_p6), %v299_v1, %v298_v0  ;;  %2274 = vmatprep.subr.bf16.mxu1 (!%p172_p6), %v2465_v3  ;;  %v301_v5 = vld [vmem:[%s3336_s1 + $0x18] sm:$0xff] (!%p172_p6)  ;;  %v2467_v6 = vmov (!%p172_p6), 0.0   ;;  %v302_v8 = vld [vmem:[%s3336_s1 + $0x20] sm:$0xff] (!%p172_p6)  ;;  %v303_v9 = vld [vmem:[%s3336_s1 + $0x28] sm:$0xff] (!%p172_p6)  ;;  %vm546_vm1 = vcmask (!%p172_p6), 1042432  }
   0xc   : > { %2021 = vmatprep.mubr.msk.f32.mxu0 (!%p172_p6), %vm2466_vm0, %v2467_v6  ;;  %2141 = vmatprep.mubr.msk.f32.mxu1 (!%p172_p6), %vm2466_vm0, %v2467_v6  ;;  %v2262_v7 = vpack.c.bf16 (!%p172_p6), %v301_v5, %v300_v2  ;;  %p205_p7 = scmp.lt.s32.totalorder (!%p172_p6), %s2536_s6, 156  ;;  %v2265_v10 = vpack.c.bf16 (!%p172_p6), %v303_v9, %v302_v8  ;;  %v304_v11 = vld [vmem:[%s3336_s1 + $0x30] sm:$0xff] (!%p172_p6)  ;;  %v305_v12 = vld [vmem:[%s3336_s1 + $0x38] sm:$0xff] (!%p172_p6)  ;;  %v306_v14 = vld [vmem:[%s3336_s1 + $0x40] sm:$0xff] (!%p172_p6)  ;;  %vm2468_vm2 = vmmov (!%p172_p6), 1   ;;  %vm308_vm4 = vcmask (!%p172_p6), 613376  }
   0xd   : > { %2260 = vmatpush3.bf16.msra.mxu0 (!%p172_p6), %v2259_v4  ;;  %2279 = vmatpush3.bf16.msra.mxu1 (!%p172_p6), %v2259_v4  ;;  %v2268_v13 = vpack.c.bf16 (!%p172_p6), %v305_v12, %v304_v11  ;;  %v307_v15 = vld [vmem:[%s3336_s1 + $0x48] sm:$0x7] (!%p172_p6)  ;;  %vm2272_vm3 = vmpackc.low (!%p172_p6), %vm546_vm1, %vm2468_vm2  ;;  %s197_s30 = sand.u32 (!%p172_p6), 1, %s2423_s15  }
   0xe   : > { %2261 = vmatprep.subr.bf16.mxu0 (!%p172_p6), %v2465_v3  ;;  %2275 = vmatprep.subr.bf16.mxu1 (!%p172_p6), %v2465_v3  ;;  %v2271_v16 = vpack.c.bf16 (!%p172_p6), %v307_v15, %v306_v14  ;;  %s2284_s8 = smul.u32 (!%p172_p6), 632, %s197_s30 }
  0x10   : > { %s2896_s15 = scalar_lea.vmem (!%p172_p6), [#allocation2], %s2284_s8  }
  0x11   : > { %2263 = vmatpush3.bf16.msra.mxu0 (!%p172_p6), %v2262_v7  ;;  %2280 = vmatpush3.bf16.msra.mxu1 (!%p172_p6), %v2262_v7 }
  0x12   : > { %2264 = vmatprep.subr.bf16.mxu0 %v2465_v3  ;;  %2276 = vmatprep.subr.bf16.mxu1 %v2465_v3  ;;  %s206_s17 = scalar_select %p205_p7, %s2536_s6, 156 }
  0x13   : > { %s1348_s11 = ssub.s32 (%p2519_p4), 157, %s2536_s6  ;;  %s1909_s12 = smul.u32 (%p2519_p4), 632, %s2507_s18 }
  0x14   : > { %s1811_s26 = sshll.u32 %s206_s17, 3  ;;  %p1349_p8 = scmp.lt.s32.totalorder (%p2519_p4), %s1348_s11, 79 }
  0x15   : > { %2266 = vmatpush3.bf16.msra.mxu0 %v2265_v10  ;;  %2281 = vmatpush3.bf16.msra.mxu1 %v2265_v10  ;;  %s2565_s29 = scalar_lea.vmem %s3335_s0, %s1811_s26  ;;  %s3136_s17 = scalar_lea.vmem (%p2519_p4), %s3339_s4, %s1909_s12  }
  0x16   : > { %2267 = vmatprep.subr.bf16.mxu0 %v2465_v3  ;;  %2277 = vmatprep.subr.bf16.mxu1 %v2465_v3  ;;  %v219_v17 = vld [vmem:[%s2565_s29] sm:$0xff]  ;;  %v220_v19 = vld [vmem:[%s2565_s29 + $0x8] sm:$0xff]  ;;  %v221_v21 = vld [vmem:[%s2565_s29 + $0x10] sm:$0xff] }
  0x17   : > { %v259_v18 = vld [vmem:[%s2565_s29 + $0x140] sm:$0xff]  ;;  %v260_v20 = vld [vmem:[%s2565_s29 + $0x148] sm:$0xff]  ;;  %v261_v22 = vld [vmem:[%s2565_s29 + $0x150] sm:$0xff] }
  0x18   : > { %v222_v23 = vld [vmem:[%s2565_s29 + $0x18] sm:$0xff]  ;;  %v223_v25 = vld [vmem:[%s2565_s29 + $0x20] sm:$0xff]  ;;  %v224_v27 = vld [vmem:[%s2565_s29 + $0x28] sm:$0xff] }
  0x19   : > { %2269 = vmatpush3.bf16.msra.mxu0 %v2268_v13  ;;  %2282 = vmatpush3.bf16.msra.mxu1 %v2268_v13  ;;  %v262_v24 = vld [vmem:[%s2565_s29 + $0x158] sm:$0xff]  ;;  %v263_v26 = vld [vmem:[%s2565_s29 + $0x160] sm:$0xff]  ;;  %v264_v28 = vld [vmem:[%s2565_s29 + $0x168] sm:$0xff] }
  0x1a   : > { %2270 = vmatprep.subr.bf16.mxu0 %v2465_v3  ;;  %2278 = vmatprep.subr.bf16.mxu1 %v2465_v3  ;;  %v225_v29 = vld [vmem:[%s2565_s29 + $0x30] sm:$0xff]  ;;  %v226_v31 = vld [vmem:[%s2565_s29 + $0x38] sm:$0xff]  ;;  %v227_v33 = vld [vmem:[%s2565_s29 + $0x40] sm:$0xff] }
  0x1b   : > { %v265_v30 = vld [vmem:[%s2565_s29 + $0x170] sm:$0xff]  ;;  %v266_v32 = vld [vmem:[%s2565_s29 + $0x178] sm:$0xff]  ;;  %v267_v34 = vld [vmem:[%s2565_s29 + $0x180] sm:$0xff] }
  0x1c   : > { %v228_v35 = vld [vmem:[%s2565_s29 + $0x48] sm:$0xff]  ;;  %v229_v37 = vld [vmem:[%s2565_s29 + $0x50] sm:$0xff]  ;;  %v230_v39 = vld [vmem:[%s2565_s29 + $0x58] sm:$0xff] }
  0x1d   : > { %2273 = vmatpush3.bf16.msk.msra.mxu0 %vm2272_vm3, %v2271_v16  ;;  %2283 = vmatpush3.bf16.msk.msra.mxu1 %vm2272_vm3, %v2271_v16  ;;  %v268_v36 = vld [vmem:[%s2565_s29 + $0x188] sm:$0xff]  ;;  %v269_v38 = vld [vmem:[%s2565_s29 + $0x190] sm:$0xff]  ;;  %v270_v40 = vld [vmem:[%s2565_s29 + $0x198] sm:$0xff] }
  0x1e   : > { %v231_v41 = vld [vmem:[%s2565_s29 + $0x60] sm:$0xff]  ;;  %v232_v43 = vld [vmem:[%s2565_s29 + $0x68] sm:$0xff]  ;;  %v233_v45 = vld [vmem:[%s2565_s29 + $0x70] sm:$0xff] }
  0x1f   : > { %v271_v42 = vld [vmem:[%s2565_s29 + $0x1a0] sm:$0xff]  ;;  %v272_v44 = vld [vmem:[%s2565_s29 + $0x1a8] sm:$0xff]  ;;  %v273_v46 = vld [vmem:[%s2565_s29 + $0x1b0] sm:$0xff] }
  0x20   : > { %2022 = vmatmul.mubr.msk.f32.vlgmr.msra.gmra.mrb[0].mxu0 %vm308_vm4, %v219_v17  ;;  %2142 = vmatmul.mubr.msk.f32.vlgmr.msra.gmra.mrb[0].mxu1 %vm308_vm4, %v259_v18  ;;  %v234_v47 = vld [vmem:[%s2565_s29 + $0x78] sm:$0xff]  ;;  %v235_v49 = vld [vmem:[%s2565_s29 + $0x80] sm:$0xff]  ;;  %v236_v51 = vld [vmem:[%s2565_s29 + $0x88] sm:$0xff] }
  0x21   : > { %2024 = vmatprep.mubr.msk.f32.mxu0 %vm2466_vm0, %v2467_v6  ;;  %2144 = vmatprep.mubr.msk.f32.mxu1 %vm2466_vm0, %v2467_v6  ;;  %v274_v48 = vld [vmem:[%s2565_s29 + $0x1b8] sm:$0xff]  ;;  %v275_v50 = vld [vmem:[%s2565_s29 + $0x1c0] sm:$0xff]  ;;  %v276_v52 = vld [vmem:[%s2565_s29 + $0x1c8] sm:$0xff] }
  0x22   : > { %v237_v53 = vld [vmem:[%s2565_s29 + $0x90] sm:$0xff]  ;;  %v238_v55 = vld [vmem:[%s2565_s29 + $0x98] sm:$0xff]  ;;  %v239_v57 = vld [vmem:[%s2565_s29 + $0xa0] sm:$0xff] }
  0x23   : > { %v277_v54 = vld [vmem:[%s2565_s29 + $0x1d0] sm:$0xff]  ;;  %v278_v56 = vld [vmem:[%s2565_s29 + $0x1d8] sm:$0xff]  ;;  %v279_v58 = vld [vmem:[%s2565_s29 + $0x1e0] sm:$0xff] }
  0x24   : > { %2025 = vmatmul.mubr.msk.f32.gmra.mrb[2].mxu0 %vm308_vm4, %v220_v19  ;;  %2145 = vmatmul.mubr.msk.f32.gmra.mrb[2].mxu1 %vm308_vm4, %v260_v20  ;;  %v240_v59 = vld [vmem:[%s2565_s29 + $0xa8] sm:$0xff]  ;;  %v241_v61 = vld [vmem:[%s2565_s29 + $0xb0] sm:$0xff]  ;;  %v242_v63 = vld [vmem:[%s2565_s29 + $0xb8] sm:$0xff] }
  0x25   : > { %2027 = vmatprep.mubr.msk.f32.mxu0 %vm2466_vm0, %v2467_v6  ;;  %2147 = vmatprep.mubr.msk.f32.mxu1 %vm2466_vm0, %v2467_v6  ;;  %v280_v60 = vld [vmem:[%s2565_s29 + $0x1e8] sm:$0xff]  ;;  %v281_v62 = vld [vmem:[%s2565_s29 + $0x1f0] sm:$0xff]  ;;  %v282_v0 = vld [vmem:[%s2565_s29 + $0x1f8] sm:$0xff] }
  0x26   : > { %v243_v1 = vld [vmem:[%s2565_s29 + $0xc0] sm:$0xff]  ;;  %v244_v3 = vld [vmem:[%s2565_s29 + $0xc8] sm:$0xff]  ;;  %v245_v5 = vld [vmem:[%s2565_s29 + $0xd0] sm:$0xff] }
  0x27   : > { %v283_v2 = vld [vmem:[%s2565_s29 + $0x200] sm:$0xff]  ;;  %v284_v4 = vld [vmem:[%s2565_s29 + $0x208] sm:$0xff]  ;;  %v285_v7 = vld [vmem:[%s2565_s29 + $0x210] sm:$0xff] }
  0x28   : > { %2028 = vmatmul.mubr.msk.f32.gmra.mrb[4].mxu0 %vm308_vm4, %v221_v21  ;;  %2148 = vmatmul.mubr.msk.f32.gmra.mrb[4].mxu1 %vm308_vm4, %v261_v22  ;;  %v246_v8 = vld [vmem:[%s2565_s29 + $0xd8] sm:$0xff]  ;;  %v247_v10 = vld [vmem:[%s2565_s29 + $0xe0] sm:$0xff]  ;;  %v248_v12 = vld [vmem:[%s2565_s29 + $0xe8] sm:$0xff] }
  0x29   : > { %2030 = vmatprep.mubr.msk.f32.mxu0 %vm2466_vm0, %v2467_v6  ;;  %2150 = vmatprep.mubr.msk.f32.mxu1 %vm2466_vm0, %v2467_v6  ;;  %v286_v9 = vld [vmem:[%s2565_s29 + $0x218] sm:$0xff]  ;;  %v287_v11 = vld [vmem:[%s2565_s29 + $0x220] sm:$0xff]  ;;  %v288_v13 = vld [vmem:[%s2565_s29 + $0x228] sm:$0xff] }
  0x2a   : > { %v249_v14 = vld [vmem:[%s2565_s29 + $0xf0] sm:$0xff]  ;;  %v250_v16 = vld [vmem:[%s2565_s29 + $0xf8] sm:$0xff]  ;;  %v251_v18 = vld [vmem:[%s2565_s29 + $0x100] sm:$0xff] }
  0x2b   : > { %v289_v15 = vld [vmem:[%s2565_s29 + $0x230] sm:$0xff]  ;;  %v290_v17 = vld [vmem:[%s2565_s29 + $0x238] sm:$0xff]  ;;  %v291_v19 = vld [vmem:[%s2565_s29 + $0x240] sm:$0xff] }
  0x2c   : > { %2031 = vmatmul.mubr.msk.f32.gmra.mrb[6].mxu0 %vm308_vm4, %v222_v23  ;;  %2151 = vmatmul.mubr.msk.f32.gmra.mrb[6].mxu1 %vm308_vm4, %v262_v24  ;;  %v252_v20 = vld [vmem:[%s2565_s29 + $0x108] sm:$0xff]  ;;  %v253_v22 = vld [vmem:[%s2565_s29 + $0x110] sm:$0xff]  ;;  %v254_v24 = vld [vmem:[%s2565_s29 + $0x118] sm:$0xff] }
  0x2d   : > { %2033 = vmatprep.mubr.msk.f32.mxu0 %vm2466_vm0, %v2467_v6  ;;  %2153 = vmatprep.mubr.msk.f32.mxu1 %vm2466_vm0, %v2467_v6  ;;  %v292_v21 = vld [vmem:[%s2565_s29 + $0x248] sm:$0xff]  ;;  %v293_v23 = vld [vmem:[%s2565_s29 + $0x250] sm:$0xff] }
  0x30   : > { %2034 = vmatmul.mubr.msk.f32.gmra.mrb[8].mxu0 %vm308_vm4, %v223_v25  ;;  %2154 = vmatmul.mubr.msk.f32.gmra.mrb[8].mxu1 %vm308_vm4, %v263_v26  ;;  %v294_v25 = vld [vmem:[%s2565_s29 + $0x258] sm:$0xff]  ;;  %v255_v26 = vld [vmem:[%s2565_s29 + $0x120] sm:$0xff] }
  0x31   : > { %2036 = vmatprep.mubr.msk.f32.mxu0 %vm2466_vm0, %v2467_v6  ;;  %2156 = vmatprep.mubr.msk.f32.mxu1 %vm2466_vm0, %v2467_v6 }
  0x34   : > { %2037 = vmatmul.mubr.msk.f32.gmra.mrb[10].mxu0 %vm308_vm4, %v224_v27  ;;  %2157 = vmatmul.mubr.msk.f32.gmra.mrb[10].mxu1 %vm308_vm4, %v264_v28  ;;  %v295_v27 = vld [vmem:[%s2565_s29 + $0x260] sm:$0xff]  ;;  %v256_v28 = vld [vmem:[%s2565_s29 + $0x128] sm:$0xff] }
  0x35   : > { %2039 = vmatprep.mubr.msk.f32.mxu0 %vm2466_vm0, %v2467_v6  ;;  %2159 = vmatprep.mubr.msk.f32.mxu1 %vm2466_vm0, %v2467_v6 }
  0x38   : > { %2040 = vmatmul.mubr.msk.f32.gmra.mrb[12].mxu0 %vm308_vm4, %v225_v29  ;;  %2160 = vmatmul.mubr.msk.f32.gmra.mrb[12].mxu1 %vm308_vm4, %v265_v30  ;;  %v296_v29 = vld [vmem:[%s2565_s29 + $0x268] sm:$0xff]  ;;  %v257_v30 = vld [vmem:[%s2565_s29 + $0x130] sm:$0xff] }
  0x39   : > { %2042 = vmatprep.mubr.msk.f32.mxu0 %vm2466_vm0, %v2467_v6  ;;  %2162 = vmatprep.mubr.msk.f32.mxu1 %vm2466_vm0, %v2467_v6 }
  0x3c   : > { %2043 = vmatmul.mubr.msk.f32.gmra.mrb[14].mxu0 %vm308_vm4, %v226_v31  ;;  %2163 = vmatmul.mubr.msk.f32.gmra.mrb[14].mxu1 %vm308_vm4, %v266_v32  ;;  %v297_v31 = vld [vmem:[%s2565_s29 + $0x270] sm:$0xff]  ;;  %v258_v32 = vld [vmem:[%s2565_s29 + $0x138] sm:$0xff] }
  0x3d   : > { %2045 = vmatprep.mubr.msk.f32.mxu0 %vm2466_vm0, %v2467_v6  ;;  %2165 = vmatprep.mubr.msk.f32.mxu1 %vm2466_vm0, %v2467_v6 }
  0x40   : > { %2046 = vmatmul.mubr.msk.f32.gmra.mrb[16].mxu0 %vm308_vm4, %v227_v33  ;;  %2166 = vmatmul.mubr.msk.f32.gmra.mrb[16].mxu1 %vm308_vm4, %v267_v34  ;;  %v2883_v33 = vld [vmem:[%s3337_s2] ss:$0 sm:$0xff] }
  0x41   : > { %2048 = vmatprep.mubr.msk.f32.mxu0 %vm2466_vm0, %v2467_v6  ;;  %2168 = vmatprep.mubr.msk.f32.mxu1 %vm2466_vm0, %v2467_v6 }
  0x44   : > { %2049 = vmatmul.mubr.msk.f32.gmra.mrb[18].mxu0 %vm308_vm4, %v228_v35  ;;  %2169 = vmatmul.mubr.msk.f32.gmra.mrb[18].mxu1 %vm308_vm4, %v268_v36  ;;  %v2888_v35 = vld [vmem:[%s3338_s3] ss:$0 sm:$0xff] }
  0x45   : > { %2051 = vmatprep.mubr.msk.f32.mxu0 %vm2466_vm0, %v2467_v6  ;;  %2171 = vmatprep.mubr.msk.f32.mxu1 %vm2466_vm0, %v2467_v6 }
  0x48   : > { %2052 = vmatmul.mubr.msk.f32.gmra.mrb[20].mxu0 %vm308_vm4, %v229_v37  ;;  %2172 = vmatmul.mubr.msk.f32.gmra.mrb[20].mxu1 %vm308_vm4, %v269_v38 }
  0x49   : > { %2054 = vmatprep.mubr.msk.f32.mxu0 %vm2466_vm0, %v2467_v6  ;;  %2174 = vmatprep.mubr.msk.f32.mxu1 %vm2466_vm0, %v2467_v6 }
  0x4c   : > { %2055 = vmatmul.mubr.msk.f32.gmra.mrb[22].mxu0 %vm308_vm4, %v230_v39  ;;  %2175 = vmatmul.mubr.msk.f32.gmra.mrb[22].mxu1 %vm308_vm4, %v270_v40 }
  0x4d   : > { %2057 = vmatprep.mubr.msk.f32.mxu0 %vm2466_vm0, %v2467_v6  ;;  %2177 = vmatprep.mubr.msk.f32.mxu1 %vm2466_vm0, %v2467_v6 }
  0x50   : > { %2058 = vmatmul.mubr.msk.f32.gmra.mrb[24].mxu0 %vm308_vm4, %v231_v41  ;;  %2178 = vmatmul.mubr.msk.f32.gmra.mrb[24].mxu1 %vm308_vm4, %v271_v42 }
  0x51   : > { %2060 = vmatprep.mubr.msk.f32.mxu0 %vm2466_vm0, %v2467_v6  ;;  %2180 = vmatprep.mubr.msk.f32.mxu1 %vm2466_vm0, %v2467_v6 }
  0x54   : > { %2061 = vmatmul.mubr.msk.f32.gmra.mrb[26].mxu0 %vm308_vm4, %v232_v43  ;;  %2181 = vmatmul.mubr.msk.f32.gmra.mrb[26].mxu1 %vm308_vm4, %v272_v44 }
  0x55   : > { %2063 = vmatprep.mubr.msk.f32.mxu0 %vm2466_vm0, %v2467_v6  ;;  %2183 = vmatprep.mubr.msk.f32.mxu1 %vm2466_vm0, %v2467_v6 }
  0x58   : > { %2064 = vmatmul.mubr.msk.f32.gmra.mrb[28].mxu0 %vm308_vm4, %v233_v45  ;;  %2184 = vmatmul.mubr.msk.f32.gmra.mrb[28].mxu1 %vm308_vm4, %v273_v46 }
  0x59   : > { %2066 = vmatprep.mubr.msk.f32.mxu0 %vm2466_vm0, %v2467_v6  ;;  %2186 = vmatprep.mubr.msk.f32.mxu1 %vm2466_vm0, %v2467_v6 }
  0x5c   : > { %2067 = vmatmul.mubr.msk.f32.gmra.mrb[30].mxu0 %vm308_vm4, %v234_v47  ;;  %2187 = vmatmul.mubr.msk.f32.gmra.mrb[30].mxu1 %vm308_vm4, %v274_v48 }
  0x5d   : > { %2069 = vmatprep.mubr.msk.f32.mxu0 %vm2466_vm0, %v2467_v6  ;;  %2189 = vmatprep.mubr.msk.f32.mxu1 %vm2466_vm0, %v2467_v6 }
  0x60   : > { %2070 = vmatmul.mubr.msk.f32.gmra.mrb[32].mxu0 %vm308_vm4, %v235_v49  ;;  %2190 = vmatmul.mubr.msk.f32.gmra.mrb[32].mxu1 %vm308_vm4, %v275_v50 }
  0x61   : > { %2072 = vmatprep.mubr.msk.f32.mxu0 %vm2466_vm0, %v2467_v6  ;;  %2192 = vmatprep.mubr.msk.f32.mxu1 %vm2466_vm0, %v2467_v6 }
  0x64   : > { %2073 = vmatmul.mubr.msk.f32.gmra.mrb[34].mxu0 %vm308_vm4, %v236_v51  ;;  %2193 = vmatmul.mubr.msk.f32.gmra.mrb[34].mxu1 %vm308_vm4, %v276_v52 }
  0x65   : > { %2075 = vmatprep.mubr.msk.f32.mxu0 %vm2466_vm0, %v2467_v6  ;;  %2195 = vmatprep.mubr.msk.f32.mxu1 %vm2466_vm0, %v2467_v6 }
  0x68   : > { %2076 = vmatmul.mubr.msk.f32.gmra.mrb[36].mxu0 %vm308_vm4, %v237_v53  ;;  %2196 = vmatmul.mubr.msk.f32.gmra.mrb[36].mxu1 %vm308_vm4, %v277_v54 }
  0x69   : > { %2078 = vmatprep.mubr.msk.f32.mxu0 %vm2466_vm0, %v2467_v6  ;;  %2198 = vmatprep.mubr.msk.f32.mxu1 %vm2466_vm0, %v2467_v6 }
  0x6c   : > { %2079 = vmatmul.mubr.msk.f32.gmra.mrb[38].mxu0 %vm308_vm4, %v238_v55  ;;  %2199 = vmatmul.mubr.msk.f32.gmra.mrb[38].mxu1 %vm308_vm4, %v278_v56 }
  0x6d   : > { %2081 = vmatprep.mubr.msk.f32.mxu0 %vm2466_vm0, %v2467_v6  ;;  %2201 = vmatprep.mubr.msk.f32.mxu1 %vm2466_vm0, %v2467_v6 }
  0x70   : > { %2082 = vmatmul.mubr.msk.f32.gmra.mrb[40].mxu0 %vm308_vm4, %v239_v57  ;;  %2202 = vmatmul.mubr.msk.f32.gmra.mrb[40].mxu1 %vm308_vm4, %v279_v58 }
  0x71   : > { %2084 = vmatprep.mubr.msk.f32.mxu0 %vm2466_vm0, %v2467_v6  ;;  %2204 = vmatprep.mubr.msk.f32.mxu1 %vm2466_vm0, %v2467_v6 }
  0x74   : > { %2085 = vmatmul.mubr.msk.f32.gmra.mrb[42].mxu0 %vm308_vm4, %v240_v59  ;;  %2205 = vmatmul.mubr.msk.f32.gmra.mrb[42].mxu1 %vm308_vm4, %v280_v60 }
  0x75   : > { %2087 = vmatprep.mubr.msk.f32.mxu0 %vm2466_vm0, %v2467_v6  ;;  %2207 = vmatprep.mubr.msk.f32.mxu1 %vm2466_vm0, %v2467_v6 }
  0x78   : > { %2088 = vmatmul.mubr.msk.f32.gmra.mrb[44].mxu0 %vm308_vm4, %v241_v61  ;;  %2208 = vmatmul.mubr.msk.f32.gmra.mrb[44].mxu1 %vm308_vm4, %v281_v62 }
  0x79   : > { %2090 = vmatprep.mubr.msk.f32.mxu0 %vm2466_vm0, %v2467_v6  ;;  %2210 = vmatprep.mubr.msk.f32.mxu1 %vm2466_vm0, %v2467_v6 }
  0x7c   : > { %2091 = vmatmul.mubr.msk.f32.gmra.mrb[46].mxu0 %vm308_vm4, %v242_v63  ;;  %2211 = vmatmul.mubr.msk.f32.gmra.mrb[46].mxu1 %vm308_vm4, %v282_v0 }
  0x7d   : > { %2093 = vmatprep.mubr.msk.f32.mxu0 %vm2466_vm0, %v2467_v6  ;;  %2213 = vmatprep.mubr.msk.f32.mxu1 %vm2466_vm0, %v2467_v6 }
  0x80   : > { %2094 = vmatmul.mubr.msk.f32.gmra.mrb[48].mxu0 %vm308_vm4, %v243_v1  ;;  %2214 = vmatmul.mubr.msk.f32.gmra.mrb[48].mxu1 %vm308_vm4, %v283_v2 }
  0x81   : > { %2096 = vmatprep.mubr.msk.f32.mxu0 %vm2466_vm0, %v2467_v6  ;;  %2216 = vmatprep.mubr.msk.f32.mxu1 %vm2466_vm0, %v2467_v6 }
  0x84   : > { %2097 = vmatmul.mubr.msk.f32.gmra.mrb[50].mxu0 %vm308_vm4, %v244_v3  ;;  %2217 = vmatmul.mubr.msk.f32.gmra.mrb[50].mxu1 %vm308_vm4, %v284_v4 }
  0x85   : > { %2099 = vmatprep.mubr.msk.f32.mxu0 %vm2466_vm0, %v2467_v6  ;;  %2219 = vmatprep.mubr.msk.f32.mxu1 %vm2466_vm0, %v2467_v6 }
  0x88   : > { %2100 = vmatmul.mubr.msk.f32.gmra.mrb[52].mxu0 %vm308_vm4, %v245_v5  ;;  %2220 = vmatmul.mubr.msk.f32.gmra.mrb[52].mxu1 %vm308_vm4, %v285_v7 }
  0x89   : > { %2102 = vmatprep.mubr.msk.f32.mxu0 %vm2466_vm0, %v2467_v6  ;;  %2222 = vmatprep.mubr.msk.f32.mxu1 %vm2466_vm0, %v2467_v6 }
  0x8c   : > { %2103 = vmatmul.mubr.msk.f32.gmra.mrb[54].mxu0 %vm308_vm4, %v246_v8  ;;  %2223 = vmatmul.mubr.msk.f32.gmra.mrb[54].mxu1 %vm308_vm4, %v286_v9 }
  0x8d   : > { %2105 = vmatprep.mubr.msk.f32.mxu0 %vm2466_vm0, %v2467_v6  ;;  %2225 = vmatprep.mubr.msk.f32.mxu1 %vm2466_vm0, %v2467_v6 }
  0x90   : > { %2106 = vmatmul.mubr.msk.f32.gmra.mrb[56].mxu0 %vm308_vm4, %v247_v10  ;;  %2226 = vmatmul.mubr.msk.f32.gmra.mrb[56].mxu1 %vm308_vm4, %v287_v11 }
  0x91   : > { %2108 = vmatprep.mubr.msk.f32.mxu0 %vm2466_vm0, %v2467_v6  ;;  %2228 = vmatprep.mubr.msk.f32.mxu1 %vm2466_vm0, %v2467_v6 }
  0x94   : > { %2109 = vmatmul.mubr.msk.f32.gmra.mrb[58].mxu0 %vm308_vm4, %v248_v12  ;;  %2229 = vmatmul.mubr.msk.f32.gmra.mrb[58].mxu1 %vm308_vm4, %v288_v13 }
  0x95   : > { %2111 = vmatprep.mubr.msk.f32.mxu0 %vm2466_vm0, %v2467_v6  ;;  %2231 = vmatprep.mubr.msk.f32.mxu1 %vm2466_vm0, %v2467_v6 }
  0x98   : > { %2112 = vmatmul.mubr.msk.f32.gmra.mrb[60].mxu0 %vm308_vm4, %v249_v14  ;;  %2232 = vmatmul.mubr.msk.f32.gmra.mrb[60].mxu1 %vm308_vm4, %v289_v15 }
  0x99   : > { %2114 = vmatprep.mubr.msk.f32.mxu0 %vm2466_vm0, %v2467_v6  ;;  %2234 = vmatprep.mubr.msk.f32.mxu1 %vm2466_vm0, %v2467_v6 }
  0x9c   : > { %2115 = vmatmul.mubr.msk.f32.gmra.mrb[62].mxu0 %vm308_vm4, %v250_v16  ;;  %2235 = vmatmul.mubr.msk.f32.gmra.mrb[62].mxu1 %vm308_vm4, %v290_v17 }
  0x9d   : > { %2117 = vmatprep.mubr.msk.f32.mxu0 %vm2466_vm0, %v2467_v6  ;;  %2237 = vmatprep.mubr.msk.f32.mxu1 %vm2466_vm0, %v2467_v6 }
  0xa0   : > { %2118 = vmatmul.mubr.msk.f32.gmra.mrb[64].mxu0 %vm308_vm4, %v251_v18  ;;  %2238 = vmatmul.mubr.msk.f32.gmra.mrb[64].mxu1 %vm308_vm4, %v291_v19 }
  0xa1   : > { %2120 = vmatprep.mubr.msk.f32.mxu0 %vm2466_vm0, %v2467_v6  ;;  %2240 = vmatprep.mubr.msk.f32.mxu1 %vm2466_vm0, %v2467_v6 }
  0xa4   : > { %2121 = vmatmul.mubr.msk.f32.gmra.mrb[66].mxu0 %vm308_vm4, %v252_v20  ;;  %2241 = vmatmul.mubr.msk.f32.gmra.mrb[66].mxu1 %vm308_vm4, %v292_v21 }
  0xa5   : > { %2123 = vmatprep.mubr.msk.f32.mxu0 %vm2466_vm0, %v2467_v6  ;;  %2243 = vmatprep.mubr.msk.f32.mxu1 %vm2466_vm0, %v2467_v6 }
  0xa8   : > { %2124 = vmatmul.mubr.msk.f32.gmra.mrb[68].mxu0 %vm308_vm4, %v253_v22  ;;  %2244 = vmatmul.mubr.msk.f32.gmra.mrb[68].mxu1 %vm308_vm4, %v293_v23 }
  0xa9   : > { %2126 = vmatprep.mubr.msk.f32.mxu0 %vm2466_vm0, %v2467_v6  ;;  %2246 = vmatprep.mubr.msk.f32.mxu1 %vm2466_vm0, %v2467_v6 }
  0xac   : > { %2127 = vmatmul.mubr.msk.f32.gmra.mrb[70].mxu0 %vm308_vm4, %v254_v24  ;;  %2247 = vmatmul.mubr.msk.f32.gmra.mrb[70].mxu1 %vm308_vm4, %v294_v25 }
  0xad   : > { %2129 = vmatprep.mubr.msk.f32.mxu0 %vm2466_vm0, %v2467_v6  ;;  %2249 = vmatprep.mubr.msk.f32.mxu1 %vm2466_vm0, %v2467_v6 }
  0xb0   : > { %2130 = vmatmul.mubr.msk.f32.gmra.mrb[72].mxu0 %vm308_vm4, %v255_v26  ;;  %2250 = vmatmul.mubr.msk.f32.gmra.mrb[72].mxu1 %vm308_vm4, %v295_v27 }
  0xb1   : > { %2132 = vmatprep.mubr.msk.f32.mxu0 %vm2466_vm0, %v2467_v6  ;;  %2252 = vmatprep.mubr.msk.f32.mxu1 %vm2466_vm0, %v2467_v6 }
  0xb4   : > { %2133 = vmatmul.mubr.msk.f32.gmra.mrb[74].mxu0 %vm308_vm4, %v256_v28  ;;  %2253 = vmatmul.mubr.msk.f32.gmra.mrb[74].mxu1 %vm308_vm4, %v296_v29 }
  0xb5   : > { %2135 = vmatprep.mubr.msk.f32.mxu0 %vm2466_vm0, %v2467_v6  ;;  %2255 = vmatprep.mubr.msk.f32.mxu1 %vm2466_vm0, %v2467_v6 }
  0xb8   : > { %2136 = vmatmul.mubr.msk.f32.gmra.mrb[76].mxu0 %vm308_vm4, %v257_v30  ;;  %2256 = vmatmul.mubr.msk.f32.gmra.mrb[76].mxu1 %vm308_vm4, %v297_v31 }
  0xb9   : > { %2138 = vmatprep.mubr.msk.f32.mxu0 %vm2466_vm0, %v2467_v6 }
  0xbc   : > { %2139 = vmatmul.mubr.msk.f32.gmra.mrb[78].mxu0 %vm308_vm4, %v258_v32 }
  0xf3   : > { %v616_v34 = vpop.f32.mrb[0].mxu0  ;;  %v816_v36 = vpop.f32.mrb[0].mxu1 }
  0xf4   : > { %v1017_v37 = vmul.f32 %v2883_v33, %v616_v34  ;;  %v2023_v6 = vpop.f32.mrb[1].mxu0  ;;  %v1057_v38 = vmul.f32 %v2883_v33, %v816_v36  ;;  %v2143_v39 = vpop.f32.mrb[1].mxu1 }
  0xf6   : > { %v1103_v40 = vadd.f32 %v2888_v35, %v1017_v37  ;;  %v1143_v41 = vadd.f32 %v2888_v35, %v1057_v38 }
  0xf7   : > { %v621_v42 = vpop.f32.mrb[2].mxu0  ;;  %v821_v43 = vpop.f32.mrb[2].mxu1 }
  0xf8   : > { %v1182_v44 = vmax.f32 %v1103_v40, 0.0  ;;  %v1222_v45 = vmax.f32 %v1143_v41, 0.0  ;;  %v1018_v46 = vmul.f32 %v2883_v33, %v621_v42  ;;  %v2026_v47 = vpop.f32.mrb[3].mxu0  ;;  %v1058_v48 = vmul.f32 %v2883_v33, %v821_v43  ;;  %v2146_v49 = vpop.f32.mrb[3].mxu1 }
  0xfa   : > { %1261 = vst [vmem:[%s2896_s15] sm:$0xff] %v1182_v44  ;;  %1301 = vst [vmem:[%s2896_s15 + $0x140] sm:$0xff] %v1222_v45  ;;  %v1104_v50 = vadd.f32 %v2888_v35, %v1018_v46  ;;  %v1144_v51 = vadd.f32 %v2888_v35, %v1058_v48 }
  0xfb   : > { %v626_v52 = vpop.f32.mrb[4].mxu0  ;;  %v826_v53 = vpop.f32.mrb[4].mxu1 }
  0xfc   : > { %v1183_v54 = vmax.f32 %v1104_v50, 0.0  ;;  %v1223_v55 = vmax.f32 %v1144_v51, 0.0  ;;  %v1019_v56 = vmul.f32 %v2883_v33, %v626_v52  ;;  %v2029_v57 = vpop.f32.mrb[5].mxu0  ;;  %v1059_v58 = vmul.f32 %v2883_v33, %v826_v53  ;;  %v2149_v59 = vpop.f32.mrb[5].mxu1 }
  0xfe   : > { %1262 = vst [vmem:[%s2896_s15 + $0x8] sm:$0xff] %v1183_v54  ;;  %1302 = vst [vmem:[%s2896_s15 + $0x148] sm:$0xff] %v1223_v55  ;;  %v1105_v60 = vadd.f32 %v2888_v35, %v1019_v56  ;;  %v1145_v61 = vadd.f32 %v2888_v35, %v1059_v58 }
  0xff   : > { %v631_v62 = vpop.f32.mrb[6].mxu0  ;;  %v831_v63 = vpop.f32.mrb[6].mxu1 }
 0x100   : > { %v1184_v0 = vmax.f32 %v1105_v60, 0.0  ;;  %v1224_v1 = vmax.f32 %v1145_v61, 0.0  ;;  %v1020_v2 = vmul.f32 %v2883_v33, %v631_v62  ;;  %v2032_v3 = vpop.f32.mrb[7].mxu0  ;;  %v1060_v4 = vmul.f32 %v2883_v33, %v831_v63  ;;  %v2152_v5 = vpop.f32.mrb[7].mxu1 }
 0x102   : > { %1263 = vst [vmem:[%s2896_s15 + $0x10] sm:$0xff] %v1184_v0  ;;  %1303 = vst [vmem:[%s2896_s15 + $0x150] sm:$0xff] %v1224_v1  ;;  %v1106_v7 = vadd.f32 %v2888_v35, %v1020_v2  ;;  %v1146_v8 = vadd.f32 %v2888_v35, %v1060_v4 }
 0x103   : > { %v636_v9 = vpop.f32.mrb[8].mxu0  ;;  %v836_v10 = vpop.f32.mrb[8].mxu1 }
 0x104   : > { %v1185_v11 = vmax.f32 %v1106_v7, 0.0  ;;  %v1225_v12 = vmax.f32 %v1146_v8, 0.0  ;;  %v1021_v13 = vmul.f32 %v2883_v33, %v636_v9  ;;  %v2035_v14 = vpop.f32.mrb[9].mxu0  ;;  %v1061_v15 = vmul.f32 %v2883_v33, %v836_v10  ;;  %v2155_v16 = vpop.f32.mrb[9].mxu1 }
 0x106   : > { %1264 = vst [vmem:[%s2896_s15 + $0x18] sm:$0xff] %v1185_v11  ;;  %1304 = vst [vmem:[%s2896_s15 + $0x158] sm:$0xff] %v1225_v12  ;;  %v1107_v17 = vadd.f32 %v2888_v35, %v1021_v13  ;;  %v1147_v18 = vadd.f32 %v2888_v35, %v1061_v15 }
 0x107   : > { %v641_v19 = vpop.f32.mrb[10].mxu0  ;;  %v841_v20 = vpop.f32.mrb[10].mxu1 }
 0x108   : > { %v1186_v21 = vmax.f32 %v1107_v17, 0.0  ;;  %v1226_v22 = vmax.f32 %v1147_v18, 0.0  ;;  %v1022_v23 = vmul.f32 %v2883_v33, %v641_v19  ;;  %v2038_v24 = vpop.f32.mrb[11].mxu0  ;;  %v1062_v25 = vmul.f32 %v2883_v33, %v841_v20  ;;  %v2158_v26 = vpop.f32.mrb[11].mxu1 }
 0x10a   : > { %1265 = vst [vmem:[%s2896_s15 + $0x20] sm:$0xff] %v1186_v21  ;;  %1305 = vst [vmem:[%s2896_s15 + $0x160] sm:$0xff] %v1226_v22  ;;  %v1108_v27 = vadd.f32 %v2888_v35, %v1022_v23  ;;  %v1148_v28 = vadd.f32 %v2888_v35, %v1062_v25 }
 0x10b   : > { %v646_v29 = vpop.f32.mrb[12].mxu0  ;;  %v846_v30 = vpop.f32.mrb[12].mxu1 }
 0x10c   : > { %v1187_v31 = vmax.f32 %v1108_v27, 0.0  ;;  %v1227_v32 = vmax.f32 %v1148_v28, 0.0  ;;  %v1023_v34 = vmul.f32 %v2883_v33, %v646_v29  ;;  %v2041_v36 = vpop.f32.mrb[13].mxu0  ;;  %v1063_v37 = vmul.f32 %v2883_v33, %v846_v30  ;;  %v2161_v6 = vpop.f32.mrb[13].mxu1 }
 0x10e   : > { %1266 = vst [vmem:[%s2896_s15 + $0x28] sm:$0xff] %v1187_v31  ;;  %1306 = vst [vmem:[%s2896_s15 + $0x168] sm:$0xff] %v1227_v32  ;;  %v1109_v38 = vadd.f32 %v2888_v35, %v1023_v34  ;;  %v1149_v39 = vadd.f32 %v2888_v35, %v1063_v37 }
 0x10f   : > { %v651_v40 = vpop.f32.mrb[14].mxu0  ;;  %v851_v41 = vpop.f32.mrb[14].mxu1 }
 0x110   : > { %v1188_v42 = vmax.f32 %v1109_v38, 0.0  ;;  %v1228_v43 = vmax.f32 %v1149_v39, 0.0  ;;  %v1024_v44 = vmul.f32 %v2883_v33, %v651_v40  ;;  %v2044_v45 = vpop.f32.mrb[15].mxu0  ;;  %v1064_v46 = vmul.f32 %v2883_v33, %v851_v41  ;;  %v2164_v47 = vpop.f32.mrb[15].mxu1 }
 0x112   : > { %1267 = vst [vmem:[%s2896_s15 + $0x30] sm:$0xff] %v1188_v42  ;;  %1307 = vst [vmem:[%s2896_s15 + $0x170] sm:$0xff] %v1228_v43  ;;  %v1110_v48 = vadd.f32 %v2888_v35, %v1024_v44  ;;  %v1150_v49 = vadd.f32 %v2888_v35, %v1064_v46 }
 0x113   : > { %v656_v50 = vpop.f32.mrb[16].mxu0  ;;  %v856_v51 = vpop.f32.mrb[16].mxu1 }
 0x114   : > { %v1189_v52 = vmax.f32 %v1110_v48, 0.0  ;;  %v1229_v53 = vmax.f32 %v1150_v49, 0.0  ;;  %v1025_v54 = vmul.f32 %v2883_v33, %v656_v50  ;;  %v2047_v55 = vpop.f32.mrb[17].mxu0  ;;  %v1065_v56 = vmul.f32 %v2883_v33, %v856_v51  ;;  %v2167_v57 = vpop.f32.mrb[17].mxu1 }
 0x116   : > { %1268 = vst [vmem:[%s2896_s15 + $0x38] sm:$0xff] %v1189_v52  ;;  %1308 = vst [vmem:[%s2896_s15 + $0x178] sm:$0xff] %v1229_v53  ;;  %v1111_v58 = vadd.f32 %v2888_v35, %v1025_v54  ;;  %v1151_v59 = vadd.f32 %v2888_v35, %v1065_v56 }
 0x117   : > { %v661_v60 = vpop.f32.mrb[18].mxu0  ;;  %v861_v61 = vpop.f32.mrb[18].mxu1 }
 0x118   : > { %v1190_v62 = vmax.f32 %v1111_v58, 0.0  ;;  %v1230_v63 = vmax.f32 %v1151_v59, 0.0  ;;  %v1026_v0 = vmul.f32 %v2883_v33, %v661_v60  ;;  %v2050_v1 = vpop.f32.mrb[19].mxu0  ;;  %v1066_v2 = vmul.f32 %v2883_v33, %v861_v61  ;;  %v2170_v3 = vpop.f32.mrb[19].mxu1 }
 0x11a   : > { %1269 = vst [vmem:[%s2896_s15 + $0x40] sm:$0xff] %v1190_v62  ;;  %1309 = vst [vmem:[%s2896_s15 + $0x180] sm:$0xff] %v1230_v63  ;;  %v1112_v4 = vadd.f32 %v2888_v35, %v1026_v0  ;;  %v1152_v5 = vadd.f32 %v2888_v35, %v1066_v2 }
 0x11b   : > { %v666_v7 = vpop.f32.mrb[20].mxu0  ;;  %v866_v8 = vpop.f32.mrb[20].mxu1 }
 0x11c   : > { %v1191_v9 = vmax.f32 %v1112_v4, 0.0  ;;  %v1231_v10 = vmax.f32 %v1152_v5, 0.0  ;;  %v1027_v11 = vmul.f32 %v2883_v33, %v666_v7  ;;  %v2053_v12 = vpop.f32.mrb[21].mxu0  ;;  %v1067_v13 = vmul.f32 %v2883_v33, %v866_v8  ;;  %v2173_v14 = vpop.f32.mrb[21].mxu1 }
 0x11e   : > { %1270 = vst [vmem:[%s2896_s15 + $0x48] sm:$0xff] %v1191_v9  ;;  %1310 = vst [vmem:[%s2896_s15 + $0x188] sm:$0xff] %v1231_v10  ;;  %v1113_v15 = vadd.f32 %v2888_v35, %v1027_v11  ;;  %v1153_v16 = vadd.f32 %v2888_v35, %v1067_v13 }
 0x11f   : > { %v671_v17 = vpop.f32.mrb[22].mxu0  ;;  %v871_v18 = vpop.f32.mrb[22].mxu1 }
 0x120   : > { %v1192_v19 = vmax.f32 %v1113_v15, 0.0  ;;  %v1232_v20 = vmax.f32 %v1153_v16, 0.0  ;;  %v1028_v21 = vmul.f32 %v2883_v33, %v671_v17  ;;  %v2056_v22 = vpop.f32.mrb[23].mxu0  ;;  %v1068_v23 = vmul.f32 %v2883_v33, %v871_v18  ;;  %v2176_v24 = vpop.f32.mrb[23].mxu1 }
 0x122   : > { %1271 = vst [vmem:[%s2896_s15 + $0x50] sm:$0xff] %v1192_v19  ;;  %1311 = vst [vmem:[%s2896_s15 + $0x190] sm:$0xff] %v1232_v20  ;;  %v1114_v25 = vadd.f32 %v2888_v35, %v1028_v21  ;;  %v1154_v26 = vadd.f32 %v2888_v35, %v1068_v23 }
 0x123   : > { %v676_v27 = vpop.f32.mrb[24].mxu0  ;;  %v876_v28 = vpop.f32.mrb[24].mxu1 }
 0x124   : > { %v1193_v29 = vmax.f32 %v1114_v25, 0.0  ;;  %v1233_v30 = vmax.f32 %v1154_v26, 0.0  ;;  %v1029_v31 = vmul.f32 %v2883_v33, %v676_v27  ;;  %v2059_v32 = vpop.f32.mrb[25].mxu0  ;;  %v1069_v34 = vmul.f32 %v2883_v33, %v876_v28  ;;  %v2179_v36 = vpop.f32.mrb[25].mxu1 }
 0x126   : > { %1272 = vst [vmem:[%s2896_s15 + $0x58] sm:$0xff] %v1193_v29  ;;  %1312 = vst [vmem:[%s2896_s15 + $0x198] sm:$0xff] %v1233_v30  ;;  %v1115_v37 = vadd.f32 %v2888_v35, %v1029_v31  ;;  %v1155_v6 = vadd.f32 %v2888_v35, %v1069_v34 }
 0x127   : > { %v681_v38 = vpop.f32.mrb[26].mxu0  ;;  %v881_v39 = vpop.f32.mrb[26].mxu1 }
 0x128   : > { %v1194_v40 = vmax.f32 %v1115_v37, 0.0  ;;  %v1234_v41 = vmax.f32 %v1155_v6, 0.0  ;;  %v1030_v42 = vmul.f32 %v2883_v33, %v681_v38  ;;  %v2062_v43 = vpop.f32.mrb[27].mxu0  ;;  %v1070_v44 = vmul.f32 %v2883_v33, %v881_v39  ;;  %v2182_v45 = vpop.f32.mrb[27].mxu1 }
 0x12a   : > { %1273 = vst [vmem:[%s2896_s15 + $0x60] sm:$0xff] %v1194_v40  ;;  %1313 = vst [vmem:[%s2896_s15 + $0x1a0] sm:$0xff] %v1234_v41  ;;  %v1116_v46 = vadd.f32 %v2888_v35, %v1030_v42  ;;  %v1156_v47 = vadd.f32 %v2888_v35, %v1070_v44 }
 0x12b   : > { %v686_v48 = vpop.f32.mrb[28].mxu0  ;;  %v886_v49 = vpop.f32.mrb[28].mxu1 }
 0x12c   : > { %v1195_v50 = vmax.f32 %v1116_v46, 0.0  ;;  %v1235_v51 = vmax.f32 %v1156_v47, 0.0  ;;  %v1031_v52 = vmul.f32 %v2883_v33, %v686_v48  ;;  %v2065_v53 = vpop.f32.mrb[29].mxu0  ;;  %v1071_v54 = vmul.f32 %v2883_v33, %v886_v49  ;;  %v2185_v55 = vpop.f32.mrb[29].mxu1 }
 0x12e   : > { %1274 = vst [vmem:[%s2896_s15 + $0x68] sm:$0xff] %v1195_v50  ;;  %1314 = vst [vmem:[%s2896_s15 + $0x1a8] sm:$0xff] %v1235_v51  ;;  %v1117_v56 = vadd.f32 %v2888_v35, %v1031_v52  ;;  %v1157_v57 = vadd.f32 %v2888_v35, %v1071_v54 }
 0x12f   : > { %v691_v58 = vpop.f32.mrb[30].mxu0  ;;  %v891_v59 = vpop.f32.mrb[30].mxu1 }
 0x130   : > { %v1196_v60 = vmax.f32 %v1117_v56, 0.0  ;;  %v1236_v61 = vmax.f32 %v1157_v57, 0.0  ;;  %v1032_v62 = vmul.f32 %v2883_v33, %v691_v58  ;;  %v2068_v63 = vpop.f32.mrb[31].mxu0  ;;  %v1072_v0 = vmul.f32 %v2883_v33, %v891_v59  ;;  %v2188_v1 = vpop.f32.mrb[31].mxu1 }
 0x132   : > { %1275 = vst [vmem:[%s2896_s15 + $0x70] sm:$0xff] %v1196_v60  ;;  %1315 = vst [vmem:[%s2896_s15 + $0x1b0] sm:$0xff] %v1236_v61  ;;  %v1118_v2 = vadd.f32 %v2888_v35, %v1032_v62  ;;  %v1158_v3 = vadd.f32 %v2888_v35, %v1072_v0 }
 0x133   : > { %v696_v4 = vpop.f32.mrb[32].mxu0  ;;  %v896_v5 = vpop.f32.mrb[32].mxu1 }
 0x134   : > { %v1197_v7 = vmax.f32 %v1118_v2, 0.0  ;;  %v1237_v8 = vmax.f32 %v1158_v3, 0.0  ;;  %v1033_v9 = vmul.f32 %v2883_v33, %v696_v4  ;;  %v2071_v10 = vpop.f32.mrb[33].mxu0  ;;  %v1073_v11 = vmul.f32 %v2883_v33, %v896_v5  ;;  %v2191_v12 = vpop.f32.mrb[33].mxu1 }
 0x136   : > { %1276 = vst [vmem:[%s2896_s15 + $0x78] sm:$0xff] %v1197_v7  ;;  %1316 = vst [vmem:[%s2896_s15 + $0x1b8] sm:$0xff] %v1237_v8  ;;  %v1119_v13 = vadd.f32 %v2888_v35, %v1033_v9  ;;  %v1159_v14 = vadd.f32 %v2888_v35, %v1073_v11 }
 0x137   : > { %v701_v15 = vpop.f32.mrb[34].mxu0  ;;  %v901_v16 = vpop.f32.mrb[34].mxu1 }
 0x138   : > { %v1198_v17 = vmax.f32 %v1119_v13, 0.0  ;;  %v1238_v18 = vmax.f32 %v1159_v14, 0.0  ;;  %v1034_v19 = vmul.f32 %v2883_v33, %v701_v15  ;;  %v2074_v20 = vpop.f32.mrb[35].mxu0  ;;  %v1074_v21 = vmul.f32 %v2883_v33, %v901_v16  ;;  %v2194_v22 = vpop.f32.mrb[35].mxu1 }
 0x13a   : > { %1277 = vst [vmem:[%s2896_s15 + $0x80] sm:$0xff] %v1198_v17  ;;  %1317 = vst [vmem:[%s2896_s15 + $0x1c0] sm:$0xff] %v1238_v18  ;;  %v1120_v23 = vadd.f32 %v2888_v35, %v1034_v19  ;;  %v1160_v24 = vadd.f32 %v2888_v35, %v1074_v21 }
 0x13b   : > { %v706_v25 = vpop.f32.mrb[36].mxu0  ;;  %v906_v26 = vpop.f32.mrb[36].mxu1 }
 0x13c   : > { %v1199_v27 = vmax.f32 %v1120_v23, 0.0  ;;  %v1239_v28 = vmax.f32 %v1160_v24, 0.0  ;;  %v1035_v29 = vmul.f32 %v2883_v33, %v706_v25  ;;  %v2077_v30 = vpop.f32.mrb[37].mxu0  ;;  %v1075_v31 = vmul.f32 %v2883_v33, %v906_v26  ;;  %v2197_v32 = vpop.f32.mrb[37].mxu1 }
 0x13e   : > { %1278 = vst [vmem:[%s2896_s15 + $0x88] sm:$0xff] %v1199_v27  ;;  %1318 = vst [vmem:[%s2896_s15 + $0x1c8] sm:$0xff] %v1239_v28  ;;  %v1121_v34 = vadd.f32 %v2888_v35, %v1035_v29  ;;  %v1161_v36 = vadd.f32 %v2888_v35, %v1075_v31 }
 0x13f   : > { %v711_v37 = vpop.f32.mrb[38].mxu0  ;;  %v911_v6 = vpop.f32.mrb[38].mxu1 }
 0x140   : > { %v1200_v38 = vmax.f32 %v1121_v34, 0.0  ;;  %v1240_v39 = vmax.f32 %v1161_v36, 0.0  ;;  %v1036_v40 = vmul.f32 %v2883_v33, %v711_v37  ;;  %v2080_v41 = vpop.f32.mrb[39].mxu0  ;;  %v1076_v42 = vmul.f32 %v2883_v33, %v911_v6  ;;  %v2200_v43 = vpop.f32.mrb[39].mxu1 }
 0x142   : > { %1279 = vst [vmem:[%s2896_s15 + $0x90] sm:$0xff] %v1200_v38  ;;  %1319 = vst [vmem:[%s2896_s15 + $0x1d0] sm:$0xff] %v1240_v39  ;;  %v1122_v44 = vadd.f32 %v2888_v35, %v1036_v40  ;;  %v1162_v45 = vadd.f32 %v2888_v35, %v1076_v42 }
 0x143   : > { %v716_v46 = vpop.f32.mrb[40].mxu0  ;;  %v916_v47 = vpop.f32.mrb[40].mxu1 }
 0x144   : > { %v1201_v48 = vmax.f32 %v1122_v44, 0.0  ;;  %v1241_v49 = vmax.f32 %v1162_v45, 0.0  ;;  %v1037_v50 = vmul.f32 %v2883_v33, %v716_v46  ;;  %v2083_v51 = vpop.f32.mrb[41].mxu0  ;;  %v1077_v52 = vmul.f32 %v2883_v33, %v916_v47  ;;  %v2203_v53 = vpop.f32.mrb[41].mxu1 }
 0x146   : > { %1280 = vst [vmem:[%s2896_s15 + $0x98] sm:$0xff] %v1201_v48  ;;  %1320 = vst [vmem:[%s2896_s15 + $0x1d8] sm:$0xff] %v1241_v49  ;;  %v1123_v54 = vadd.f32 %v2888_v35, %v1037_v50  ;;  %v1163_v55 = vadd.f32 %v2888_v35, %v1077_v52 }
 0x147   : > { %v721_v56 = vpop.f32.mrb[42].mxu0  ;;  %v921_v57 = vpop.f32.mrb[42].mxu1 }
 0x148   : > { %v1202_v58 = vmax.f32 %v1123_v54, 0.0  ;;  %v1242_v59 = vmax.f32 %v1163_v55, 0.0  ;;  %v1038_v60 = vmul.f32 %v2883_v33, %v721_v56  ;;  %v2086_v61 = vpop.f32.mrb[43].mxu0  ;;  %v1078_v62 = vmul.f32 %v2883_v33, %v921_v57  ;;  %v2206_v63 = vpop.f32.mrb[43].mxu1 }
 0x14a   : > { %1281 = vst [vmem:[%s2896_s15 + $0xa0] sm:$0xff] %v1202_v58  ;;  %1321 = vst [vmem:[%s2896_s15 + $0x1e0] sm:$0xff] %v1242_v59  ;;  %v1124_v0 = vadd.f32 %v2888_v35, %v1038_v60  ;;  %v1164_v1 = vadd.f32 %v2888_v35, %v1078_v62 }
 0x14b   : > { %v726_v2 = vpop.f32.mrb[44].mxu0  ;;  %v926_v3 = vpop.f32.mrb[44].mxu1 }
 0x14c   : > { %v1203_v4 = vmax.f32 %v1124_v0, 0.0  ;;  %v1243_v5 = vmax.f32 %v1164_v1, 0.0  ;;  %v1039_v7 = vmul.f32 %v2883_v33, %v726_v2  ;;  %v2089_v8 = vpop.f32.mrb[45].mxu0  ;;  %v1079_v9 = vmul.f32 %v2883_v33, %v926_v3  ;;  %v2209_v10 = vpop.f32.mrb[45].mxu1 }
 0x14e   : > { %1282 = vst [vmem:[%s2896_s15 + $0xa8] sm:$0xff] %v1203_v4  ;;  %1322 = vst [vmem:[%s2896_s15 + $0x1e8] sm:$0xff] %v1243_v5  ;;  %v1125_v11 = vadd.f32 %v2888_v35, %v1039_v7  ;;  %v1165_v12 = vadd.f32 %v2888_v35, %v1079_v9 }
 0x14f   : > { %v731_v13 = vpop.f32.mrb[46].mxu0  ;;  %v931_v14 = vpop.f32.mrb[46].mxu1 }
 0x150   : > { %v1204_v15 = vmax.f32 %v1125_v11, 0.0  ;;  %v1244_v16 = vmax.f32 %v1165_v12, 0.0  ;;  %v1040_v17 = vmul.f32 %v2883_v33, %v731_v13  ;;  %v2092_v18 = vpop.f32.mrb[47].mxu0  ;;  %v1080_v19 = vmul.f32 %v2883_v33, %v931_v14  ;;  %v2212_v20 = vpop.f32.mrb[47].mxu1 }
 0x152   : > { %1283 = vst [vmem:[%s2896_s15 + $0xb0] sm:$0xff] %v1204_v15  ;;  %1323 = vst [vmem:[%s2896_s15 + $0x1f0] sm:$0xff] %v1244_v16  ;;  %v1126_v21 = vadd.f32 %v2888_v35, %v1040_v17  ;;  %v1166_v22 = vadd.f32 %v2888_v35, %v1080_v19 }
 0x153   : > { %v736_v23 = vpop.f32.mrb[48].mxu0  ;;  %v936_v24 = vpop.f32.mrb[48].mxu1 }
 0x154   : > { %v1205_v25 = vmax.f32 %v1126_v21, 0.0  ;;  %v1245_v26 = vmax.f32 %v1166_v22, 0.0  ;;  %v1041_v27 = vmul.f32 %v2883_v33, %v736_v23  ;;  %v2095_v28 = vpop.f32.mrb[49].mxu0  ;;  %v1081_v29 = vmul.f32 %v2883_v33, %v936_v24  ;;  %v2215_v30 = vpop.f32.mrb[49].mxu1 }
 0x156   : > { %1284 = vst [vmem:[%s2896_s15 + $0xb8] sm:$0xff] %v1205_v25  ;;  %1324 = vst [vmem:[%s2896_s15 + $0x1f8] sm:$0xff] %v1245_v26  ;;  %v1127_v31 = vadd.f32 %v2888_v35, %v1041_v27  ;;  %v1167_v32 = vadd.f32 %v2888_v35, %v1081_v29 }
 0x157   : > { %v741_v34 = vpop.f32.mrb[50].mxu0  ;;  %v941_v36 = vpop.f32.mrb[50].mxu1 }
 0x158   : > { %v1206_v37 = vmax.f32 %v1127_v31, 0.0  ;;  %v1246_v6 = vmax.f32 %v1167_v32, 0.0  ;;  %v1042_v38 = vmul.f32 %v2883_v33, %v741_v34  ;;  %v2098_v39 = vpop.f32.mrb[51].mxu0  ;;  %v1082_v40 = vmul.f32 %v2883_v33, %v941_v36  ;;  %v2218_v41 = vpop.f32.mrb[51].mxu1 }
 0x15a   : > { %1285 = vst [vmem:[%s2896_s15 + $0xc0] sm:$0xff] %v1206_v37  ;;  %1325 = vst [vmem:[%s2896_s15 + $0x200] sm:$0xff] %v1246_v6  ;;  %v1128_v42 = vadd.f32 %v2888_v35, %v1042_v38  ;;  %v1168_v43 = vadd.f32 %v2888_v35, %v1082_v40 }
 0x15b   : > { %v746_v44 = vpop.f32.mrb[52].mxu0  ;;  %v946_v45 = vpop.f32.mrb[52].mxu1 }
 0x15c   : > { %v1207_v46 = vmax.f32 %v1128_v42, 0.0  ;;  %v1247_v47 = vmax.f32 %v1168_v43, 0.0  ;;  %v1043_v48 = vmul.f32 %v2883_v33, %v746_v44  ;;  %v2101_v49 = vpop.f32.mrb[53].mxu0  ;;  %v1083_v50 = vmul.f32 %v2883_v33, %v946_v45  ;;  %v2221_v51 = vpop.f32.mrb[53].mxu1 }
 0x15e   : > { %1286 = vst [vmem:[%s2896_s15 + $0xc8] sm:$0xff] %v1207_v46  ;;  %1326 = vst [vmem:[%s2896_s15 + $0x208] sm:$0xff] %v1247_v47  ;;  %v1129_v52 = vadd.f32 %v2888_v35, %v1043_v48  ;;  %v1169_v53 = vadd.f32 %v2888_v35, %v1083_v50 }
 0x15f   : > { %v751_v54 = vpop.f32.mrb[54].mxu0  ;;  %v951_v55 = vpop.f32.mrb[54].mxu1 }
 0x160   : > { %v1208_v56 = vmax.f32 %v1129_v52, 0.0  ;;  %v1248_v57 = vmax.f32 %v1169_v53, 0.0  ;;  %v1044_v58 = vmul.f32 %v2883_v33, %v751_v54  ;;  %v2104_v59 = vpop.f32.mrb[55].mxu0  ;;  %v1084_v60 = vmul.f32 %v2883_v33, %v951_v55  ;;  %v2224_v61 = vpop.f32.mrb[55].mxu1 }
 0x162   : > { %1287 = vst [vmem:[%s2896_s15 + $0xd0] sm:$0xff] %v1208_v56  ;;  %1327 = vst [vmem:[%s2896_s15 + $0x210] sm:$0xff] %v1248_v57  ;;  %v1130_v62 = vadd.f32 %v2888_v35, %v1044_v58  ;;  %v1170_v63 = vadd.f32 %v2888_v35, %v1084_v60 }
 0x163   : > { %v756_v0 = vpop.f32.mrb[56].mxu0  ;;  %v956_v1 = vpop.f32.mrb[56].mxu1 }
 0x164   : > { %v1209_v2 = vmax.f32 %v1130_v62, 0.0  ;;  %v1249_v3 = vmax.f32 %v1170_v63, 0.0  ;;  %v1045_v4 = vmul.f32 %v2883_v33, %v756_v0  ;;  %v2107_v5 = vpop.f32.mrb[57].mxu0  ;;  %v1085_v7 = vmul.f32 %v2883_v33, %v956_v1  ;;  %v2227_v8 = vpop.f32.mrb[57].mxu1 }
 0x166   : > { %1288 = vst [vmem:[%s2896_s15 + $0xd8] sm:$0xff] %v1209_v2  ;;  %1328 = vst [vmem:[%s2896_s15 + $0x218] sm:$0xff] %v1249_v3  ;;  %v1131_v9 = vadd.f32 %v2888_v35, %v1045_v4  ;;  %v1171_v10 = vadd.f32 %v2888_v35, %v1085_v7 }
 0x167   : > { %v761_v11 = vpop.f32.mrb[58].mxu0  ;;  %v961_v12 = vpop.f32.mrb[58].mxu1 }
 0x168   : > { %v1210_v13 = vmax.f32 %v1131_v9, 0.0  ;;  %v1250_v14 = vmax.f32 %v1171_v10, 0.0  ;;  %v1046_v15 = vmul.f32 %v2883_v33, %v761_v11  ;;  %v2110_v16 = vpop.f32.mrb[59].mxu0  ;;  %v1086_v17 = vmul.f32 %v2883_v33, %v961_v12  ;;  %v2230_v18 = vpop.f32.mrb[59].mxu1 }
 0x16a   : > { %1289 = vst [vmem:[%s2896_s15 + $0xe0] sm:$0xff] %v1210_v13  ;;  %1329 = vst [vmem:[%s2896_s15 + $0x220] sm:$0xff] %v1250_v14  ;;  %v1132_v19 = vadd.f32 %v2888_v35, %v1046_v15  ;;  %v1172_v20 = vadd.f32 %v2888_v35, %v1086_v17 }
 0x16b   : > { %v766_v21 = vpop.f32.mrb[60].mxu0  ;;  %v966_v22 = vpop.f32.mrb[60].mxu1 }
 0x16c   : > { %v1211_v23 = vmax.f32 %v1132_v19, 0.0  ;;  %v1251_v24 = vmax.f32 %v1172_v20, 0.0  ;;  %v1047_v25 = vmul.f32 %v2883_v33, %v766_v21  ;;  %v2113_v26 = vpop.f32.mrb[61].mxu0  ;;  %v1087_v27 = vmul.f32 %v2883_v33, %v966_v22  ;;  %v2233_v28 = vpop.f32.mrb[61].mxu1 }
 0x16e   : > { %1290 = vst [vmem:[%s2896_s15 + $0xe8] sm:$0xff] %v1211_v23  ;;  %1330 = vst [vmem:[%s2896_s15 + $0x228] sm:$0xff] %v1251_v24  ;;  %v1133_v29 = vadd.f32 %v2888_v35, %v1047_v25  ;;  %v1173_v30 = vadd.f32 %v2888_v35, %v1087_v27 }
 0x16f   : > { %v771_v31 = vpop.f32.mrb[62].mxu0  ;;  %v971_v32 = vpop.f32.mrb[62].mxu1 }
 0x170   : > { %v1212_v34 = vmax.f32 %v1133_v29, 0.0  ;;  %v1252_v36 = vmax.f32 %v1173_v30, 0.0  ;;  %v1048_v37 = vmul.f32 %v2883_v33, %v771_v31  ;;  %v2116_v6 = vpop.f32.mrb[63].mxu0  ;;  %v1088_v38 = vmul.f32 %v2883_v33, %v971_v32  ;;  %v2236_v39 = vpop.f32.mrb[63].mxu1 }
 0x172   : > { %1291 = vst [vmem:[%s2896_s15 + $0xf0] sm:$0xff] %v1212_v34  ;;  %1331 = vst [vmem:[%s2896_s15 + $0x230] sm:$0xff] %v1252_v36  ;;  %v1134_v40 = vadd.f32 %v2888_v35, %v1048_v37  ;;  %v1174_v41 = vadd.f32 %v2888_v35, %v1088_v38 }
 0x173   : > { %v776_v42 = vpop.f32.mrb[64].mxu0  ;;  %v976_v43 = vpop.f32.mrb[64].mxu1 }
 0x174   : > { %v1213_v44 = vmax.f32 %v1134_v40, 0.0  ;;  %v1253_v45 = vmax.f32 %v1174_v41, 0.0  ;;  %v1049_v46 = vmul.f32 %v2883_v33, %v776_v42  ;;  %v2119_v47 = vpop.f32.mrb[65].mxu0  ;;  %v1089_v48 = vmul.f32 %v2883_v33, %v976_v43  ;;  %v2239_v49 = vpop.f32.mrb[65].mxu1 }
 0x176   : > { %1292 = vst [vmem:[%s2896_s15 + $0xf8] sm:$0xff] %v1213_v44  ;;  %1332 = vst [vmem:[%s2896_s15 + $0x238] sm:$0xff] %v1253_v45  ;;  %v1135_v50 = vadd.f32 %v2888_v35, %v1049_v46  ;;  %v1175_v51 = vadd.f32 %v2888_v35, %v1089_v48 }
 0x177   : > { %v781_v52 = vpop.f32.mrb[66].mxu0  ;;  %v981_v53 = vpop.f32.mrb[66].mxu1 }
 0x178   : > { %v1214_v54 = vmax.f32 %v1135_v50, 0.0  ;;  %v1254_v55 = vmax.f32 %v1175_v51, 0.0  ;;  %v1050_v56 = vmul.f32 %v2883_v33, %v781_v52  ;;  %v2122_v57 = vpop.f32.mrb[67].mxu0  ;;  %v1090_v58 = vmul.f32 %v2883_v33, %v981_v53  ;;  %v2242_v59 = vpop.f32.mrb[67].mxu1 }
 0x17a   : > { %1293 = vst [vmem:[%s2896_s15 + $0x100] sm:$0xff] %v1214_v54  ;;  %1333 = vst [vmem:[%s2896_s15 + $0x240] sm:$0xff] %v1254_v55  ;;  %v1136_v60 = vadd.f32 %v2888_v35, %v1050_v56  ;;  %v1176_v61 = vadd.f32 %v2888_v35, %v1090_v58 }
 0x17b   : > { %v786_v62 = vpop.f32.mrb[68].mxu0  ;;  %v986_v63 = vpop.f32.mrb[68].mxu1 }
 0x17c   : > { %v1215_v0 = vmax.f32 %v1136_v60, 0.0  ;;  %v1255_v1 = vmax.f32 %v1176_v61, 0.0  ;;  %v1051_v2 = vmul.f32 %v2883_v33, %v786_v62  ;;  %v2125_v3 = vpop.f32.mrb[69].mxu0  ;;  %v1091_v4 = vmul.f32 %v2883_v33, %v986_v63  ;;  %v2245_v5 = vpop.f32.mrb[69].mxu1 }
 0x17e   : > { %1294 = vst [vmem:[%s2896_s15 + $0x108] sm:$0xff] %v1215_v0  ;;  %1334 = vst [vmem:[%s2896_s15 + $0x248] sm:$0xff] %v1255_v1  ;;  %v1137_v7 = vadd.f32 %v2888_v35, %v1051_v2  ;;  %v1177_v8 = vadd.f32 %v2888_v35, %v1091_v4 }
 0x17f   : > { %v791_v9 = vpop.f32.mrb[70].mxu0  ;;  %v991_v10 = vpop.f32.mrb[70].mxu1 }
 0x180   : > { %v1216_v11 = vmax.f32 %v1137_v7, 0.0  ;;  %v1256_v12 = vmax.f32 %v1177_v8, 0.0  ;;  %v1052_v13 = vmul.f32 %v2883_v33, %v791_v9  ;;  %v2128_v14 = vpop.f32.mrb[71].mxu0  ;;  %v1092_v15 = vmul.f32 %v2883_v33, %v991_v10  ;;  %v2248_v16 = vpop.f32.mrb[71].mxu1 }
 0x182   : > { %1295 = vst [vmem:[%s2896_s15 + $0x110] sm:$0xff] %v1216_v11  ;;  %1335 = vst [vmem:[%s2896_s15 + $0x250] sm:$0xff] %v1256_v12  ;;  %v1138_v17 = vadd.f32 %v2888_v35, %v1052_v13  ;;  %v1178_v18 = vadd.f32 %v2888_v35, %v1092_v15 }
 0x183   : > { %v796_v19 = vpop.f32.mrb[72].mxu0  ;;  %v996_v20 = vpop.f32.mrb[72].mxu1 }
 0x184   : > { %v1217_v21 = vmax.f32 %v1138_v17, 0.0  ;;  %v1257_v22 = vmax.f32 %v1178_v18, 0.0  ;;  %v1053_v23 = vmul.f32 %v2883_v33, %v796_v19  ;;  %v2131_v24 = vpop.f32.mrb[73].mxu0  ;;  %v1093_v25 = vmul.f32 %v2883_v33, %v996_v20  ;;  %v2251_v26 = vpop.f32.mrb[73].mxu1 }
 0x186   : > { %1296 = vst [vmem:[%s2896_s15 + $0x118] sm:$0xff] %v1217_v21  ;;  %1336 = vst [vmem:[%s2896_s15 + $0x258] sm:$0xff] %v1257_v22  ;;  %v1139_v27 = vadd.f32 %v2888_v35, %v1053_v23  ;;  %v1179_v28 = vadd.f32 %v2888_v35, %v1093_v25 }
 0x187   : > { %v801_v29 = vpop.f32.mrb[74].mxu0  ;;  %v1001_v30 = vpop.f32.mrb[74].mxu1 }
 0x188   : > { %v1218_v31 = vmax.f32 %v1139_v27, 0.0  ;;  %v1258_v32 = vmax.f32 %v1179_v28, 0.0  ;;  %v1054_v34 = vmul.f32 %v2883_v33, %v801_v29  ;;  %v2134_v36 = vpop.f32.mrb[75].mxu0  ;;  %v1094_v37 = vmul.f32 %v2883_v33, %v1001_v30  ;;  %v2254_v6 = vpop.f32.mrb[75].mxu1 }
 0x18a   : > { %1297 = vst [vmem:[%s2896_s15 + $0x120] sm:$0xff] %v1218_v31  ;;  %1337 = vst [vmem:[%s2896_s15 + $0x260] sm:$0xff] %v1258_v32  ;;  %v1140_v38 = vadd.f32 %v2888_v35, %v1054_v34  ;;  %v1180_v39 = vadd.f32 %v2888_v35, %v1094_v37 }
 0x18b   : > { %v806_v40 = vpop.f32.mrb[76].mxu0  ;;  %v1006_v41 = vpop.f32.mrb[76].mxu1 }
 0x18c   : > { %v1219_v42 = vmax.f32 %v1140_v38, 0.0  ;;  %v1259_v43 = vmax.f32 %v1180_v39, 0.0  ;;  %v1055_v44 = vmul.f32 %v2883_v33, %v806_v40  ;;  %v2137_v45 = vpop.f32.mrb[77].mxu0  ;;  %v1095_v46 = vmul.f32 %v2883_v33, %v1006_v41  ;;  %v2257_v47 = vpop.f32.mrb[77].mxu1 }
 0x18e   : > { %1298 = vst [vmem:[%s2896_s15 + $0x128] sm:$0xff] %v1219_v42  ;;  %1338 = vst [vmem:[%s2896_s15 + $0x268] sm:$0xff] %v1259_v43  ;;  %v1141_v48 = vadd.f32 %v2888_v35, %v1055_v44  ;;  %v1181_v49 = vadd.f32 %v2888_v35, %v1095_v46 }
 0x18f   : > { %v811_v50 = vpop.f32.mrb[78].mxu0 }
 0x190   : > { %v1220_v51 = vmax.f32 %v1141_v48, 0.0  ;;  %v1260_v52 = vmax.f32 %v1181_v49, 0.0  ;;  %v1056_v53 = vmul.f32 %v2883_v33, %v811_v50  ;;  %v2140_v54 = vpop.f32.mrb[79].mxu0  ;;  %1346 = sbr.rel (!%p2519_p4) target bundleno = 479 (0x1df), region = 40 }
 0x192   : > { %1299 = vst [vmem:[%s2896_s15 + $0x130] sm:$0xff] %v1220_v51  ;;  %1339 = vst [vmem:[%s2896_s15 + $0x270] sm:$0xff] %v1260_v52  ;;  %v1142_v55 = vadd.f32 %v2888_v35, %v1056_v53 }
 0x194   : > { %v1221_v56 = vmax.f32 %v1142_v55, 0.0 }
 0x196   : > { %1300 = vst [vmem:[%s2896_s15 + $0x138] sm:$0xff] %v1221_v56 }
 0x197   : > { %s3350_s11 = smov (!%p1349_p8, %s1348_s11), 79 }
 0x198   : > { %s1894_s20 = sshll.u32 %s3350_s11, 7 }
 0x199   : > { %p1897_p9 = scmp.eq.s32.totalorder %s1894_s20, 0 }
 0x19a   : > { %s3142_s21 = sshrl.u32 (!%p1897_p9), %s3350_s11, 6 }
 0x19b   : > { %1357 = sbr.rel (%p1897_p9) target bundleno = 479 (0x1df), region = 44  ;;  %p1898_p10 = scmp.le.s32.totalorder (!%p1897_p9), %s3142_s21, 0 }
 0x1a2   : > { %1763 = sbr.rel (%p1898_p10) target bundleno = 458 (0x1ca), region = 120  ;;  %s3341_s18 = smov (!%p1898_p10), %s3136_s17 }
 0x1a3   : > { %s3342_s23 = smov (!%p1898_p10), %s2896_s15  ;;  %s3151_s6 = smov (!%p1898_p10), 0  }
 0x1a4   : > { %s3153_s24 = smov (!%p1898_p10), 0  }
 0x1a9 LB: >> { %v1545_v33 = vld [vmem:[%s2439_s23] sm:$0xff]  ;;  %v1547_v35 = vld [vmem:[%s2439_s23 + $0x8] sm:$0xff]  ;;  %v1549_v57 = vld [vmem:[%s2439_s23 + $0x10] sm:$0xff]  ;;  %s1673_s25 = sadd.s32 1, %s2443_s6  ;;  %s1539_s24 = sadd.s32 1, %s2447_s24   ;;  %s2447_s24 = sphi %s3153_s24, %s1539_s24   ;;  %s2443_s6 = sphi %s3151_s6, %s3345_s6   ;;  %s2439_s23 = sphi %s3342_s23, %s3344_s23   ;;  %s2435_s18 = sphi %s3341_s18, %s3343_s18  }
 0x1aa   : >> { %1546 = vst [vmem:[%s2435_s18] sm:$0xff] %v1545_v33  ;;  %1548 = vst [vmem:[%s2435_s18 + $0x8] sm:$0xff] %v1547_v35  ;;  %v1551_v58 = vld [vmem:[%s2439_s23 + $0x18] sm:$0xff]  ;;  %v1553_v59 = vld [vmem:[%s2439_s23 + $0x20] sm:$0xff]  ;;  %p1674_p11 = scmp.ge.s32.totalorder %s1673_s25, %s3142_s21  ;;  %p1538_p12 = scmp.ge.s32.totalorder %s1539_s24, %s3142_s21 }
 0x1ab   : >> { %1550 = vst [vmem:[%s2435_s18 + $0x10] sm:$0xff] %v1549_v57  ;;  %v1555_v60 = vld [vmem:[%s2439_s23 + $0x28] sm:$0xff]  ;;  %1552 = vst [vmem:[%s2435_s18 + $0x18] sm:$0xff] %v1551_v58  ;;  %v1557_v61 = vld [vmem:[%s2439_s23 + $0x30] sm:$0xff] }
 0x1ac   : >> { %1554 = vst [vmem:[%s2435_s18 + $0x20] sm:$0xff] %v1553_v59  ;;  %1556 = vst [vmem:[%s2435_s18 + $0x28] sm:$0xff] %v1555_v60  ;;  %v1559_v62 = vld [vmem:[%s2439_s23 + $0x38] sm:$0xff]  ;;  %v1561_v63 = vld [vmem:[%s2439_s23 + $0x40] sm:$0xff]  ;;  %s3352_s25 = smov (%p1674_p11, %s1673_s25), 0 }
 0x1ad   : >> { %1558 = vst [vmem:[%s2435_s18 + $0x30] sm:$0xff] %v1557_v61  ;;  %1560 = vst [vmem:[%s2435_s18 + $0x38] sm:$0xff] %v1559_v62  ;;  %v1563_v0 = vld [vmem:[%s2439_s23 + $0x48] sm:$0xff]  ;;  %v1565_v1 = vld [vmem:[%s2439_s23 + $0x50] sm:$0xff]  ;;  %s1899_s26 = sshll.u32 %s3352_s25, 9  ;;  %s3345_s6 = smov %s3352_s25 }
 0x1ae   : >> { %1562 = vst [vmem:[%s2435_s18 + $0x40] sm:$0xff] %v1561_v63  ;;  %v1567_v2 = vld [vmem:[%s2439_s23 + $0x58] sm:$0xff]  ;;  %1564 = vst [vmem:[%s2435_s18 + $0x48] sm:$0xff] %v1563_v0  ;;  %v1569_v3 = vld [vmem:[%s2439_s23 + $0x60] sm:$0xff]  ;;  %s3209_s27 = scalar_lea.vmem %s2896_s15, %s1899_s26 [#allocation2]   ;;  %s3212_s28 = scalar_lea.vmem %s3136_s17, %s1899_s26  }
 0x1af   : >> { %1566 = vst [vmem:[%s2435_s18 + $0x50] sm:$0xff] %v1565_v1  ;;  %1568 = vst [vmem:[%s2435_s18 + $0x58] sm:$0xff] %v1567_v2  ;;  %v1571_v4 = vld [vmem:[%s2439_s23 + $0x68] sm:$0xff]  ;;  %v1573_v5 = vld [vmem:[%s2439_s23 + $0x70] sm:$0xff] }
 0x1b0   : >> { %1570 = vst [vmem:[%s2435_s18 + $0x60] sm:$0xff] %v1569_v3  ;;  %1572 = vst [vmem:[%s2435_s18 + $0x68] sm:$0xff] %v1571_v4  ;;  %v1575_v7 = vld [vmem:[%s2439_s23 + $0x78] sm:$0xff]  ;;  %v1577_v8 = vld [vmem:[%s2439_s23 + $0x80] sm:$0xff] }
 0x1b1   : >> { %1574 = vst [vmem:[%s2435_s18 + $0x70] sm:$0xff] %v1573_v5  ;;  %v1579_v9 = vld [vmem:[%s2439_s23 + $0x88] sm:$0xff]  ;;  %1576 = vst [vmem:[%s2435_s18 + $0x78] sm:$0xff] %v1575_v7  ;;  %v1581_v10 = vld [vmem:[%s2439_s23 + $0x90] sm:$0xff] }
 0x1b2   : >> { %1578 = vst [vmem:[%s2435_s18 + $0x80] sm:$0xff] %v1577_v8  ;;  %1580 = vst [vmem:[%s2435_s18 + $0x88] sm:$0xff] %v1579_v9  ;;  %v1583_v11 = vld [vmem:[%s2439_s23 + $0x98] sm:$0xff]  ;;  %v1585_v12 = vld [vmem:[%s2439_s23 + $0xa0] sm:$0xff] }
 0x1b3   : >> { %1582 = vst [vmem:[%s2435_s18 + $0x90] sm:$0xff] %v1581_v10  ;;  %1584 = vst [vmem:[%s2435_s18 + $0x98] sm:$0xff] %v1583_v11  ;;  %v1587_v13 = vld [vmem:[%s2439_s23 + $0xa8] sm:$0xff]  ;;  %v1589_v14 = vld [vmem:[%s2439_s23 + $0xb0] sm:$0xff] }
 0x1b4   : >> { %1586 = vst [vmem:[%s2435_s18 + $0xa0] sm:$0xff] %v1585_v12  ;;  %v1591_v15 = vld [vmem:[%s2439_s23 + $0xb8] sm:$0xff]  ;;  %1588 = vst [vmem:[%s2435_s18 + $0xa8] sm:$0xff] %v1587_v13  ;;  %v1593_v16 = vld [vmem:[%s2439_s23 + $0xc0] sm:$0xff] }
 0x1b5   : >> { %1590 = vst [vmem:[%s2435_s18 + $0xb0] sm:$0xff] %v1589_v14  ;;  %1592 = vst [vmem:[%s2435_s18 + $0xb8] sm:$0xff] %v1591_v15  ;;  %v1595_v17 = vld [vmem:[%s2439_s23 + $0xc8] sm:$0xff]  ;;  %v1597_v18 = vld [vmem:[%s2439_s23 + $0xd0] sm:$0xff] }
 0x1b6   : >> { %1594 = vst [vmem:[%s2435_s18 + $0xc0] sm:$0xff] %v1593_v16  ;;  %1596 = vst [vmem:[%s2435_s18 + $0xc8] sm:$0xff] %v1595_v17  ;;  %v1599_v19 = vld [vmem:[%s2439_s23 + $0xd8] sm:$0xff]  ;;  %v1601_v20 = vld [vmem:[%s2439_s23 + $0xe0] sm:$0xff] }
 0x1b7   : >> { %1598 = vst [vmem:[%s2435_s18 + $0xd0] sm:$0xff] %v1597_v18  ;;  %v1603_v21 = vld [vmem:[%s2439_s23 + $0xe8] sm:$0xff]  ;;  %1600 = vst [vmem:[%s2435_s18 + $0xd8] sm:$0xff] %v1599_v19  ;;  %v1605_v22 = vld [vmem:[%s2439_s23 + $0xf0] sm:$0xff] }
 0x1b8   : >> { %1602 = vst [vmem:[%s2435_s18 + $0xe0] sm:$0xff] %v1601_v20  ;;  %1604 = vst [vmem:[%s2435_s18 + $0xe8] sm:$0xff] %v1603_v21  ;;  %v1607_v23 = vld [vmem:[%s2439_s23 + $0xf8] sm:$0xff]  ;;  %v1609_v24 = vld [vmem:[%s2439_s23 + $0x100] sm:$0xff] }
 0x1b9   : >> { %1606 = vst [vmem:[%s2435_s18 + $0xf0] sm:$0xff] %v1605_v22  ;;  %1608 = vst [vmem:[%s2435_s18 + $0xf8] sm:$0xff] %v1607_v23  ;;  %v1611_v25 = vld [vmem:[%s2439_s23 + $0x108] sm:$0xff]  ;;  %v1613_v26 = vld [vmem:[%s2439_s23 + $0x110] sm:$0xff] }
 0x1ba   : >> { %1610 = vst [vmem:[%s2435_s18 + $0x100] sm:$0xff] %v1609_v24  ;;  %v1615_v27 = vld [vmem:[%s2439_s23 + $0x118] sm:$0xff]  ;;  %1612 = vst [vmem:[%s2435_s18 + $0x108] sm:$0xff] %v1611_v25  ;;  %v1617_v28 = vld [vmem:[%s2439_s23 + $0x120] sm:$0xff] }
 0x1bb   : >> { %1614 = vst [vmem:[%s2435_s18 + $0x110] sm:$0xff] %v1613_v26  ;;  %1616 = vst [vmem:[%s2435_s18 + $0x118] sm:$0xff] %v1615_v27  ;;  %v1619_v29 = vld [vmem:[%s2439_s23 + $0x128] sm:$0xff]  ;;  %v1621_v30 = vld [vmem:[%s2439_s23 + $0x130] sm:$0xff] }
 0x1bc   : >> { %1618 = vst [vmem:[%s2435_s18 + $0x120] sm:$0xff] %v1617_v28  ;;  %1620 = vst [vmem:[%s2435_s18 + $0x128] sm:$0xff] %v1619_v29  ;;  %v1623_v31 = vld [vmem:[%s2439_s23 + $0x138] sm:$0xff]  ;;  %v1625_v32 = vld [vmem:[%s2439_s23 + $0x140] sm:$0xff] }
 0x1bd   : >> { %1622 = vst [vmem:[%s2435_s18 + $0x130] sm:$0xff] %v1621_v30  ;;  %v1627_v34 = vld [vmem:[%s2439_s23 + $0x148] sm:$0xff]  ;;  %1624 = vst [vmem:[%s2435_s18 + $0x138] sm:$0xff] %v1623_v31  ;;  %v1629_v36 = vld [vmem:[%s2439_s23 + $0x150] sm:$0xff] }
 0x1be   : >> { %1626 = vst [vmem:[%s2435_s18 + $0x140] sm:$0xff] %v1625_v32  ;;  %1628 = vst [vmem:[%s2435_s18 + $0x148] sm:$0xff] %v1627_v34  ;;  %v1631_v37 = vld [vmem:[%s2439_s23 + $0x158] sm:$0xff]  ;;  %v1633_v6 = vld [vmem:[%s2439_s23 + $0x160] sm:$0xff] }
 0x1bf   : >> { %1630 = vst [vmem:[%s2435_s18 + $0x150] sm:$0xff] %v1629_v36  ;;  %1632 = vst [vmem:[%s2435_s18 + $0x158] sm:$0xff] %v1631_v37  ;;  %v1635_v38 = vld [vmem:[%s2439_s23 + $0x168] sm:$0xff]  ;;  %v1637_v39 = vld [vmem:[%s2439_s23 + $0x170] sm:$0xff] }
 0x1c0   : >> { %1634 = vst [vmem:[%s2435_s18 + $0x160] sm:$0xff] %v1633_v6  ;;  %v1639_v40 = vld [vmem:[%s2439_s23 + $0x178] sm:$0xff]  ;;  %1636 = vst [vmem:[%s2435_s18 + $0x168] sm:$0xff] %v1635_v38  ;;  %v1641_v41 = vld [vmem:[%s2439_s23 + $0x180] sm:$0xff] }
 0x1c1   : >> { %1638 = vst [vmem:[%s2435_s18 + $0x170] sm:$0xff] %v1637_v39  ;;  %1640 = vst [vmem:[%s2435_s18 + $0x178] sm:$0xff] %v1639_v40  ;;  %v1643_v42 = vld [vmem:[%s2439_s23 + $0x188] sm:$0xff]  ;;  %v1645_v43 = vld [vmem:[%s2439_s23 + $0x190] sm:$0xff] }
 0x1c2   : >> { %1642 = vst [vmem:[%s2435_s18 + $0x180] sm:$0xff] %v1641_v41  ;;  %1644 = vst [vmem:[%s2435_s18 + $0x188] sm:$0xff] %v1643_v42  ;;  %v1647_v44 = vld [vmem:[%s2439_s23 + $0x198] sm:$0xff]  ;;  %v1649_v45 = vld [vmem:[%s2439_s23 + $0x1a0] sm:$0xff] }
 0x1c3   : >> { %1646 = vst [vmem:[%s2435_s18 + $0x190] sm:$0xff] %v1645_v43  ;;  %v1651_v46 = vld [vmem:[%s2439_s23 + $0x1a8] sm:$0xff]  ;;  %1648 = vst [vmem:[%s2435_s18 + $0x198] sm:$0xff] %v1647_v44  ;;  %v1653_v47 = vld [vmem:[%s2439_s23 + $0x1b0] sm:$0xff]  ;;  %1541 = sbr.rel (!%p1538_p12) target bundleno = 425 (0x1a9), region = 126 }
 0x1c4   : >> { %1650 = vst [vmem:[%s2435_s18 + $0x1a0] sm:$0xff] %v1649_v45  ;;  %1652 = vst [vmem:[%s2435_s18 + $0x1a8] sm:$0xff] %v1651_v46  ;;  %v1655_v48 = vld [vmem:[%s2439_s23 + $0x1b8] sm:$0xff]  ;;  %v1657_v49 = vld [vmem:[%s2439_s23 + $0x1c0] sm:$0xff] }
 0x1c5   : >> { %1654 = vst [vmem:[%s2435_s18 + $0x1b0] sm:$0xff] %v1653_v47  ;;  %1656 = vst [vmem:[%s2435_s18 + $0x1b8] sm:$0xff] %v1655_v48  ;;  %v1659_v50 = vld [vmem:[%s2439_s23 + $0x1c8] sm:$0xff]  ;;  %v1661_v51 = vld [vmem:[%s2439_s23 + $0x1d0] sm:$0xff] }
 0x1c6   : >> { %1658 = vst [vmem:[%s2435_s18 + $0x1c0] sm:$0xff] %v1657_v49  ;;  %v1663_v52 = vld [vmem:[%s2439_s23 + $0x1d8] sm:$0xff]  ;;  %1660 = vst [vmem:[%s2435_s18 + $0x1c8] sm:$0xff] %v1659_v50  ;;  %v1665_v53 = vld [vmem:[%s2439_s23 + $0x1e0] sm:$0xff] }
 0x1c7   : >> { %1662 = vst [vmem:[%s2435_s18 + $0x1d0] sm:$0xff] %v1661_v51  ;;  %1664 = vst [vmem:[%s2435_s18 + $0x1d8] sm:$0xff] %v1663_v52  ;;  %v1667_v54 = vld [vmem:[%s2439_s23 + $0x1e8] sm:$0xff]  ;;  %v1669_v55 = vld [vmem:[%s2439_s23 + $0x1f0] sm:$0xff] }
 0x1c8   : >> { %1666 = vst [vmem:[%s2435_s18 + $0x1e0] sm:$0xff] %v1665_v53  ;;  %1668 = vst [vmem:[%s2435_s18 + $0x1e8] sm:$0xff] %v1667_v54  ;;  %v1671_v56 = vld [vmem:[%s2439_s23 + $0x1f8] sm:$0xff]  ;;  %s3344_s23 = smov %s3209_s27 }
 0x1c9   : >> { %1670 = vst [vmem:[%s2435_s18 + $0x1f0] sm:$0xff] %v1669_v55  ;;  %1672 = vst [vmem:[%s2435_s18 + $0x1f8] sm:$0xff] %v1671_v56  ;;  %s3343_s18 = smov %s3212_s28 }
 0x1ca PF: > { %s3317_s29 = sand.u32 63, %s3350_s11   ;;  %s1910_s30 = sshll.u32 %s3142_s21, 9 }
 0x1cb   : > { %s1684_s5 = scalar_lea.vmem %s2896_s15, %s1910_s30 [#allocation2]   ;;  %s1686_s7 = scalar_lea.vmem %s3136_s17, %s1910_s30  }
 0x1cc   : > { %p1904_p13 = scmp.le.s32.totalorder %s3317_s29, 0 }
 0x1cd   : > { %s2449_s8 = smov (!%p1904_p13), %s1686_s7   ;;  %s2453_s9 = smov (!%p1904_p13), %s1684_s5  }
 0x1ce   : > { %1777 = sbr.rel (%p1904_p13) target bundleno = 479 (0x1df), region = 131  ;;  %s2457_s10 = smov (!%p1904_p13), 0  }
 0x1cf   : > { %s2461_s12 = smov (!%p1904_p13), 0  }
 0x1d5 LB: >> { %v1696_v33 = vld [vmem:[%s2455_s9] sm:$0xff]  ;;  %s1698_s11 = sadd.s32 1, %s2459_s10  ;;  %s1690_s12 = sadd.s32 1, %s2463_s12   ;;  %s2463_s12 = sphi %s2461_s12, %s1690_s12   ;;  %s2459_s10 = sphi %s2457_s10, %s2458_s10   ;;  %s2455_s9 = sphi %s2453_s9, %s1703_s9   ;;  %s2451_s8 = sphi %s2449_s8, %s1704_s8  }
 0x1d6   : >> { %1697 = vst [vmem:[%s2451_s8] sm:$0xff] %v1696_v33  ;;  %p1699_p0 = scmp.ge.s32.totalorder %s1698_s11, %s3317_s29  ;;  %p1689_p1 = scmp.ge.s32.totalorder %s1690_s12, %s3317_s29 }
 0x1d8   : >> { %s3354_s11 = smov (%p1699_p0, %s1698_s11), 0  ;;  %1692 = sbr.rel (!%p1689_p1) target bundleno = 469 (0x1d5), region = 137 }
 0x1d9   : >> { %s1905_s15 = sshll.u32 %s3354_s11, 3  ;;  %s2458_s10 = smov %s3354_s11  }
 0x1da   : >> { %s1703_s9 = scalar_lea.vmem %s1684_s5, %s1905_s15 [#allocation2]   ;;  %s1704_s8 = scalar_lea.vmem %s1686_s7, %s1905_s15  }
 0x1df PF: > { %p11_p2 = scmp.ge.s32.totalorder %s2509_s19, 4   ;;  %s3346_s15 = smov %s2427_s16 }
 0x1e0   : > { %s3347_s16 = smov %s2517_s22  ;;  %s3348_s17 = smov %s2509_s19 }
 0x1e1   :  { %13 = sbr.rel (!%p11_p2) target bundleno = 2 (0x2), region = 148 }

// kernel: darqn_forward.5
= control target key start
LH: loop header
LB: loop body
LE: loop exit
PB: predicated region body
PF: predicated region fallthrough
CT: control target
= control target key end

     0   :  { %v1007_v0 = vmov 0.0|0.0   ;;  %vm191_vm0 = vcmask 130048   ;;  %s1776_s1 = inlined_call_operand.vmem [shape: f32[400,128], index: 1, kind: input, shape index: {}]   ;;  %s1777_s0 = inlined_call_operand.vmem [shape: f32[242,400], index: 0, kind: input, shape index: {}]   ;;  %s1778_s2 = inlined_call_operand.vmem [shape: f32[1,128], index: 2, kind: input, shape index: {}]   ;;  %s1779_s3 = inlined_call_operand.vmem [shape: f32[1,128], index: 3, kind: input, shape index: {}]   ;;  %s1780_s4 = inlined_call_operand.vmem [shape: f32[242,128], index: 4, kind: output, shape index: {}]  }
   0x1   :  { %900 = vmatprep.subr.bf16.mxu1 %v1007_v0  ;;  %v141_v1 = vld [vmem:[%s1776_s1] sm:$0xff]  ;;  %v142_v2 = vld [vmem:[%s1776_s1 + $0x8] sm:$0xff]  ;;  %v143_v3 = vld [vmem:[%s1776_s1 + $0x10] sm:$0xff]  ;;  %948 = vmatprep.subr.bf16.mxu0 %v1007_v0 }
   0x2   :  { %v901_v4 = vpack.c.bf16 %v142_v2, %v141_v1  ;;  %v144_v5 = vld [vmem:[%s1776_s1 + $0x18] sm:$0xff]  ;;  %v145_v7 = vld [vmem:[%s1776_s1 + $0x20] sm:$0xff]  ;;  %v146_v8 = vld [vmem:[%s1776_s1 + $0x28] sm:$0xff] }
   0x3   :  { %v904_v6 = vpack.c.bf16 %v144_v5, %v143_v3  ;;  %v173_v9 = vld [vmem:[%s1776_s1 + $0x100] sm:$0xff]  ;;  %v174_v10 = vld [vmem:[%s1776_s1 + $0x108] sm:$0xff]  ;;  %v175_v12 = vld [vmem:[%s1776_s1 + $0x110] sm:$0xff]  ;;  %v907_v14 = vpack.c.bf16 %v146_v8, %v145_v7 }
   0x4   :  { %902 = vmatpush1.bf16.msra.mxu1 %v901_v4  ;;  %v949_v11 = vpack.c.bf16 %v174_v10, %v173_v9  ;;  %v176_v13 = vld [vmem:[%s1776_s1 + $0x118] sm:$0xff]  ;;  %v147_v15 = vld [vmem:[%s1776_s1 + $0x30] sm:$0xff]  ;;  %v177_v18 = vld [vmem:[%s1776_s1 + $0x120] sm:$0xff] }
   0x5   :  { %903 = vmatprep.subr.bf16.mxu1 %v1007_v0  ;;  %v148_v16 = vld [vmem:[%s1776_s1 + $0x38] sm:$0xff]  ;;  %v952_v17 = vpack.c.bf16 %v176_v13, %v175_v12  ;;  %v178_v19 = vld [vmem:[%s1776_s1 + $0x128] sm:$0xff]  ;;  %v149_v21 = vld [vmem:[%s1776_s1 + $0x40] sm:$0xff] }
   0x6   :  { %950 = vmatpush1.bf16.msra.mxu0 %v949_v11  ;;  %v910_v20 = vpack.c.bf16 %v148_v16, %v147_v15  ;;  %v150_v22 = vld [vmem:[%s1776_s1 + $0x48] sm:$0xff]  ;;  %v955_v23 = vpack.c.bf16 %v178_v19, %v177_v18  ;;  %v179_v24 = vld [vmem:[%s1776_s1 + $0x130] sm:$0xff]  ;;  %v180_v25 = vld [vmem:[%s1776_s1 + $0x138] sm:$0xff] }
   0x7   :  { %951 = vmatprep.subr.bf16.mxu0 %v1007_v0  ;;  %v913_v26 = vpack.c.bf16 %v150_v22, %v149_v21  ;;  %v151_v27 = vld [vmem:[%s1776_s1 + $0x50] sm:$0xff]  ;;  %v152_v28 = vld [vmem:[%s1776_s1 + $0x58] sm:$0xff]  ;;  %v958_v29 = vpack.c.bf16 %v180_v25, %v179_v24  ;;  %v181_v31 = vld [vmem:[%s1776_s1 + $0x140] sm:$0xff] }
   0x8   :  { %905 = vmatpush1.bf16.msra.mxu1 %v904_v6  ;;  %v20_v30 = vld [vmem:[%s1777_s0 + $0x18] sm:$0xff]  ;;  %v182_v32 = vld [vmem:[%s1776_s1 + $0x148] sm:$0xff]  ;;  %v916_v34 = vpack.c.bf16 %v152_v28, %v151_v27  ;;  %v153_v35 = vld [vmem:[%s1776_s1 + $0x60] sm:$0xff] }
   0x9   :  { %906 = vmatprep.subr.bf16.mxu1 %v1007_v0  ;;  %867 = vmatprep.mubr.msk.f32.mxu0 %vm191_vm0, %v20_v30  ;;  %v18_v33 = vld [vmem:[%s1777_s0 + $0x8] sm:$0xff]  ;;  %v961_v37 = vpack.c.bf16 %v182_v32, %v181_v31  ;;  %v183_v38 = vld [vmem:[%s1776_s1 + $0x150] sm:$0xff]  ;;  %v184_v39 = vld [vmem:[%s1776_s1 + $0x158] sm:$0xff] }
   0xa   :  { %953 = vmatpush1.bf16.msra.mxu0 %v952_v17  ;;  %349 = vmatprep.mubr.f32.mxu1 %v18_v33  ;;  %v154_v36 = vld [vmem:[%s1776_s1 + $0x68] sm:$0xff]  ;;  %v155_v41 = vld [vmem:[%s1776_s1 + $0x70] sm:$0xff]  ;;  %v156_v42 = vld [vmem:[%s1776_s1 + $0x78] sm:$0xff]  ;;  %v964_v43 = vpack.c.bf16 %v184_v39, %v183_v38 }
   0xb   :  { %954 = vmatprep.subr.bf16.mxu0 %v1007_v0  ;;  %v919_v40 = vpack.c.bf16 %v154_v36, %v153_v35  ;;  %v185_v44 = vld [vmem:[%s1776_s1 + $0x160] sm:$0xff]  ;;  %v186_v45 = vld [vmem:[%s1776_s1 + $0x168] sm:$0xff]  ;;  %v922_v46 = vpack.c.bf16 %v156_v42, %v155_v41  ;;  %v187_v50 = vld [vmem:[%s1776_s1 + $0x170] sm:$0xff] }
   0xc   :  { %908 = vmatpush1.bf16.msra.mxu1 %v907_v14  ;;  %v157_v47 = vld [vmem:[%s1776_s1 + $0x80] sm:$0xff]  ;;  %v158_v48 = vld [vmem:[%s1776_s1 + $0x88] sm:$0xff]  ;;  %v967_v49 = vpack.c.bf16 %v186_v45, %v185_v44  ;;  %v188_v51 = vld [vmem:[%s1776_s1 + $0x178] sm:$0xff] }
   0xd   :  { %909 = vmatprep.subr.bf16.mxu1 %v1007_v0  ;;  %v925_v52 = vpack.c.bf16 %v158_v48, %v157_v47  ;;  %v159_v53 = vld [vmem:[%s1776_s1 + $0x90] sm:$0xff]  ;;  %v160_v54 = vld [vmem:[%s1776_s1 + $0x98] sm:$0xff]  ;;  %v970_v55 = vpack.c.bf16 %v188_v51, %v187_v50  ;;  %v189_v56 = vld [vmem:[%s1776_s1 + $0x180] sm:$0xff] }
   0xe   :  { %956 = vmatpush1.bf16.msra.mxu0 %v955_v23  ;;  %v190_v57 = vld [vmem:[%s1776_s1 + $0x188] sm:$0xff]  ;;  %v928_v58 = vpack.c.bf16 %v160_v54, %v159_v53  ;;  %v161_v59 = vld [vmem:[%s1776_s1 + $0xa0] sm:$0xff]  ;;  %v163_v63 = vld [vmem:[%s1776_s1 + $0xb0] sm:$0xff] }
   0xf   :  { %957 = vmatprep.subr.bf16.mxu0 %v1007_v0  ;;  %v162_v60 = vld [vmem:[%s1776_s1 + $0xa8] sm:$0xff]  ;;  %v973_v61 = vpack.c.bf16 %v190_v57, %v189_v56  ;;  %v164_v1 = vld [vmem:[%s1776_s1 + $0xb8] sm:$0xff]  ;;  %v19_v2 = vld [vmem:[%s1777_s0 + $0x10] sm:$0xff] }
  0x10   :  { %911 = vmatpush1.bf16.msra.mxu1 %v910_v20  ;;  %v931_v62 = vpack.c.bf16 %v162_v60, %v161_v59  ;;  %v24_v3 = vld [vmem:[%s1777_s0 + $0x38] sm:$0xff]  ;;  %v934_v4 = vpack.c.bf16 %v164_v1, %v163_v63  ;;  %v165_v5 = vld [vmem:[%s1776_s1 + $0xc0] sm:$0xff]  ;;  %v166_v6 = vld [vmem:[%s1776_s1 + $0xc8] sm:$0xff] }
  0x11   :  { %912 = vmatprep.subr.bf16.mxu1 %v1007_v0  ;;  %v23_v7 = vld [vmem:[%s1777_s0 + $0x30] sm:$0xff]  ;;  %v28_v8 = vld [vmem:[%s1777_s0 + $0x58] sm:$0xff]  ;;  %v937_v9 = vpack.c.bf16 %v166_v6, %v165_v5  ;;  %v169_v15 = vld [vmem:[%s1776_s1 + $0xe0] sm:$0xff] }
  0x12   :  { %959 = vmatpush1.bf16.msra.mxu0 %v958_v29  ;;  %v167_v10 = vld [vmem:[%s1776_s1 + $0xd0] sm:$0xff]  ;;  %v168_v11 = vld [vmem:[%s1776_s1 + $0xd8] sm:$0xff]  ;;  %v170_v16 = vld [vmem:[%s1776_s1 + $0xe8] sm:$0xff] }
  0x13   :  { %960 = vmatprep.subr.bf16.mxu0 %v1007_v0  ;;  %v27_v12 = vld [vmem:[%s1777_s0 + $0x50] sm:$0xff]  ;;  %v32_v13 = vld [vmem:[%s1777_s0 + $0x78] sm:$0xff]  ;;  %v940_v14 = vpack.c.bf16 %v168_v11, %v167_v10  ;;  %v943_v19 = vpack.c.bf16 %v170_v16, %v169_v15  ;;  %v17_v27 = vld [vmem:[%s1777_s0] sm:$0xff] }
  0x14   :  { %914 = vmatpush1.bf16.msra.mxu1 %v913_v26  ;;  %v31_v17 = vld [vmem:[%s1777_s0 + $0x70] sm:$0xff]  ;;  %v36_v18 = vld [vmem:[%s1777_s0 + $0x98] sm:$0xff]  ;;  %v21_v30 = vld [vmem:[%s1777_s0 + $0x20] sm:$0xff] }
  0x15   :  { %915 = vmatprep.subr.bf16.mxu1 %v1007_v0  ;;  %v171_v20 = vld [vmem:[%s1776_s1 + $0xf0] sm:$0xff]  ;;  %v172_v21 = vld [vmem:[%s1776_s1 + $0xf8] sm:$0xff]  ;;  %v26_v31 = vld [vmem:[%s1777_s0 + $0x48] sm:$0xff] }
  0x16   :  { %962 = vmatpush1.bf16.msra.mxu0 %v961_v37  ;;  %v35_v22 = vld [vmem:[%s1777_s0 + $0x90] sm:$0xff]  ;;  %v40_v23 = vld [vmem:[%s1777_s0 + $0xb8] sm:$0xff]  ;;  %v946_v24 = vpack.c.bf16 %v172_v21, %v171_v20  ;;  %v30_v35 = vld [vmem:[%s1777_s0 + $0x68] sm:$0xff] }
  0x17   :  { %963 = vmatprep.subr.bf16.mxu0 %v1007_v0  ;;  %v39_v25 = vld [vmem:[%s1777_s0 + $0xb0] sm:$0xff]  ;;  %v44_v26 = vld [vmem:[%s1777_s0 + $0xd8] sm:$0xff]  ;;  %v29_v38 = vld [vmem:[%s1777_s0 + $0x60] sm:$0xff] }
  0x18   :  { %917 = vmatpush1.bf16.msra.mxu1 %v916_v34  ;;  %v43_v28 = vld [vmem:[%s1777_s0 + $0xd0] sm:$0xff]  ;;  %v48_v29 = vld [vmem:[%s1777_s0 + $0xf8] sm:$0xff]  ;;  %v25_v34 = vld [vmem:[%s1777_s0 + $0x40] sm:$0xff] }
  0x19   :  { %918 = vmatprep.subr.bf16.mxu1 %v1007_v0  ;;  %v47_v32 = vld [vmem:[%s1777_s0 + $0xf0] sm:$0xff]  ;;  %v52_v33 = vld [vmem:[%s1777_s0 + $0x118] sm:$0xff]  ;;  %v34_v39 = vld [vmem:[%s1777_s0 + $0x88] sm:$0xff] }
  0x1a   :  { %965 = vmatpush1.bf16.msra.mxu0 %v964_v43  ;;  %v51_v36 = vld [vmem:[%s1777_s0 + $0x110] sm:$0xff]  ;;  %v56_v37 = vld [vmem:[%s1777_s0 + $0x138] sm:$0xff]  ;;  %v33_v42 = vld [vmem:[%s1777_s0 + $0x80] sm:$0xff] }
  0x1b   :  { %966 = vmatprep.subr.bf16.mxu0 %v1007_v0  ;;  %v60_v41 = vld [vmem:[%s1777_s0 + $0x158] sm:$0xff]  ;;  %v38_v43 = vld [vmem:[%s1777_s0 + $0xa8] sm:$0xff]  ;;  %v59_v44 = vld [vmem:[%s1777_s0 + $0x150] sm:$0xff] }
  0x1c   :  { %920 = vmatpush1.bf16.msra.mxu1 %v919_v40  ;;  %v55_v40 = vld [vmem:[%s1777_s0 + $0x130] sm:$0xff]  ;;  %v64_v45 = vld [vmem:[%s1777_s0 + $0x178] sm:$0xff]  ;;  %v42_v47 = vld [vmem:[%s1777_s0 + $0xc8] sm:$0xff] }
  0x1d   :  { %921 = vmatprep.subr.bf16.mxu1 %v1007_v0  ;;  %v63_v48 = vld [vmem:[%s1777_s0 + $0x170] sm:$0xff]  ;;  %v41_v50 = vld [vmem:[%s1777_s0 + $0xc0] sm:$0xff]  ;;  %v46_v51 = vld [vmem:[%s1777_s0 + $0xe8] sm:$0xff] }
  0x1e   :  { %968 = vmatpush1.bf16.msra.mxu0 %v967_v49  ;;  %v68_v49 = vld [vmem:[%s1777_s0 + $0x198] sm:$0xff]  ;;  %v45_v54 = vld [vmem:[%s1777_s0 + $0xe0] sm:$0xff]  ;;  %v71_v56 = vld [vmem:[%s1777_s0 + $0x1b0] sm:$0xff] }
  0x1f   :  { %969 = vmatprep.subr.bf16.mxu0 %v1007_v0  ;;  %v72_v53 = vld [vmem:[%s1777_s0 + $0x1b8] sm:$0xff]  ;;  %v54_v59 = vld [vmem:[%s1777_s0 + $0x128] sm:$0xff]  ;;  %v75_v60 = vld [vmem:[%s1777_s0 + $0x1d0] sm:$0xff] }
  0x20   :  { %923 = vmatpush1.bf16.msra.mxu1 %v922_v46  ;;  %v37_v46 = vld [vmem:[%s1777_s0 + $0xa0] sm:$0xff]  ;;  %v76_v57 = vld [vmem:[%s1777_s0 + $0x1d8] sm:$0xff]  ;;  %v58_v63 = vld [vmem:[%s1777_s0 + $0x148] sm:$0xff] }
  0x21   :  { %924 = vmatprep.subr.bf16.mxu1 %v1007_v0  ;;  %v79_v1 = vld [vmem:[%s1777_s0 + $0x1f0] sm:$0xff]  ;;  %v88_v6 = vld [vmem:[%s1777_s0 + $0x238] sm:$0xff]  ;;  %v65_v11 = vld [vmem:[%s1777_s0 + $0x180] sm:$0xff] }
  0x22   :  { %971 = vmatpush1.bf16.msra.mxu0 %v970_v55  ;;  %v50_v55 = vld [vmem:[%s1777_s0 + $0x108] sm:$0xff]  ;;  %v83_v5 = vld [vmem:[%s1777_s0 + $0x210] sm:$0xff]  ;;  %v92_v10 = vld [vmem:[%s1777_s0 + $0x258] sm:$0xff] }
  0x23   :  { %972 = vmatprep.subr.bf16.mxu0 %v1007_v0  ;;  %v69_v15 = vld [vmem:[%s1777_s0 + $0x1a0] sm:$0xff]  ;;  %v74_v16 = vld [vmem:[%s1777_s0 + $0x1c8] sm:$0xff]  ;;  %v99_v21 = vld [vmem:[%s1777_s0 + $0x290] sm:$0xff] }
  0x24   :  { %926 = vmatpush1.bf16.msra.mxu1 %v925_v52  ;;  %v67_v52 = vld [vmem:[%s1777_s0 + $0x190] sm:$0xff]  ;;  %v78_v20 = vld [vmem:[%s1777_s0 + $0x1e8] sm:$0xff] }
  0x25   :  { %927 = vmatprep.subr.bf16.mxu1 %v1007_v0 }
  0x26   :  { %974 = vmatpush1.bf16.msra.mxu0 %v973_v61  ;;  %v80_v61 = vld [vmem:[%s1777_s0 + $0x1f8] sm:$0xff] }
  0x28   :  { %929 = vmatpush1.bf16.msra.mxu1 %v928_v58  ;;  %v49_v58 = vld [vmem:[%s1777_s0 + $0x100] sm:$0xff] }
  0x29   :  { %930 = vmatprep.subr.bf16.mxu1 %v1007_v0  ;;  %570 = vmatmul.mubr.f32.vlgmr.msra.gmra.mrb[0].mxu0 %v19_v2  ;;  %v84_v2 = vld [vmem:[%s1777_s0 + $0x218] sm:$0xff] }
  0x2a   :  { %868 = vmatprep.mubr.msk.f32.mxu0 %vm191_vm0, %v24_v3  ;;  %v57_v3 = vld [vmem:[%s1777_s0 + $0x140] sm:$0xff] }
  0x2c   :  { %932 = vmatpush1.bf16.msra.mxu1 %v931_v62  ;;  %v53_v62 = vld [vmem:[%s1777_s0 + $0x120] sm:$0xff] }
  0x2d   :  { %933 = vmatprep.subr.bf16.mxu1 %v1007_v0  ;;  %575 = vmatmul.mubr.f32.gmra.mrb[2].mxu0 %v23_v7  ;;  %v61_v7 = vld [vmem:[%s1777_s0 + $0x160] sm:$0xff] }
  0x2e   :  { %869 = vmatprep.mubr.msk.f32.mxu0 %vm191_vm0, %v28_v8  ;;  %v66_v8 = vld [vmem:[%s1777_s0 + $0x188] sm:$0xff] }
  0x30   :  { %935 = vmatpush1.bf16.msra.mxu1 %v934_v4  ;;  %v62_v4 = vld [vmem:[%s1777_s0 + $0x168] sm:$0xff] }
  0x31   :  { %936 = vmatprep.subr.bf16.mxu1 %v1007_v0  ;;  %580 = vmatmul.mubr.f32.gmra.mrb[4].mxu0 %v27_v12  ;;  %v70_v12 = vld [vmem:[%s1777_s0 + $0x1a8] sm:$0xff] }
  0x32   :  { %870 = vmatprep.mubr.msk.f32.mxu0 %vm191_vm0, %v32_v13  ;;  %v91_v13 = vld [vmem:[%s1777_s0 + $0x250] sm:$0xff] }
  0x34   :  { %938 = vmatpush1.bf16.msra.mxu1 %v937_v9  ;;  %v87_v9 = vld [vmem:[%s1777_s0 + $0x230] sm:$0xff] }
  0x35   :  { %939 = vmatprep.subr.bf16.mxu1 %v1007_v0  ;;  %585 = vmatmul.mubr.f32.gmra.mrb[6].mxu0 %v31_v17  ;;  %v95_v17 = vld [vmem:[%s1777_s0 + $0x270] sm:$0xff] }
  0x36   :  { %871 = vmatprep.mubr.msk.f32.mxu0 %vm191_vm0, %v36_v18  ;;  %v100_v18 = vld [vmem:[%s1777_s0 + $0x298] sm:$0xff] }
  0x38   :  { %941 = vmatpush1.bf16.msra.mxu1 %v940_v14  ;;  %v96_v14 = vld [vmem:[%s1777_s0 + $0x278] sm:$0xff] }
  0x39   :  { %942 = vmatprep.subr.bf16.mxu1 %v1007_v0  ;;  %590 = vmatmul.mubr.f32.gmra.mrb[8].mxu0 %v35_v22  ;;  %v104_v22 = vld [vmem:[%s1777_s0 + $0x2b8] sm:$0xff] }
  0x3a   :  { %872 = vmatprep.mubr.msk.f32.mxu0 %vm191_vm0, %v40_v23  ;;  %v77_v23 = vld [vmem:[%s1777_s0 + $0x1e0] sm:$0xff] }
  0x3c   :  { %944 = vmatpush1.bf16.msra.mxu1 %v943_v19  ;;  %v73_v19 = vld [vmem:[%s1777_s0 + $0x1c0] sm:$0xff] }
  0x3d   :  { %945 = vmatprep.subr.bf16.mxu1 %v1007_v0  ;;  %595 = vmatmul.mubr.f32.gmra.mrb[10].mxu0 %v39_v25  ;;  %v22_v0 = vld [vmem:[%s1777_s0 + $0x28] sm:$0xff]  ;;  %v103_v25 = vld [vmem:[%s1777_s0 + $0x2b0] sm:$0xff] }
  0x3e   :  { %873 = vmatprep.mubr.msk.f32.mxu0 %vm191_vm0, %v44_v26  ;;  %v108_v26 = vld [vmem:[%s1777_s0 + $0x2d8] sm:$0xff] }
  0x40   :  { %947 = vmatpush1.bf16.msra.mxu1 %v946_v24  ;;  %v82_v24 = vld [vmem:[%s1777_s0 + $0x208] sm:$0xff] }
  0x41   :  { %600 = vmatmul.mubr.f32.gmra.mrb[12].mxu0 %v43_v28  ;;  %v107_v28 = vld [vmem:[%s1777_s0 + $0x2d0] sm:$0xff] }
  0x42   :  { %874 = vmatprep.mubr.msk.f32.mxu0 %vm191_vm0, %v48_v29  ;;  %v112_v29 = vld [vmem:[%s1777_s0 + $0x2f8] sm:$0xff] }
  0x43   :  { %350 = vmatmul.mubr.f32.vlgmr.msra.gmra.mrb[0].mxu1 %v17_v27  ;;  %v81_v27 = vld [vmem:[%s1777_s0 + $0x200] sm:$0xff] }
  0x44   :  { %354 = vmatprep.mubr.f32.mxu1 %v22_v0  ;;  %v86_v0 = vld [vmem:[%s1777_s0 + $0x228] sm:$0xff] }
  0x45   :  { %605 = vmatmul.mubr.f32.gmra.mrb[14].mxu0 %v47_v32  ;;  %v111_v32 = vld [vmem:[%s1777_s0 + $0x2f0] sm:$0xff] }
  0x46   :  { %875 = vmatprep.mubr.msk.f32.mxu0 %vm191_vm0, %v52_v33  ;;  %v116_v33 = vld [vmem:[%s1777_s0 + $0x318] sm:$0xff] }
  0x47   :  { %355 = vmatmul.mubr.f32.gmra.mrb[2].mxu1 %v21_v30  ;;  %v85_v30 = vld [vmem:[%s1777_s0 + $0x220] sm:$0xff] }
  0x48   :  { %359 = vmatprep.mubr.f32.mxu1 %v26_v31  ;;  %v90_v31 = vld [vmem:[%s1777_s0 + $0x248] sm:$0xff] }
  0x49   :  { %610 = vmatmul.mubr.f32.gmra.mrb[16].mxu0 %v51_v36  ;;  %v115_v36 = vld [vmem:[%s1777_s0 + $0x310] sm:$0xff] }
  0x4a   :  { %876 = vmatprep.mubr.msk.f32.mxu0 %vm191_vm0, %v56_v37  ;;  %v120_v37 = vld [vmem:[%s1777_s0 + $0x338] sm:$0xff] }
  0x4b   :  { %360 = vmatmul.mubr.f32.gmra.mrb[4].mxu1 %v25_v34  ;;  %v89_v34 = vld [vmem:[%s1777_s0 + $0x240] sm:$0xff] }
  0x4c   :  { %364 = vmatprep.mubr.f32.mxu1 %v30_v35  ;;  %v94_v35 = vld [vmem:[%s1777_s0 + $0x268] sm:$0xff] }
  0x4d   :  { %615 = vmatmul.mubr.f32.gmra.mrb[18].mxu0 %v55_v40  ;;  %v119_v40 = vld [vmem:[%s1777_s0 + $0x330] sm:$0xff] }
  0x4e   :  { %877 = vmatprep.mubr.msk.f32.mxu0 %vm191_vm0, %v60_v41  ;;  %v124_v41 = vld [vmem:[%s1777_s0 + $0x358] sm:$0xff] }
  0x4f   :  { %365 = vmatmul.mubr.f32.gmra.mrb[6].mxu1 %v29_v38  ;;  %v93_v38 = vld [vmem:[%s1777_s0 + $0x260] sm:$0xff] }
  0x50   :  { %369 = vmatprep.mubr.f32.mxu1 %v34_v39  ;;  %v98_v39 = vld [vmem:[%s1777_s0 + $0x288] sm:$0xff] }
  0x51   :  { %620 = vmatmul.mubr.f32.gmra.mrb[20].mxu0 %v59_v44  ;;  %v123_v44 = vld [vmem:[%s1777_s0 + $0x350] sm:$0xff] }
  0x52   :  { %878 = vmatprep.mubr.msk.f32.mxu0 %vm191_vm0, %v64_v45  ;;  %v128_v45 = vld [vmem:[%s1777_s0 + $0x378] sm:$0xff] }
  0x53   :  { %370 = vmatmul.mubr.f32.gmra.mrb[8].mxu1 %v33_v42  ;;  %v97_v42 = vld [vmem:[%s1777_s0 + $0x280] sm:$0xff] }
  0x54   :  { %374 = vmatprep.mubr.f32.mxu1 %v38_v43  ;;  %v102_v43 = vld [vmem:[%s1777_s0 + $0x2a8] sm:$0xff] }
  0x55   :  { %625 = vmatmul.mubr.f32.gmra.mrb[22].mxu0 %v63_v48  ;;  %v127_v48 = vld [vmem:[%s1777_s0 + $0x370] sm:$0xff] }
  0x56   :  { %879 = vmatprep.mubr.msk.f32.mxu0 %vm191_vm0, %v68_v49  ;;  %v132_v49 = vld [vmem:[%s1777_s0 + $0x398] sm:$0xff] }
  0x57   :  { %375 = vmatmul.mubr.f32.gmra.mrb[10].mxu1 %v37_v46  ;;  %v101_v46 = vld [vmem:[%s1777_s0 + $0x2a0] sm:$0xff] }
  0x58   :  { %379 = vmatprep.mubr.f32.mxu1 %v42_v47  ;;  %v106_v47 = vld [vmem:[%s1777_s0 + $0x2c8] sm:$0xff] }
  0x59   :  { %630 = vmatmul.mubr.f32.gmra.mrb[24].mxu0 %v67_v52  ;;  %v131_v52 = vld [vmem:[%s1777_s0 + $0x390] sm:$0xff] }
  0x5a   :  { %880 = vmatprep.mubr.msk.f32.mxu0 %vm191_vm0, %v72_v53  ;;  %v136_v53 = vld [vmem:[%s1777_s0 + $0x3b8] sm:$0xff] }
  0x5b   :  { %380 = vmatmul.mubr.f32.gmra.mrb[12].mxu1 %v41_v50  ;;  %v105_v50 = vld [vmem:[%s1777_s0 + $0x2c0] sm:$0xff] }
  0x5c   :  { %384 = vmatprep.mubr.f32.mxu1 %v46_v51  ;;  %v110_v51 = vld [vmem:[%s1777_s0 + $0x2e8] sm:$0xff] }
  0x5d   :  { %635 = vmatmul.mubr.f32.gmra.mrb[26].mxu0 %v71_v56  ;;  %v135_v56 = vld [vmem:[%s1777_s0 + $0x3b0] sm:$0xff] }
  0x5e   :  { %881 = vmatprep.mubr.msk.f32.mxu0 %vm191_vm0, %v76_v57  ;;  %v140_v57 = vld [vmem:[%s1777_s0 + $0x3d8] sm:$0x3] }
  0x5f   :  { %385 = vmatmul.mubr.f32.gmra.mrb[14].mxu1 %v45_v54  ;;  %v109_v54 = vld [vmem:[%s1777_s0 + $0x2e0] sm:$0xff] }
  0x60   :  { %389 = vmatprep.mubr.f32.mxu1 %v50_v55  ;;  %v114_v55 = vld [vmem:[%s1777_s0 + $0x308] sm:$0xff] }
  0x61   :  { %640 = vmatmul.mubr.f32.gmra.mrb[28].mxu0 %v75_v60  ;;  %v139_v60 = vld [vmem:[%s1777_s0 + $0x3d0] sm:$0x3] }
  0x62   :  { %882 = vmatprep.mubr.msk.f32.mxu0 %vm191_vm0, %v80_v61  ;;  %v117_v61 = vld [vmem:[%s1777_s0 + $0x320] sm:$0xff] }
  0x63   :  { %390 = vmatmul.mubr.f32.gmra.mrb[16].mxu1 %v49_v58  ;;  %v113_v58 = vld [vmem:[%s1777_s0 + $0x300] sm:$0xff] }
  0x64   :  { %394 = vmatprep.mubr.f32.mxu1 %v54_v59  ;;  %v118_v59 = vld [vmem:[%s1777_s0 + $0x328] sm:$0xff] }
  0x65   :  { %645 = vmatmul.mubr.f32.gmra.mrb[30].mxu0 %v79_v1  ;;  %v126_v1 = vld [vmem:[%s1777_s0 + $0x368] sm:$0xff] }
  0x66   :  { %883 = vmatprep.mubr.msk.f32.mxu0 %vm191_vm0, %v84_v2  ;;  %v125_v2 = vld [vmem:[%s1777_s0 + $0x360] sm:$0xff] }
  0x67   :  { %395 = vmatmul.mubr.f32.gmra.mrb[18].mxu1 %v53_v62  ;;  %v122_v62 = vld [vmem:[%s1777_s0 + $0x348] sm:$0xff] }
  0x68   :  { %399 = vmatprep.mubr.f32.mxu1 %v58_v63  ;;  %v121_v63 = vld [vmem:[%s1777_s0 + $0x340] sm:$0xff] }
  0x69   :  { %650 = vmatmul.mubr.f32.gmra.mrb[32].mxu0 %v83_v5  ;;  %v134_v5 = vld [vmem:[%s1777_s0 + $0x3a8] sm:$0xff] }
  0x6a   :  { %884 = vmatprep.mubr.msk.f32.mxu0 %vm191_vm0, %v88_v6  ;;  %v133_v6 = vld [vmem:[%s1777_s0 + $0x3a0] sm:$0xff] }
  0x6b   :  { %400 = vmatmul.mubr.f32.gmra.mrb[20].mxu1 %v57_v3  ;;  %v130_v3 = vld [vmem:[%s1777_s0 + $0x388] sm:$0xff] }
  0x6c   :  { %404 = vmatprep.mubr.f32.mxu1 %v62_v4  ;;  %v129_v4 = vld [vmem:[%s1777_s0 + $0x380] sm:$0xff] }
  0x6d   :  { %655 = vmatmul.mubr.f32.gmra.mrb[34].mxu0 %v87_v9 }
  0x6e   :  { %885 = vmatprep.mubr.msk.f32.mxu0 %vm191_vm0, %v92_v10 }
  0x6f   :  { %405 = vmatmul.mubr.f32.gmra.mrb[22].mxu1 %v61_v7  ;;  %v138_v7 = vld [vmem:[%s1777_s0 + $0x3c8] sm:$0x3] }
  0x70   :  { %409 = vmatprep.mubr.f32.mxu1 %v66_v8  ;;  %v137_v8 = vld [vmem:[%s1777_s0 + $0x3c0] sm:$0x3] }
  0x71   :  { %660 = vmatmul.mubr.f32.gmra.mrb[36].mxu0 %v91_v13 }
  0x72   :  { %886 = vmatprep.mubr.msk.f32.mxu0 %vm191_vm0, %v96_v14 }
  0x73   :  { %410 = vmatmul.mubr.f32.gmra.mrb[24].mxu1 %v65_v11 }
  0x74   :  { %414 = vmatprep.mubr.f32.mxu1 %v70_v12 }
  0x75   :  { %665 = vmatmul.mubr.f32.gmra.mrb[38].mxu0 %v95_v17 }
  0x76   :  { %887 = vmatprep.mubr.msk.f32.mxu0 %vm191_vm0, %v100_v18 }
  0x77   :  { %415 = vmatmul.mubr.f32.gmra.mrb[26].mxu1 %v69_v15 }
  0x78   :  { %419 = vmatprep.mubr.f32.mxu1 %v74_v16 }
  0x79   :  { %670 = vmatmul.mubr.f32.gmra.mrb[40].mxu0 %v99_v21 }
  0x7a   :  { %888 = vmatprep.mubr.msk.f32.mxu0 %vm191_vm0, %v104_v22  ;;  %v1614_v22 = vld [vmem:[%s1778_s2] ss:$0 sm:$0xff] }
  0x7b   :  { %420 = vmatmul.mubr.f32.gmra.mrb[28].mxu1 %v73_v19 }
  0x7c   :  { %424 = vmatprep.mubr.f32.mxu1 %v78_v20 }
  0x7d   :  { %675 = vmatmul.mubr.f32.gmra.mrb[42].mxu0 %v103_v25 }
  0x7e   :  { %889 = vmatprep.mubr.msk.f32.mxu0 %vm191_vm0, %v108_v26  ;;  %v1619_v26 = vld [vmem:[%s1779_s3] ss:$0 sm:$0xff] }
  0x7f   :  { %425 = vmatmul.mubr.f32.gmra.mrb[30].mxu1 %v77_v23 }
  0x80   :  { %429 = vmatprep.mubr.f32.mxu1 %v82_v24 }
  0x81   :  { %680 = vmatmul.mubr.f32.gmra.mrb[44].mxu0 %v107_v28 }
  0x82   :  { %890 = vmatprep.mubr.msk.f32.mxu0 %vm191_vm0, %v112_v29 }
  0x83   :  { %430 = vmatmul.mubr.f32.gmra.mrb[32].mxu1 %v81_v27 }
  0x84   :  { %434 = vmatprep.mubr.f32.mxu1 %v86_v0 }
  0x85   :  { %685 = vmatmul.mubr.f32.gmra.mrb[46].mxu0 %v111_v32 }
  0x86   :  { %891 = vmatprep.mubr.msk.f32.mxu0 %vm191_vm0, %v116_v33 }
  0x87   :  { %435 = vmatmul.mubr.f32.gmra.mrb[34].mxu1 %v85_v30 }
  0x88   :  { %439 = vmatprep.mubr.f32.mxu1 %v90_v31 }
  0x89   :  { %690 = vmatmul.mubr.f32.gmra.mrb[48].mxu0 %v115_v36 }
  0x8a   :  { %892 = vmatprep.mubr.msk.f32.mxu0 %vm191_vm0, %v120_v37 }
  0x8b   :  { %440 = vmatmul.mubr.f32.gmra.mrb[36].mxu1 %v89_v34 }
  0x8c   :  { %444 = vmatprep.mubr.f32.mxu1 %v94_v35 }
  0x8d   :  { %695 = vmatmul.mubr.f32.gmra.mrb[50].mxu0 %v119_v40 }
  0x8e   :  { %893 = vmatprep.mubr.msk.f32.mxu0 %vm191_vm0, %v124_v41 }
  0x8f   :  { %445 = vmatmul.mubr.f32.gmra.mrb[38].mxu1 %v93_v38 }
  0x90   :  { %449 = vmatprep.mubr.f32.mxu1 %v98_v39 }
  0x91   :  { %700 = vmatmul.mubr.f32.gmra.mrb[52].mxu0 %v123_v44 }
  0x92   :  { %894 = vmatprep.mubr.msk.f32.mxu0 %vm191_vm0, %v128_v45 }
  0x93   :  { %450 = vmatmul.mubr.f32.gmra.mrb[40].mxu1 %v97_v42 }
  0x94   :  { %454 = vmatprep.mubr.f32.mxu1 %v102_v43 }
  0x95   :  { %705 = vmatmul.mubr.f32.gmra.mrb[54].mxu0 %v127_v48 }
  0x96   :  { %895 = vmatprep.mubr.msk.f32.mxu0 %vm191_vm0, %v132_v49 }
  0x97   :  { %455 = vmatmul.mubr.f32.gmra.mrb[42].mxu1 %v101_v46 }
  0x98   :  { %459 = vmatprep.mubr.f32.mxu1 %v106_v47 }
  0x99   :  { %710 = vmatmul.mubr.f32.gmra.mrb[56].mxu0 %v131_v52 }
  0x9a   :  { %896 = vmatprep.mubr.msk.f32.mxu0 %vm191_vm0, %v136_v53 }
  0x9b   :  { %460 = vmatmul.mubr.f32.gmra.mrb[44].mxu1 %v105_v50 }
  0x9c   :  { %464 = vmatprep.mubr.f32.mxu1 %v110_v51 }
  0x9d   :  { %715 = vmatmul.mubr.f32.gmra.mrb[58].mxu0 %v135_v56 }
  0x9e   :  { %897 = vmatprep.mubr.msk.f32.mxu0 %vm191_vm0, %v140_v57 }
  0x9f   :  { %465 = vmatmul.mubr.f32.gmra.mrb[46].mxu1 %v109_v54 }
  0xa0   :  { %469 = vmatprep.mubr.f32.mxu1 %v114_v55 }
  0xa1   :  { %720 = vmatmul.mubr.f32.gmra.mrb[60].mxu0 %v139_v60 }
  0xa3   :  { %470 = vmatmul.mubr.f32.gmra.mrb[48].mxu1 %v113_v58 }
  0xa4   :  { %474 = vmatprep.mubr.f32.mxu1 %v118_v59 }
  0xa7   :  { %475 = vmatmul.mubr.f32.gmra.mrb[50].mxu1 %v117_v61 }
  0xa8   :  { %479 = vmatprep.mubr.f32.mxu1 %v122_v62 }
  0xab   :  { %480 = vmatmul.mubr.f32.gmra.mrb[52].mxu1 %v121_v63 }
  0xac   :  { %484 = vmatprep.mubr.f32.mxu1 %v126_v1 }
  0xaf   :  { %485 = vmatmul.mubr.f32.gmra.mrb[54].mxu1 %v125_v2 }
  0xb0   :  { %489 = vmatprep.mubr.f32.mxu1 %v130_v3 }
  0xb3   :  { %490 = vmatmul.mubr.f32.gmra.mrb[56].mxu1 %v129_v4 }
  0xb4   :  { %494 = vmatprep.mubr.f32.mxu1 %v134_v5 }
  0xb7   :  { %495 = vmatmul.mubr.f32.gmra.mrb[58].mxu1 %v133_v6 }
  0xb8   :  { %499 = vmatprep.mubr.f32.mxu1 %v138_v7 }
  0xbb   :  { %500 = vmatmul.mubr.f32.gmra.mrb[60].mxu1 %v137_v8 }
  0xfc   :  { %v571_v9 = vpop.f32.mrb[0].mxu0 }
  0xfd   :  { %v573_v10 = vpop.f32.mrb[1].mxu0 }
 0x100   :  { %v576_v11 = vpop.f32.mrb[2].mxu0 }
 0x101   :  { %v578_v12 = vpop.f32.mrb[3].mxu0 }
 0x104   :  { %v581_v13 = vpop.f32.mrb[4].mxu0 }
 0x105   :  { %v583_v14 = vpop.f32.mrb[5].mxu0 }
 0x108   :  { %v586_v15 = vpop.f32.mrb[6].mxu0 }
 0x109   :  { %v588_v16 = vpop.f32.mrb[7].mxu0 }
 0x10c   :  { %v591_v17 = vpop.f32.mrb[8].mxu0 }
 0x10d   :  { %v593_v18 = vpop.f32.mrb[9].mxu0 }
 0x110   :  { %v596_v19 = vpop.f32.mrb[10].mxu0 }
 0x111   :  { %v598_v20 = vpop.f32.mrb[11].mxu0 }
 0x114   :  { %v601_v25 = vpop.f32.mrb[12].mxu0 }
 0x115   :  { %v603_v27 = vpop.f32.mrb[13].mxu0 }
 0x116   :  { %v351_v21 = vpop.f32.mrb[0].mxu1 }
 0x117   :  { %v572_v23 = vadd.f32 %v571_v9, %v351_v21  ;;  %v353_v24 = vpop.f32.mrb[1].mxu1 }
 0x118   :  { %v606_v32 = vpop.f32.mrb[14].mxu0 }
 0x119   :  { %v732_v0 = vmul.f32 %v1614_v22, %v572_v23  ;;  %v608_v33 = vpop.f32.mrb[15].mxu0 }
 0x11a   :  { %v356_v28 = vpop.f32.mrb[2].mxu1 }
 0x11b   :  { %v770_v29 = vadd.f32 %v1619_v26, %v732_v0  ;;  %v577_v30 = vadd.f32 %v576_v11, %v356_v28  ;;  %v358_v31 = vpop.f32.mrb[3].mxu1 }
 0x11c   :  { %v611_v40 = vpop.f32.mrb[16].mxu0 }
 0x11d   :  { %v801_v34 = vmax.f32 %v770_v29, 0.0  ;;  %v733_v35 = vmul.f32 %v1614_v22, %v577_v30  ;;  %v613_v41 = vpop.f32.mrb[17].mxu0 }
 0x11e   :  { %v361_v36 = vpop.f32.mrb[4].mxu1 }
 0x11f   :  { %832 = vst [vmem:[%s1780_s4] sm:$0xff] %v801_v34  ;;  %v771_v37 = vadd.f32 %v1619_v26, %v733_v35  ;;  %v582_v38 = vadd.f32 %v581_v13, %v361_v36  ;;  %v363_v39 = vpop.f32.mrb[5].mxu1 }
 0x120   :  { %v616_v48 = vpop.f32.mrb[18].mxu0 }
 0x121   :  { %v802_v42 = vmax.f32 %v771_v37, 0.0  ;;  %v734_v43 = vmul.f32 %v1614_v22, %v582_v38  ;;  %v618_v49 = vpop.f32.mrb[19].mxu0 }
 0x122   :  { %v366_v44 = vpop.f32.mrb[6].mxu1 }
 0x123   :  { %833 = vst [vmem:[%s1780_s4 + $0x8] sm:$0xff] %v802_v42  ;;  %v772_v45 = vadd.f32 %v1619_v26, %v734_v43  ;;  %v587_v46 = vadd.f32 %v586_v15, %v366_v44  ;;  %v368_v47 = vpop.f32.mrb[7].mxu1 }
 0x124   :  { %v621_v56 = vpop.f32.mrb[20].mxu0 }
 0x125   :  { %v803_v50 = vmax.f32 %v772_v45, 0.0  ;;  %v735_v51 = vmul.f32 %v1614_v22, %v587_v46  ;;  %v623_v57 = vpop.f32.mrb[21].mxu0 }
 0x126   :  { %v371_v52 = vpop.f32.mrb[8].mxu1 }
 0x127   :  { %834 = vst [vmem:[%s1780_s4 + $0x10] sm:$0xff] %v803_v50  ;;  %v773_v53 = vadd.f32 %v1619_v26, %v735_v51  ;;  %v592_v54 = vadd.f32 %v591_v17, %v371_v52  ;;  %v373_v55 = vpop.f32.mrb[9].mxu1 }
 0x128   :  { %v626_v1 = vpop.f32.mrb[22].mxu0 }
 0x129   :  { %v804_v58 = vmax.f32 %v773_v53, 0.0  ;;  %v736_v59 = vmul.f32 %v1614_v22, %v592_v54  ;;  %v628_v2 = vpop.f32.mrb[23].mxu0 }
 0x12a   :  { %v376_v60 = vpop.f32.mrb[10].mxu1 }
 0x12b   :  { %835 = vst [vmem:[%s1780_s4 + $0x18] sm:$0xff] %v804_v58  ;;  %v774_v61 = vadd.f32 %v1619_v26, %v736_v59  ;;  %v597_v62 = vadd.f32 %v596_v19, %v376_v60  ;;  %v378_v63 = vpop.f32.mrb[11].mxu1 }
 0x12c   :  { %v631_v9 = vpop.f32.mrb[24].mxu0 }
 0x12d   :  { %v805_v3 = vmax.f32 %v774_v61, 0.0  ;;  %v737_v4 = vmul.f32 %v1614_v22, %v597_v62  ;;  %v633_v10 = vpop.f32.mrb[25].mxu0 }
 0x12e   :  { %v381_v5 = vpop.f32.mrb[12].mxu1 }
 0x12f   :  { %836 = vst [vmem:[%s1780_s4 + $0x20] sm:$0xff] %v805_v3  ;;  %v775_v6 = vadd.f32 %v1619_v26, %v737_v4  ;;  %v602_v7 = vadd.f32 %v601_v25, %v381_v5  ;;  %v383_v8 = vpop.f32.mrb[13].mxu1 }
 0x130   :  { %v636_v17 = vpop.f32.mrb[26].mxu0 }
 0x131   :  { %v806_v11 = vmax.f32 %v775_v6, 0.0  ;;  %v738_v12 = vmul.f32 %v1614_v22, %v602_v7  ;;  %v638_v18 = vpop.f32.mrb[27].mxu0 }
 0x132   :  { %v386_v13 = vpop.f32.mrb[14].mxu1 }
 0x133   :  { %837 = vst [vmem:[%s1780_s4 + $0x28] sm:$0xff] %v806_v11  ;;  %v776_v14 = vadd.f32 %v1619_v26, %v738_v12  ;;  %v607_v15 = vadd.f32 %v606_v32, %v386_v13  ;;  %v388_v16 = vpop.f32.mrb[15].mxu1 }
 0x134   :  { %v641_v27 = vpop.f32.mrb[28].mxu0 }
 0x135   :  { %v807_v19 = vmax.f32 %v776_v14, 0.0  ;;  %v739_v20 = vmul.f32 %v1614_v22, %v607_v15  ;;  %v643_v0 = vpop.f32.mrb[29].mxu0 }
 0x136   :  { %v391_v21 = vpop.f32.mrb[16].mxu1 }
 0x137   :  { %838 = vst [vmem:[%s1780_s4 + $0x30] sm:$0xff] %v807_v19  ;;  %v777_v23 = vadd.f32 %v1619_v26, %v739_v20  ;;  %v612_v24 = vadd.f32 %v611_v40, %v391_v21  ;;  %v393_v25 = vpop.f32.mrb[17].mxu1 }
 0x138   :  { %v646_v34 = vpop.f32.mrb[30].mxu0 }
 0x139   :  { %v808_v28 = vmax.f32 %v777_v23, 0.0  ;;  %v740_v29 = vmul.f32 %v1614_v22, %v612_v24  ;;  %v648_v35 = vpop.f32.mrb[31].mxu0 }
 0x13a   :  { %v396_v30 = vpop.f32.mrb[18].mxu1 }
 0x13b   :  { %839 = vst [vmem:[%s1780_s4 + $0x38] sm:$0xff] %v808_v28  ;;  %v778_v31 = vadd.f32 %v1619_v26, %v740_v29  ;;  %v617_v32 = vadd.f32 %v616_v48, %v396_v30  ;;  %v398_v33 = vpop.f32.mrb[19].mxu1 }
 0x13c   :  { %v651_v42 = vpop.f32.mrb[32].mxu0 }
 0x13d   :  { %v809_v36 = vmax.f32 %v778_v31, 0.0  ;;  %v741_v37 = vmul.f32 %v1614_v22, %v617_v32  ;;  %v653_v43 = vpop.f32.mrb[33].mxu0 }
 0x13e   :  { %v401_v38 = vpop.f32.mrb[20].mxu1 }
 0x13f   :  { %840 = vst [vmem:[%s1780_s4 + $0x40] sm:$0xff] %v809_v36  ;;  %v779_v39 = vadd.f32 %v1619_v26, %v741_v37  ;;  %v622_v40 = vadd.f32 %v621_v56, %v401_v38  ;;  %v403_v41 = vpop.f32.mrb[21].mxu1 }
 0x140   :  { %v656_v50 = vpop.f32.mrb[34].mxu0 }
 0x141   :  { %v810_v44 = vmax.f32 %v779_v39, 0.0  ;;  %v742_v45 = vmul.f32 %v1614_v22, %v622_v40  ;;  %v658_v51 = vpop.f32.mrb[35].mxu0 }
 0x142   :  { %v406_v46 = vpop.f32.mrb[22].mxu1 }
 0x143   :  { %841 = vst [vmem:[%s1780_s4 + $0x48] sm:$0xff] %v810_v44  ;;  %v780_v47 = vadd.f32 %v1619_v26, %v742_v45  ;;  %v627_v48 = vadd.f32 %v626_v1, %v406_v46  ;;  %v408_v49 = vpop.f32.mrb[23].mxu1 }
 0x144   :  { %v661_v58 = vpop.f32.mrb[36].mxu0 }
 0x145   :  { %v811_v52 = vmax.f32 %v780_v47, 0.0  ;;  %v743_v53 = vmul.f32 %v1614_v22, %v627_v48  ;;  %v663_v59 = vpop.f32.mrb[37].mxu0 }
 0x146   :  { %v411_v54 = vpop.f32.mrb[24].mxu1 }
 0x147   :  { %842 = vst [vmem:[%s1780_s4 + $0x50] sm:$0xff] %v811_v52  ;;  %v781_v55 = vadd.f32 %v1619_v26, %v743_v53  ;;  %v632_v56 = vadd.f32 %v631_v9, %v411_v54  ;;  %v413_v57 = vpop.f32.mrb[25].mxu1 }
 0x148   :  { %v666_v3 = vpop.f32.mrb[38].mxu0 }
 0x149   :  { %v812_v60 = vmax.f32 %v781_v55, 0.0  ;;  %v744_v61 = vmul.f32 %v1614_v22, %v632_v56  ;;  %v668_v4 = vpop.f32.mrb[39].mxu0 }
 0x14a   :  { %v416_v62 = vpop.f32.mrb[26].mxu1 }
 0x14b   :  { %843 = vst [vmem:[%s1780_s4 + $0x58] sm:$0xff] %v812_v60  ;;  %v782_v63 = vadd.f32 %v1619_v26, %v744_v61  ;;  %v637_v1 = vadd.f32 %v636_v17, %v416_v62  ;;  %v418_v2 = vpop.f32.mrb[27].mxu1 }
 0x14c   :  { %v671_v11 = vpop.f32.mrb[40].mxu0 }
 0x14d   :  { %v813_v5 = vmax.f32 %v782_v63, 0.0  ;;  %v745_v6 = vmul.f32 %v1614_v22, %v637_v1  ;;  %v673_v12 = vpop.f32.mrb[41].mxu0 }
 0x14e   :  { %v421_v7 = vpop.f32.mrb[28].mxu1 }
 0x14f   :  { %844 = vst [vmem:[%s1780_s4 + $0x60] sm:$0xff] %v813_v5  ;;  %v783_v8 = vadd.f32 %v1619_v26, %v745_v6  ;;  %v642_v9 = vadd.f32 %v641_v27, %v421_v7  ;;  %v423_v10 = vpop.f32.mrb[29].mxu1 }
 0x150   :  { %v676_v19 = vpop.f32.mrb[42].mxu0 }
 0x151   :  { %v814_v13 = vmax.f32 %v783_v8, 0.0  ;;  %v746_v14 = vmul.f32 %v1614_v22, %v642_v9  ;;  %v678_v20 = vpop.f32.mrb[43].mxu0 }
 0x152   :  { %v426_v15 = vpop.f32.mrb[30].mxu1 }
 0x153   :  { %845 = vst [vmem:[%s1780_s4 + $0x68] sm:$0xff] %v814_v13  ;;  %v784_v16 = vadd.f32 %v1619_v26, %v746_v14  ;;  %v647_v17 = vadd.f32 %v646_v34, %v426_v15  ;;  %v428_v18 = vpop.f32.mrb[31].mxu1 }
 0x154   :  { %v681_v28 = vpop.f32.mrb[44].mxu0 }
 0x155   :  { %v815_v21 = vmax.f32 %v784_v16, 0.0  ;;  %v747_v23 = vmul.f32 %v1614_v22, %v647_v17  ;;  %v683_v29 = vpop.f32.mrb[45].mxu0 }
 0x156   :  { %v431_v24 = vpop.f32.mrb[32].mxu1 }
 0x157   :  { %846 = vst [vmem:[%s1780_s4 + $0x70] sm:$0xff] %v815_v21  ;;  %v785_v25 = vadd.f32 %v1619_v26, %v747_v23  ;;  %v652_v27 = vadd.f32 %v651_v42, %v431_v24  ;;  %v433_v0 = vpop.f32.mrb[33].mxu1 }
 0x158   :  { %v686_v36 = vpop.f32.mrb[46].mxu0 }
 0x159   :  { %v816_v30 = vmax.f32 %v785_v25, 0.0  ;;  %v748_v31 = vmul.f32 %v1614_v22, %v652_v27  ;;  %v688_v37 = vpop.f32.mrb[47].mxu0 }
 0x15a   :  { %v436_v32 = vpop.f32.mrb[34].mxu1 }
 0x15b   :  { %847 = vst [vmem:[%s1780_s4 + $0x78] sm:$0xff] %v816_v30  ;;  %v786_v33 = vadd.f32 %v1619_v26, %v748_v31  ;;  %v657_v34 = vadd.f32 %v656_v50, %v436_v32  ;;  %v438_v35 = vpop.f32.mrb[35].mxu1 }
 0x15c   :  { %v691_v44 = vpop.f32.mrb[48].mxu0 }
 0x15d   :  { %v817_v38 = vmax.f32 %v786_v33, 0.0  ;;  %v749_v39 = vmul.f32 %v1614_v22, %v657_v34  ;;  %v693_v45 = vpop.f32.mrb[49].mxu0 }
 0x15e   :  { %v441_v40 = vpop.f32.mrb[36].mxu1 }
 0x15f   :  { %848 = vst [vmem:[%s1780_s4 + $0x80] sm:$0xff] %v817_v38  ;;  %v787_v41 = vadd.f32 %v1619_v26, %v749_v39  ;;  %v662_v42 = vadd.f32 %v661_v58, %v441_v40  ;;  %v443_v43 = vpop.f32.mrb[37].mxu1 }
 0x160   :  { %v696_v52 = vpop.f32.mrb[50].mxu0 }
 0x161   :  { %v818_v46 = vmax.f32 %v787_v41, 0.0  ;;  %v750_v47 = vmul.f32 %v1614_v22, %v662_v42  ;;  %v698_v53 = vpop.f32.mrb[51].mxu0 }
 0x162   :  { %v446_v48 = vpop.f32.mrb[38].mxu1 }
 0x163   :  { %849 = vst [vmem:[%s1780_s4 + $0x88] sm:$0xff] %v818_v46  ;;  %v788_v49 = vadd.f32 %v1619_v26, %v750_v47  ;;  %v667_v50 = vadd.f32 %v666_v3, %v446_v48  ;;  %v448_v51 = vpop.f32.mrb[39].mxu1 }
 0x164   :  { %v701_v60 = vpop.f32.mrb[52].mxu0 }
 0x165   :  { %v819_v54 = vmax.f32 %v788_v49, 0.0  ;;  %v751_v55 = vmul.f32 %v1614_v22, %v667_v50  ;;  %v703_v61 = vpop.f32.mrb[53].mxu0 }
 0x166   :  { %v451_v56 = vpop.f32.mrb[40].mxu1 }
 0x167   :  { %850 = vst [vmem:[%s1780_s4 + $0x90] sm:$0xff] %v819_v54  ;;  %v789_v57 = vadd.f32 %v1619_v26, %v751_v55  ;;  %v672_v58 = vadd.f32 %v671_v11, %v451_v56  ;;  %v453_v59 = vpop.f32.mrb[41].mxu1 }
 0x168   :  { %v706_v5 = vpop.f32.mrb[54].mxu0 }
 0x169   :  { %v820_v62 = vmax.f32 %v789_v57, 0.0  ;;  %v752_v63 = vmul.f32 %v1614_v22, %v672_v58  ;;  %v708_v6 = vpop.f32.mrb[55].mxu0 }
 0x16a   :  { %v456_v1 = vpop.f32.mrb[42].mxu1 }
 0x16b   :  { %851 = vst [vmem:[%s1780_s4 + $0x98] sm:$0xff] %v820_v62  ;;  %v790_v2 = vadd.f32 %v1619_v26, %v752_v63  ;;  %v677_v3 = vadd.f32 %v676_v19, %v456_v1  ;;  %v458_v4 = vpop.f32.mrb[43].mxu1 }
 0x16c   :  { %v711_v13 = vpop.f32.mrb[56].mxu0 }
 0x16d   :  { %v821_v7 = vmax.f32 %v790_v2, 0.0  ;;  %v753_v8 = vmul.f32 %v1614_v22, %v677_v3  ;;  %v713_v14 = vpop.f32.mrb[57].mxu0 }
 0x16e   :  { %v461_v9 = vpop.f32.mrb[44].mxu1 }
 0x16f   :  { %852 = vst [vmem:[%s1780_s4 + $0xa0] sm:$0xff] %v821_v7  ;;  %v791_v10 = vadd.f32 %v1619_v26, %v753_v8  ;;  %v682_v11 = vadd.f32 %v681_v28, %v461_v9  ;;  %v463_v12 = vpop.f32.mrb[45].mxu1 }
 0x170   :  { %v716_v21 = vpop.f32.mrb[58].mxu0 }
 0x171   :  { %v822_v15 = vmax.f32 %v791_v10, 0.0  ;;  %v754_v16 = vmul.f32 %v1614_v22, %v682_v11  ;;  %v718_v23 = vpop.f32.mrb[59].mxu0 }
 0x172   :  { %v466_v17 = vpop.f32.mrb[46].mxu1 }
 0x173   :  { %853 = vst [vmem:[%s1780_s4 + $0xa8] sm:$0xff] %v822_v15  ;;  %v792_v18 = vadd.f32 %v1619_v26, %v754_v16  ;;  %v687_v19 = vadd.f32 %v686_v36, %v466_v17  ;;  %v468_v20 = vpop.f32.mrb[47].mxu1 }
 0x174   :  { %v721_v30 = vpop.f32.mrb[60].mxu0 }
 0x175   :  { %v823_v24 = vmax.f32 %v792_v18, 0.0  ;;  %v755_v25 = vmul.f32 %v1614_v22, %v687_v19  ;;  %v723_v31 = vpop.f32.mrb[61].mxu0 }
 0x176   :  { %v471_v27 = vpop.f32.mrb[48].mxu1 }
 0x177   :  { %854 = vst [vmem:[%s1780_s4 + $0xb0] sm:$0xff] %v823_v24  ;;  %v793_v0 = vadd.f32 %v1619_v26, %v755_v25  ;;  %v692_v28 = vadd.f32 %v691_v44, %v471_v27  ;;  %v473_v29 = vpop.f32.mrb[49].mxu1 }
 0x179   :  { %v824_v32 = vmax.f32 %v793_v0, 0.0  ;;  %v756_v33 = vmul.f32 %v1614_v22, %v692_v28 }
 0x17a   :  { %v476_v34 = vpop.f32.mrb[50].mxu1 }
 0x17b   :  { %855 = vst [vmem:[%s1780_s4 + $0xb8] sm:$0xff] %v824_v32  ;;  %v794_v35 = vadd.f32 %v1619_v26, %v756_v33  ;;  %v697_v36 = vadd.f32 %v696_v52, %v476_v34  ;;  %v478_v37 = vpop.f32.mrb[51].mxu1 }
 0x17d   :  { %v825_v38 = vmax.f32 %v794_v35, 0.0  ;;  %v757_v39 = vmul.f32 %v1614_v22, %v697_v36 }
 0x17e   :  { %v481_v40 = vpop.f32.mrb[52].mxu1 }
 0x17f   :  { %856 = vst [vmem:[%s1780_s4 + $0xc0] sm:$0xff] %v825_v38  ;;  %v795_v41 = vadd.f32 %v1619_v26, %v757_v39  ;;  %v702_v42 = vadd.f32 %v701_v60, %v481_v40  ;;  %v483_v43 = vpop.f32.mrb[53].mxu1 }
 0x181   :  { %v826_v44 = vmax.f32 %v795_v41, 0.0  ;;  %v758_v45 = vmul.f32 %v1614_v22, %v702_v42 }
 0x182   :  { %v486_v46 = vpop.f32.mrb[54].mxu1 }
 0x183   :  { %857 = vst [vmem:[%s1780_s4 + $0xc8] sm:$0xff] %v826_v44  ;;  %v796_v47 = vadd.f32 %v1619_v26, %v758_v45  ;;  %v707_v48 = vadd.f32 %v706_v5, %v486_v46  ;;  %v488_v49 = vpop.f32.mrb[55].mxu1 }
 0x185   :  { %v827_v50 = vmax.f32 %v796_v47, 0.0  ;;  %v759_v51 = vmul.f32 %v1614_v22, %v707_v48 }
 0x186   :  { %v491_v52 = vpop.f32.mrb[56].mxu1 }
 0x187   :  { %858 = vst [vmem:[%s1780_s4 + $0xd0] sm:$0xff] %v827_v50  ;;  %v797_v53 = vadd.f32 %v1619_v26, %v759_v51  ;;  %v712_v54 = vadd.f32 %v711_v13, %v491_v52  ;;  %v493_v55 = vpop.f32.mrb[57].mxu1 }
 0x189   :  { %v828_v56 = vmax.f32 %v797_v53, 0.0  ;;  %v760_v57 = vmul.f32 %v1614_v22, %v712_v54 }
 0x18a   :  { %v496_v58 = vpop.f32.mrb[58].mxu1 }
 0x18b   :  { %859 = vst [vmem:[%s1780_s4 + $0xd8] sm:$0xff] %v828_v56  ;;  %v798_v59 = vadd.f32 %v1619_v26, %v760_v57  ;;  %v717_v60 = vadd.f32 %v716_v21, %v496_v58  ;;  %v498_v61 = vpop.f32.mrb[59].mxu1 }
 0x18d   :  { %v829_v62 = vmax.f32 %v798_v59, 0.0  ;;  %v761_v63 = vmul.f32 %v1614_v22, %v717_v60 }
 0x18e   :  { %v501_v1 = vpop.f32.mrb[60].mxu1 }
 0x18f   :  { %860 = vst [vmem:[%s1780_s4 + $0xe0] sm:$0xff] %v829_v62  ;;  %v799_v2 = vadd.f32 %v1619_v26, %v761_v63  ;;  %v722_v3 = vadd.f32 %v721_v30, %v501_v1  ;;  %v503_v4 = vpop.f32.mrb[61].mxu1 }
 0x191   :  { %v830_v5 = vmax.f32 %v799_v2, 0.0  ;;  %v762_v6 = vmul.f32 %v1614_v22, %v722_v3 }
 0x193   :  { %861 = vst [vmem:[%s1780_s4 + $0xe8] sm:$0xff] %v830_v5  ;;  %v800_v7 = vadd.f32 %v1619_v26, %v762_v6 }
 0x195   :  { %v831_v8 = vmax.f32 %v800_v7, 0.0 }
 0x197   :  { %862 = vst [vmem:[%s1780_s4 + $0xf0] sm:$0x3] %v831_v8 }

// kernel: darqn_forward.6
= control target key start
LH: loop header
LB: loop body
LE: loop exit
PB: predicated region body
PF: predicated region fallthrough
CT: control target
= control target key end

     0   :  { %vm145_vm0 = vcmask 261120   ;;  %s1227_s1 = inlined_call_operand.vmem [shape: f32[800,128], index: 1, kind: input, shape index: {}]   ;;  %s1228_s0 = inlined_call_operand.vmem [shape: f32[32,800], index: 0, kind: input, shape index: {}]   ;;  %s1229_s2 = inlined_call_operand.vmem [shape: f32[1,128], index: 2, kind: input, shape index: {}]   ;;  %s1230_s3 = inlined_call_operand.vmem [shape: f32[1,128], index: 3, kind: input, shape index: {}]   ;;  %s1231_s4 = inlined_call_operand.vmem [shape: f32[32,128], index: 4, kind: output, shape index: {}]  }
   0x1   :  { %v61_v0 = vld [vmem:[%s1227_s1 + $0x80] sm:$0xff]  ;;  %v62_v1 = vld [vmem:[%s1227_s1 + $0x88] sm:$0xff]  ;;  %v63_v11 = vld [vmem:[%s1227_s1 + $0x90] sm:$0xff] }
   0x2   :  { %v93_v2 = vld [vmem:[%s1227_s1 + $0x180] sm:$0xff]  ;;  %v692_v3 = vpack.c.bf16 %v62_v1, %v61_v0  ;;  %v94_v4 = vld [vmem:[%s1227_s1 + $0x188] sm:$0xff]  ;;  %v64_v13 = vld [vmem:[%s1227_s1 + $0x98] sm:$0xff] }
   0x3   :  { %v45_v5 = vld [vmem:[%s1227_s1] sm:$0xff]  ;;  %v46_v6 = vld [vmem:[%s1227_s1 + $0x8] sm:$0xff]  ;;  %v724_v7 = vpack.c.bf16 %v94_v4, %v93_v2  ;;  %v95_v14 = vld [vmem:[%s1227_s1 + $0x190] sm:$0xff]  ;;  %v696_v16 = vpack.c.bf16 %v64_v13, %v63_v11 }
   0x4   :  { %v694_v8 = vpack.c.bf16 %v46_v6, %v45_v5  ;;  %v77_v9 = vld [vmem:[%s1227_s1 + $0x100] sm:$0xff]  ;;  %v78_v10 = vld [vmem:[%s1227_s1 + $0x108] sm:$0xff]  ;;  %693 = vmatprep.subr.bf16.mxu0 %v692_v3  ;;  %v96_v15 = vld [vmem:[%s1227_s1 + $0x198] sm:$0xff] }
   0x5   :  { %v726_v12 = vpack.c.bf16 %v78_v10, %v77_v9  ;;  %725 = vmatprep.subr.bf16.mxu1 %v724_v7  ;;  %v728_v17 = vpack.c.bf16 %v96_v15, %v95_v14  ;;  %v47_v18 = vld [vmem:[%s1227_s1 + $0x10] sm:$0xff]  ;;  %v48_v19 = vld [vmem:[%s1227_s1 + $0x18] sm:$0xff]  ;;  %v65_v23 = vld [vmem:[%s1227_s1 + $0xa0] sm:$0xff] }
   0x6   :  { %695 = vmatpush3.bf16.msra.mxu0 %v694_v8  ;;  %v79_v20 = vld [vmem:[%s1227_s1 + $0x110] sm:$0xff]  ;;  %v698_v21 = vpack.c.bf16 %v48_v19, %v47_v18  ;;  %v80_v22 = vld [vmem:[%s1227_s1 + $0x118] sm:$0xff]  ;;  %v66_v24 = vld [vmem:[%s1227_s1 + $0xa8] sm:$0xff] }
   0x7   :  { %727 = vmatpush3.bf16.msra.mxu1 %v726_v12  ;;  %697 = vmatprep.subr.bf16.mxu0 %v696_v16  ;;  %v730_v25 = vpack.c.bf16 %v80_v22, %v79_v20  ;;  %v700_v26 = vpack.c.bf16 %v66_v24, %v65_v23  ;;  %v97_v27 = vld [vmem:[%s1227_s1 + $0x1a0] sm:$0xff]  ;;  %v98_v28 = vld [vmem:[%s1227_s1 + $0x1a8] sm:$0xff]  ;;  %v67_v35 = vld [vmem:[%s1227_s1 + $0xb0] sm:$0xff] }
   0x8   :  { %729 = vmatprep.subr.bf16.mxu1 %v728_v17  ;;  %v49_v29 = vld [vmem:[%s1227_s1 + $0x20] sm:$0xff]  ;;  %v732_v30 = vpack.c.bf16 %v98_v28, %v97_v27  ;;  %v50_v31 = vld [vmem:[%s1227_s1 + $0x28] sm:$0xff]  ;;  %v68_v36 = vld [vmem:[%s1227_s1 + $0xb8] sm:$0xff] }
   0x9   :  { %v81_v32 = vld [vmem:[%s1227_s1 + $0x120] sm:$0xff]  ;;  %v82_v33 = vld [vmem:[%s1227_s1 + $0x128] sm:$0xff]  ;;  %v702_v34 = vpack.c.bf16 %v50_v31, %v49_v29  ;;  %v99_v37 = vld [vmem:[%s1227_s1 + $0x1b0] sm:$0xff]  ;;  %v704_v39 = vpack.c.bf16 %v68_v36, %v67_v35 }
   0xa   :  { %699 = vmatpush3.bf16.msra.mxu0 %v698_v21  ;;  %v734_v38 = vpack.c.bf16 %v82_v33, %v81_v32  ;;  %v100_v40 = vld [vmem:[%s1227_s1 + $0x1b8] sm:$0xff]  ;;  %v51_v41 = vld [vmem:[%s1227_s1 + $0x30] sm:$0xff]  ;;  %v69_v46 = vld [vmem:[%s1227_s1 + $0xc0] sm:$0xff] }
   0xb   :  { %731 = vmatpush3.bf16.msra.mxu1 %v730_v25  ;;  %701 = vmatprep.subr.bf16.mxu0 %v700_v26  ;;  %v52_v42 = vld [vmem:[%s1227_s1 + $0x38] sm:$0xff]  ;;  %v736_v43 = vpack.c.bf16 %v100_v40, %v99_v37  ;;  %v83_v44 = vld [vmem:[%s1227_s1 + $0x130] sm:$0xff]  ;;  %v70_v47 = vld [vmem:[%s1227_s1 + $0xc8] sm:$0xff] }
   0xc   :  { %733 = vmatprep.subr.bf16.mxu1 %v732_v30  ;;  %v84_v45 = vld [vmem:[%s1227_s1 + $0x138] sm:$0xff]  ;;  %v101_v48 = vld [vmem:[%s1227_s1 + $0x1c0] sm:$0xff]  ;;  %v102_v49 = vld [vmem:[%s1227_s1 + $0x1c8] sm:$0xff]  ;;  %v706_v50 = vpack.c.bf16 %v52_v42, %v51_v41  ;;  %v708_v52 = vpack.c.bf16 %v70_v47, %v69_v46 }
   0xd   :  { %v738_v51 = vpack.c.bf16 %v84_v45, %v83_v44  ;;  %v53_v53 = vld [vmem:[%s1227_s1 + $0x40] sm:$0xff]  ;;  %v54_v54 = vld [vmem:[%s1227_s1 + $0x48] sm:$0xff]  ;;  %v740_v56 = vpack.c.bf16 %v102_v49, %v101_v48  ;;  %v71_v58 = vld [vmem:[%s1227_s1 + $0xd0] sm:$0xff] }
   0xe   :  { %703 = vmatpush3.bf16.msra.mxu0 %v702_v34  ;;  %v85_v55 = vld [vmem:[%s1227_s1 + $0x140] sm:$0xff]  ;;  %v86_v57 = vld [vmem:[%s1227_s1 + $0x148] sm:$0xff]  ;;  %v72_v59 = vld [vmem:[%s1227_s1 + $0xd8] sm:$0xff]  ;;  %v710_v62 = vpack.c.bf16 %v54_v54, %v53_v53 }
   0xf   :  { %735 = vmatpush3.bf16.msra.mxu1 %v734_v38  ;;  %705 = vmatprep.subr.bf16.mxu0 %v704_v39  ;;  %v103_v60 = vld [vmem:[%s1227_s1 + $0x1d0] sm:$0xff]  ;;  %v104_v61 = vld [vmem:[%s1227_s1 + $0x1d8] sm:$0xff]  ;;  %v742_v63 = vpack.c.bf16 %v86_v57, %v85_v55  ;;  %v712_v0 = vpack.c.bf16 %v72_v59, %v71_v58  ;;  %v73_v6 = vld [vmem:[%s1227_s1 + $0xe0] sm:$0xff] }
  0x10   :  { %737 = vmatprep.subr.bf16.mxu1 %v736_v43  ;;  %v55_v1 = vld [vmem:[%s1227_s1 + $0x50] sm:$0xff]  ;;  %v56_v2 = vld [vmem:[%s1227_s1 + $0x58] sm:$0xff]  ;;  %v744_v4 = vpack.c.bf16 %v104_v61, %v103_v60  ;;  %v74_v7 = vld [vmem:[%s1227_s1 + $0xe8] sm:$0xff] }
  0x11   :  { %v87_v3 = vld [vmem:[%s1227_s1 + $0x150] sm:$0xff]  ;;  %v88_v5 = vld [vmem:[%s1227_s1 + $0x158] sm:$0xff]  ;;  %v105_v8 = vld [vmem:[%s1227_s1 + $0x1e0] sm:$0xff]  ;;  %v714_v10 = vpack.c.bf16 %v56_v2, %v55_v1  ;;  %v716_v14 = vpack.c.bf16 %v74_v7, %v73_v6 }
  0x12   :  { %707 = vmatpush3.bf16.msra.mxu0 %v706_v50  ;;  %v106_v9 = vld [vmem:[%s1227_s1 + $0x1e8] sm:$0xff]  ;;  %v57_v11 = vld [vmem:[%s1227_s1 + $0x60] sm:$0xff]  ;;  %v746_v13 = vpack.c.bf16 %v88_v5, %v87_v3  ;;  %v20_v17 = vld [vmem:[%s1228_s0 + $0x18] sm:$0xff] }
  0x13   :  { %739 = vmatpush3.bf16.msra.mxu1 %v738_v51  ;;  %709 = vmatprep.subr.bf16.mxu0 %v708_v52  ;;  %v58_v12 = vld [vmem:[%s1227_s1 + $0x68] sm:$0xff]  ;;  %v89_v15 = vld [vmem:[%s1227_s1 + $0x160] sm:$0xff]  ;;  %v748_v18 = vpack.c.bf16 %v106_v9, %v105_v8  ;;  %v75_v20 = vld [vmem:[%s1227_s1 + $0xf0] sm:$0xff] }
  0x14   :  { %741 = vmatprep.subr.bf16.mxu1 %v740_v56  ;;  %v18_v16 = vld [vmem:[%s1228_s0 + $0x8] sm:$0xff]  ;;  %v76_v21 = vld [vmem:[%s1227_s1 + $0xf8] sm:$0xff]  ;;  %v107_v22 = vld [vmem:[%s1227_s1 + $0x1f0] sm:$0xff]  ;;  %307 = vmatprep.mubr.f32.mxu1 %v20_v17  ;;  %v718_v24 = vpack.c.bf16 %v58_v12, %v57_v11 }
  0x15   :  { %v90_v19 = vld [vmem:[%s1227_s1 + $0x168] sm:$0xff]  ;;  %222 = vmatprep.mubr.f32.mxu0 %v18_v16  ;;  %v108_v23 = vld [vmem:[%s1227_s1 + $0x1f8] sm:$0xff]  ;;  %v720_v26 = vpack.c.bf16 %v76_v21, %v75_v20  ;;  %v59_v27 = vld [vmem:[%s1227_s1 + $0x70] sm:$0xff] }
  0x16   :  { %711 = vmatpush3.bf16.msra.mxu0 %v710_v62  ;;  %v750_v25 = vpack.c.bf16 %v90_v19, %v89_v15  ;;  %v60_v28 = vld [vmem:[%s1227_s1 + $0x78] sm:$0xff]  ;;  %v91_v29 = vld [vmem:[%s1227_s1 + $0x170] sm:$0xff]  ;;  %v752_v30 = vpack.c.bf16 %v108_v23, %v107_v22  ;;  %v125_v32 = vld [vmem:[%s1227_s1 + $0x280] sm:$0xff] }
  0x17   :  { %743 = vmatpush3.bf16.msra.mxu1 %v742_v63  ;;  %713 = vmatprep.subr.bf16.mxu0 %v712_v0  ;;  %v92_v31 = vld [vmem:[%s1227_s1 + $0x178] sm:$0xff]  ;;  %v126_v33 = vld [vmem:[%s1227_s1 + $0x288] sm:$0xff]  ;;  %v722_v34 = vpack.c.bf16 %v60_v28, %v59_v27  ;;  %v109_v37 = vld [vmem:[%s1227_s1 + $0x200] sm:$0xff] }
  0x18   :  { %745 = vmatprep.subr.bf16.mxu1 %v744_v4  ;;  %v754_v35 = vpack.c.bf16 %v92_v31, %v91_v29  ;;  %v756_v36 = vpack.c.bf16 %v126_v33, %v125_v32  ;;  %v110_v38 = vld [vmem:[%s1227_s1 + $0x208] sm:$0xff]  ;;  %v127_v39 = vld [vmem:[%s1227_s1 + $0x290] sm:$0xff]  ;;  %v128_v40 = vld [vmem:[%s1227_s1 + $0x298] sm:$0xff] }
  0x19   :  { %v17_v41 = vld [vmem:[%s1228_s0] sm:$0xff]  ;;  %v758_v42 = vpack.c.bf16 %v110_v38, %v109_v37  ;;  %v19_v43 = vld [vmem:[%s1228_s0 + $0x10] sm:$0xff]  ;;  %v760_v44 = vpack.c.bf16 %v128_v40, %v127_v39  ;;  %v112_v46 = vld [vmem:[%s1227_s1 + $0x218] sm:$0xff] }
  0x1a   :  { %715 = vmatpush3.bf16.msra.mxu0 %v714_v10  ;;  %v111_v45 = vld [vmem:[%s1227_s1 + $0x210] sm:$0xff]  ;;  %v129_v47 = vld [vmem:[%s1227_s1 + $0x2a0] sm:$0xff]  ;;  %v130_v48 = vld [vmem:[%s1227_s1 + $0x2a8] sm:$0xff] }
  0x1b   :  { %747 = vmatpush3.bf16.msra.mxu1 %v746_v13  ;;  %717 = vmatprep.subr.bf16.mxu0 %v716_v14  ;;  %v25_v49 = vld [vmem:[%s1228_s0 + $0x40] sm:$0xff]  ;;  %v27_v51 = vld [vmem:[%s1228_s0 + $0x50] sm:$0xff]  ;;  %v762_v52 = vpack.c.bf16 %v112_v46, %v111_v45  ;;  %v24_v53 = vld [vmem:[%s1228_s0 + $0x38] sm:$0xff]  ;;  %v764_v56 = vpack.c.bf16 %v130_v48, %v129_v47 }
  0x1c   :  { %749 = vmatprep.subr.bf16.mxu1 %v748_v18  ;;  %v113_v50 = vld [vmem:[%s1227_s1 + $0x220] sm:$0xff]  ;;  %v142_v55 = vld [vmem:[%s1227_s1 + $0x308] sm:$0xff]  ;;  %v131_v58 = vld [vmem:[%s1227_s1 + $0x2b0] sm:$0xff] }
  0x1d   :  { %v141_v54 = vld [vmem:[%s1227_s1 + $0x300] sm:$0xff]  ;;  %v114_v57 = vld [vmem:[%s1227_s1 + $0x228] sm:$0xff]  ;;  %v132_v61 = vld [vmem:[%s1227_s1 + $0x2b8] sm:$0xff] }
  0x1e   :  { %719 = vmatpush3.bf16.msra.mxu0 %v718_v24  ;;  %v26_v59 = vld [vmem:[%s1228_s0 + $0x48] sm:$0xff]  ;;  %v788_v60 = vpack.c.bf16 %v142_v55, %v141_v54  ;;  %v32_v62 = vld [vmem:[%s1228_s0 + $0x78] sm:$0xff]  ;;  %v143_v63 = vld [vmem:[%s1227_s1 + $0x310] sm:$0xff]  ;;  %v766_v2 = vpack.c.bf16 %v114_v57, %v113_v50  ;;  %v768_v5 = vpack.c.bf16 %v132_v61, %v131_v58 }
  0x1f   :  { %751 = vmatpush3.bf16.msra.mxu1 %v750_v25  ;;  %721 = vmatprep.subr.bf16.mxu0 %v720_v26  ;;  %v34_v0 = vld [vmem:[%s1228_s0 + $0x88] sm:$0xff]  ;;  %v144_v1 = vld [vmem:[%s1227_s1 + $0x318] sm:$0xff]  ;;  %v31_v3 = vld [vmem:[%s1228_s0 + $0x70] sm:$0xff] }
  0x20   :  { %753 = vmatprep.subr.bf16.mxu1 %v752_v30  ;;  %v792_v4 = vpack.c.bf16 %v144_v1, %v143_v63  ;;  %v115_v6 = vld [vmem:[%s1227_s1 + $0x230] sm:$0xff]  ;;  %v116_v7 = vld [vmem:[%s1227_s1 + $0x238] sm:$0xff]  ;;  %v33_v8 = vld [vmem:[%s1228_s0 + $0x80] sm:$0xff] }
  0x21   :  { %v133_v9 = vld [vmem:[%s1227_s1 + $0x2c0] sm:$0xff]  ;;  %v134_v10 = vld [vmem:[%s1227_s1 + $0x2c8] sm:$0xff]  ;;  %v39_v11 = vld [vmem:[%s1228_s0 + $0xb0] sm:$0xff]  ;;  %v770_v13 = vpack.c.bf16 %v116_v7, %v115_v6 }
  0x22   :  { %723 = vmatpush3.bf16.msra.mxu0 %v722_v34  ;;  %v41_v12 = vld [vmem:[%s1228_s0 + $0xc0] sm:$0xff]  ;;  %v38_v14 = vld [vmem:[%s1228_s0 + $0xa8] sm:$0xff]  ;;  %v772_v15 = vpack.c.bf16 %v134_v10, %v133_v9  ;;  %v40_v18 = vld [vmem:[%s1228_s0 + $0xb8] sm:$0xff] }
  0x23   :  { %755 = vmatpush3.bf16.msra.mxu1 %v754_v35  ;;  %757 = vmatprep.subr.bf16.mxu0 %v756_v36  ;;  %v117_v16 = vld [vmem:[%s1227_s1 + $0x240] sm:$0xff]  ;;  %v118_v17 = vld [vmem:[%s1227_s1 + $0x248] sm:$0xff]  ;;  %v135_v19 = vld [vmem:[%s1227_s1 + $0x2d0] sm:$0xff] }
  0x24   :  { %789 = vmatprep.subr.bf16.mxu1 %v788_v60  ;;  %v136_v20 = vld [vmem:[%s1227_s1 + $0x2d8] sm:$0xff]  ;;  %v22_v21 = vld [vmem:[%s1228_s0 + $0x28] sm:$0xff]  ;;  %v23_v22 = vld [vmem:[%s1228_s0 + $0x30] sm:$0xff]  ;;  %v774_v23 = vpack.c.bf16 %v118_v17, %v117_v16 }
  0x25   :  { %223 = vmatmul.mubr.f32.vlgmr.msra.gmra.mrb[0].mxu0 %v17_v41  ;;  %v776_v24 = vpack.c.bf16 %v136_v20, %v135_v19  ;;  %v119_v25 = vld [vmem:[%s1227_s1 + $0x250] sm:$0xff]  ;;  %v120_v26 = vld [vmem:[%s1227_s1 + $0x258] sm:$0xff]  ;;  %v30_v27 = vld [vmem:[%s1228_s0 + $0x68] sm:$0xff] }
  0x26   :  { %308 = vmatmul.mubr.f32.vlgmr.msra.gmra.mrb[0].mxu1 %v19_v43  ;;  %759 = vmatpush3.bf16.msra.mxu0 %v758_v42  ;;  %v137_v28 = vld [vmem:[%s1227_s1 + $0x2e0] sm:$0xff]  ;;  %v138_v29 = vld [vmem:[%s1227_s1 + $0x2e8] sm:$0xff]  ;;  %v778_v31 = vpack.c.bf16 %v120_v26, %v119_v25  ;;  %v44_v35 = vld [vmem:[%s1228_s0 + $0xd8] sm:$0xff] }
  0x27   :  { %761 = vmatprep.subr.bf16.mxu0 %v760_v44  ;;  %227 = vmatprep.mubr.f32.mxu0 %v25_v49  ;;  %v37_v30 = vld [vmem:[%s1228_s0 + $0xa0] sm:$0xff]  ;;  %v780_v32 = vpack.c.bf16 %v138_v29, %v137_v28  ;;  %v122_v34 = vld [vmem:[%s1227_s1 + $0x268] sm:$0xff]  ;;  %v139_v36 = vld [vmem:[%s1227_s1 + $0x2f0] sm:$0xff] }
  0x28   :  { %312 = vmatprep.mubr.f32.mxu1 %v27_v51  ;;  %791 = vmatpush3.bf16.msra.mxu1 %v788_v60  ;;  %v121_v33 = vld [vmem:[%s1227_s1 + $0x260] sm:$0xff]  ;;  %v140_v37 = vld [vmem:[%s1227_s1 + $0x2f8] sm:$0xff]  ;;  %v123_v40 = vld [vmem:[%s1227_s1 + $0x270] sm:$0xff] }
  0x29   :  { %228 = vmatmul.mubr.f32.gmra.mrb[2].mxu0 %v24_v53  ;;  %793 = vmatprep.subr.bf16.mxu1 %v792_v4  ;;  %v782_v38 = vpack.c.bf16 %v122_v34, %v121_v33  ;;  %v784_v39 = vpack.c.bf16 %v140_v37, %v139_v36  ;;  %v124_v41 = vld [vmem:[%s1227_s1 + $0x278] sm:$0xff]  ;;  %v21_v43 = vld [vmem:[%s1228_s0 + $0x20] sm:$0xff]  ;;  %v35_v47 = vld [vmem:[%s1228_s0 + $0x90] sm:$0xff] }
  0x2a   :  { %763 = vmatpush3.bf16.msra.mxu0 %v762_v52  ;;  %313 = vmatmul.mubr.f32.gmra.mrb[2].mxu1 %v26_v59  ;;  %v786_v42 = vpack.c.bf16 %v124_v41, %v123_v40  ;;  %v29_v44 = vld [vmem:[%s1228_s0 + $0x60] sm:$0xff]  ;;  %v28_v45 = vld [vmem:[%s1228_s0 + $0x58] sm:$0xff]  ;;  %v43_v48 = vld [vmem:[%s1228_s0 + $0xd0] sm:$0xff] }
  0x2b   :  { %765 = vmatprep.subr.bf16.mxu0 %v764_v56  ;;  %232 = vmatprep.mubr.f32.mxu0 %v32_v62  ;;  %v36_v46 = vld [vmem:[%s1228_s0 + $0x98] sm:$0xff]  ;;  %v42_v49 = vld [vmem:[%s1228_s0 + $0xc8] sm:$0xff] }
  0x2c   :  { %317 = vmatprep.mubr.f32.mxu1 %v34_v0  ;;  %795 = vmatpush3.bf16.msra.mxu1 %v792_v4 }
  0x2d   :  { %233 = vmatmul.mubr.f32.gmra.mrb[4].mxu0 %v31_v3 }
  0x2e   :  { %767 = vmatpush3.bf16.msra.mxu0 %v766_v2  ;;  %318 = vmatmul.mubr.f32.gmra.mrb[4].mxu1 %v33_v8 }
  0x2f   :  { %769 = vmatprep.subr.bf16.mxu0 %v768_v5  ;;  %237 = vmatprep.mubr.f32.mxu0 %v39_v11 }
  0x30   :  { %322 = vmatprep.mubr.f32.mxu1 %v41_v12 }
  0x31   :  { %238 = vmatmul.mubr.f32.gmra.mrb[6].mxu0 %v38_v14 }
  0x32   :  { %771 = vmatpush3.bf16.msra.mxu0 %v770_v13  ;;  %323 = vmatmul.mubr.f32.gmra.mrb[6].mxu1 %v40_v18 }
  0x33   :  { %773 = vmatprep.subr.bf16.mxu0 %v772_v15  ;;  %392 = vmatprep.mubr.f32.mxu0 %v22_v21 }
  0x34   :  { %686 = vmatprep.mubr.msk.f32.mxu1 %vm145_vm0, %v23_v22 }
  0x36   :  { %775 = vmatpush3.bf16.msra.mxu0 %v774_v23  ;;  %687 = vmatmul.mubr.msk.f32.vlgmr.msra.gmra.mrb[8].mxu1 %vm145_vm0, %v30_v27  ;;  %v537_v27 = vld [vmem:[%s1230_s3] ss:$0 sm:$0xff] }
  0x37   :  { %777 = vmatprep.subr.bf16.mxu0 %v776_v24  ;;  %689 = vmatprep.mubr.msk.f32.mxu1 %vm145_vm0, %v37_v30  ;;  %v536_v24 = vld [vmem:[%s1229_s2] ss:$0 sm:$0xff] }
  0x3a   :  { %779 = vmatpush3.bf16.msra.mxu0 %v778_v31  ;;  %690 = vmatmul.mubr.msk.f32.gmra.mrb[10].mxu1 %vm145_vm0, %v44_v35 }
  0x3b   :  { %781 = vmatprep.subr.bf16.mxu0 %v780_v32 }
  0x3e   :  { %783 = vmatpush3.bf16.msra.mxu0 %v782_v38 }
  0x3f   :  { %785 = vmatprep.subr.bf16.mxu0 %v784_v39 }
  0x42   :  { %787 = vmatpush3.bf16.msra.mxu0 %v786_v42 }
  0x45   :  { %393 = vmatmul.mubr.f32.vlgmr.msra.gmra.mrb[8].mxu0 %v21_v43 }
  0x46   :  { %397 = vmatprep.mubr.f32.mxu0 %v29_v44 }
  0x49   :  { %398 = vmatmul.mubr.f32.gmra.mrb[10].mxu0 %v28_v45 }
  0x4a   :  { %402 = vmatprep.mubr.f32.mxu0 %v36_v46 }
  0x4d   :  { %403 = vmatmul.mubr.f32.gmra.mrb[12].mxu0 %v35_v47 }
  0x4e   :  { %407 = vmatprep.mubr.f32.mxu0 %v43_v48 }
  0x51   :  { %408 = vmatmul.mubr.f32.gmra.mrb[14].mxu0 %v42_v49 }
  0xf8   :  { %v570_v50 = vpop.f32.mrb[0].mxu0 }
  0xf9   :  { %v614_v51 = vpop.f32.mrb[0].mxu1  ;;  %v571_v52 = vpop.f32.mrb[1].mxu0 }
  0xfa   :  { %v572_v53 = vadd.f32 %v571_v52, %v570_v50  ;;  %v615_v54 = vpop.f32.mrb[1].mxu1 }
  0xfb   :  { %v616_v55 = vadd.f32 %v615_v54, %v614_v51 }
  0xfc   :  { %v573_v56 = vpop.f32.mrb[2].mxu0 }
  0xfd   :  { %v310_v57 = vadd.f32 %v616_v55, %v572_v53  ;;  %v617_v58 = vpop.f32.mrb[2].mxu1  ;;  %v574_v59 = vpop.f32.mrb[3].mxu0 }
  0xfe   :  { %v575_v60 = vadd.f32 %v574_v59, %v573_v56  ;;  %v618_v61 = vpop.f32.mrb[3].mxu1 }
  0xff   :  { %v619_v62 = vadd.f32 %v618_v61, %v617_v58 }
 0x100   :  { %v576_v63 = vpop.f32.mrb[4].mxu0 }
 0x101   :  { %v315_v0 = vadd.f32 %v619_v62, %v575_v60  ;;  %v620_v1 = vpop.f32.mrb[4].mxu1  ;;  %v577_v2 = vpop.f32.mrb[5].mxu0 }
 0x102   :  { %v578_v3 = vadd.f32 %v577_v2, %v576_v63  ;;  %v621_v4 = vpop.f32.mrb[5].mxu1 }
 0x103   :  { %v622_v5 = vadd.f32 %v621_v4, %v620_v1 }
 0x104   :  { %v579_v6 = vpop.f32.mrb[6].mxu0 }
 0x105   :  { %v320_v7 = vadd.f32 %v622_v5, %v578_v3  ;;  %v623_v8 = vpop.f32.mrb[6].mxu1  ;;  %v580_v9 = vpop.f32.mrb[7].mxu0 }
 0x106   :  { %v581_v10 = vadd.f32 %v580_v9, %v579_v6  ;;  %v624_v11 = vpop.f32.mrb[7].mxu1 }
 0x107   :  { %v625_v12 = vadd.f32 %v624_v11, %v623_v8 }
 0x109   :  { %v325_v13 = vadd.f32 %v625_v12, %v581_v10  ;;  %v688_v14 = vpop.f32.mrb[8].mxu1 }
 0x10a   :  { %v479_v15 = vpop.f32.mrb[9].mxu1 }
 0x10d   :  { %v691_v16 = vpop.f32.mrb[10].mxu1 }
 0x10e   :  { %v489_v17 = vpop.f32.mrb[11].mxu1 }
 0x118   :  { %v658_v18 = vpop.f32.mrb[8].mxu0 }
 0x119   :  { %v659_v19 = vpop.f32.mrb[9].mxu0 }
 0x11a   :  { %v660_v20 = vadd.f32 %v659_v19, %v658_v18 }
 0x11c   :  { %v661_v21 = vpop.f32.mrb[10].mxu0  ;;  %v395_v22 = vadd.f32 %v660_v20, %v310_v57 }
 0x11d   :  { %v662_v23 = vpop.f32.mrb[11].mxu0 }
 0x11e   :  { %v663_v25 = vadd.f32 %v662_v23, %v661_v21  ;;  %v480_v26 = vadd.f32 %v479_v15, %v395_v22 }
 0x120   :  { %v400_v28 = vadd.f32 %v663_v25, %v315_v0  ;;  %v505_v29 = vmul.f32 %v536_v24, %v480_v26  ;;  %v664_v30 = vpop.f32.mrb[12].mxu0 }
 0x121   :  { %v665_v31 = vpop.f32.mrb[13].mxu0 }
 0x122   :  { %v485_v32 = vadd.f32 %v688_v14, %v400_v28  ;;  %v516_v33 = vadd.f32 %v537_v27, %v505_v29  ;;  %v666_v34 = vadd.f32 %v665_v31, %v664_v30 }
 0x124   :  { %v506_v35 = vmul.f32 %v536_v24, %v485_v32  ;;  %v520_v36 = vmax.f32 %v516_v33, 0.0  ;;  %v667_v37 = vpop.f32.mrb[14].mxu0  ;;  %v405_v38 = vadd.f32 %v666_v34, %v320_v7 }
 0x125   :  { %v668_v39 = vpop.f32.mrb[15].mxu0 }
 0x126   :  { %v517_v40 = vadd.f32 %v537_v27, %v506_v35  ;;  %524 = vst [vmem:[%s1231_s4] sm:$0xff] %v520_v36  ;;  %v669_v41 = vadd.f32 %v668_v39, %v667_v37  ;;  %v490_v42 = vadd.f32 %v489_v17, %v405_v38 }
 0x128   :  { %v521_v43 = vmax.f32 %v517_v40, 0.0  ;;  %v410_v44 = vadd.f32 %v669_v41, %v325_v13  ;;  %v507_v45 = vmul.f32 %v536_v24, %v490_v42 }
 0x12a   :  { %525 = vst [vmem:[%s1231_s4 + $0x8] sm:$0xff] %v521_v43  ;;  %v495_v46 = vadd.f32 %v691_v16, %v410_v44  ;;  %v518_v47 = vadd.f32 %v537_v27, %v507_v45 }
 0x12c   :  { %v508_v48 = vmul.f32 %v536_v24, %v495_v46  ;;  %v522_v49 = vmax.f32 %v518_v47, 0.0 }
 0x12e   :  { %v519_v50 = vadd.f32 %v537_v27, %v508_v48  ;;  %526 = vst [vmem:[%s1231_s4 + $0x10] sm:$0xff] %v522_v49 }
 0x130   :  { %v523_v51 = vmax.f32 %v519_v50, 0.0 }
 0x132   :  { %527 = vst [vmem:[%s1231_s4 + $0x18] sm:$0xff] %v523_v51 }

// kernel: darqn_forward.7
= control target key start
LH: loop header
LB: loop body
LE: loop exit
PB: predicated region body
PF: predicated region fallthrough
CT: control target
= control target key end

     0   :  { %s21334_s0 = inlined_call_operand.vmem [shape: f32[8,512], index: 0, kind: input, shape index: {}]   ;;  %s21335_s1 = inlined_call_operand.vmem [shape: bf16[512,1536], index: 1, kind: input, shape index: {}]   ;;  %s21336_s2 = inlined_call_operand.vmem [shape: f32[1,1536], index: 2, kind: input, shape index: {}]   ;;  %s21337_s3 = inlined_call_operand.vmem [shape: bf16[512,512], index: 3, kind: input, shape index: {}]   ;;  %s21338_s4 = inlined_call_operand.vmem [shape: f32[1,512], index: 4, kind: input, shape index: {}]   ;;  %s21339_s5 = inlined_call_operand.vmem [shape: f32[1,512], index: 5, kind: input, shape index: {}]   ;;  %s21340_s6 = inlined_call_operand.vmem [shape: f32[1,512], index: 6, kind: input, shape index: {}]   ;;  %s21341_s7 = inlined_call_operand.vmem [shape: bf16[512,2048], index: 7, kind: input, shape index: {}]   ;;  %s21342_s8 = inlined_call_operand.vmem [shape: f32[1,2048], index: 8, kind: input, shape index: {}]   ;;  %s21343_s9 = inlined_call_operand.vmem [shape: bf16[2048,512], index: 9, kind: input, shape index: {}]   ;;  %s21344_s10 = inlined_call_operand.vmem [shape: f32[1,512], index: 10, kind: input, shape index: {}]   ;;  %s21345_s11 = inlined_call_operand.vmem [shape: f32[1,512], index: 11, kind: input, shape index: {}]   ;;  %s21346_s12 = inlined_call_operand.vmem [shape: f32[1,512], index: 12, kind: input, shape index: {}]   ;;  %s21347_s13 = inlined_call_operand.vmem [shape: f32[512,8], index: 13, kind: input, shape index: {}]   ;;  %s21348_s14 = inlined_call_operand.vmem [shape: f32[1,8], index: 14, kind: input, shape index: {}]   ;;  %s21349_s15 = inlined_call_operand.vmem [shape: f32[2,8], index: 15, kind: input, shape index: {}]   ;;  %s21350_s16 = inlined_call_operand.vmem [shape: f32[2,8], index: 16, kind: input, shape index: {}]   ;;  %s21351_s17 = inlined_call_operand.vmem [shape: f32[2,8], index: 17, kind: input, shape index: {}]   ;;  %s21352_s18 = inlined_call_operand.vmem [shape: f32[1,8], index: 18, kind: input, shape index: {}]   ;;  %s21353_s19 = inlined_call_operand.vmem [shape: f32[2,2], index: 19, kind: input, shape index: {}]   ;;  %s21354_s20 = inlined_call_operand.vmem [shape: f32[2,2], index: 20, kind: input, shape index: {}]   ;;  %s21355_s21 = inlined_call_operand.hbm [shape: f32[2,2], index: 21, kind: output, shape index: {}]  }
   0x1   :  { %21360 = sst [smem:[#allocation5_spill]] %s21334_s0 }
   0x2   :  { %21361 = sst [smem:[#allocation6_spill]] %s21335_s1 }
   0x3   :  { %21362 = sst [smem:[#allocation7_spill]] %s21336_s2 }
   0x4   :  { %21363 = sst [smem:[#allocation8_spill]] %s21337_s3 }
   0x5   :  { %21364 = sst [smem:[#allocation9_spill]] %s21338_s4 }
   0x6   :  { %21365 = sst [smem:[#allocation10_spill]] %s21339_s5 }
   0x7   :  { %s21366_s26 = sld [smem:[#allocation6_spill]]  ;;  %s21367_s22 = sld [smem:[#allocation5_spill]] }
   0x8   :  { %s21368_s5 = sld [smem:[#allocation7_spill]] }
   0xd   :  { %v14210_v0 = vld [vmem:[%s21366_s26 + $0x4] ss:$48 sps:$4 sm:$0xff]   ;;  %v14212_v1 = vld [vmem:[%s21366_s26 + $0xc] ss:$48 sps:$4 sm:$0xff]   ;;  %v14214_v2 = vld [vmem:[%s21366_s26] ss:$48 sps:$4 sm:$0xff]  }
   0xe   :  { %2445 = vmatprep.subr.bf16.mxu0 %v14210_v0  ;;  %v14215_v3 = vld [vmem:[%s21366_s26 + $0x8] ss:$48 sps:$4 sm:$0xff]   ;;  %2527 = vmatprep.subr.bf16.mxu1 %v14212_v1  ;;  %v14216_v4 = vld [vmem:[%s21366_s26 + $0x64] ss:$48 sps:$4 sm:$0xff]   ;;  %v14218_v5 = vld [vmem:[%s21366_s26 + $0x6c] ss:$48 sps:$4 sm:$0xff]  }
   0xf   :  { %2446 = vmatpush1.bf16.msra.mxu0 %v14214_v2  ;;  %2528 = vmatpush1.bf16.msra.mxu1 %v14215_v3  ;;  %v14220_v6 = vld [vmem:[%s21366_s26 + $0x60] ss:$48 sps:$4 sm:$0xff]   ;;  %v14221_v7 = vld [vmem:[%s21366_s26 + $0x68] ss:$48 sps:$4 sm:$0xff]   ;;  %v14222_v8 = vld [vmem:[%s21366_s26 + $0xc4] ss:$48 sps:$4 sm:$0xff]  }
  0x10   :  { %2447 = vmatprep.subr.bf16.mxu0 %v14216_v4  ;;  %2529 = vmatprep.subr.bf16.mxu1 %v14218_v5  ;;  %v14224_v9 = vld [vmem:[%s21366_s26 + $0xcc] ss:$48 sps:$4 sm:$0xff]   ;;  %v14226_v10 = vld [vmem:[%s21366_s26 + $0xc0] ss:$48 sps:$4 sm:$0xff]   ;;  %v14227_v11 = vld [vmem:[%s21366_s26 + $0xc8] ss:$48 sps:$4 sm:$0xff]  }
  0x11   :  { %v14228_v12 = vld [vmem:[%s21366_s26 + $0x124] ss:$48 sps:$4 sm:$0xff]   ;;  %v14230_v13 = vld [vmem:[%s21366_s26 + $0x12c] ss:$48 sps:$4 sm:$0xff]   ;;  %v14232_v14 = vld [vmem:[%s21366_s26 + $0x120] ss:$48 sps:$4 sm:$0xff]  }
  0x12   :  { %v14233_v15 = vld [vmem:[%s21366_s26 + $0x128] ss:$48 sps:$4 sm:$0xff]   ;;  %v14234_v16 = vld [vmem:[%s21366_s26 + $0x184] ss:$48 sps:$4 sm:$0xff]   ;;  %v14236_v17 = vld [vmem:[%s21366_s26 + $0x18c] ss:$48 sps:$4 sm:$0xff]  }
  0x13   :  { %2448 = vmatpush1.bf16.msra.mxu0 %v14220_v6  ;;  %2530 = vmatpush1.bf16.msra.mxu1 %v14221_v7  ;;  %v14238_v18 = vld [vmem:[%s21366_s26 + $0x180] ss:$48 sps:$4 sm:$0xff]   ;;  %v14239_v19 = vld [vmem:[%s21366_s26 + $0x188] ss:$48 sps:$4 sm:$0xff]   ;;  %v14240_v20 = vld [vmem:[%s21366_s26 + $0x1e4] ss:$48 sps:$4 sm:$0xff]  }
  0x14   :  { %2449 = vmatprep.subr.bf16.mxu0 %v14222_v8  ;;  %2531 = vmatprep.subr.bf16.mxu1 %v14224_v9  ;;  %v14242_v21 = vld [vmem:[%s21366_s26 + $0x1ec] ss:$48 sps:$4 sm:$0xff]   ;;  %v14244_v22 = vld [vmem:[%s21366_s26 + $0x1e0] ss:$48 sps:$4 sm:$0xff]   ;;  %v14245_v23 = vld [vmem:[%s21366_s26 + $0x1e8] ss:$48 sps:$4 sm:$0xff]  }
  0x15   :  { %v14246_v24 = vld [vmem:[%s21366_s26 + $0x244] ss:$48 sps:$4 sm:$0xff]   ;;  %v14248_v25 = vld [vmem:[%s21366_s26 + $0x24c] ss:$48 sps:$4 sm:$0xff]   ;;  %v14250_v26 = vld [vmem:[%s21366_s26 + $0x240] ss:$48 sps:$4 sm:$0xff]  }
  0x16   :  { %v14251_v27 = vld [vmem:[%s21366_s26 + $0x248] ss:$48 sps:$4 sm:$0xff]   ;;  %v14252_v28 = vld [vmem:[%s21366_s26 + $0x2a4] ss:$48 sps:$4 sm:$0xff]   ;;  %v14254_v29 = vld [vmem:[%s21366_s26 + $0x2ac] ss:$48 sps:$4 sm:$0xff]  }
  0x17   :  { %2450 = vmatpush1.bf16.msra.mxu0 %v14226_v10  ;;  %2532 = vmatpush1.bf16.msra.mxu1 %v14227_v11  ;;  %v14256_v30 = vld [vmem:[%s21366_s26 + $0x2a0] ss:$48 sps:$4 sm:$0xff]   ;;  %v14257_v31 = vld [vmem:[%s21366_s26 + $0x2a8] ss:$48 sps:$4 sm:$0xff]   ;;  %v14258_v32 = vld [vmem:[%s21366_s26 + $0x304] ss:$48 sps:$4 sm:$0xff]  }
  0x18   :  { %2451 = vmatprep.subr.bf16.mxu0 %v14228_v12  ;;  %2533 = vmatprep.subr.bf16.mxu1 %v14230_v13  ;;  %v14260_v33 = vld [vmem:[%s21366_s26 + $0x30c] ss:$48 sps:$4 sm:$0xff]   ;;  %v14262_v34 = vld [vmem:[%s21366_s26 + $0x300] ss:$48 sps:$4 sm:$0xff]   ;;  %v14263_v35 = vld [vmem:[%s21366_s26 + $0x308] ss:$48 sps:$4 sm:$0xff]  }
  0x19   :  { %v14264_v36 = vld [vmem:[%s21366_s26 + $0x364] ss:$48 sps:$4 sm:$0xff]   ;;  %v14266_v37 = vld [vmem:[%s21366_s26 + $0x36c] ss:$48 sps:$4 sm:$0xff]   ;;  %v14268_v38 = vld [vmem:[%s21366_s26 + $0x360] ss:$48 sps:$4 sm:$0xff]  }
  0x1a   :  { %v14269_v39 = vld [vmem:[%s21366_s26 + $0x368] ss:$48 sps:$4 sm:$0xff]   ;;  %v14270_v40 = vld [vmem:[%s21366_s26 + $0x3c4] ss:$48 sps:$4 sm:$0xff]   ;;  %v14272_v41 = vld [vmem:[%s21366_s26 + $0x3cc] ss:$48 sps:$4 sm:$0xff]  }
  0x1b   :  { %2452 = vmatpush1.bf16.msra.mxu0 %v14232_v14  ;;  %2534 = vmatpush1.bf16.msra.mxu1 %v14233_v15  ;;  %v14274_v42 = vld [vmem:[%s21366_s26 + $0x3c0] ss:$48 sps:$4 sm:$0xff]   ;;  %v14275_v43 = vld [vmem:[%s21366_s26 + $0x3c8] ss:$48 sps:$4 sm:$0xff]   ;;  %v14276_v44 = vld [vmem:[%s21366_s26 + $0x424] ss:$48 sps:$4 sm:$0xff]  }
  0x1c   :  { %2453 = vmatprep.subr.bf16.mxu0 %v14234_v16  ;;  %2535 = vmatprep.subr.bf16.mxu1 %v14236_v17  ;;  %v14278_v45 = vld [vmem:[%s21366_s26 + $0x42c] ss:$48 sps:$4 sm:$0xff]   ;;  %v14280_v47 = vld [vmem:[%s21366_s26 + $0x420] ss:$48 sps:$4 sm:$0xff]   ;;  %v14281_v49 = vld [vmem:[%s21366_s26 + $0x428] ss:$48 sps:$4 sm:$0xff]  }
  0x1d   :  { %v70_v46 = vld [vmem:[%s21367_s22 + $0x8] sm:$0xff]  ;;  %v14282_v50 = vld [vmem:[%s21366_s26 + $0x484] ss:$48 sps:$4 sm:$0xff]   ;;  %v14286_v52 = vld [vmem:[%s21366_s26 + $0x480] ss:$48 sps:$4 sm:$0xff]  }
  0x1e   :  { %v16084_v48 = vpack.c.bf16 %v70_v46, %v70_v46  ;;  %v14284_v51 = vld [vmem:[%s21366_s26 + $0x48c] ss:$48 sps:$4 sm:$0xff]   ;;  %v14287_v53 = vld [vmem:[%s21366_s26 + $0x488] ss:$48 sps:$4 sm:$0xff]   ;;  %v14288_v54 = vld [vmem:[%s21366_s26 + $0x4e4] ss:$48 sps:$4 sm:$0xff]  }
  0x1f   :  { %2454 = vmatpush1.bf16.msra.mxu0 %v14238_v18  ;;  %2536 = vmatpush1.bf16.msra.mxu1 %v14239_v19  ;;  %v14290_v55 = vld [vmem:[%s21366_s26 + $0x4ec] ss:$48 sps:$4 sm:$0xff]   ;;  %v14292_v56 = vld [vmem:[%s21366_s26 + $0x4e0] ss:$48 sps:$4 sm:$0xff]   ;;  %v14293_v57 = vld [vmem:[%s21366_s26 + $0x4e8] ss:$48 sps:$4 sm:$0xff]  }
  0x20   :  { %2455 = vmatprep.subr.bf16.mxu0 %v14240_v20  ;;  %2537 = vmatprep.subr.bf16.mxu1 %v14242_v21  ;;  %v14294_v58 = vld [vmem:[%s21366_s26 + $0x544] ss:$48 sps:$4 sm:$0xff]   ;;  %v14296_v59 = vld [vmem:[%s21366_s26 + $0x54c] ss:$48 sps:$4 sm:$0xff]   ;;  %v14298_v60 = vld [vmem:[%s21366_s26 + $0x540] ss:$48 sps:$4 sm:$0xff]  }
  0x21   :  { %2477 = vmatprep.mubr.bf16.mxu0 %v16084_v48  ;;  %2559 = vmatprep.mubr.bf16.mxu1 %v16084_v48  ;;  %v14299_v61 = vld [vmem:[%s21366_s26 + $0x548] ss:$48 sps:$4 sm:$0xff]   ;;  %v14300_v62 = vld [vmem:[%s21366_s26 + $0x5a4] ss:$48 sps:$4 sm:$0xff]   ;;  %v14302_v63 = vld [vmem:[%s21366_s26 + $0x5ac] ss:$48 sps:$4 sm:$0xff]  }
  0x22   :  { %v14304_v0 = vld [vmem:[%s21366_s26 + $0x5a0] ss:$48 sps:$4 sm:$0xff]   ;;  %v14305_v1 = vld [vmem:[%s21366_s26 + $0x5a8] ss:$48 sps:$4 sm:$0xff]   ;;  %v14308_v3 = vld [vmem:[%s21366_s26 + $0x604] ss:$48 sps:$4 sm:$0xff]  }
  0x23   :  { %2456 = vmatpush1.bf16.msra.mxu0 %v14244_v22  ;;  %2538 = vmatpush1.bf16.msra.mxu1 %v14245_v23  ;;  %v69_v2 = vld [vmem:[%s21367_s22] sm:$0xff]  ;;  %v14311_v4 = vld [vmem:[%s21366_s26 + $0x60c] ss:$48 sps:$4 sm:$0xff]   ;;  %v14309_v7 = vld [vmem:[%s21366_s26 + $0x608] ss:$48 sps:$4 sm:$0xff]  }
  0x24   :  { %2457 = vmatprep.subr.bf16.mxu0 %v14246_v24  ;;  %2539 = vmatprep.subr.bf16.mxu1 %v14248_v25  ;;  %v16148_v5 = vpack.c.bf16 %v69_v2, %v69_v2  ;;  %v14306_v6 = vld [vmem:[%s21366_s26 + $0x600] ss:$48 sps:$4 sm:$0xff]   ;;  %v14314_v8 = vld [vmem:[%s21366_s26 + $0x664] ss:$48 sps:$4 sm:$0xff]   ;;  %v14317_v9 = vld [vmem:[%s21366_s26 + $0x66c] ss:$48 sps:$4 sm:$0xff]  }
  0x25   :  { %v14312_v10 = vld [vmem:[%s21366_s26 + $0x660] ss:$48 sps:$4 sm:$0xff]   ;;  %v14315_v11 = vld [vmem:[%s21366_s26 + $0x668] ss:$48 sps:$4 sm:$0xff]   ;;  %v14320_v12 = vld [vmem:[%s21366_s26 + $0x6c4] ss:$48 sps:$4 sm:$0xff]  }
  0x26   :  { %v14323_v13 = vld [vmem:[%s21366_s26 + $0x6cc] ss:$48 sps:$4 sm:$0xff]   ;;  %v14318_v14 = vld [vmem:[%s21366_s26 + $0x6c0] ss:$48 sps:$4 sm:$0xff]   ;;  %v14321_v15 = vld [vmem:[%s21366_s26 + $0x6c8] ss:$48 sps:$4 sm:$0xff]  }
  0x27   :  { %2458 = vmatpush1.bf16.msra.mxu0 %v14250_v26  ;;  %2540 = vmatpush1.bf16.msra.mxu1 %v14251_v27  ;;  %v14326_v16 = vld [vmem:[%s21366_s26 + $0x724] ss:$48 sps:$4 sm:$0xff]   ;;  %v14329_v17 = vld [vmem:[%s21366_s26 + $0x72c] ss:$48 sps:$4 sm:$0xff]   ;;  %v14324_v18 = vld [vmem:[%s21366_s26 + $0x720] ss:$48 sps:$4 sm:$0xff]  }
  0x28   :  { %2459 = vmatprep.subr.bf16.mxu0 %v14252_v28  ;;  %2541 = vmatprep.subr.bf16.mxu1 %v14254_v29  ;;  %v14327_v19 = vld [vmem:[%s21366_s26 + $0x728] ss:$48 sps:$4 sm:$0xff]   ;;  %v14332_v20 = vld [vmem:[%s21366_s26 + $0x784] ss:$48 sps:$4 sm:$0xff]   ;;  %v14335_v21 = vld [vmem:[%s21366_s26 + $0x78c] ss:$48 sps:$4 sm:$0xff]  }
  0x29   :  { %v14330_v22 = vld [vmem:[%s21366_s26 + $0x780] ss:$48 sps:$4 sm:$0xff]   ;;  %v14333_v23 = vld [vmem:[%s21366_s26 + $0x788] ss:$48 sps:$4 sm:$0xff]   ;;  %v14338_v24 = vld [vmem:[%s21366_s26 + $0x7e4] ss:$48 sps:$4 sm:$0xff]  }
  0x2a   :  { %v14341_v25 = vld [vmem:[%s21366_s26 + $0x7ec] ss:$48 sps:$4 sm:$0xff]   ;;  %v14336_v26 = vld [vmem:[%s21366_s26 + $0x7e0] ss:$48 sps:$4 sm:$0xff]   ;;  %v14339_v27 = vld [vmem:[%s21366_s26 + $0x7e8] ss:$48 sps:$4 sm:$0xff]  }
  0x2b   :  { %2460 = vmatpush1.bf16.msra.mxu0 %v14256_v30  ;;  %2542 = vmatpush1.bf16.msra.mxu1 %v14257_v31  ;;  %v14344_v28 = vld [vmem:[%s21366_s26 + $0x844] ss:$48 sps:$4 sm:$0xff]   ;;  %v14347_v29 = vld [vmem:[%s21366_s26 + $0x84c] ss:$48 sps:$4 sm:$0xff]   ;;  %v14342_v31 = vld [vmem:[%s21366_s26 + $0x840] ss:$48 sps:$4 sm:$0xff]  }
  0x2c   :  { %2461 = vmatprep.subr.bf16.mxu0 %v14258_v32  ;;  %2543 = vmatprep.subr.bf16.mxu1 %v14260_v33  ;;  %v72_v30 = vld [vmem:[%s21367_s22 + $0x18] sm:$0xff]  ;;  %v14368_v46 = vld [vmem:[%s21366_s26 + $0x9c4] ss:$48 sps:$4 sm:$0xff]  }
  0x2d   :  { %v14345_v32 = vld [vmem:[%s21366_s26 + $0x848] ss:$48 sps:$4 sm:$0xff]   ;;  %v16233_v33 = vpack.c.bf16 %v72_v30, %v72_v30  ;;  %v14434_v30 = vld [vmem:[%s21366_s26 + $0x1f4] ss:$48 sps:$4 sm:$0xff]  }
  0x2e   :  { %v14393_v2 = vld [vmem:[%s21366_s26 + $0xb48] ss:$48 sps:$4 sm:$0xff]  }
  0x2f   :  { %2462 = vmatpush1.bf16.msra.mxu0 %v14262_v34  ;;  %2544 = vmatpush1.bf16.msra.mxu1 %v14263_v35  ;;  %v14350_v34 = vld [vmem:[%s21366_s26 + $0x8a4] ss:$48 sps:$4 sm:$0xff]   ;;  %v14353_v35 = vld [vmem:[%s21366_s26 + $0x8ac] ss:$48 sps:$4 sm:$0xff]  }
  0x30   :  { %2463 = vmatprep.subr.bf16.mxu0 %v14264_v36  ;;  %2545 = vmatprep.subr.bf16.mxu1 %v14266_v37  ;;  %v14348_v36 = vld [vmem:[%s21366_s26 + $0x8a0] ss:$48 sps:$4 sm:$0xff]   ;;  %v14351_v37 = vld [vmem:[%s21366_s26 + $0x8a8] ss:$48 sps:$4 sm:$0xff]  }
  0x33   :  { %2464 = vmatpush1.bf16.msra.mxu0 %v14268_v38  ;;  %2546 = vmatpush1.bf16.msra.mxu1 %v14269_v39  ;;  %v14356_v38 = vld [vmem:[%s21366_s26 + $0x904] ss:$48 sps:$4 sm:$0xff]   ;;  %v14359_v39 = vld [vmem:[%s21366_s26 + $0x90c] ss:$48 sps:$4 sm:$0xff]  }
  0x34   :  { %2465 = vmatprep.subr.bf16.mxu0 %v14270_v40  ;;  %2547 = vmatprep.subr.bf16.mxu1 %v14272_v41  ;;  %v14354_v40 = vld [vmem:[%s21366_s26 + $0x900] ss:$48 sps:$4 sm:$0xff]   ;;  %v14357_v41 = vld [vmem:[%s21366_s26 + $0x908] ss:$48 sps:$4 sm:$0xff]  }
  0x37   :  { %2466 = vmatpush1.bf16.msra.mxu0 %v14274_v42  ;;  %2548 = vmatpush1.bf16.msra.mxu1 %v14275_v43  ;;  %v14362_v42 = vld [vmem:[%s21366_s26 + $0x964] ss:$48 sps:$4 sm:$0xff]   ;;  %v14365_v43 = vld [vmem:[%s21366_s26 + $0x96c] ss:$48 sps:$4 sm:$0xff]  }
  0x38   :  { %2467 = vmatprep.subr.bf16.mxu0 %v14276_v44  ;;  %2549 = vmatprep.subr.bf16.mxu1 %v14278_v45  ;;  %v14360_v44 = vld [vmem:[%s21366_s26 + $0x960] ss:$48 sps:$4 sm:$0xff]   ;;  %v14363_v45 = vld [vmem:[%s21366_s26 + $0x968] ss:$48 sps:$4 sm:$0xff]  }
  0x3b   :  { %2468 = vmatpush1.bf16.msra.mxu0 %v14280_v47  ;;  %2550 = vmatpush1.bf16.msra.mxu1 %v14281_v49  ;;  %v14371_v47 = vld [vmem:[%s21366_s26 + $0x9cc] ss:$48 sps:$4 sm:$0xff]   ;;  %v14366_v49 = vld [vmem:[%s21366_s26 + $0x9c0] ss:$48 sps:$4 sm:$0xff]  }
  0x3c   :  { %2469 = vmatprep.subr.bf16.mxu0 %v14282_v50  ;;  %2551 = vmatprep.subr.bf16.mxu1 %v14284_v51  ;;  %v14369_v50 = vld [vmem:[%s21366_s26 + $0x9c8] ss:$48 sps:$4 sm:$0xff]   ;;  %v14374_v51 = vld [vmem:[%s21366_s26 + $0xa24] ss:$48 sps:$4 sm:$0xff]  }
  0x3f   :  { %2470 = vmatpush1.bf16.msra.mxu0 %v14286_v52  ;;  %2552 = vmatpush1.bf16.msra.mxu1 %v14287_v53  ;;  %v14377_v52 = vld [vmem:[%s21366_s26 + $0xa2c] ss:$48 sps:$4 sm:$0xff]   ;;  %v14372_v53 = vld [vmem:[%s21366_s26 + $0xa20] ss:$48 sps:$4 sm:$0xff]  }
  0x40   :  { %2471 = vmatprep.subr.bf16.mxu0 %v14288_v54  ;;  %2553 = vmatprep.subr.bf16.mxu1 %v14290_v55  ;;  %v14375_v54 = vld [vmem:[%s21366_s26 + $0xa28] ss:$48 sps:$4 sm:$0xff]   ;;  %v14380_v55 = vld [vmem:[%s21366_s26 + $0xa84] ss:$48 sps:$4 sm:$0xff]  }
  0x43   :  { %2472 = vmatpush1.bf16.msra.mxu0 %v14292_v56  ;;  %2554 = vmatpush1.bf16.msra.mxu1 %v14293_v57  ;;  %v14383_v56 = vld [vmem:[%s21366_s26 + $0xa8c] ss:$48 sps:$4 sm:$0xff]   ;;  %v14378_v57 = vld [vmem:[%s21366_s26 + $0xa80] ss:$48 sps:$4 sm:$0xff]  }
  0x44   :  { %2473 = vmatprep.subr.bf16.mxu0 %v14294_v58  ;;  %2555 = vmatprep.subr.bf16.mxu1 %v14296_v59  ;;  %v14381_v58 = vld [vmem:[%s21366_s26 + $0xa88] ss:$48 sps:$4 sm:$0xff]   ;;  %v14386_v59 = vld [vmem:[%s21366_s26 + $0xae4] ss:$48 sps:$4 sm:$0xff]  }
  0x47   :  { %2474 = vmatpush1.bf16.msra.mxu0 %v14298_v60  ;;  %2556 = vmatpush1.bf16.msra.mxu1 %v14299_v61  ;;  %v14389_v60 = vld [vmem:[%s21366_s26 + $0xaec] ss:$48 sps:$4 sm:$0xff]   ;;  %v14384_v61 = vld [vmem:[%s21366_s26 + $0xae0] ss:$48 sps:$4 sm:$0xff]  }
  0x48   :  { %2475 = vmatprep.subr.bf16.mxu0 %v14300_v62  ;;  %2557 = vmatprep.subr.bf16.mxu1 %v14302_v63  ;;  %v14387_v62 = vld [vmem:[%s21366_s26 + $0xae8] ss:$48 sps:$4 sm:$0xff]   ;;  %v14392_v63 = vld [vmem:[%s21366_s26 + $0xb44] ss:$48 sps:$4 sm:$0xff]  }
  0x4b   :  { %2476 = vmatpush1.bf16.msra.mxu0 %v14304_v0  ;;  %2558 = vmatpush1.bf16.msra.mxu1 %v14305_v1  ;;  %v14395_v0 = vld [vmem:[%s21366_s26 + $0xb4c] ss:$48 sps:$4 sm:$0xff]   ;;  %v14390_v1 = vld [vmem:[%s21366_s26 + $0xb40] ss:$48 sps:$4 sm:$0xff]  }
  0x4c   :  { %2486 = vmatprep.subr.bf16.mxu0 %v14308_v3  ;;  %2568 = vmatprep.subr.bf16.mxu1 %v14311_v4  ;;  %v14398_v3 = vld [vmem:[%s21366_s26 + $0xba4] ss:$48 sps:$4 sm:$0xff]   ;;  %v14401_v4 = vld [vmem:[%s21366_s26 + $0xbac] ss:$48 sps:$4 sm:$0xff]  }
  0x4e   :  { %2478 = vmatmul.mubr.bf16.vlgmr.msra.gmra.mrb[0].mxu0 %v16148_v5  ;;  %2560 = vmatmul.mubr.bf16.vlgmr.msra.gmra.mrb[0].mxu1 %v16148_v5 }
  0x4f   :  { %2487 = vmatpush1.bf16.msra.mxu0 %v14306_v6  ;;  %2569 = vmatpush1.bf16.msra.mxu1 %v14309_v7  ;;  %v14396_v6 = vld [vmem:[%s21366_s26 + $0xba0] ss:$48 sps:$4 sm:$0xff]   ;;  %v14399_v7 = vld [vmem:[%s21366_s26 + $0xba8] ss:$48 sps:$4 sm:$0xff]  }
  0x50   :  { %2488 = vmatprep.subr.bf16.mxu0 %v14314_v8  ;;  %2570 = vmatprep.subr.bf16.mxu1 %v14317_v9  ;;  %v71_v8 = vld [vmem:[%s21367_s22 + $0x10] sm:$0xff] }
  0x51   :  { %2518 = vmatprep.mubr.bf16.mxu0 %v16233_v33  ;;  %2600 = vmatprep.mubr.bf16.mxu1 %v16233_v33  ;;  %v14404_v9 = vld [vmem:[%s21366_s26 + $0x14] ss:$48 sps:$4 sm:$0xff]  }
  0x53   :  { %2489 = vmatpush1.bf16.msra.mxu0 %v14312_v10  ;;  %2571 = vmatpush1.bf16.msra.mxu1 %v14315_v11  ;;  %v14407_v10 = vld [vmem:[%s21366_s26 + $0x1c] ss:$48 sps:$4 sm:$0xff]   ;;  %v16354_v11 = vpack.c.bf16 %v71_v8, %v71_v8  ;;  %v14489_v8 = vld [vmem:[%s21366_s26 + $0x558] ss:$48 sps:$4 sm:$0xff]  }
  0x54   :  { %2490 = vmatprep.subr.bf16.mxu0 %v14320_v12  ;;  %2572 = vmatprep.subr.bf16.mxu1 %v14323_v13  ;;  %v14402_v12 = vld [vmem:[%s21366_s26 + $0x10] ss:$48 sps:$4 sm:$0xff]   ;;  %v14405_v13 = vld [vmem:[%s21366_s26 + $0x18] ss:$48 sps:$4 sm:$0xff]  }
  0x57   :  { %2491 = vmatpush1.bf16.msra.mxu0 %v14318_v14  ;;  %2573 = vmatpush1.bf16.msra.mxu1 %v14321_v15  ;;  %v14410_v14 = vld [vmem:[%s21366_s26 + $0x74] ss:$48 sps:$4 sm:$0xff]   ;;  %v14413_v15 = vld [vmem:[%s21366_s26 + $0x7c] ss:$48 sps:$4 sm:$0xff]  }
  0x58   :  { %2492 = vmatprep.subr.bf16.mxu0 %v14326_v16  ;;  %2574 = vmatprep.subr.bf16.mxu1 %v14329_v17  ;;  %v14408_v16 = vld [vmem:[%s21366_s26 + $0x70] ss:$48 sps:$4 sm:$0xff]   ;;  %v14411_v17 = vld [vmem:[%s21366_s26 + $0x78] ss:$48 sps:$4 sm:$0xff]  }
  0x5b   :  { %2493 = vmatpush1.bf16.msra.mxu0 %v14324_v18  ;;  %2575 = vmatpush1.bf16.msra.mxu1 %v14327_v19  ;;  %v14416_v18 = vld [vmem:[%s21366_s26 + $0xd4] ss:$48 sps:$4 sm:$0xff]   ;;  %v14419_v19 = vld [vmem:[%s21366_s26 + $0xdc] ss:$48 sps:$4 sm:$0xff]  }
  0x5c   :  { %2494 = vmatprep.subr.bf16.mxu0 %v14332_v20  ;;  %2576 = vmatprep.subr.bf16.mxu1 %v14335_v21  ;;  %v14414_v20 = vld [vmem:[%s21366_s26 + $0xd0] ss:$48 sps:$4 sm:$0xff]   ;;  %v14417_v21 = vld [vmem:[%s21366_s26 + $0xd8] ss:$48 sps:$4 sm:$0xff]  }
  0x5f   :  { %2495 = vmatpush1.bf16.msra.mxu0 %v14330_v22  ;;  %2577 = vmatpush1.bf16.msra.mxu1 %v14333_v23  ;;  %v14422_v22 = vld [vmem:[%s21366_s26 + $0x134] ss:$48 sps:$4 sm:$0xff]   ;;  %v14425_v23 = vld [vmem:[%s21366_s26 + $0x13c] ss:$48 sps:$4 sm:$0xff]  }
  0x60   :  { %2496 = vmatprep.subr.bf16.mxu0 %v14338_v24  ;;  %2578 = vmatprep.subr.bf16.mxu1 %v14341_v25  ;;  %v14420_v24 = vld [vmem:[%s21366_s26 + $0x130] ss:$48 sps:$4 sm:$0xff]   ;;  %v14423_v25 = vld [vmem:[%s21366_s26 + $0x138] ss:$48 sps:$4 sm:$0xff]  }
  0x63   :  { %2497 = vmatpush1.bf16.msra.mxu0 %v14336_v26  ;;  %2579 = vmatpush1.bf16.msra.mxu1 %v14339_v27  ;;  %v14428_v26 = vld [vmem:[%s21366_s26 + $0x194] ss:$48 sps:$4 sm:$0xff]   ;;  %v14431_v27 = vld [vmem:[%s21366_s26 + $0x19c] ss:$48 sps:$4 sm:$0xff]  }
  0x64   :  { %2498 = vmatprep.subr.bf16.mxu0 %v14344_v28  ;;  %2580 = vmatprep.subr.bf16.mxu1 %v14347_v29  ;;  %v14426_v28 = vld [vmem:[%s21366_s26 + $0x190] ss:$48 sps:$4 sm:$0xff]   ;;  %v14429_v29 = vld [vmem:[%s21366_s26 + $0x198] ss:$48 sps:$4 sm:$0xff]  }
  0x67   :  { %2499 = vmatpush1.bf16.msra.mxu0 %v14342_v31  ;;  %2581 = vmatpush1.bf16.msra.mxu1 %v14345_v32  ;;  %v14437_v31 = vld [vmem:[%s21366_s26 + $0x1fc] ss:$48 sps:$4 sm:$0xff]   ;;  %v14432_v32 = vld [vmem:[%s21366_s26 + $0x1f0] ss:$48 sps:$4 sm:$0xff]  }
  0x68   :  { %2500 = vmatprep.subr.bf16.mxu0 %v14350_v34  ;;  %2582 = vmatprep.subr.bf16.mxu1 %v14353_v35  ;;  %v14435_v34 = vld [vmem:[%s21366_s26 + $0x1f8] ss:$48 sps:$4 sm:$0xff]   ;;  %v14440_v35 = vld [vmem:[%s21366_s26 + $0x254] ss:$48 sps:$4 sm:$0xff]  }
  0x6b   :  { %2501 = vmatpush1.bf16.msra.mxu0 %v14348_v36  ;;  %2583 = vmatpush1.bf16.msra.mxu1 %v14351_v37  ;;  %v14443_v36 = vld [vmem:[%s21366_s26 + $0x25c] ss:$48 sps:$4 sm:$0xff]   ;;  %v14438_v37 = vld [vmem:[%s21366_s26 + $0x250] ss:$48 sps:$4 sm:$0xff]  }
  0x6c   :  { %2502 = vmatprep.subr.bf16.mxu0 %v14356_v38  ;;  %2584 = vmatprep.subr.bf16.mxu1 %v14359_v39  ;;  %v14441_v38 = vld [vmem:[%s21366_s26 + $0x258] ss:$48 sps:$4 sm:$0xff]   ;;  %v14446_v39 = vld [vmem:[%s21366_s26 + $0x2b4] ss:$48 sps:$4 sm:$0xff]  }
  0x6f   :  { %2503 = vmatpush1.bf16.msra.mxu0 %v14354_v40  ;;  %2585 = vmatpush1.bf16.msra.mxu1 %v14357_v41  ;;  %v14449_v40 = vld [vmem:[%s21366_s26 + $0x2bc] ss:$48 sps:$4 sm:$0xff]   ;;  %v14444_v41 = vld [vmem:[%s21366_s26 + $0x2b0] ss:$48 sps:$4 sm:$0xff]  }
  0x70   :  { %2504 = vmatprep.subr.bf16.mxu0 %v14362_v42  ;;  %2586 = vmatprep.subr.bf16.mxu1 %v14365_v43  ;;  %v14447_v42 = vld [vmem:[%s21366_s26 + $0x2b8] ss:$48 sps:$4 sm:$0xff]   ;;  %v14452_v43 = vld [vmem:[%s21366_s26 + $0x314] ss:$48 sps:$4 sm:$0xff]  }
  0x73   :  { %2505 = vmatpush1.bf16.msra.mxu0 %v14360_v44  ;;  %2587 = vmatpush1.bf16.msra.mxu1 %v14363_v45  ;;  %v14455_v44 = vld [vmem:[%s21366_s26 + $0x31c] ss:$48 sps:$4 sm:$0xff]   ;;  %v14450_v45 = vld [vmem:[%s21366_s26 + $0x310] ss:$48 sps:$4 sm:$0xff]  }
  0x74   :  { %2506 = vmatprep.subr.bf16.mxu0 %v14368_v46  ;;  %2588 = vmatprep.subr.bf16.mxu1 %v14371_v47  ;;  %v14453_v46 = vld [vmem:[%s21366_s26 + $0x318] ss:$48 sps:$4 sm:$0xff]   ;;  %v14458_v47 = vld [vmem:[%s21366_s26 + $0x374] ss:$48 sps:$4 sm:$0xff]  }
  0x77   :  { %2507 = vmatpush1.bf16.msra.mxu0 %v14366_v49  ;;  %2589 = vmatpush1.bf16.msra.mxu1 %v14369_v50  ;;  %v14461_v49 = vld [vmem:[%s21366_s26 + $0x37c] ss:$48 sps:$4 sm:$0xff]   ;;  %v14456_v50 = vld [vmem:[%s21366_s26 + $0x370] ss:$48 sps:$4 sm:$0xff]  }
  0x78   :  { %2508 = vmatprep.subr.bf16.mxu0 %v14374_v51  ;;  %2590 = vmatprep.subr.bf16.mxu1 %v14377_v52  ;;  %v14459_v51 = vld [vmem:[%s21366_s26 + $0x378] ss:$48 sps:$4 sm:$0xff]   ;;  %v14464_v52 = vld [vmem:[%s21366_s26 + $0x3d4] ss:$48 sps:$4 sm:$0xff]  }
  0x7b   :  { %2509 = vmatpush1.bf16.msra.mxu0 %v14372_v53  ;;  %2591 = vmatpush1.bf16.msra.mxu1 %v14375_v54  ;;  %v14467_v53 = vld [vmem:[%s21366_s26 + $0x3dc] ss:$48 sps:$4 sm:$0xff]   ;;  %v14462_v54 = vld [vmem:[%s21366_s26 + $0x3d0] ss:$48 sps:$4 sm:$0xff]  }
  0x7c   :  { %2510 = vmatprep.subr.bf16.mxu0 %v14380_v55  ;;  %2592 = vmatprep.subr.bf16.mxu1 %v14383_v56  ;;  %v14465_v55 = vld [vmem:[%s21366_s26 + $0x3d8] ss:$48 sps:$4 sm:$0xff]   ;;  %v14470_v56 = vld [vmem:[%s21366_s26 + $0x434] ss:$48 sps:$4 sm:$0xff]  }
  0x7f   :  { %2511 = vmatpush1.bf16.msra.mxu0 %v14378_v57  ;;  %2593 = vmatpush1.bf16.msra.mxu1 %v14381_v58  ;;  %v14473_v57 = vld [vmem:[%s21366_s26 + $0x43c] ss:$48 sps:$4 sm:$0xff]   ;;  %v14468_v58 = vld [vmem:[%s21366_s26 + $0x430] ss:$48 sps:$4 sm:$0xff]  }
  0x80   :  { %2512 = vmatprep.subr.bf16.mxu0 %v14386_v59  ;;  %2594 = vmatprep.subr.bf16.mxu1 %v14389_v60  ;;  %v14471_v59 = vld [vmem:[%s21366_s26 + $0x438] ss:$48 sps:$4 sm:$0xff]   ;;  %v14476_v60 = vld [vmem:[%s21366_s26 + $0x494] ss:$48 sps:$4 sm:$0xff]  }
  0x83   :  { %2513 = vmatpush1.bf16.msra.mxu0 %v14384_v61  ;;  %2595 = vmatpush1.bf16.msra.mxu1 %v14387_v62  ;;  %v14479_v61 = vld [vmem:[%s21366_s26 + $0x49c] ss:$48 sps:$4 sm:$0xff]   ;;  %v14474_v62 = vld [vmem:[%s21366_s26 + $0x490] ss:$48 sps:$4 sm:$0xff]  }
  0x84   :  { %2514 = vmatprep.subr.bf16.mxu0 %v14392_v63  ;;  %2596 = vmatprep.subr.bf16.mxu1 %v14395_v0  ;;  %v14477_v63 = vld [vmem:[%s21366_s26 + $0x498] ss:$48 sps:$4 sm:$0xff]   ;;  %v14482_v0 = vld [vmem:[%s21366_s26 + $0x4f4] ss:$48 sps:$4 sm:$0xff]  }
  0x87   :  { %2515 = vmatpush1.bf16.msra.mxu0 %v14390_v1  ;;  %2597 = vmatpush1.bf16.msra.mxu1 %v14393_v2  ;;  %v14485_v1 = vld [vmem:[%s21366_s26 + $0x4fc] ss:$48 sps:$4 sm:$0xff]   ;;  %v14480_v2 = vld [vmem:[%s21366_s26 + $0x4f0] ss:$48 sps:$4 sm:$0xff]  }
  0x88   :  { %2516 = vmatprep.subr.bf16.mxu0 %v14398_v3  ;;  %2598 = vmatprep.subr.bf16.mxu1 %v14401_v4  ;;  %v14483_v3 = vld [vmem:[%s21366_s26 + $0x4f8] ss:$48 sps:$4 sm:$0xff]   ;;  %v14488_v4 = vld [vmem:[%s21366_s26 + $0x554] ss:$48 sps:$4 sm:$0xff]  }
  0x8b   :  { %2517 = vmatpush1.bf16.msra.mxu0 %v14396_v6  ;;  %2599 = vmatpush1.bf16.msra.mxu1 %v14399_v7  ;;  %v14491_v6 = vld [vmem:[%s21366_s26 + $0x55c] ss:$48 sps:$4 sm:$0xff]   ;;  %v14486_v7 = vld [vmem:[%s21366_s26 + $0x550] ss:$48 sps:$4 sm:$0xff]  }
  0x8c   :  { %2609 = vmatprep.subr.bf16.mxu0 %v14404_v9  ;;  %2691 = vmatprep.subr.bf16.mxu1 %v14407_v10  ;;  %v14494_v9 = vld [vmem:[%s21366_s26 + $0x5b4] ss:$48 sps:$4 sm:$0xff]   ;;  %v14497_v10 = vld [vmem:[%s21366_s26 + $0x5bc] ss:$48 sps:$4 sm:$0xff]  }
  0x8e   :  { %2519 = vmatmul.mubr.bf16.vlgmr.msra.gmra.mrb[0].mxu0 %v16354_v11  ;;  %2601 = vmatmul.mubr.bf16.vlgmr.msra.gmra.mrb[0].mxu1 %v16354_v11 }
  0x8f   :  { %2610 = vmatpush1.bf16.msra.mxu0 %v14402_v12  ;;  %2692 = vmatpush1.bf16.msra.mxu1 %v14405_v13  ;;  %v14492_v12 = vld [vmem:[%s21366_s26 + $0x5b0] ss:$48 sps:$4 sm:$0xff]   ;;  %v14495_v13 = vld [vmem:[%s21366_s26 + $0x5b8] ss:$48 sps:$4 sm:$0xff]  }
  0x90   :  { %2611 = vmatprep.subr.bf16.mxu0 %v14410_v14  ;;  %2693 = vmatprep.subr.bf16.mxu1 %v14413_v15  ;;  %v14500_v14 = vld [vmem:[%s21366_s26 + $0x614] ss:$48 sps:$4 sm:$0xff]   ;;  %v14503_v15 = vld [vmem:[%s21366_s26 + $0x61c] ss:$48 sps:$4 sm:$0xff]  }
  0x91   :  { %2641 = vmatprep.mubr.bf16.mxu0 %v16084_v48  ;;  %2723 = vmatprep.mubr.bf16.mxu1 %v16084_v48 }
  0x93   :  { %2612 = vmatpush1.bf16.msra.mxu0 %v14408_v16  ;;  %2694 = vmatpush1.bf16.msra.mxu1 %v14411_v17  ;;  %v14498_v16 = vld [vmem:[%s21366_s26 + $0x610] ss:$48 sps:$4 sm:$0xff]   ;;  %v14501_v17 = vld [vmem:[%s21366_s26 + $0x618] ss:$48 sps:$4 sm:$0xff]  }
  0x94   :  { %2613 = vmatprep.subr.bf16.mxu0 %v14416_v18  ;;  %2695 = vmatprep.subr.bf16.mxu1 %v14419_v19  ;;  %v14506_v18 = vld [vmem:[%s21366_s26 + $0x674] ss:$48 sps:$4 sm:$0xff]   ;;  %v14509_v19 = vld [vmem:[%s21366_s26 + $0x67c] ss:$48 sps:$4 sm:$0xff]  }
  0x97   :  { %2614 = vmatpush1.bf16.msra.mxu0 %v14414_v20  ;;  %2696 = vmatpush1.bf16.msra.mxu1 %v14417_v21  ;;  %v14504_v20 = vld [vmem:[%s21366_s26 + $0x670] ss:$48 sps:$4 sm:$0xff]   ;;  %v14507_v21 = vld [vmem:[%s21366_s26 + $0x678] ss:$48 sps:$4 sm:$0xff]  }
  0x98   :  { %2615 = vmatprep.subr.bf16.mxu0 %v14422_v22  ;;  %2697 = vmatprep.subr.bf16.mxu1 %v14425_v23  ;;  %v14512_v22 = vld [vmem:[%s21366_s26 + $0x6d4] ss:$48 sps:$4 sm:$0xff]   ;;  %v14515_v23 = vld [vmem:[%s21366_s26 + $0x6dc] ss:$48 sps:$4 sm:$0xff]  }
  0x9b   :  { %2616 = vmatpush1.bf16.msra.mxu0 %v14420_v24  ;;  %2698 = vmatpush1.bf16.msra.mxu1 %v14423_v25  ;;  %v14510_v24 = vld [vmem:[%s21366_s26 + $0x6d0] ss:$48 sps:$4 sm:$0xff]   ;;  %v14513_v25 = vld [vmem:[%s21366_s26 + $0x6d8] ss:$48 sps:$4 sm:$0xff]  }
  0x9c   :  { %2617 = vmatprep.subr.bf16.mxu0 %v14428_v26  ;;  %2699 = vmatprep.subr.bf16.mxu1 %v14431_v27  ;;  %v14518_v26 = vld [vmem:[%s21366_s26 + $0x734] ss:$48 sps:$4 sm:$0xff]   ;;  %v14521_v27 = vld [vmem:[%s21366_s26 + $0x73c] ss:$48 sps:$4 sm:$0xff]  }
  0x9f   :  { %2618 = vmatpush1.bf16.msra.mxu0 %v14426_v28  ;;  %2700 = vmatpush1.bf16.msra.mxu1 %v14429_v29  ;;  %v14516_v28 = vld [vmem:[%s21366_s26 + $0x730] ss:$48 sps:$4 sm:$0xff]   ;;  %v14519_v29 = vld [vmem:[%s21366_s26 + $0x738] ss:$48 sps:$4 sm:$0xff]  }
  0xa0   :  { %2619 = vmatprep.subr.bf16.mxu0 %v14434_v30  ;;  %2701 = vmatprep.subr.bf16.mxu1 %v14437_v31  ;;  %v14524_v30 = vld [vmem:[%s21366_s26 + $0x794] ss:$48 sps:$4 sm:$0xff]   ;;  %v14527_v31 = vld [vmem:[%s21366_s26 + $0x79c] ss:$48 sps:$4 sm:$0xff]  }
  0xa3   :  { %2620 = vmatpush1.bf16.msra.mxu0 %v14432_v32  ;;  %2702 = vmatpush1.bf16.msra.mxu1 %v14435_v34  ;;  %v14522_v32 = vld [vmem:[%s21366_s26 + $0x790] ss:$48 sps:$4 sm:$0xff]   ;;  %v14525_v34 = vld [vmem:[%s21366_s26 + $0x798] ss:$48 sps:$4 sm:$0xff]  }
  0xa4   :  { %2621 = vmatprep.subr.bf16.mxu0 %v14440_v35  ;;  %2703 = vmatprep.subr.bf16.mxu1 %v14443_v36  ;;  %v14530_v35 = vld [vmem:[%s21366_s26 + $0x7f4] ss:$48 sps:$4 sm:$0xff]   ;;  %v14533_v36 = vld [vmem:[%s21366_s26 + $0x7fc] ss:$48 sps:$4 sm:$0xff]  }
  0xa7   :  { %2622 = vmatpush1.bf16.msra.mxu0 %v14438_v37  ;;  %2704 = vmatpush1.bf16.msra.mxu1 %v14441_v38  ;;  %v14528_v37 = vld [vmem:[%s21366_s26 + $0x7f0] ss:$48 sps:$4 sm:$0xff]   ;;  %v14531_v38 = vld [vmem:[%s21366_s26 + $0x7f8] ss:$48 sps:$4 sm:$0xff]  }
  0xa8   :  { %2623 = vmatprep.subr.bf16.mxu0 %v14446_v39  ;;  %2705 = vmatprep.subr.bf16.mxu1 %v14449_v40  ;;  %v14536_v39 = vld [vmem:[%s21366_s26 + $0x854] ss:$48 sps:$4 sm:$0xff]   ;;  %v14539_v40 = vld [vmem:[%s21366_s26 + $0x85c] ss:$48 sps:$4 sm:$0xff]  }
  0xab   :  { %2624 = vmatpush1.bf16.msra.mxu0 %v14444_v41  ;;  %2706 = vmatpush1.bf16.msra.mxu1 %v14447_v42  ;;  %v14534_v41 = vld [vmem:[%s21366_s26 + $0x850] ss:$48 sps:$4 sm:$0xff]   ;;  %v14537_v42 = vld [vmem:[%s21366_s26 + $0x858] ss:$48 sps:$4 sm:$0xff]  }
  0xac   :  { %2625 = vmatprep.subr.bf16.mxu0 %v14452_v43  ;;  %2707 = vmatprep.subr.bf16.mxu1 %v14455_v44  ;;  %v14542_v43 = vld [vmem:[%s21366_s26 + $0x8b4] ss:$48 sps:$4 sm:$0xff]   ;;  %v14545_v44 = vld [vmem:[%s21366_s26 + $0x8bc] ss:$48 sps:$4 sm:$0xff]  }
  0xaf   :  { %2626 = vmatpush1.bf16.msra.mxu0 %v14450_v45  ;;  %2708 = vmatpush1.bf16.msra.mxu1 %v14453_v46  ;;  %v14540_v45 = vld [vmem:[%s21366_s26 + $0x8b0] ss:$48 sps:$4 sm:$0xff]   ;;  %v14543_v46 = vld [vmem:[%s21366_s26 + $0x8b8] ss:$48 sps:$4 sm:$0xff]  }
  0xb0   :  { %2627 = vmatprep.subr.bf16.mxu0 %v14458_v47  ;;  %2709 = vmatprep.subr.bf16.mxu1 %v14461_v49  ;;  %v14548_v47 = vld [vmem:[%s21366_s26 + $0x914] ss:$48 sps:$4 sm:$0xff]   ;;  %v14551_v49 = vld [vmem:[%s21366_s26 + $0x91c] ss:$48 sps:$4 sm:$0xff]  }
  0xb3   :  { %2628 = vmatpush1.bf16.msra.mxu0 %v14456_v50  ;;  %2710 = vmatpush1.bf16.msra.mxu1 %v14459_v51  ;;  %v14546_v50 = vld [vmem:[%s21366_s26 + $0x910] ss:$48 sps:$4 sm:$0xff]   ;;  %v14549_v51 = vld [vmem:[%s21366_s26 + $0x918] ss:$48 sps:$4 sm:$0xff]  }
  0xb4   :  { %2629 = vmatprep.subr.bf16.mxu0 %v14464_v52  ;;  %2711 = vmatprep.subr.bf16.mxu1 %v14467_v53  ;;  %v14554_v52 = vld [vmem:[%s21366_s26 + $0x974] ss:$48 sps:$4 sm:$0xff]   ;;  %v14557_v53 = vld [vmem:[%s21366_s26 + $0x97c] ss:$48 sps:$4 sm:$0xff]  }
  0xb7   :  { %2630 = vmatpush1.bf16.msra.mxu0 %v14462_v54  ;;  %2712 = vmatpush1.bf16.msra.mxu1 %v14465_v55  ;;  %v14552_v54 = vld [vmem:[%s21366_s26 + $0x970] ss:$48 sps:$4 sm:$0xff]   ;;  %v14555_v55 = vld [vmem:[%s21366_s26 + $0x978] ss:$48 sps:$4 sm:$0xff]  }
  0xb8   :  { %2631 = vmatprep.subr.bf16.mxu0 %v14470_v56  ;;  %2713 = vmatprep.subr.bf16.mxu1 %v14473_v57  ;;  %v14560_v56 = vld [vmem:[%s21366_s26 + $0x9d4] ss:$48 sps:$4 sm:$0xff]   ;;  %v14563_v57 = vld [vmem:[%s21366_s26 + $0x9dc] ss:$48 sps:$4 sm:$0xff]  }
  0xbb   :  { %2632 = vmatpush1.bf16.msra.mxu0 %v14468_v58  ;;  %2714 = vmatpush1.bf16.msra.mxu1 %v14471_v59  ;;  %v14558_v58 = vld [vmem:[%s21366_s26 + $0x9d0] ss:$48 sps:$4 sm:$0xff]   ;;  %v14561_v59 = vld [vmem:[%s21366_s26 + $0x9d8] ss:$48 sps:$4 sm:$0xff]  }
  0xbc   :  { %2633 = vmatprep.subr.bf16.mxu0 %v14476_v60  ;;  %2715 = vmatprep.subr.bf16.mxu1 %v14479_v61  ;;  %v14566_v60 = vld [vmem:[%s21366_s26 + $0xa34] ss:$48 sps:$4 sm:$0xff]   ;;  %v14569_v61 = vld [vmem:[%s21366_s26 + $0xa3c] ss:$48 sps:$4 sm:$0xff]  }
  0xbf   :  { %2634 = vmatpush1.bf16.msra.mxu0 %v14474_v62  ;;  %2716 = vmatpush1.bf16.msra.mxu1 %v14477_v63  ;;  %v14564_v62 = vld [vmem:[%s21366_s26 + $0xa30] ss:$48 sps:$4 sm:$0xff]   ;;  %v14567_v63 = vld [vmem:[%s21366_s26 + $0xa38] ss:$48 sps:$4 sm:$0xff]  }
  0xc0   :  { %2635 = vmatprep.subr.bf16.mxu0 %v14482_v0  ;;  %2717 = vmatprep.subr.bf16.mxu1 %v14485_v1  ;;  %v14572_v0 = vld [vmem:[%s21366_s26 + $0xa94] ss:$48 sps:$4 sm:$0xff]   ;;  %v14575_v1 = vld [vmem:[%s21366_s26 + $0xa9c] ss:$48 sps:$4 sm:$0xff]  }
  0xc3   :  { %2636 = vmatpush1.bf16.msra.mxu0 %v14480_v2  ;;  %2718 = vmatpush1.bf16.msra.mxu1 %v14483_v3  ;;  %v14570_v2 = vld [vmem:[%s21366_s26 + $0xa90] ss:$48 sps:$4 sm:$0xff]   ;;  %v14573_v3 = vld [vmem:[%s21366_s26 + $0xa98] ss:$48 sps:$4 sm:$0xff]  }
  0xc4   :  { %2637 = vmatprep.subr.bf16.mxu0 %v14488_v4  ;;  %2719 = vmatprep.subr.bf16.mxu1 %v14491_v6  ;;  %v14578_v4 = vld [vmem:[%s21366_s26 + $0xaf4] ss:$48 sps:$4 sm:$0xff]   ;;  %v14581_v6 = vld [vmem:[%s21366_s26 + $0xafc] ss:$48 sps:$4 sm:$0xff]  }
  0xc7   :  { %2638 = vmatpush1.bf16.msra.mxu0 %v14486_v7  ;;  %2720 = vmatpush1.bf16.msra.mxu1 %v14489_v8  ;;  %v14576_v7 = vld [vmem:[%s21366_s26 + $0xaf0] ss:$48 sps:$4 sm:$0xff]   ;;  %v14579_v8 = vld [vmem:[%s21366_s26 + $0xaf8] ss:$48 sps:$4 sm:$0xff]  }
  0xc8   :  { %2639 = vmatprep.subr.bf16.mxu0 %v14494_v9  ;;  %2721 = vmatprep.subr.bf16.mxu1 %v14497_v10  ;;  %v14584_v9 = vld [vmem:[%s21366_s26 + $0xb54] ss:$48 sps:$4 sm:$0xff]   ;;  %v14587_v10 = vld [vmem:[%s21366_s26 + $0xb5c] ss:$48 sps:$4 sm:$0xff]  }
  0xcb   :  { %2640 = vmatpush1.bf16.msra.mxu0 %v14492_v12  ;;  %2722 = vmatpush1.bf16.msra.mxu1 %v14495_v13  ;;  %v14582_v12 = vld [vmem:[%s21366_s26 + $0xb50] ss:$48 sps:$4 sm:$0xff]   ;;  %v14585_v13 = vld [vmem:[%s21366_s26 + $0xb58] ss:$48 sps:$4 sm:$0xff]  }
  0xcc   :  { %2650 = vmatprep.subr.bf16.mxu0 %v14500_v14  ;;  %2732 = vmatprep.subr.bf16.mxu1 %v14503_v15  ;;  %v14590_v14 = vld [vmem:[%s21366_s26 + $0xbb4] ss:$48 sps:$4 sm:$0xff]   ;;  %v14593_v15 = vld [vmem:[%s21366_s26 + $0xbbc] ss:$48 sps:$4 sm:$0xff]  }
  0xce   :  { %2642 = vmatmul.mubr.bf16.vlgmr.msra.gmra.mrb[4].mxu0 %v16148_v5  ;;  %2724 = vmatmul.mubr.bf16.vlgmr.msra.gmra.mrb[4].mxu1 %v16148_v5 }
  0xcf   :  { %2651 = vmatpush1.bf16.msra.mxu0 %v14498_v16  ;;  %2733 = vmatpush1.bf16.msra.mxu1 %v14501_v17  ;;  %v14588_v16 = vld [vmem:[%s21366_s26 + $0xbb0] ss:$48 sps:$4 sm:$0xff]   ;;  %v14591_v17 = vld [vmem:[%s21366_s26 + $0xbb8] ss:$48 sps:$4 sm:$0xff]  }
  0xd0   :  { %2652 = vmatprep.subr.bf16.mxu0 %v14506_v18  ;;  %2734 = vmatprep.subr.bf16.mxu1 %v14509_v19  ;;  %v14596_v18 = vld [vmem:[%s21366_s26 + $0x24] ss:$48 sps:$4 sm:$0xff]   ;;  %v14594_v19 = vld [vmem:[%s21366_s26 + $0x20] ss:$48 sps:$4 sm:$0xff]  }
  0xd1   :  { %2682 = vmatprep.mubr.bf16.mxu0 %v16233_v33  ;;  %2764 = vmatprep.mubr.bf16.mxu1 %v16233_v33 }
  0xd3   :  { %2653 = vmatpush1.bf16.msra.mxu0 %v14504_v20  ;;  %2735 = vmatpush1.bf16.msra.mxu1 %v14507_v21  ;;  %v14599_v20 = vld [vmem:[%s21366_s26 + $0x84] ss:$48 sps:$4 sm:$0xff]   ;;  %v14597_v21 = vld [vmem:[%s21366_s26 + $0x80] ss:$48 sps:$4 sm:$0xff]  }
  0xd4   :  { %2654 = vmatprep.subr.bf16.mxu0 %v14512_v22  ;;  %2736 = vmatprep.subr.bf16.mxu1 %v14515_v23  ;;  %v14602_v22 = vld [vmem:[%s21366_s26 + $0xe4] ss:$48 sps:$4 sm:$0xff]   ;;  %v14600_v23 = vld [vmem:[%s21366_s26 + $0xe0] ss:$48 sps:$4 sm:$0xff]  }
  0xd7   :  { %2655 = vmatpush1.bf16.msra.mxu0 %v14510_v24  ;;  %2737 = vmatpush1.bf16.msra.mxu1 %v14513_v25  ;;  %v14605_v24 = vld [vmem:[%s21366_s26 + $0x144] ss:$48 sps:$4 sm:$0xff]   ;;  %v14603_v25 = vld [vmem:[%s21366_s26 + $0x140] ss:$48 sps:$4 sm:$0xff]  }
  0xd8   :  { %2656 = vmatprep.subr.bf16.mxu0 %v14518_v26  ;;  %2738 = vmatprep.subr.bf16.mxu1 %v14521_v27  ;;  %v14608_v26 = vld [vmem:[%s21366_s26 + $0x1a4] ss:$48 sps:$4 sm:$0xff]  }
  0xd9   :  { %v14611_v27 = vld [vmem:[%s21366_s26 + $0x204] ss:$48 sps:$4 sm:$0xff]  }
  0xdb   :  { %2657 = vmatpush1.bf16.msra.mxu0 %v14516_v28  ;;  %2739 = vmatpush1.bf16.msra.mxu1 %v14519_v29  ;;  %v14609_v28 = vld [vmem:[%s21366_s26 + $0x200] ss:$48 sps:$4 sm:$0xff]   ;;  %v14614_v29 = vld [vmem:[%s21366_s26 + $0x264] ss:$48 sps:$4 sm:$0xff]  }
  0xdc   :  { %2658 = vmatprep.subr.bf16.mxu0 %v14524_v30  ;;  %2740 = vmatprep.subr.bf16.mxu1 %v14527_v31  ;;  %v14612_v30 = vld [vmem:[%s21366_s26 + $0x260] ss:$48 sps:$4 sm:$0xff]   ;;  %v14617_v31 = vld [vmem:[%s21366_s26 + $0x2c4] ss:$48 sps:$4 sm:$0xff]  }
  0xdf   :  { %2659 = vmatpush1.bf16.msra.mxu0 %v14522_v32  ;;  %2741 = vmatpush1.bf16.msra.mxu1 %v14525_v34  ;;  %v14615_v32 = vld [vmem:[%s21366_s26 + $0x2c0] ss:$48 sps:$4 sm:$0xff]   ;;  %v14620_v34 = vld [vmem:[%s21366_s26 + $0x324] ss:$48 sps:$4 sm:$0xff]  }
  0xe0   :  { %2660 = vmatprep.subr.bf16.mxu0 %v14530_v35  ;;  %2742 = vmatprep.subr.bf16.mxu1 %v14533_v36  ;;  %v14618_v35 = vld [vmem:[%s21366_s26 + $0x320] ss:$48 sps:$4 sm:$0xff]   ;;  %v14623_v36 = vld [vmem:[%s21366_s26 + $0x384] ss:$48 sps:$4 sm:$0xff]  }
  0xe3   :  { %2661 = vmatpush1.bf16.msra.mxu0 %v14528_v37  ;;  %2743 = vmatpush1.bf16.msra.mxu1 %v14531_v38  ;;  %v14621_v37 = vld [vmem:[%s21366_s26 + $0x380] ss:$48 sps:$4 sm:$0xff]   ;;  %v14626_v38 = vld [vmem:[%s21366_s26 + $0x3e4] ss:$48 sps:$4 sm:$0xff]  }
  0xe4   :  { %2662 = vmatprep.subr.bf16.mxu0 %v14536_v39  ;;  %2744 = vmatprep.subr.bf16.mxu1 %v14539_v40  ;;  %v14624_v39 = vld [vmem:[%s21366_s26 + $0x3e0] ss:$48 sps:$4 sm:$0xff]   ;;  %v14629_v40 = vld [vmem:[%s21366_s26 + $0x444] ss:$48 sps:$4 sm:$0xff]  }
  0xe7   :  { %2663 = vmatpush1.bf16.msra.mxu0 %v14534_v41  ;;  %2745 = vmatpush1.bf16.msra.mxu1 %v14537_v42  ;;  %v14627_v41 = vld [vmem:[%s21366_s26 + $0x440] ss:$48 sps:$4 sm:$0xff]   ;;  %v14632_v42 = vld [vmem:[%s21366_s26 + $0x4a4] ss:$48 sps:$4 sm:$0xff]  }
  0xe8   :  { %2664 = vmatprep.subr.bf16.mxu0 %v14542_v43  ;;  %2746 = vmatprep.subr.bf16.mxu1 %v14545_v44  ;;  %v14630_v43 = vld [vmem:[%s21366_s26 + $0x4a0] ss:$48 sps:$4 sm:$0xff]   ;;  %v14635_v44 = vld [vmem:[%s21366_s26 + $0x504] ss:$48 sps:$4 sm:$0xff]  }
  0xeb   :  { %2665 = vmatpush1.bf16.msra.mxu0 %v14540_v45  ;;  %2747 = vmatpush1.bf16.msra.mxu1 %v14543_v46  ;;  %v14633_v45 = vld [vmem:[%s21366_s26 + $0x500] ss:$48 sps:$4 sm:$0xff]   ;;  %v14638_v46 = vld [vmem:[%s21366_s26 + $0x564] ss:$48 sps:$4 sm:$0xff]  }
  0xec   :  { %2666 = vmatprep.subr.bf16.mxu0 %v14548_v47  ;;  %2748 = vmatprep.subr.bf16.mxu1 %v14551_v49  ;;  %v14636_v47 = vld [vmem:[%s21366_s26 + $0x560] ss:$48 sps:$4 sm:$0xff]   ;;  %v14641_v49 = vld [vmem:[%s21366_s26 + $0x5c4] ss:$48 sps:$4 sm:$0xff]  }
  0xef   :  { %2667 = vmatpush1.bf16.msra.mxu0 %v14546_v50  ;;  %2749 = vmatpush1.bf16.msra.mxu1 %v14549_v51  ;;  %v14639_v50 = vld [vmem:[%s21366_s26 + $0x5c0] ss:$48 sps:$4 sm:$0xff]   ;;  %v14644_v51 = vld [vmem:[%s21366_s26 + $0x624] ss:$48 sps:$4 sm:$0xff]  }
  0xf0   :  { %2668 = vmatprep.subr.bf16.mxu0 %v14554_v52  ;;  %2750 = vmatprep.subr.bf16.mxu1 %v14557_v53  ;;  %v14642_v52 = vld [vmem:[%s21366_s26 + $0x620] ss:$48 sps:$4 sm:$0xff]   ;;  %v14647_v53 = vld [vmem:[%s21366_s26 + $0x684] ss:$48 sps:$4 sm:$0xff]  }
  0xf3   :  { %2669 = vmatpush1.bf16.msra.mxu0 %v14552_v54  ;;  %2751 = vmatpush1.bf16.msra.mxu1 %v14555_v55  ;;  %v14645_v54 = vld [vmem:[%s21366_s26 + $0x680] ss:$48 sps:$4 sm:$0xff]   ;;  %v14650_v55 = vld [vmem:[%s21366_s26 + $0x6e4] ss:$48 sps:$4 sm:$0xff]  }
  0xf4   :  { %2670 = vmatprep.subr.bf16.mxu0 %v14560_v56  ;;  %2752 = vmatprep.subr.bf16.mxu1 %v14563_v57  ;;  %v14648_v56 = vld [vmem:[%s21366_s26 + $0x6e0] ss:$48 sps:$4 sm:$0xff]   ;;  %v14653_v57 = vld [vmem:[%s21366_s26 + $0x744] ss:$48 sps:$4 sm:$0xff]  }
  0xf7   :  { %2671 = vmatpush1.bf16.msra.mxu0 %v14558_v58  ;;  %2753 = vmatpush1.bf16.msra.mxu1 %v14561_v59  ;;  %v14651_v58 = vld [vmem:[%s21366_s26 + $0x740] ss:$48 sps:$4 sm:$0xff]   ;;  %v14656_v59 = vld [vmem:[%s21366_s26 + $0x7a4] ss:$48 sps:$4 sm:$0xff]  }
  0xf8   :  { %2672 = vmatprep.subr.bf16.mxu0 %v14566_v60  ;;  %2754 = vmatprep.subr.bf16.mxu1 %v14569_v61  ;;  %v14654_v60 = vld [vmem:[%s21366_s26 + $0x7a0] ss:$48 sps:$4 sm:$0xff]   ;;  %v14659_v61 = vld [vmem:[%s21366_s26 + $0x804] ss:$48 sps:$4 sm:$0xff]  }
  0xfb   :  { %2673 = vmatpush1.bf16.msra.mxu0 %v14564_v62  ;;  %2755 = vmatpush1.bf16.msra.mxu1 %v14567_v63  ;;  %v14657_v62 = vld [vmem:[%s21366_s26 + $0x800] ss:$48 sps:$4 sm:$0xff]   ;;  %v14662_v63 = vld [vmem:[%s21366_s26 + $0x864] ss:$48 sps:$4 sm:$0xff]  }
  0xfc   :  { %2674 = vmatprep.subr.bf16.mxu0 %v14572_v0  ;;  %2756 = vmatprep.subr.bf16.mxu1 %v14575_v1 }
  0xff   :  { %2675 = vmatpush1.bf16.msra.mxu0 %v14570_v2  ;;  %2757 = vmatpush1.bf16.msra.mxu1 %v14573_v3  ;;  %v14660_v2 = vld [vmem:[%s21366_s26 + $0x860] ss:$48 sps:$4 sm:$0xff]  }
 0x100   :  { %2676 = vmatprep.subr.bf16.mxu0 %v14578_v4  ;;  %2758 = vmatprep.subr.bf16.mxu1 %v14581_v6  ;;  %v14665_v6 = vld [vmem:[%s21366_s26 + $0x8c4] ss:$48 sps:$4 sm:$0xff]  }
 0x103   :  { %2677 = vmatpush1.bf16.msra.mxu0 %v14576_v7  ;;  %2759 = vmatpush1.bf16.msra.mxu1 %v14579_v8 }
 0x104   :  { %2678 = vmatprep.subr.bf16.mxu0 %v14584_v9  ;;  %2760 = vmatprep.subr.bf16.mxu1 %v14587_v10 }
 0x107   :  { %2679 = vmatpush1.bf16.msra.mxu0 %v14582_v12  ;;  %2761 = vmatpush1.bf16.msra.mxu1 %v14585_v13  ;;  %v14663_v12 = vld [vmem:[%s21366_s26 + $0x8c0] ss:$48 sps:$4 sm:$0xff]   ;;  %v14668_v13 = vld [vmem:[%s21366_s26 + $0x924] ss:$48 sps:$4 sm:$0xff]  }
 0x108   :  { %2680 = vmatprep.subr.bf16.mxu0 %v14590_v14  ;;  %2762 = vmatprep.subr.bf16.mxu1 %v14593_v15  ;;  %v14666_v14 = vld [vmem:[%s21366_s26 + $0x920] ss:$48 sps:$4 sm:$0xff]   ;;  %v14671_v15 = vld [vmem:[%s21366_s26 + $0x984] ss:$48 sps:$4 sm:$0xff]  }
 0x10b   :  { %2681 = vmatpush1.bf16.msra.mxu0 %v14588_v16  ;;  %2763 = vmatpush1.bf16.msra.mxu1 %v14591_v17  ;;  %v14690_v16 = vld [vmem:[%s21366_s26 + $0x28] ss:$48 sps:$4 sm:$0xff]   ;;  %v14692_v17 = vld [vmem:[%s21366_s26 + $0x2c] ss:$48 sps:$4 sm:$0xff]  }
 0x10c   :  { %2773 = vmatprep.subr.bf16.mxu0 %v14596_v18  ;;  %v14695_v18 = vld [vmem:[%s21366_s26 + $0x8c] ss:$48 sps:$4 sm:$0xff]   ;;  %2855 = vmatprep.subr.bf16.mxu1 %v14692_v17 }
 0x10d   :  { %v14755_v17 = vld [vmem:[%s21366_s26 + $0x80c] ss:$48 sps:$4 sm:$0xff]  }
 0x10e   :  { %2683 = vmatmul.mubr.bf16.vlgmr.msra.gmra.mrb[4].mxu0 %v16354_v11  ;;  %2765 = vmatmul.mubr.bf16.vlgmr.msra.gmra.mrb[4].mxu1 %v16354_v11 }
 0x10f   :  { %2774 = vmatpush1.bf16.msra.mxu0 %v14594_v19  ;;  %2805 = vmatprep.mubr.bf16.mxu0 %v16084_v48  ;;  %v14669_v19 = vld [vmem:[%s21366_s26 + $0x980] ss:$48 sps:$4 sm:$0xff]  }
 0x110   :  { %2775 = vmatprep.subr.bf16.mxu0 %v14599_v20  ;;  %2887 = vmatprep.mubr.bf16.mxu1 %v16084_v48  ;;  %v14606_v48 = vld [vmem:[%s21366_s26 + $0x1a0] ss:$48 sps:$4 sm:$0xff]   ;;  %v14674_v20 = vld [vmem:[%s21366_s26 + $0x9e4] ss:$48 sps:$4 sm:$0xff]  }
 0x111   :  { %2856 = vmatpush1.bf16.msra.mxu1 %v14690_v16  ;;  %v14752_v16 = vld [vmem:[%s21366_s26 + $0x7ac] ss:$48 sps:$4 sm:$0xff]  }
 0x112   :  { %2857 = vmatprep.subr.bf16.mxu1 %v14695_v18  ;;  %v14753_v18 = vld [vmem:[%s21366_s26 + $0x808] ss:$48 sps:$4 sm:$0xff]  }
 0x113   :  { %2776 = vmatpush1.bf16.msra.mxu0 %v14597_v21  ;;  %v14693_v21 = vld [vmem:[%s21366_s26 + $0x88] ss:$48 sps:$4 sm:$0xff]  }
 0x114   :  { %2777 = vmatprep.subr.bf16.mxu0 %v14602_v22  ;;  %v14698_v22 = vld [vmem:[%s21366_s26 + $0xec] ss:$48 sps:$4 sm:$0xff]  }
 0x115   :  { %2858 = vmatpush1.bf16.msra.mxu1 %v14693_v21  ;;  %v14761_v21 = vld [vmem:[%s21366_s26 + $0x8cc] ss:$48 sps:$4 sm:$0xff]  }
 0x116   :  { %2859 = vmatprep.subr.bf16.mxu1 %v14698_v22  ;;  %v14759_v22 = vld [vmem:[%s21366_s26 + $0x8c8] ss:$48 sps:$4 sm:$0xff]  }
 0x117   :  { %2778 = vmatpush1.bf16.msra.mxu0 %v14600_v23  ;;  %v14672_v23 = vld [vmem:[%s21366_s26 + $0x9e0] ss:$48 sps:$4 sm:$0xff]  }
 0x118   :  { %2779 = vmatprep.subr.bf16.mxu0 %v14605_v24  ;;  %v14677_v24 = vld [vmem:[%s21366_s26 + $0xa44] ss:$48 sps:$4 sm:$0xff]  }
 0x11b   :  { %2780 = vmatpush1.bf16.msra.mxu0 %v14603_v25  ;;  %v14696_v25 = vld [vmem:[%s21366_s26 + $0xe8] ss:$48 sps:$4 sm:$0xff]  }
 0x11c   :  { %2781 = vmatprep.subr.bf16.mxu0 %v14608_v26  ;;  %v14701_v26 = vld [vmem:[%s21366_s26 + $0x14c] ss:$48 sps:$4 sm:$0xff]   ;;  %2860 = vmatpush1.bf16.msra.mxu1 %v14696_v25 }
 0x11d   :  { %2861 = vmatprep.subr.bf16.mxu1 %v14701_v26  ;;  %v14767_v25 = vld [vmem:[%s21366_s26 + $0x98c] ss:$48 sps:$4 sm:$0xff]   ;;  %v14765_v26 = vld [vmem:[%s21366_s26 + $0x988] ss:$48 sps:$4 sm:$0xff]  }
 0x11f   :  { %2782 = vmatpush1.bf16.msra.mxu0 %v14606_v48  ;;  %v14675_v48 = vld [vmem:[%s21366_s26 + $0xa40] ss:$48 sps:$4 sm:$0xff]  }
 0x120   :  { %2783 = vmatprep.subr.bf16.mxu0 %v14611_v27  ;;  %v14680_v27 = vld [vmem:[%s21366_s26 + $0xaa4] ss:$48 sps:$4 sm:$0xff]  }
 0x123   :  { %2784 = vmatpush1.bf16.msra.mxu0 %v14609_v28  ;;  %v14699_v28 = vld [vmem:[%s21366_s26 + $0x148] ss:$48 sps:$4 sm:$0xff]  }
 0x124   :  { %2785 = vmatprep.subr.bf16.mxu0 %v14614_v29  ;;  %v14704_v29 = vld [vmem:[%s21366_s26 + $0x1ac] ss:$48 sps:$4 sm:$0xff]   ;;  %2862 = vmatpush1.bf16.msra.mxu1 %v14699_v28 }
 0x125   :  { %2863 = vmatprep.subr.bf16.mxu1 %v14704_v29  ;;  %v14773_v28 = vld [vmem:[%s21366_s26 + $0xa4c] ss:$48 sps:$4 sm:$0xff]   ;;  %v14771_v29 = vld [vmem:[%s21366_s26 + $0xa48] ss:$48 sps:$4 sm:$0xff]  }
 0x127   :  { %2786 = vmatpush1.bf16.msra.mxu0 %v14612_v30  ;;  %v14678_v30 = vld [vmem:[%s21366_s26 + $0xaa0] ss:$48 sps:$4 sm:$0xff]  }
 0x128   :  { %2787 = vmatprep.subr.bf16.mxu0 %v14617_v31  ;;  %v14683_v31 = vld [vmem:[%s21366_s26 + $0xb04] ss:$48 sps:$4 sm:$0xff]  }
 0x12b   :  { %2788 = vmatpush1.bf16.msra.mxu0 %v14615_v32  ;;  %v14702_v32 = vld [vmem:[%s21366_s26 + $0x1a8] ss:$48 sps:$4 sm:$0xff]  }
 0x12c   :  { %2789 = vmatprep.subr.bf16.mxu0 %v14620_v34  ;;  %v465_v34 = vlaneseq  ;;  %2864 = vmatpush1.bf16.msra.mxu1 %v14702_v32 }
 0x12f   :  { %2790 = vmatpush1.bf16.msra.mxu0 %v14618_v35  ;;  %v14707_v35 = vld [vmem:[%s21366_s26 + $0x20c] ss:$48 sps:$4 sm:$0xff]  }
 0x130   :  { %2791 = vmatprep.subr.bf16.mxu0 %v14623_v36  ;;  %v14681_v36 = vld [vmem:[%s21366_s26 + $0xb00] ss:$48 sps:$4 sm:$0xff]   ;;  %2865 = vmatprep.subr.bf16.mxu1 %v14707_v35  ;;  %v14779_v35 = vld [vmem:[%s21366_s26 + $0xb0c] ss:$48 sps:$4 sm:$0xff]  }
 0x133   :  { %2792 = vmatpush1.bf16.msra.mxu0 %v14621_v37  ;;  %v14686_v37 = vld [vmem:[%s21366_s26 + $0xb64] ss:$48 sps:$4 sm:$0xff]  }
 0x134   :  { %2793 = vmatprep.subr.bf16.mxu0 %v14626_v38  ;;  %v14705_v38 = vld [vmem:[%s21366_s26 + $0x208] ss:$48 sps:$4 sm:$0xff]  }
 0x135   :  { %2866 = vmatpush1.bf16.msra.mxu1 %v14705_v38  ;;  %v14777_v38 = vld [vmem:[%s21366_s26 + $0xb08] ss:$48 sps:$4 sm:$0xff]  }
 0x137   :  { %2794 = vmatpush1.bf16.msra.mxu0 %v14624_v39  ;;  %v16976_v39 = vshrl.u32 %v465_v34, 7 }
 0x138   :  { %2795 = vmatprep.subr.bf16.mxu0 %v14629_v40  ;;  %v14684_v40 = vld [vmem:[%s21366_s26 + $0xb60] ss:$48 sps:$4 sm:$0xff]  }
 0x139   :  { %v17140_v32 = vsub.s32 5, %v16976_v39 }
 0x13b   :  { %2796 = vmatpush1.bf16.msra.mxu0 %v14627_v41  ;;  %v14710_v41 = vld [vmem:[%s21366_s26 + $0x26c] ss:$48 sps:$4 sm:$0xff]  }
 0x13c   :  { %2797 = vmatprep.subr.bf16.mxu0 %v14632_v42  ;;  %v14689_v42 = vld [vmem:[%s21366_s26 + $0xbc4] ss:$48 sps:$4 sm:$0xff]   ;;  %2867 = vmatprep.subr.bf16.mxu1 %v14710_v41 }
 0x13f   :  { %2798 = vmatpush1.bf16.msra.mxu0 %v14630_v43  ;;  %v14708_v43 = vld [vmem:[%s21366_s26 + $0x268] ss:$48 sps:$4 sm:$0xff]  }
 0x140   :  { %2799 = vmatprep.subr.bf16.mxu0 %v14635_v44  ;;  %v14713_v44 = vld [vmem:[%s21366_s26 + $0x2cc] ss:$48 sps:$4 sm:$0xff]   ;;  %2868 = vmatpush1.bf16.msra.mxu1 %v14708_v43  ;;  %v17163_v43 = vsub.s32 3, %v16976_v39 }
 0x141   :  { %2869 = vmatprep.subr.bf16.mxu1 %v14713_v44 }
 0x143   :  { %2800 = vmatpush1.bf16.msra.mxu0 %v14633_v45  ;;  %v16996_v45 = vld [vmem:[%s21368_s5] sm:$0xff] }
 0x144   :  { %2801 = vmatprep.subr.bf16.mxu0 %v14638_v46  ;;  %v16999_v46 = vsub.s32 1, %v16976_v39  ;;  %v488_v41 = vrot.slane %v16996_v45, %v17140_v32 }
 0x147   :  { %2802 = vmatpush1.bf16.msra.mxu0 %v14636_v47  ;;  %v14687_v47 = vld [vmem:[%s21366_s26 + $0xbc0] ss:$48 sps:$4 sm:$0xff]  }
 0x148   :  { %2803 = vmatprep.subr.bf16.mxu0 %v14641_v49  ;;  %v14711_v49 = vld [vmem:[%s21366_s26 + $0x2c8] ss:$48 sps:$4 sm:$0xff]  }
 0x149   :  { %2870 = vmatpush1.bf16.msra.mxu1 %v14711_v49 }
 0x14b   :  { %2804 = vmatpush1.bf16.msra.mxu0 %v14639_v50  ;;  %v14716_v50 = vld [vmem:[%s21366_s26 + $0x32c] ss:$48 sps:$4 sm:$0xff]  }
 0x14c   :  { %2814 = vmatprep.subr.bf16.mxu0 %v14644_v51  ;;  %v472_v51 = vrot.slane %v16996_v45, %v16999_v46  ;;  %2871 = vmatprep.subr.bf16.mxu1 %v14716_v50 }
 0x14e   :  { %2806 = vmatmul.mubr.bf16.vlgmr.msra.gmra.mrb[8].mxu0 %v16148_v5 }
 0x14f   :  { %2815 = vmatpush1.bf16.msra.mxu0 %v14642_v52  ;;  %2846 = vmatprep.mubr.bf16.mxu0 %v16233_v33  ;;  %v14714_v52 = vld [vmem:[%s21366_s26 + $0x328] ss:$48 sps:$4 sm:$0xff]  }
 0x150   :  { %2816 = vmatprep.subr.bf16.mxu0 %v14647_v53  ;;  %v14719_v53 = vld [vmem:[%s21366_s26 + $0x38c] ss:$48 sps:$4 sm:$0xff]   ;;  %2872 = vmatpush1.bf16.msra.mxu1 %v14714_v52 }
 0x151   :  { %2873 = vmatprep.subr.bf16.mxu1 %v14719_v53 }
 0x153   :  { %2817 = vmatpush1.bf16.msra.mxu0 %v14645_v54 }
 0x154   :  { %2818 = vmatprep.subr.bf16.mxu0 %v14650_v55  ;;  %v14717_v55 = vld [vmem:[%s21366_s26 + $0x388] ss:$48 sps:$4 sm:$0xff]  }
 0x155   :  { %2874 = vmatpush1.bf16.msra.mxu1 %v14717_v55 }
 0x157   :  { %2819 = vmatpush1.bf16.msra.mxu0 %v14648_v56  ;;  %v14722_v56 = vld [vmem:[%s21366_s26 + $0x3ec] ss:$48 sps:$4 sm:$0xff]  }
 0x158   :  { %2820 = vmatprep.subr.bf16.mxu0 %v14653_v57  ;;  %v14720_v57 = vld [vmem:[%s21366_s26 + $0x3e8] ss:$48 sps:$4 sm:$0xff]   ;;  %2875 = vmatprep.subr.bf16.mxu1 %v14722_v56 }
 0x159   :  { %2876 = vmatpush1.bf16.msra.mxu1 %v14720_v57 }
 0x15b   :  { %2821 = vmatpush1.bf16.msra.mxu0 %v14651_v58  ;;  %v14725_v58 = vld [vmem:[%s21366_s26 + $0x44c] ss:$48 sps:$4 sm:$0xff]  }
 0x15c   :  { %2822 = vmatprep.subr.bf16.mxu0 %v14656_v59  ;;  %v14723_v59 = vld [vmem:[%s21366_s26 + $0x448] ss:$48 sps:$4 sm:$0xff]   ;;  %2877 = vmatprep.subr.bf16.mxu1 %v14725_v58 }
 0x15d   :  { %2878 = vmatpush1.bf16.msra.mxu1 %v14723_v59 }
 0x15f   :  { %2823 = vmatpush1.bf16.msra.mxu0 %v14654_v60  ;;  %v14728_v60 = vld [vmem:[%s21366_s26 + $0x4ac] ss:$48 sps:$4 sm:$0xff]  }
 0x160   :  { %2824 = vmatprep.subr.bf16.mxu0 %v14659_v61  ;;  %v14726_v61 = vld [vmem:[%s21366_s26 + $0x4a8] ss:$48 sps:$4 sm:$0xff]   ;;  %2879 = vmatprep.subr.bf16.mxu1 %v14728_v60 }
 0x161   :  { %v16883_v0 = vpop.f32.mrb[0].mxu0  ;;  %v16885_v1 = vpop.f32.mrb[0].mxu1  ;;  %2880 = vmatpush1.bf16.msra.mxu1 %v14726_v61 }
 0x162   :  { %v16890_v3 = vpop.f32.mrb[1].mxu0  ;;  %v16892_v4 = vpop.f32.mrb[1].mxu1 }
 0x163   :  { %v2524_v7 = vpop.f32.mrb[2].mxu0  ;;  %v2606_v8 = vpop.f32.mrb[2].mxu1  ;;  %2825 = vmatpush1.bf16.msra.mxu0 %v14657_v62  ;;  %v14107_v54 = vadd.f32 %v16890_v3, %v472_v51  ;;  %v14731_v62 = vld [vmem:[%s21366_s26 + $0x50c] ss:$48 sps:$4 sm:$0xff]   ;;  %v14732_v3 = vld [vmem:[%s21366_s26 + $0x568] ss:$48 sps:$4 sm:$0xff]  }
 0x164   :  { %v2525_v9 = vpop.f32.mrb[3].mxu0  ;;  %v2607_v10 = vpop.f32.mrb[3].mxu1  ;;  %2826 = vmatprep.subr.bf16.mxu0 %v14662_v63  ;;  %v14729_v63 = vld [vmem:[%s21366_s26 + $0x508] ss:$48 sps:$4 sm:$0xff]   ;;  %2881 = vmatprep.subr.bf16.mxu1 %v14731_v62  ;;  %v14740_v8 = vld [vmem:[%s21366_s26 + $0x62c] ss:$48 sps:$4 sm:$0xff]  }
 0x165   :  { %2882 = vmatpush1.bf16.msra.mxu1 %v14729_v63  ;;  %v14735_v7 = vld [vmem:[%s21366_s26 + $0x5c8] ss:$48 sps:$4 sm:$0xff]   ;;  %v14743_v10 = vld [vmem:[%s21366_s26 + $0x68c] ss:$48 sps:$4 sm:$0xff]  }
 0x166   :  { %v14738_v9 = vld [vmem:[%s21366_s26 + $0x628] ss:$48 sps:$4 sm:$0xff]  }
 0x167   :  { %2827 = vmatpush1.bf16.msra.mxu0 %v14660_v2  ;;  %v14734_v2 = vld [vmem:[%s21366_s26 + $0x56c] ss:$48 sps:$4 sm:$0xff]  }
 0x168   :  { %2828 = vmatprep.subr.bf16.mxu0 %v14665_v6  ;;  %v14737_v6 = vld [vmem:[%s21366_s26 + $0x5cc] ss:$48 sps:$4 sm:$0xff]   ;;  %2883 = vmatprep.subr.bf16.mxu1 %v14734_v2 }
 0x169   :  { %2884 = vmatpush1.bf16.msra.mxu1 %v14732_v3 }
 0x16a   :  { %2885 = vmatprep.subr.bf16.mxu1 %v14737_v6 }
 0x16b   :  { %2829 = vmatpush1.bf16.msra.mxu0 %v14663_v12  ;;  %v14741_v12 = vld [vmem:[%s21366_s26 + $0x688] ss:$48 sps:$4 sm:$0xff]  }
 0x16c   :  { %2830 = vmatprep.subr.bf16.mxu0 %v14668_v13  ;;  %v14746_v13 = vld [vmem:[%s21366_s26 + $0x6ec] ss:$48 sps:$4 sm:$0xff]  }
 0x16d   :  { %2886 = vmatpush1.bf16.msra.mxu1 %v14735_v7 }
 0x16e   :  { %2896 = vmatprep.subr.bf16.mxu1 %v14740_v8 }
 0x16f   :  { %2831 = vmatpush1.bf16.msra.mxu0 %v14666_v14  ;;  %v14744_v14 = vld [vmem:[%s21366_s26 + $0x6e8] ss:$48 sps:$4 sm:$0xff]  }
 0x170   :  { %2832 = vmatprep.subr.bf16.mxu0 %v14671_v15  ;;  %2888 = vmatmul.mubr.bf16.vlgmr.msra.gmra.mrb[8].mxu1 %v16148_v5  ;;  %v14749_v15 = vld [vmem:[%s21366_s26 + $0x74c] ss:$48 sps:$4 sm:$0xff]   ;;  %v14747_v5 = vld [vmem:[%s21366_s26 + $0x748] ss:$48 sps:$4 sm:$0xff]  }
 0x171   :  { %2897 = vmatpush1.bf16.msra.mxu1 %v14738_v9  ;;  %2928 = vmatprep.mubr.bf16.mxu1 %v16233_v33  ;;  %v14750_v33 = vld [vmem:[%s21366_s26 + $0x7a8] ss:$48 sps:$4 sm:$0xff]  }
 0x172   :  { %2898 = vmatprep.subr.bf16.mxu1 %v14743_v10 }
 0x173   :  { %2833 = vmatpush1.bf16.msra.mxu0 %v14669_v19  ;;  %v14758_v19 = vld [vmem:[%s21366_s26 + $0x86c] ss:$48 sps:$4 sm:$0xff]  }
 0x174   :  { %2834 = vmatprep.subr.bf16.mxu0 %v14674_v20  ;;  %v14756_v20 = vld [vmem:[%s21366_s26 + $0x868] ss:$48 sps:$4 sm:$0xff]  }
 0x175   :  { %2899 = vmatpush1.bf16.msra.mxu1 %v14741_v12 }
 0x176   :  { %2900 = vmatprep.subr.bf16.mxu1 %v14746_v13 }
 0x177   :  { %2835 = vmatpush1.bf16.msra.mxu0 %v14672_v23  ;;  %v14764_v23 = vld [vmem:[%s21366_s26 + $0x92c] ss:$48 sps:$4 sm:$0xff]  }
 0x178   :  { %2836 = vmatprep.subr.bf16.mxu0 %v14677_v24  ;;  %v14762_v24 = vld [vmem:[%s21366_s26 + $0x928] ss:$48 sps:$4 sm:$0xff]  }
 0x179   :  { %2901 = vmatpush1.bf16.msra.mxu1 %v14744_v14 }
 0x17a   :  { %2902 = vmatprep.subr.bf16.mxu1 %v14749_v15 }
 0x17b   :  { %2837 = vmatpush1.bf16.msra.mxu0 %v14675_v48  ;;  %v14770_v48 = vld [vmem:[%s21366_s26 + $0x9ec] ss:$48 sps:$4 sm:$0xff]  }
 0x17c   :  { %2838 = vmatprep.subr.bf16.mxu0 %v14680_v27  ;;  %v14768_v27 = vld [vmem:[%s21366_s26 + $0x9e8] ss:$48 sps:$4 sm:$0xff]  }
 0x17d   :  { %2903 = vmatpush1.bf16.msra.mxu1 %v14747_v5 }
 0x17e   :  { %2904 = vmatprep.subr.bf16.mxu1 %v14752_v16 }
 0x17f   :  { %2839 = vmatpush1.bf16.msra.mxu0 %v14678_v30  ;;  %v14776_v30 = vld [vmem:[%s21366_s26 + $0xaac] ss:$48 sps:$4 sm:$0xff]  }
 0x180   :  { %2840 = vmatprep.subr.bf16.mxu0 %v14683_v31  ;;  %v14774_v31 = vld [vmem:[%s21366_s26 + $0xaa8] ss:$48 sps:$4 sm:$0xff]  }
 0x181   :  { %2905 = vmatpush1.bf16.msra.mxu1 %v14750_v33 }
 0x182   :  { %2906 = vmatprep.subr.bf16.mxu1 %v14755_v17 }
 0x183   :  { %2841 = vmatpush1.bf16.msra.mxu0 %v14681_v36  ;;  %v17146_v36 = vsub.s32 4, %v16976_v39 }
 0x184   :  { %2842 = vmatprep.subr.bf16.mxu0 %v14686_v37  ;;  %v17149_v37 = vsub.s32 7, %v16976_v39 }
 0x185   :  { %2907 = vmatpush1.bf16.msra.mxu1 %v14753_v18  ;;  %v484_v44 = vrot.slane %v16996_v45, %v17146_v36 }
 0x186   :  { %2908 = vmatprep.subr.bf16.mxu1 %v14758_v19  ;;  %v496_v51 = vrot.slane %v16996_v45, %v17149_v37 }
 0x187   :  { %2843 = vmatpush1.bf16.msra.mxu0 %v14684_v40  ;;  %v17155_v40 = vsub.s32 0, %v16976_v39 }
 0x188   :  { %2844 = vmatprep.subr.bf16.mxu0 %v14689_v42  ;;  %v14782_v42 = vld [vmem:[%s21366_s26 + $0xb6c] ss:$48 sps:$4 sm:$0xff]  }
 0x189   :  { %2909 = vmatpush1.bf16.msra.mxu1 %v14756_v20 }
 0x18a   :  { %2910 = vmatprep.subr.bf16.mxu1 %v14761_v21 }
 0x18b   :  { %2845 = vmatpush1.bf16.msra.mxu0 %v14687_v47  ;;  %v17168_v47 = vsub.s32 6, %v16976_v39 }
 0x18d   :  { %2911 = vmatpush1.bf16.msra.mxu1 %v14759_v22 }
 0x18e   :  { %2847 = vmatmul.mubr.bf16.vlgmr.msra.gmra.mrb[8].mxu0 %v16354_v11  ;;  %2912 = vmatprep.subr.bf16.mxu1 %v14764_v23 }
 0x18f   :  { %3005 = vmatprep.mubr.f32.mxu0 %v14107_v54 }
 0x191   :  { %2913 = vmatpush1.bf16.msra.mxu1 %v14762_v24 }
 0x192   :  { %2914 = vmatprep.subr.bf16.mxu1 %v14767_v25 }
 0x195   :  { %2915 = vmatpush1.bf16.msra.mxu1 %v14765_v26 }
 0x196   :  { %2916 = vmatprep.subr.bf16.mxu1 %v14770_v48 }
 0x199   :  { %2917 = vmatpush1.bf16.msra.mxu1 %v14768_v27 }
 0x19a   :  { %2918 = vmatprep.subr.bf16.mxu1 %v14773_v28 }
 0x19d   :  { %2919 = vmatpush1.bf16.msra.mxu1 %v14771_v29 }
 0x19e   :  { %2920 = vmatprep.subr.bf16.mxu1 %v14776_v30 }
 0x1a1   :  { %2921 = vmatpush1.bf16.msra.mxu1 %v14774_v31 }
 0x1a2   :  { %2922 = vmatprep.subr.bf16.mxu1 %v14779_v35 }
 0x1e1   :  { %v2684_v49 = vpop.f32.mrb[4].mxu0  ;;  %v2766_v50 = vpop.f32.mrb[4].mxu1 }
 0x1e2   :  { %26 = vsyncpa [#allocation3], 0  ;;  %v2686_v52 = vpop.f32.mrb[5].mxu0  ;;  %v2768_v53 = vpop.f32.mrb[5].mxu1  ;;  %v468_v54 = vrot.slane %v16996_v45, %v17155_v40  ;;  %v17175_v55 = vsub.s32 2, %v16976_v39  ;;  %v480_v59 = vrot.slane %v16996_v45, %v17163_v43  ;;  %v14110_v60 = vadd.f32 %v2684_v49, %v484_v44  ;;  %2923 = vmatpush1.bf16.msra.mxu1 %v14777_v38  ;;  %s21369_s3 = sld [smem:[#allocation8_spill]] }
 0x1e3   :  { %v14111_v56 = vadd.f32 %v2686_v52, %v488_v41  ;;  %v2688_v57 = vpop.f32.mrb[6].mxu0  ;;  %v2770_v58 = vpop.f32.mrb[6].mxu1  ;;  %v492_v61 = vrot.slane %v16996_v45, %v17168_v47  ;;  %v14780_v2 = vld [vmem:[%s21366_s26 + $0xb68] ss:$48 sps:$4 sm:$0xff]   ;;  %v14113_v3 = vadd.f32 %v2768_v53, %v496_v51  ;;  %2924 = vmatprep.subr.bf16.mxu1 %v14782_v42  ;;  %v14785_v39 = vld [vmem:[%s21366_s26 + $0xbcc] ss:$48 sps:$4 sm:$0xff]  }
 0x1e4   :  { %v2689_v62 = vpop.f32.mrb[7].mxu0  ;;  %v2771_v63 = vpop.f32.mrb[7].mxu1  ;;  %v14106_v6 = vadd.f32 %v16883_v0, %v468_v54  ;;  %v476_v7 = vrot.slane %v16996_v45, %v17175_v55  ;;  %v14109_v8 = vadd.f32 %v16892_v4, %v480_v59  ;;  %v14783_v10 = vld [vmem:[%s21366_s26 + $0xbc8] ss:$48 sps:$4 sm:$0xff]   ;;  %v15819_v17 = vmov -1e+30  }
 0x1e5   :  { %2941 = vmatprep.subr.mxu0 %v14111_v56  ;;  %v14112_v9 = vadd.f32 %v2766_v50, %v492_v61  ;;  %v17199_v0 = vld [vmem:[%s21368_s5 + $0x8] sm:$0xf]  ;;  %vm3013_vm1 = vcmask 64512   ;;  %v15820_v54 = vmov 0.0   ;;  %s21370_s25 = sld [smem:[#allocation9_spill]]  ;;  %s21371_s24 = sld [smem:[#allocation10_spill]] }
 0x1e6   :  { %2942 = vmatpush1.xpose.msra.mxu0 %v14110_v60  ;;  %2925 = vmatpush1.bf16.msra.mxu1 %v14780_v2  ;;  %v14108_v12 = vadd.f32 %v16885_v1, %v476_v7  ;;  %v500_v4 = vrot.slane %v17199_v0, %v17155_v40  ;;  %v504_v45 = vrot.slane %v17199_v0, %v16999_v46  ;;  %s15823_s29 = smov 124   ;;  %vm12298_vm2 = vcmask 8192  }
 0x1e7   :  { %3099 = vmatprep.subr.mxu0 %v14113_v3  ;;  %2926 = vmatprep.subr.bf16.mxu1 %v14785_v39  ;;  %vm12412_vm3 = vcmask 9217  }
 0x1e8   :  { %v14786_v56 = vld [vmem:[%s21369_s3] ss:$16 sps:$4 sm:$0xff]   ;;  %v14788_v57 = vld [vmem:[%s21369_s3 + $0x4] ss:$16 sps:$4 sm:$0xff]  }
 0x1e9   :  { %3006 = vmatmul.mubr.f32.vlgmr.msra.gmra.mrb[12].mxu0 %v14106_v6  ;;  %v14791_v58 = vld [vmem:[%s21369_s3 + $0x24] ss:$16 sps:$4 sm:$0xff]   ;;  %v14789_v59 = vld [vmem:[%s21369_s3 + $0x20] ss:$16 sps:$4 sm:$0xff]  }
 0x1ea   :  { %3100 = vmatpush1.xpose.msra.mxu0 %v14112_v9  ;;  %3163 = vmatprep.mubr.f32.mxu0 %v14109_v8  ;;  %v14797_v60 = vld [vmem:[%s21369_s3 + $0x44] ss:$16 sps:$4 sm:$0xff]   ;;  %v14795_v61 = vld [vmem:[%s21369_s3 + $0x40] ss:$16 sps:$4 sm:$0xff]  }
 0x1eb   :  { %2927 = vmatpush1.bf16.msra.mxu1 %v14783_v10  ;;  %4050 = vmatprep.subr.bf16.mxu0 %v14788_v57  ;;  %v14803_v62 = vld [vmem:[%s21369_s3 + $0x64] ss:$16 sps:$4 sm:$0xff]   ;;  %v14801_v63 = vld [vmem:[%s21369_s3 + $0x60] ss:$16 sps:$4 sm:$0xff]  }
 0x1ec   :  { %v14809_v2 = vld [vmem:[%s21369_s3 + $0x84] ss:$16 sps:$4 sm:$0xff]   ;;  %v14807_v3 = vld [vmem:[%s21369_s3 + $0x80] ss:$16 sps:$4 sm:$0xff]  }
 0x1ed   :  { %3164 = vmatmul.mubr.f32.vlgmr.msra.gmra.mrb[14].mxu0 %v14108_v12  ;;  %v14815_v39 = vld [vmem:[%s21369_s3 + $0xa4] ss:$16 sps:$4 sm:$0xff]   ;;  %v14813_v6 = vld [vmem:[%s21369_s3 + $0xa0] ss:$16 sps:$4 sm:$0xff]  }
 0x1ee   :  { %2929 = vmatmul.mubr.bf16.vlgmr.msra.gmra.mrb[8].mxu1 %v16354_v11  ;;  %v2938_v11 = vand.u32 127, %v465_v34  ;;  %v512_v34 = vrot.slane %v17199_v0, %v17163_v43  ;;  %4051 = vmatpush1.bf16.msra.mxu0 %v14786_v56  ;;  %v14821_v7 = vld [vmem:[%s21369_s3 + $0xc4] ss:$16 sps:$4 sm:$0xff]   ;;  %v14819_v8 = vld [vmem:[%s21369_s3 + $0xc0] ss:$16 sps:$4 sm:$0xff]  }
 0x1ef   :  { %3092 = vmatprep.mubr.f32.mxu1 %v15820_v54  ;;  %4052 = vmatprep.subr.bf16.mxu0 %v14791_v58  ;;  %v14827_v9 = vld [vmem:[%s21369_s3 + $0xe4] ss:$16 sps:$4 sm:$0xff]   ;;  %v14825_v10 = vld [vmem:[%s21369_s3 + $0xe0] ss:$16 sps:$4 sm:$0xff]  }
 0x1f0   :  { %vm2939_vm0 = vcmp.lt.s32.totalorder %v2938_v11, 2  ;;  %v14833_v12 = vld [vmem:[%s21369_s3 + $0x104] ss:$16 sps:$4 sm:$0xff]   ;;  %v14855_v11 = vld [vmem:[%s21369_s3 + $0x180] ss:$16 sps:$4 sm:$0xff]  }
 0x1f1   :  { %v2940_v18 = vsel %vm2939_vm0, 0.0, %v15819_v17  ;;  %v14861_v17 = vld [vmem:[%s21369_s3 + $0x1a0] ss:$16 sps:$4 sm:$0xff]   ;;  %v14848_v56 = vld [vmem:[%s21369_s3 + $0x324] ss:$16 sps:$4 sm:$0xff]  }
 0x1f2   :  { %4053 = vmatpush1.bf16.msra.mxu0 %v14789_v59  ;;  %v14846_v57 = vld [vmem:[%s21369_s3 + $0x320] ss:$16 sps:$4 sm:$0xff]   ;;  %v14854_v58 = vld [vmem:[%s21369_s3 + $0x344] ss:$16 sps:$4 sm:$0xff]  }
 0x1f3   :  { %4054 = vmatprep.subr.bf16.mxu0 %v14797_v60  ;;  %v14852_v59 = vld [vmem:[%s21369_s3 + $0x340] ss:$16 sps:$4 sm:$0xff]   ;;  %v14860_v60 = vld [vmem:[%s21369_s3 + $0x364] ss:$16 sps:$4 sm:$0xff]  }
 0x1f6   :  { %4055 = vmatpush1.bf16.msra.mxu0 %v14795_v61  ;;  %v14858_v61 = vld [vmem:[%s21369_s3 + $0x360] ss:$16 sps:$4 sm:$0xff]  }
 0x1f7   :  { %4056 = vmatprep.subr.bf16.mxu0 %v14803_v62  ;;  %v14866_v62 = vld [vmem:[%s21369_s3 + $0x384] ss:$16 sps:$4 sm:$0xff]  }
 0x1fa   :  { %4057 = vmatpush1.bf16.msra.mxu0 %v14801_v63  ;;  %v14864_v63 = vld [vmem:[%s21369_s3 + $0x380] ss:$16 sps:$4 sm:$0xff]  }
 0x1fb   :  { %4058 = vmatprep.subr.bf16.mxu0 %v14809_v2  ;;  %v14872_v2 = vld [vmem:[%s21369_s3 + $0x3a4] ss:$16 sps:$4 sm:$0xff]  }
 0x1fe   :  { %4059 = vmatpush1.bf16.msra.mxu0 %v14807_v3  ;;  %v14870_v3 = vld [vmem:[%s21369_s3 + $0x3a0] ss:$16 sps:$4 sm:$0xff]  }
 0x1ff   :  { %4060 = vmatprep.subr.bf16.mxu0 %v14815_v39  ;;  %v14875_v39 = vld [vmem:[%s21369_s3 + $0x1e4] ss:$16 sps:$4 sm:$0xff]  }
 0x202   :  { %4061 = vmatpush1.bf16.msra.mxu0 %v14813_v6  ;;  %v14878_v6 = vld [vmem:[%s21369_s3 + $0x3c4] ss:$16 sps:$4 sm:$0xff]  }
 0x203   :  { %4062 = vmatprep.subr.bf16.mxu0 %v14821_v7  ;;  %v14873_v7 = vld [vmem:[%s21369_s3 + $0x1e0] ss:$16 sps:$4 sm:$0xff]  }
 0x206   :  { %4063 = vmatpush1.bf16.msra.mxu0 %v14819_v8  ;;  %v14876_v8 = vld [vmem:[%s21369_s3 + $0x3c0] ss:$16 sps:$4 sm:$0xff]  }
 0x207   :  { %4064 = vmatprep.subr.bf16.mxu0 %v14827_v9  ;;  %v14881_v9 = vld [vmem:[%s21369_s3 + $0x3e4] ss:$16 sps:$4 sm:$0xff]  }
 0x20a   :  { %4065 = vmatpush1.bf16.msra.mxu0 %v14825_v10  ;;  %v14884_v10 = vld [vmem:[%s21369_s3 + $0xc] ss:$16 sps:$4 sm:$0xff]  }
 0x20b   :  { %4066 = vmatprep.subr.bf16.mxu0 %v14833_v12  ;;  %v14879_v12 = vld [vmem:[%s21369_s3 + $0x3e0] ss:$16 sps:$4 sm:$0xff]  }
 0x261   :  { %v2848_v13 = vpop.f32.mrb[8].mxu0 }
 0x262   :  { %v14114_v14 = vadd.f32 %v2848_v13, %v500_v4  ;;  %v2850_v15 = vpop.f32.mrb[9].mxu0  ;;  %v14831_v4 = vld [vmem:[%s21369_s3 + $0x100] ss:$16 sps:$4 sm:$0xff]  }
 0x263   :  { %v14115_v5 = vadd.f32 %v2850_v15, %v504_v45  ;;  %v2852_v1 = vpop.f32.mrb[10].mxu0  ;;  %v14839_v45 = vld [vmem:[%s21369_s3 + $0x124] ss:$16 sps:$4 sm:$0xff]   ;;  %4067 = vmatpush1.bf16.msra.mxu0 %v14831_v4  ;;  %v14837_v13 = vld [vmem:[%s21369_s3 + $0x120] ss:$16 sps:$4 sm:$0xff]  }
 0x264   :  { %v2853_v16 = vpop.f32.mrb[11].mxu0  ;;  %4068 = vmatprep.subr.bf16.mxu0 %v14839_v45  ;;  %v14843_v15 = vld [vmem:[%s21369_s3 + $0x140] ss:$16 sps:$4 sm:$0xff]   ;;  %v14890_v4 = vld [vmem:[%s21369_s3 + $0x20c] ss:$16 sps:$4 sm:$0xff]  }
 0x265   :  { %3028 = vmatprep.subr.mxu1 %v14115_v5  ;;  %v14851_v5 = vld [vmem:[%s21369_s3 + $0x164] ss:$16 sps:$4 sm:$0xff]   ;;  %v14849_v1 = vld [vmem:[%s21369_s3 + $0x160] ss:$16 sps:$4 sm:$0xff]  }
 0x266   :  { %3029 = vmatpush1.msra.mxu1 %v14114_v14  ;;  %v14845_v14 = vld [vmem:[%s21369_s3 + $0x144] ss:$16 sps:$4 sm:$0xff]  }
 0x267   :  { %4069 = vmatpush1.bf16.msra.mxu0 %v14837_v13  ;;  %v14857_v16 = vld [vmem:[%s21369_s3 + $0x184] ss:$16 sps:$4 sm:$0xff]  }
 0x268   :  { %4070 = vmatprep.subr.bf16.mxu0 %v14845_v14 }
 0x26b   :  { %4071 = vmatpush1.bf16.msra.mxu0 %v14843_v15  ;;  %v14882_v15 = vld [vmem:[%s21369_s3 + $0x8] ss:$16 sps:$4 sm:$0xff]  }
 0x26c   :  { %4072 = vmatprep.subr.bf16.mxu0 %v14851_v5 }
 0x26f   :  { %4073 = vmatpush1.bf16.msra.mxu0 %v14849_v1  ;;  %v14887_v1 = vld [vmem:[%s21369_s3 + $0x2c] ss:$16 sps:$4 sm:$0xff]  }
 0x270   :  { %4074 = vmatprep.subr.bf16.mxu0 %v14857_v16 }
 0x273   :  { %4075 = vmatpush1.bf16.msra.mxu0 %v14855_v11 }
 0x2bc   :  { %v3007_v33 = vpop.f32.mrb[12].mxu0 }
 0x2bd   :  { %v3011_v19 = vmul.f32 0.0625, %v3007_v33  ;;  %v3009_v20 = vpop.f32.mrb[13].mxu0  ;;  %v14863_v33 = vld [vmem:[%s21369_s3 + $0x1a4] ss:$16 sps:$4 sm:$0xff]  }
 0x2be   :  { %4076 = vmatprep.subr.bf16.mxu0 %v14863_v33 }
 0x2bf   :  { %v3012_v21 = vadd.f32 %v3011_v19, %v2940_v18  ;;  %4077 = vmatpush1.bf16.msra.mxu0 %v14861_v17  ;;  %v14867_v19 = vld [vmem:[%s21369_s3 + $0x1c0] ss:$16 sps:$4 sm:$0xff]   ;;  %v14885_v17 = vld [vmem:[%s21369_s3 + $0x28] ss:$16 sps:$4 sm:$0xff]  }
 0x2c0   :  { %v3165_v22 = vpop.f32.mrb[14].mxu0 }
 0x2c1   :  { %v3169_v23 = vmul.f32 0.0625, %v3165_v22  ;;  %v3167_v24 = vpop.f32.mrb[15].mxu0  ;;  %v3014_v25 = vsel %vm3013_vm1, %v3012_v21, -inf  ;;  %v17208_v27 = vpop.f32.mrb[8].mxu1  ;;  %v508_v22 = vrot.slane %v17199_v0, %v17175_v55 }
 0x2c2   :  { %3015 = vmax.xlane.f32.xlu0 %v3014_v25  ;;  %v2932_v28 = vpop.f32.mrb[9].mxu1  ;;  %v14794_v25 = vld [vmem:[%s21369_s3 + $0x204] ss:$16 sps:$4 sm:$0xff]  }
 0x2c3   :  { %v3170_v26 = vadd.f32 %v3169_v23, %v2940_v18  ;;  %v14117_v29 = vadd.f32 %v2932_v28, %v512_v34  ;;  %v2934_v30 = vpop.f32.mrb[10].mxu1  ;;  %v14869_v18 = vld [vmem:[%s21369_s3 + $0x1c4] ss:$16 sps:$4 sm:$0xff]   ;;  %v14792_v34 = vld [vmem:[%s21369_s3 + $0x200] ss:$16 sps:$4 sm:$0xff]  }
 0x2c4   :  { %v2935_v31 = vpop.f32.mrb[11].mxu1  ;;  %4078 = vmatprep.subr.bf16.mxu0 %v14869_v18  ;;  %v14800_v28 = vld [vmem:[%s21369_s3 + $0x224] ss:$16 sps:$4 sm:$0xff]   ;;  %v14804_v30 = vld [vmem:[%s21369_s3 + $0x240] ss:$16 sps:$4 sm:$0xff]  }
 0x2c5   :  { %v3171_v48 = vsel %vm3013_vm1, %v3170_v26, -inf  ;;  %3185 = vmatprep.subr.mxu1 %v14117_v29  ;;  %4079 = vmatpush1.bf16.msra.mxu0 %v14867_v19  ;;  %v14806_v29 = vld [vmem:[%s21369_s3 + $0x244] ss:$16 sps:$4 sm:$0xff]   ;;  %v14888_v18 = vld [vmem:[%s21369_s3 + $0x208] ss:$16 sps:$4 sm:$0xff]  }
 0x2c6   :  { %3172 = vmax.xlane.f32.xlu0 %v3171_v48  ;;  %v14812_v31 = vld [vmem:[%s21369_s3 + $0x264] ss:$16 sps:$4 sm:$0xff]   ;;  %4080 = vmatprep.subr.bf16.mxu0 %v14875_v39  ;;  %v14947_v39 = vld [vmem:[%s21369_s3 + $0x16c] ss:$16 sps:$4 sm:$0xff]  }
 0x2c9   :  { %4081 = vmatpush1.bf16.msra.mxu0 %v14873_v7  ;;  %v14945_v7 = vld [vmem:[%s21369_s3 + $0x168] ss:$16 sps:$4 sm:$0xff]  }
 0x2ca   :  { %4132 = vmatprep.subr.bf16.mxu0 %v14884_v10  ;;  %v14956_v10 = vld [vmem:[%s21369_s3 + $0x36c] ss:$16 sps:$4 sm:$0xff]  }
 0x34f   :  { %v3016_v35 = vpop.xlane.xlu0 %3015 }
 0x350   :  { %v3017_v38 = vsub.f32 %v3012_v21, %v3016_v35  ;;  %v14810_v35 = vld [vmem:[%s21369_s3 + $0x260] ss:$16 sps:$4 sm:$0xff]  }
 0x352   :  { %v3018_v41 = vmul.f32 1.442695, %v3017_v38  ;;  %v14818_v38 = vld [vmem:[%s21369_s3 + $0x284] ss:$16 sps:$4 sm:$0xff]  }
 0x353   :  { %v3173_v42 = vpop.xlane.xlu0 %3172 }
 0x354   :  { %15746 = vpow2.f32 %v3018_v41  ;;  %v3174_v44 = vsub.f32 %v3170_v26, %v3173_v42  ;;  %v14116_v26 = vadd.f32 %v17208_v27, %v508_v22  ;;  %v14798_v27 = vld [vmem:[%s21369_s3 + $0x220] ss:$16 sps:$4 sm:$0xff]   ;;  %v14824_v42 = vld [vmem:[%s21369_s3 + $0x2a4] ss:$16 sps:$4 sm:$0xff]   ;;  %v14891_v22 = vld [vmem:[%s21369_s3 + $0x48] ss:$16 sps:$4 sm:$0xff]  }
 0x355   :  { %v14816_v41 = vld [vmem:[%s21369_s3 + $0x280] ss:$16 sps:$4 sm:$0xff]  }
 0x356   :  { %v3175_v49 = vmul.f32 1.442695, %v3174_v44  ;;  %v14822_v44 = vld [vmem:[%s21369_s3 + $0x2a0] ss:$16 sps:$4 sm:$0xff]  }
 0x358   :  { %15748 = vpow2.f32 %v3175_v49  ;;  %v14830_v49 = vld [vmem:[%s21369_s3 + $0x2c4] ss:$16 sps:$4 sm:$0xff]  }
 0x35e   :  { %v17212_v50 = vpop.eup %15746 }
 0x35f   :  { %v3020_v51 = vsel %vm3013_vm1, %v17212_v50, 0.0 }
 0x360   :  { %3021 = vadd.xlane.f32.xlu1 %v3020_v51  ;;  %v14836_v51 = vld [vmem:[%s21369_s3 + $0x2e4] ss:$16 sps:$4 sm:$0xff]  }
 0x362   :  { %v17216_v52 = vpop.eup %15748 }
 0x363   :  { %v3177_v53 = vsel %vm3013_vm1, %v17216_v52, 0.0 }
 0x364   :  { %3178 = vadd.xlane.f32.xlu1 %v3177_v53  ;;  %v14842_v53 = vld [vmem:[%s21369_s3 + $0x304] ss:$16 sps:$4 sm:$0xff]  }
 0x3ed   :  { %v3022_v20 = vpop.xlane.xlu1 %3021 }
 0x3ee   :  { %15750 = vrcp.f32 %v3022_v20  ;;  %v14893_v20 = vld [vmem:[%s21369_s3 + $0x4c] ss:$16 sps:$4 sm:$0xff]  }
 0x3f1   :  { %v3179_v21 = vpop.xlane.xlu1 %3178 }
 0x3f2   :  { %15752 = vrcp.f32 %v3179_v21  ;;  %v14896_v21 = vld [vmem:[%s21369_s3 + $0x22c] ss:$16 sps:$4 sm:$0xff]  }
 0x3f8   :  { %v15751_v23 = vpop.eup %15750 }
 0x3f9   :  { %v3024_v24 = vmul.f32 %v15751_v23, %v17212_v50  ;;  %v14828_v50 = vld [vmem:[%s21369_s3 + $0x2c0] ss:$16 sps:$4 sm:$0xff]   ;;  %v14894_v23 = vld [vmem:[%s21369_s3 + $0x228] ss:$16 sps:$4 sm:$0xff]  }
 0x3fb   :  { %12812 = vmatmul.mubr.msk.f32.vlgmr.msra.gmra.mrb[12].mxu1 %vm3013_vm1, %v3024_v24  ;;  %v14899_v24 = vld [vmem:[%s21369_s3 + $0x6c] ss:$16 sps:$4 sm:$0xff]  }
 0x3fc   :  { %v15753_v48 = vpop.eup %15752  ;;  %3186 = vmatpush1.msra.mxu1 %v14116_v26  ;;  %3249 = vmatprep.mubr.f32.mxu1 %v15820_v54  ;;  %v14840_v54 = vld [vmem:[%s21369_s3 + $0x300] ss:$16 sps:$4 sm:$0xff]   ;;  %v14897_v26 = vld [vmem:[%s21369_s3 + $0x68] ss:$16 sps:$4 sm:$0xff]  }
 0x3fd   :  { %v3181_v0 = vmul.f32 %v15753_v48, %v17216_v52  ;;  %4091 = vmatprep.subr.bf16.mxu1 %v14794_v25  ;;  %v14834_v52 = vld [vmem:[%s21369_s3 + $0x2e0] ss:$16 sps:$4 sm:$0xff]   ;;  %v14902_v25 = vld [vmem:[%s21369_s3 + $0x24c] ss:$16 sps:$4 sm:$0xff]   ;;  %v14900_v48 = vld [vmem:[%s21369_s3 + $0x248] ss:$16 sps:$4 sm:$0xff]  }
 0x3ff   :  { %12813 = vmatmul.mubr.msk.f32.vlgmr.msra.gmra.mrb[14].mxu1 %vm3013_vm1, %v3181_v0  ;;  %v14908_v0 = vld [vmem:[%s21369_s3 + $0x26c] ss:$16 sps:$4 sm:$0xff]  }
 0x400   :  { %4092 = vmatpush1.bf16.msra.mxu1 %v14792_v34  ;;  %v14905_v34 = vld [vmem:[%s21369_s3 + $0x8c] ss:$16 sps:$4 sm:$0xff]  }
 0x401   :  { %4093 = vmatprep.subr.bf16.mxu1 %v14800_v28  ;;  %v14903_v28 = vld [vmem:[%s21369_s3 + $0x88] ss:$16 sps:$4 sm:$0xff]  }
 0x404   :  { %4094 = vmatpush1.bf16.msra.mxu1 %v14798_v27  ;;  %v14906_v27 = vld [vmem:[%s21369_s3 + $0x268] ss:$16 sps:$4 sm:$0xff]  }
 0x405   :  { %4095 = vmatprep.subr.bf16.mxu1 %v14806_v29  ;;  %v14911_v29 = vld [vmem:[%s21369_s3 + $0xac] ss:$16 sps:$4 sm:$0xff]  }
 0x408   :  { %4096 = vmatpush1.bf16.msra.mxu1 %v14804_v30  ;;  %v14914_v30 = vld [vmem:[%s21369_s3 + $0x28c] ss:$16 sps:$4 sm:$0xff]  }
 0x409   :  { %4097 = vmatprep.subr.bf16.mxu1 %v14812_v31  ;;  %v14909_v31 = vld [vmem:[%s21369_s3 + $0xa8] ss:$16 sps:$4 sm:$0xff]  }
 0x40c   :  { %4098 = vmatpush1.bf16.msra.mxu1 %v14810_v35  ;;  %v14912_v35 = vld [vmem:[%s21369_s3 + $0x288] ss:$16 sps:$4 sm:$0xff]  }
 0x40d   :  { %4099 = vmatprep.subr.bf16.mxu1 %v14818_v38  ;;  %v14917_v38 = vld [vmem:[%s21369_s3 + $0xcc] ss:$16 sps:$4 sm:$0xff]  }
 0x410   :  { %4100 = vmatpush1.bf16.msra.mxu1 %v14816_v41  ;;  %v14920_v41 = vld [vmem:[%s21369_s3 + $0x2ac] ss:$16 sps:$4 sm:$0xff]  }
 0x411   :  { %4101 = vmatprep.subr.bf16.mxu1 %v14824_v42  ;;  %v14915_v42 = vld [vmem:[%s21369_s3 + $0xc8] ss:$16 sps:$4 sm:$0xff]  }
 0x414   :  { %4102 = vmatpush1.bf16.msra.mxu1 %v14822_v44  ;;  %v14918_v44 = vld [vmem:[%s21369_s3 + $0x2a8] ss:$16 sps:$4 sm:$0xff]  }
 0x415   :  { %4103 = vmatprep.subr.bf16.mxu1 %v14830_v49  ;;  %v14923_v49 = vld [vmem:[%s21369_s3 + $0xec] ss:$16 sps:$4 sm:$0xff]  }
 0x418   :  { %4104 = vmatpush1.bf16.msra.mxu1 %v14828_v50  ;;  %v14926_v50 = vld [vmem:[%s21369_s3 + $0x2cc] ss:$16 sps:$4 sm:$0xff]  }
 0x419   :  { %4105 = vmatprep.subr.bf16.mxu1 %v14836_v51  ;;  %v14921_v51 = vld [vmem:[%s21369_s3 + $0xe8] ss:$16 sps:$4 sm:$0xff]  }
 0x41c   :  { %4106 = vmatpush1.bf16.msra.mxu1 %v14834_v52  ;;  %v14924_v52 = vld [vmem:[%s21369_s3 + $0x2c8] ss:$16 sps:$4 sm:$0xff]  }
 0x41d   :  { %4107 = vmatprep.subr.bf16.mxu1 %v14842_v53  ;;  %v14929_v53 = vld [vmem:[%s21369_s3 + $0x10c] ss:$16 sps:$4 sm:$0xff]  }
 0x420   :  { %4108 = vmatpush1.bf16.msra.mxu1 %v14840_v54  ;;  %v14932_v54 = vld [vmem:[%s21369_s3 + $0x2ec] ss:$16 sps:$4 sm:$0xff]  }
 0x421   :  { %4109 = vmatprep.subr.bf16.mxu1 %v14848_v56  ;;  %v14927_v56 = vld [vmem:[%s21369_s3 + $0x108] ss:$16 sps:$4 sm:$0xff]  }
 0x424   :  { %4110 = vmatpush1.bf16.msra.mxu1 %v14846_v57  ;;  %v14930_v57 = vld [vmem:[%s21369_s3 + $0x2e8] ss:$16 sps:$4 sm:$0xff]  }
 0x425   :  { %4111 = vmatprep.subr.bf16.mxu1 %v14854_v58  ;;  %v14935_v58 = vld [vmem:[%s21369_s3 + $0x12c] ss:$16 sps:$4 sm:$0xff]  }
 0x428   :  { %4112 = vmatpush1.bf16.msra.mxu1 %v14852_v59  ;;  %v14938_v59 = vld [vmem:[%s21369_s3 + $0x30c] ss:$16 sps:$4 sm:$0xff]  }
 0x429   :  { %4113 = vmatprep.subr.bf16.mxu1 %v14860_v60  ;;  %v14933_v60 = vld [vmem:[%s21369_s3 + $0x128] ss:$16 sps:$4 sm:$0xff]  }
 0x42c   :  { %4114 = vmatpush1.bf16.msra.mxu1 %v14858_v61  ;;  %v14936_v61 = vld [vmem:[%s21369_s3 + $0x308] ss:$16 sps:$4 sm:$0xff]  }
 0x42d   :  { %4115 = vmatprep.subr.bf16.mxu1 %v14866_v62  ;;  %v14941_v62 = vld [vmem:[%s21369_s3 + $0x14c] ss:$16 sps:$4 sm:$0xff]  }
 0x430   :  { %4116 = vmatpush1.bf16.msra.mxu1 %v14864_v63  ;;  %v14944_v63 = vld [vmem:[%s21369_s3 + $0x32c] ss:$16 sps:$4 sm:$0xff]  }
 0x431   :  { %4117 = vmatprep.subr.bf16.mxu1 %v14872_v2  ;;  %v14939_v2 = vld [vmem:[%s21369_s3 + $0x148] ss:$16 sps:$4 sm:$0xff]  }
 0x434   :  { %4118 = vmatpush1.bf16.msra.mxu1 %v14870_v3  ;;  %v14942_v3 = vld [vmem:[%s21369_s3 + $0x328] ss:$16 sps:$4 sm:$0xff]  }
 0x435   :  { %4119 = vmatprep.subr.bf16.mxu1 %v14878_v6  ;;  %v14950_v6 = vld [vmem:[%s21369_s3 + $0x34c] ss:$16 sps:$4 sm:$0xff]  }
 0x438   :  { %4120 = vmatpush1.bf16.msra.mxu1 %v14876_v8  ;;  %v14948_v8 = vld [vmem:[%s21369_s3 + $0x348] ss:$16 sps:$4 sm:$0xff]  }
 0x439   :  { %4121 = vmatprep.subr.bf16.mxu1 %v14881_v9  ;;  %v14953_v9 = vld [vmem:[%s21369_s3 + $0x18c] ss:$16 sps:$4 sm:$0xff]  }
 0x43c   :  { %4122 = vmatpush1.bf16.msra.mxu1 %v14879_v12  ;;  %v14951_v12 = vld [vmem:[%s21369_s3 + $0x188] ss:$16 sps:$4 sm:$0xff]  }
 0x43d   :  { %4173 = vmatprep.subr.bf16.mxu1 %v14890_v4  ;;  %v14954_v4 = vld [vmem:[%s21369_s3 + $0x368] ss:$16 sps:$4 sm:$0xff]  }
 0x4ce   :  { %v3094_v45 = vpop.f32.mrb[12].mxu1 }
 0x4cf   :  { %v3096_v13 = vpop.f32.mrb[13].mxu1  ;;  %v17430_v5 = vpack.c.bf16 %v3094_v45, %v3094_v45  ;;  %v14959_v45 = vld [vmem:[%s21369_s3 + $0x1ac] ss:$16 sps:$4 sm:$0xff]  }
 0x4d0   :  { %v3257_v14 = vpack.c.bf16 %v3096_v13, %v3096_v13  ;;  %v14962_v13 = vld [vmem:[%s21369_s3 + $0x38c] ss:$16 sps:$4 sm:$0xff]  }
 0x4d2   :  { %v3251_v16 = vpop.f32.mrb[14].mxu1  ;;  %4082 = vmatprep.mubr.bf16.mxu0 %v3257_v14 }
 0x4d3   :  { %v3253_v11 = vpop.f32.mrb[15].mxu1  ;;  %4083 = vmatmul.mubr.bf16.vlgmr.msra.gmra.mrb[16].mxu0 %v17430_v5  ;;  %v17442_v19 = vpack.c.bf16 %v3251_v16, %v3251_v16  ;;  %v14968_v16 = vld [vmem:[%s21369_s3 + $0x3ac] ss:$16 sps:$4 sm:$0xff]  }
 0x4d4   :  { %v3259_v33 = vpack.c.bf16 %v3253_v11, %v3253_v11  ;;  %4133 = vmatpush1.bf16.msra.mxu0 %v14882_v15  ;;  %4164 = vmatprep.mubr.bf16.mxu0 %v3257_v14  ;;  %v14957_v14 = vld [vmem:[%s21369_s3 + $0x1a8] ss:$16 sps:$4 sm:$0xff]  }
 0x4d5   :  { %4134 = vmatprep.subr.bf16.mxu0 %v14887_v1  ;;  %v14960_v15 = vld [vmem:[%s21369_s3 + $0x388] ss:$16 sps:$4 sm:$0xff]   ;;  %v14965_v1 = vld [vmem:[%s21369_s3 + $0x1cc] ss:$16 sps:$4 sm:$0xff]  }
 0x4d6   :  { %4123 = vmatprep.mubr.bf16.mxu1 %v3259_v33  ;;  %v14963_v11 = vld [vmem:[%s21369_s3 + $0x1c8] ss:$16 sps:$4 sm:$0xff]  }
 0x4d7   :  { %4124 = vmatmul.mubr.bf16.vlgmr.msra.gmra.mrb[16].mxu1 %v17442_v19 }
 0x4d8   :  { %4135 = vmatpush1.bf16.msra.mxu0 %v14885_v17  ;;  %4174 = vmatpush1.bf16.msra.mxu1 %v14888_v18  ;;  %v14971_v17 = vld [vmem:[%s21369_s3 + $0x1ec] ss:$16 sps:$4 sm:$0xff]  }
 0x4d9   :  { %4205 = vmatprep.mubr.bf16.mxu1 %v3259_v33  ;;  %4136 = vmatprep.subr.bf16.mxu0 %v14893_v20  ;;  %v14966_v33 = vld [vmem:[%s21369_s3 + $0x3a8] ss:$16 sps:$4 sm:$0xff]   ;;  %v14974_v18 = vld [vmem:[%s21369_s3 + $0x3cc] ss:$16 sps:$4 sm:$0xff]  }
 0x4da   :  { %4175 = vmatprep.subr.bf16.mxu1 %v14896_v21  ;;  %v14969_v20 = vld [vmem:[%s21369_s3 + $0x1e8] ss:$16 sps:$4 sm:$0xff]  }
 0x4db   :  { %v14972_v21 = vld [vmem:[%s21369_s3 + $0x3c8] ss:$16 sps:$4 sm:$0xff]  }
 0x4dc   :  { %4137 = vmatpush1.bf16.msra.mxu0 %v14891_v22  ;;  %4176 = vmatpush1.bf16.msra.mxu1 %v14894_v23  ;;  %v14977_v22 = vld [vmem:[%s21369_s3 + $0x3ec] ss:$16 sps:$4 sm:$0xff]   ;;  %v14975_v23 = vld [vmem:[%s21369_s3 + $0x3e8] ss:$16 sps:$4 sm:$0xff]  }
 0x4dd   :  { %4138 = vmatprep.subr.bf16.mxu0 %v14899_v24  ;;  %4177 = vmatprep.subr.bf16.mxu1 %v14902_v25  ;;  %v3388_v24 = vld [vmem:[%s21370_s25] sm:$0xf] }
 0x4de   :  { %v3393_v25 = vrot.slane %v3388_v24, %v17155_v40 }
 0x4e0   :  { %4139 = vmatpush1.bf16.msra.mxu0 %v14897_v26  ;;  %4178 = vmatpush1.bf16.msra.mxu1 %v14900_v48  ;;  %v3397_v48 = vrot.slane %v3388_v24, %v16999_v46 }
 0x4e1   :  { %4140 = vmatprep.subr.bf16.mxu0 %v14905_v34  ;;  %4179 = vmatprep.subr.bf16.mxu1 %v14908_v0 }
 0x4e4   :  { %4141 = vmatpush1.bf16.msra.mxu0 %v14903_v28  ;;  %4180 = vmatpush1.bf16.msra.mxu1 %v14906_v27 }
 0x4e5   :  { %4142 = vmatprep.subr.bf16.mxu0 %v14911_v29  ;;  %4181 = vmatprep.subr.bf16.mxu1 %v14914_v30 }
 0x4e8   :  { %4143 = vmatpush1.bf16.msra.mxu0 %v14909_v31  ;;  %4182 = vmatpush1.bf16.msra.mxu1 %v14912_v35 }
 0x4e9   :  { %4144 = vmatprep.subr.bf16.mxu0 %v14917_v38  ;;  %4183 = vmatprep.subr.bf16.mxu1 %v14920_v41  ;;  %v3401_v41 = vrot.slane %v3388_v24, %v17175_v55 }
 0x4ec   :  { %4145 = vmatpush1.bf16.msra.mxu0 %v14915_v42  ;;  %4184 = vmatpush1.bf16.msra.mxu1 %v14918_v44  ;;  %v3405_v44 = vrot.slane %v3388_v24, %v17163_v43  ;;  %v4334_v24 = vld [vmem:[%s21341_s7 + $0x108] sm:$0xff] }
 0x4ed   :  { %4146 = vmatprep.subr.bf16.mxu0 %v14923_v49  ;;  %4185 = vmatprep.subr.bf16.mxu1 %v14926_v50 }
 0x4f0   :  { %4147 = vmatpush1.bf16.msra.mxu0 %v14921_v51  ;;  %4186 = vmatpush1.bf16.msra.mxu1 %v14924_v52  ;;  %v15790_v51 = vld [vmem:[%s21367_s22] sm:$0xff] }
 0x4f1   :  { %4148 = vmatprep.subr.bf16.mxu0 %v14929_v53  ;;  %4187 = vmatprep.subr.bf16.mxu1 %v14932_v54  ;;  %v15791_v53 = vld [vmem:[%s21367_s22 + $0x8] sm:$0xff] }
 0x4f4   :  { %4149 = vmatpush1.bf16.msra.mxu0 %v14927_v56  ;;  %4188 = vmatpush1.bf16.msra.mxu1 %v14930_v57 }
 0x4f5   :  { %4150 = vmatprep.subr.bf16.mxu0 %v14935_v58  ;;  %4189 = vmatprep.subr.bf16.mxu1 %v14938_v59 }
 0x4f8   :  { %4151 = vmatpush1.bf16.msra.mxu0 %v14933_v60  ;;  %4190 = vmatpush1.bf16.msra.mxu1 %v14936_v61 }
 0x4f9   :  { %4152 = vmatprep.subr.bf16.mxu0 %v14941_v62  ;;  %4191 = vmatprep.subr.bf16.mxu1 %v14944_v63 }
 0x4fc   :  { %4153 = vmatpush1.bf16.msra.mxu0 %v14939_v2  ;;  %4192 = vmatpush1.bf16.msra.mxu1 %v14942_v3  ;;  %v15792_v3 = vld [vmem:[%s21367_s22 + $0x10] sm:$0xff] }
 0x4fd   :  { %4154 = vmatprep.subr.bf16.mxu0 %v14947_v39  ;;  %4193 = vmatprep.subr.bf16.mxu1 %v14950_v6 }
 0x500   :  { %4155 = vmatpush1.bf16.msra.mxu0 %v14945_v7  ;;  %4194 = vmatpush1.bf16.msra.mxu1 %v14948_v8  ;;  %v15793_v7 = vld [vmem:[%s21367_s22 + $0x18] sm:$0xff] }
 0x501   :  { %4156 = vmatprep.subr.bf16.mxu0 %v14953_v9  ;;  %4195 = vmatprep.subr.bf16.mxu1 %v14956_v10 }
 0x504   :  { %4157 = vmatpush1.bf16.msra.mxu0 %v14951_v12  ;;  %4196 = vmatpush1.bf16.msra.mxu1 %v14954_v4  ;;  %v4301_v12 = vld [vmem:[%s21341_s7] sm:$0xff] }
 0x505   :  { %4158 = vmatprep.subr.bf16.mxu0 %v14959_v45  ;;  %4197 = vmatprep.subr.bf16.mxu1 %v14962_v13  ;;  %v4309_v4 = vld [vmem:[%s21341_s7 + $0x40] sm:$0xff]  ;;  %v4302_v45 = vld [vmem:[%s21341_s7 + $0x8] sm:$0xff] }
 0x506   :  { %v12942_v13 = vcombine.low %v4301_v12, %v4309_v4 }
 0x508   :  { %4159 = vmatpush1.bf16.msra.mxu0 %v14957_v14  ;;  %4198 = vmatpush1.bf16.msra.mxu1 %v14960_v15  ;;  %v12943_v14 = vcombine.high %v4301_v12, %v4309_v4  ;;  %v4310_v15 = vld [vmem:[%s21341_s7 + $0x48] sm:$0xff] }
 0x509   :  { %4160 = vmatprep.subr.bf16.mxu0 %v14965_v1  ;;  %4199 = vmatprep.subr.bf16.mxu1 %v14968_v16  ;;  %v4317_v1 = vld [vmem:[%s21341_s7 + $0x80] sm:$0xff] }
 0x50a   :  { %v4325_v16 = vld [vmem:[%s21341_s7 + $0xc0] sm:$0xff] }
 0x50c   :  { %4161 = vmatpush1.bf16.msra.mxu0 %v14963_v11  ;;  %4200 = vmatpush1.bf16.msra.mxu1 %v14966_v33  ;;  %v12944_v11 = vcombine.low %v4302_v45, %v4310_v15  ;;  %v12945_v33 = vcombine.high %v4302_v45, %v4310_v15  ;;  %v4413_v45 = vld [vmem:[%s21341_s7 + $0x380] sm:$0xff]  ;;  %v4422_v15 = vld [vmem:[%s21341_s7 + $0x3c8] sm:$0xff] }
 0x50d   :  { %4162 = vmatprep.subr.bf16.mxu0 %v14971_v17  ;;  %4201 = vmatprep.subr.bf16.mxu1 %v14974_v18  ;;  %v12959_v17 = vcombine.high %v4317_v1, %v4325_v16  ;;  %v4318_v18 = vld [vmem:[%s21341_s7 + $0x88] sm:$0xff] }
 0x510   :  { %4163 = vmatpush1.bf16.msra.mxu0 %v14969_v20  ;;  %4202 = vmatpush1.bf16.msra.mxu1 %v14972_v21  ;;  %v4326_v20 = vld [vmem:[%s21341_s7 + $0xc8] sm:$0xff]  ;;  %v4333_v21 = vld [vmem:[%s21341_s7 + $0x100] sm:$0xff] }
 0x511   :  { %4203 = vmatprep.subr.bf16.mxu1 %v14977_v22  ;;  %7457 = vmatprep.subr.bf16.mxu0 %v12943_v14  ;;  %v12961_v22 = vcombine.high %v4318_v18, %v4326_v20  ;;  %v4414_v14 = vld [vmem:[%s21341_s7 + $0x388] sm:$0xff] }
 0x513   :  { %4165 = vmatmul.mubr.bf16.vlgmr.msra.gmra.mrb[20].mxu0 %v17430_v5 }
 0x514   :  { %4204 = vmatpush1.bf16.msra.mxu1 %v14975_v23  ;;  %v4341_v23 = vld [vmem:[%s21341_s7 + $0x140] sm:$0xff]  ;;  %7458 = vmatpush1.bf16.msra.mxu0 %v12942_v13 }
 0x515   :  { %7539 = vmatprep.subr.bf16.mxu1 %v12945_v33  ;;  %7459 = vmatprep.subr.bf16.mxu0 %v12959_v17  ;;  %v4421_v13 = vld [vmem:[%s21341_s7 + $0x3c0] sm:$0xff]  ;;  %v13057_v33 = vcombine.high %v4414_v14, %v4422_v15 }
 0x516   :  { %v4429_v17 = vld [vmem:[%s21341_s7 + $0x400] sm:$0xff] }
 0x517   :  { %4206 = vmatmul.mubr.bf16.vlgmr.msra.gmra.mrb[20].mxu1 %v17442_v19 }
 0x518   :  { %7540 = vmatpush1.bf16.msra.mxu1 %v12944_v11  ;;  %v13055_v11 = vcombine.high %v4413_v45, %v4421_v13 }
 0x519   :  { %7541 = vmatprep.subr.bf16.mxu1 %v12961_v22  ;;  %v13054_v22 = vcombine.low %v4413_v45, %v4421_v13  ;;  %v4501_v45 = vld [vmem:[%s21341_s7 + $0x640] sm:$0xff]  ;;  %v4494_v13 = vld [vmem:[%s21341_s7 + $0x608] sm:$0xff] }
 0x5a6   :  { %v4084_v26 = vpop.f32.mrb[16].mxu0 }
 0x5a7   :  { %v4086_v34 = vpop.f32.mrb[17].mxu0  ;;  %v4085_v28 = vadd.f32 %v4084_v26, %v3393_v25  ;;  %v4342_v25 = vld [vmem:[%s21341_s7 + $0x148] sm:$0xff]  ;;  %v12958_v26 = vcombine.low %v4317_v1, %v4325_v16 }
 0x5a8   :  { %v4088_v0 = vpop.f32.mrb[18].mxu0  ;;  %v4087_v29 = vadd.f32 %v4086_v34, %v3397_v48  ;;  %v12960_v48 = vcombine.low %v4318_v18, %v4326_v20  ;;  %v12975_v34 = vcombine.high %v4333_v21, %v4341_v23  ;;  %v4437_v18 = vld [vmem:[%s21341_s7 + $0x440] sm:$0xff]  ;;  %v4430_v20 = vld [vmem:[%s21341_s7 + $0x408] sm:$0xff] }
 0x5a9   :  { %v4089_v27 = vpop.f32.mrb[19].mxu0  ;;  %v12977_v0 = vcombine.high %v4334_v24, %v4342_v25  ;;  %7460 = vmatpush1.bf16.msra.mxu0 %v12958_v26  ;;  %v4445_v26 = vld [vmem:[%s21341_s7 + $0x480] sm:$0xff] }
 0x5aa   :  { %v4125_v30 = vpop.f32.mrb[16].mxu1  ;;  %v4357_v27 = vld [vmem:[%s21341_s7 + $0x1c0] sm:$0xff]  ;;  %7542 = vmatpush1.bf16.msra.mxu1 %v12960_v48  ;;  %7461 = vmatprep.subr.bf16.mxu0 %v12975_v34  ;;  %v4446_v34 = vld [vmem:[%s21341_s7 + $0x488] sm:$0xff] }
 0x5ab   :  { %v4126_v31 = vadd.f32 %v4125_v30, %v4085_v28  ;;  %v4127_v5 = vpop.f32.mrb[17].mxu1  ;;  %v4349_v28 = vld [vmem:[%s21341_s7 + $0x180] sm:$0xff]  ;;  %v4358_v30 = vld [vmem:[%s21341_s7 + $0x1c8] sm:$0xff]  ;;  %7543 = vmatprep.subr.bf16.mxu1 %v12977_v0 }
 0x5ac   :  { %v4128_v35 = vadd.f32 %v4127_v5, %v4087_v29  ;;  %v4129_v38 = vpop.f32.mrb[18].mxu1  ;;  %v4350_v29 = vld [vmem:[%s21341_s7 + $0x188] sm:$0xff]  ;;  %v12976_v5 = vcombine.low %v4334_v24, %v4342_v25  ;;  %v13071_v24 = vcombine.high %v4429_v17, %v4437_v18  ;;  %v4453_v48 = vld [vmem:[%s21341_s7 + $0x4c0] sm:$0xff] }
 0x5ad   :  { %v4130_v19 = vpop.f32.mrb[19].mxu1  ;;  %v17631_v52 = vadd.f32 %v15790_v51, %v4126_v31  ;;  %v12974_v31 = vcombine.low %v4333_v21, %v4341_v23  ;;  %v12993_v38 = vcombine.high %v4350_v29, %v4358_v30  ;;  %v4438_v21 = vld [vmem:[%s21341_s7 + $0x448] sm:$0xff]  ;;  %v13056_v23 = vcombine.low %v4414_v14, %v4422_v15 }
 0x5ae   :  { %v17636_v54 = vadd.f32 %v15791_v53, %v4128_v35  ;;  %v12991_v35 = vcombine.high %v4349_v28, %v4357_v27  ;;  %v4365_v19 = vld [vmem:[%s21341_s7 + $0x200] sm:$0xff]  ;;  %7544 = vmatpush1.bf16.msra.mxu1 %v12976_v5  ;;  %v13073_v25 = vcombine.high %v4430_v20, %v4438_v21  ;;  %v4454_v0 = vld [vmem:[%s21341_s7 + $0x4c8] sm:$0xff] }
 0x5af   :  { %7462 = vmatpush1.bf16.msra.mxu0 %v12974_v31  ;;  %7545 = vmatprep.subr.bf16.mxu1 %v12993_v38  ;;  %v4461_v31 = vld [vmem:[%s21341_s7 + $0x500] sm:$0xff]  ;;  %v4470_v38 = vld [vmem:[%s21341_s7 + $0x548] sm:$0xff] }
 0x5b0   :  { %v4218_v2 = vadd.f32 %v17636_v54, %v17631_v52  ;;  %7463 = vmatprep.subr.bf16.mxu0 %v12991_v35  ;;  %v4469_v5 = vld [vmem:[%s21341_s7 + $0x540] sm:$0xff]  ;;  %v4462_v35 = vld [vmem:[%s21341_s7 + $0x508] sm:$0xff] }
 0x5e6   :  { %v4166_v42 = vpop.f32.mrb[20].mxu0 }
 0x5e7   :  { %v4168_v49 = vpop.f32.mrb[21].mxu0  ;;  %v4167_v56 = vadd.f32 %v4166_v42, %v3401_v41  ;;  %v4373_v41 = vld [vmem:[%s21341_s7 + $0x240] sm:$0xff]  ;;  %v4366_v42 = vld [vmem:[%s21341_s7 + $0x208] sm:$0xff] }
 0x5e8   :  { %v4170_v50 = vpop.f32.mrb[22].mxu0  ;;  %v4169_v58 = vadd.f32 %v4168_v49, %v3405_v44  ;;  %v4374_v44 = vld [vmem:[%s21341_s7 + $0x248] sm:$0xff]  ;;  %v12990_v49 = vcombine.low %v4349_v28, %v4357_v27  ;;  %v13007_v51 = vcombine.high %v4365_v19, %v4373_v41  ;;  %v13070_v28 = vcombine.low %v4429_v17, %v4437_v18 }
 0x5e9   :  { %v4171_v57 = vpop.f32.mrb[23].mxu0  ;;  %v12992_v50 = vcombine.low %v4350_v29, %v4358_v30  ;;  %v13009_v53 = vcombine.high %v4366_v42, %v4374_v44  ;;  %v13072_v27 = vcombine.low %v4430_v20, %v4438_v21  ;;  %v13087_v29 = vcombine.high %v4445_v26, %v4453_v48  ;;  %v4510_v20 = vld [vmem:[%s21341_s7 + $0x688] sm:$0xff] }
 0x5ea   :  { %v4207_v59 = vpop.f32.mrb[20].mxu1  ;;  %v4389_v57 = vld [vmem:[%s21341_s7 + $0x2c0] sm:$0xff]  ;;  %7464 = vmatpush1.bf16.msra.mxu0 %v12990_v49  ;;  %v13089_v30 = vcombine.high %v4446_v34, %v4454_v0  ;;  %v13102_v49 = vcombine.low %v4461_v31, %v4469_v5  ;;  %v4518_v21 = vld [vmem:[%s21341_s7 + $0x6c8] sm:$0xff] }
 0x5eb   :  { %v4208_v60 = vadd.f32 %v4207_v59, %v4167_v56  ;;  %v4209_v61 = vpop.f32.mrb[21].mxu1  ;;  %v4381_v56 = vld [vmem:[%s21341_s7 + $0x280] sm:$0xff]  ;;  %v4390_v59 = vld [vmem:[%s21341_s7 + $0x2c8] sm:$0xff]  ;;  %7546 = vmatpush1.bf16.msra.mxu1 %v12992_v50  ;;  %7465 = vmatprep.subr.bf16.mxu0 %v13007_v51  ;;  %v13104_v50 = vcombine.low %v4462_v35, %v4470_v38 }
 0x5ec   :  { %v4210_v62 = vadd.f32 %v4209_v61, %v4169_v58  ;;  %v4211_v63 = vpop.f32.mrb[22].mxu1  ;;  %v4382_v58 = vld [vmem:[%s21341_s7 + $0x288] sm:$0xff]  ;;  %v13008_v61 = vcombine.low %v4366_v42, %v4374_v44  ;;  %7547 = vmatprep.subr.bf16.mxu1 %v13009_v53  ;;  %v13103_v42 = vcombine.high %v4461_v31, %v4469_v5  ;;  %v13105_v44 = vcombine.high %v4462_v35, %v4470_v38 }
 0x5ed   :  { %v17643_v39 = vadd.f32 %v15792_v3, %v4208_v60  ;;  %v4212_v6 = vpop.f32.mrb[23].mxu1  ;;  %v13006_v60 = vcombine.low %v4365_v19, %v4373_v41  ;;  %v13025_v63 = vcombine.high %v4382_v58, %v4390_v59  ;;  %v4405_v3 = vld [vmem:[%s21341_s7 + $0x340] sm:$0xff]  ;;  %v13086_v19 = vcombine.low %v4445_v26, %v4453_v48  ;;  %v4534_v26 = vld [vmem:[%s21341_s7 + $0x748] sm:$0xff] }
 0x5ee   :  { %v17648_v8 = vadd.f32 %v15793_v7, %v4210_v62  ;;  %v13023_v62 = vcombine.high %v4381_v56, %v4389_v57  ;;  %v4398_v6 = vld [vmem:[%s21341_s7 + $0x308] sm:$0xff]  ;;  %v13088_v41 = vcombine.low %v4446_v34, %v4454_v0  ;;  %v13152_v34 = vcombine.low %v4510_v20, %v4518_v21 }
 0x5ef   :  { %v4219_v9 = vadd.f32 %v4218_v2, %v17643_v39  ;;  %v4397_v2 = vld [vmem:[%s21341_s7 + $0x300] sm:$0xff]  ;;  %v4406_v7 = vld [vmem:[%s21341_s7 + $0x348] sm:$0xff]  ;;  %7466 = vmatpush1.bf16.msra.mxu0 %v13006_v60  ;;  %7548 = vmatpush1.bf16.msra.mxu1 %v13008_v61 }
 0x5f0   :  { %7467 = vmatprep.subr.bf16.mxu0 %v13023_v62  ;;  %v13039_v12 = vcombine.high %v4397_v2, %v4405_v3  ;;  %7549 = vmatprep.subr.bf16.mxu1 %v13025_v63  ;;  %v13041_v4 = vcombine.high %v4398_v6, %v4406_v7  ;;  %v13038_v1 = vcombine.low %v4397_v2, %v4405_v3  ;;  %v4478_v3 = vld [vmem:[%s21341_s7 + $0x588] sm:$0xff] }
 0x5f1   :  { %v4220_v10 = vadd.f32 %v4219_v9, %v17648_v8  ;;  %v13022_v9 = vcombine.low %v4381_v56, %v4389_v57  ;;  %v13040_v16 = vcombine.low %v4398_v6, %v4406_v7  ;;  %v4486_v7 = vld [vmem:[%s21341_s7 + $0x5c8] sm:$0xff] }
 0x5f2   :  { %v4550_v31 = vld [vmem:[%s21341_s7 + $0x7c8] sm:$0xff] }
 0x5f3   :  { %4221 = vadd.xlane.f32.xlu0 %v4220_v10  ;;  %v13024_v10 = vcombine.low %v4382_v58, %v4390_v59  ;;  %7468 = vmatpush1.bf16.msra.mxu0 %v13022_v9 }
 0x5f4   :  { %7469 = vmatprep.subr.bf16.mxu0 %v13039_v12  ;;  %v13121_v12 = vcombine.high %v4478_v3, %v4486_v7 }
 0x5f5   :  { %7550 = vmatpush1.bf16.msra.mxu1 %v13024_v10  ;;  %v13120_v10 = vcombine.low %v4478_v3, %v4486_v7 }
 0x5f6   :  { %7551 = vmatprep.subr.bf16.mxu1 %v13041_v4  ;;  %v4493_v4 = vld [vmem:[%s21341_s7 + $0x600] sm:$0xff] }
 0x5f7   :  { %7470 = vmatpush1.bf16.msra.mxu0 %v13038_v1  ;;  %v13134_v14 = vcombine.low %v4493_v4, %v4501_v45  ;;  %v13135_v15 = vcombine.high %v4493_v4, %v4501_v45  ;;  %v4502_v1 = vld [vmem:[%s21341_s7 + $0x648] sm:$0xff] }
 0x5f8   :  { %7471 = vmatprep.subr.bf16.mxu0 %v13055_v11  ;;  %v4517_v11 = vld [vmem:[%s21341_s7 + $0x6c0] sm:$0xff]  ;;  %v13137_v17 = vcombine.high %v4494_v13, %v4502_v1 }
 0x5f9   :  { %7552 = vmatpush1.bf16.msra.mxu1 %v13040_v16  ;;  %v4509_v16 = vld [vmem:[%s21341_s7 + $0x680] sm:$0xff] }
 0x5fa   :  { %7553 = vmatprep.subr.bf16.mxu1 %v13057_v33  ;;  %v13136_v33 = vcombine.low %v4494_v13, %v4502_v1  ;;  %v13151_v18 = vcombine.high %v4509_v16, %v4517_v11  ;;  %v13150_v48 = vcombine.low %v4509_v16, %v4517_v11 }
 0x5fb   :  { %7472 = vmatpush1.bf16.msra.mxu0 %v13054_v22  ;;  %v4525_v22 = vld [vmem:[%s21341_s7 + $0x700] sm:$0xff] }
 0x5fc   :  { %7473 = vmatprep.subr.bf16.mxu0 %v13071_v24  ;;  %v4533_v24 = vld [vmem:[%s21341_s7 + $0x740] sm:$0xff] }
 0x5fd   :  { %7554 = vmatpush1.bf16.msra.mxu1 %v13056_v23  ;;  %v13153_v23 = vcombine.high %v4510_v20, %v4518_v21  ;;  %v13167_v0 = vcombine.high %v4525_v22, %v4533_v24  ;;  %v13166_v5 = vcombine.low %v4525_v22, %v4533_v24  ;;  %v4582_v22 = vld [vmem:[%s21341_s7 + $0x8c8] sm:$0xff] }
 0x5fe   :  { %7555 = vmatprep.subr.bf16.mxu1 %v13073_v25  ;;  %v4526_v25 = vld [vmem:[%s21341_s7 + $0x708] sm:$0xff] }
 0x5ff   :  { %7474 = vmatpush1.bf16.msra.mxu0 %v13070_v28  ;;  %v13169_v28 = vcombine.high %v4526_v25, %v4534_v26  ;;  %v13168_v35 = vcombine.low %v4526_v25, %v4534_v26  ;;  %v4589_v25 = vld [vmem:[%s21341_s7 + $0x900] sm:$0xff] }
 0x600   :  { %7475 = vmatprep.subr.bf16.mxu0 %v13087_v29  ;;  %v4549_v29 = vld [vmem:[%s21341_s7 + $0x7c0] sm:$0xff] }
 0x601   :  { %7556 = vmatpush1.bf16.msra.mxu1 %v13072_v27  ;;  %v4541_v27 = vld [vmem:[%s21341_s7 + $0x780] sm:$0xff] }
 0x602   :  { %7557 = vmatprep.subr.bf16.mxu1 %v13089_v30  ;;  %v4542_v30 = vld [vmem:[%s21341_s7 + $0x788] sm:$0xff]  ;;  %v13183_v38 = vcombine.high %v4541_v27, %v4549_v29 }
 0x603   :  { %7476 = vmatpush1.bf16.msra.mxu0 %v13086_v19  ;;  %v13185_v19 = vcombine.high %v4542_v30, %v4550_v31 }
 0x604   :  { %7477 = vmatprep.subr.bf16.mxu0 %v13103_v42  ;;  %v13184_v42 = vcombine.low %v4542_v30, %v4550_v31 }
 0x605   :  { %7558 = vmatpush1.bf16.msra.mxu1 %v13088_v41  ;;  %v13182_v41 = vcombine.low %v4541_v27, %v4549_v29 }
 0x606   :  { %7559 = vmatprep.subr.bf16.mxu1 %v13105_v44  ;;  %v4557_v44 = vld [vmem:[%s21341_s7 + $0x800] sm:$0xff] }
 0x607   :  { %7478 = vmatpush1.bf16.msra.mxu0 %v13102_v49  ;;  %v4565_v49 = vld [vmem:[%s21341_s7 + $0x840] sm:$0xff] }
 0x609   :  { %7560 = vmatpush1.bf16.msra.mxu1 %v13104_v50  ;;  %v4558_v50 = vld [vmem:[%s21341_s7 + $0x808] sm:$0xff] }
 0x60a   :  { %7561 = vmatprep.subr.bf16.mxu1 %v13121_v12 }
 0x60d   :  { %7562 = vmatpush1.bf16.msra.mxu1 %v13120_v10 }
 0x60e   :  { %7563 = vmatprep.subr.bf16.mxu1 %v13137_v17 }
 0x611   :  { %7564 = vmatpush1.bf16.msra.mxu1 %v13136_v33 }
 0x612   :  { %7565 = vmatprep.subr.bf16.mxu1 %v13153_v23 }
 0x615   :  { %7566 = vmatpush1.bf16.msra.mxu1 %v13152_v34  ;;  %v4597_v34 = vld [vmem:[%s21341_s7 + $0x940] sm:$0xff] }
 0x616   :  { %7567 = vmatprep.subr.bf16.mxu1 %v13169_v28  ;;  %v4598_v28 = vld [vmem:[%s21341_s7 + $0x948] sm:$0xff]  ;;  %v13231_v31 = vcombine.high %v4589_v25, %v4597_v34 }
 0x619   :  { %7568 = vmatpush1.bf16.msra.mxu1 %v13168_v35  ;;  %v4605_v35 = vld [vmem:[%s21341_s7 + $0x980] sm:$0xff] }
 0x61a   :  { %7569 = vmatprep.subr.bf16.mxu1 %v13185_v19  ;;  %v4606_v19 = vld [vmem:[%s21341_s7 + $0x988] sm:$0xff] }
 0x61d   :  { %7570 = vmatpush1.bf16.msra.mxu1 %v13184_v42  ;;  %v13230_v42 = vcombine.low %v4589_v25, %v4597_v34  ;;  %v4686_v34 = vld [vmem:[%s21341_s7 + $0xc08] sm:$0xff] }
 0x680   :  { %v4222_v51 = vpop.xlane.xlu0 %4221 }
 0x681   :  { %v4224_v53 = vmul.f32 0.001953125, %v4222_v51  ;;  %v13199_v51 = vcombine.high %v4557_v44, %v4565_v49 }
 0x683   :  { %v17785_v56 = vsub.f32 %v17631_v52, %v4224_v53  ;;  %v17788_v57 = vsub.f32 %v17636_v54, %v4224_v53  ;;  %v17791_v58 = vsub.f32 %v17643_v39, %v4224_v53  ;;  %v17794_v59 = vsub.f32 %v17648_v8, %v4224_v53  ;;  %v4477_v39 = vld [vmem:[%s21341_s7 + $0x580] sm:$0xff]  ;;  %v4566_v53 = vld [vmem:[%s21341_s7 + $0x848] sm:$0xff] }
 0x684   :  { %v4485_v8 = vld [vmem:[%s21341_s7 + $0x5c0] sm:$0xff] }
 0x685   :  { %v4229_v60 = vmul.f32 %v17785_v56, %v17785_v56  ;;  %v4230_v61 = vmul.f32 %v17788_v57, %v17788_v57  ;;  %v4231_v62 = vmul.f32 %v17791_v58, %v17791_v58  ;;  %v4232_v54 = vmul.f32 %v17794_v59, %v17794_v59 }
 0x686   :  { %v13119_v6 = vcombine.high %v4477_v39, %v4485_v8  ;;  %v13118_v9 = vcombine.low %v4477_v39, %v4485_v8  ;;  %v4271_v39 = vld [vmem:[%s21340_s6] sm:$0xf] }
 0x687   :  { %v4233_v52 = vadd.f32 %v4230_v61, %v4229_v60  ;;  %v13198_v60 = vcombine.low %v4557_v44, %v4565_v49  ;;  %v13200_v61 = vcombine.low %v4558_v50, %v4566_v53  ;;  %v4280_v10 = vrot.slane %v4271_v39, %v16999_v46 }
 0x688   :  { %7479 = vmatprep.subr.bf16.mxu0 %v13119_v6  ;;  %v4276_v12 = vrot.slane %v4271_v39, %v17155_v40  ;;  %v4284_v4 = vrot.slane %v4271_v39, %v17175_v55  ;;  %v4288_v1 = vrot.slane %v4271_v39, %v17163_v43  ;;  %v4645_v39 = vld [vmem:[%s21341_s7 + $0xac0] sm:$0xff] }
 0x689   :  { %v4234_v63 = vadd.f32 %v4233_v52, %v4231_v62  ;;  %7480 = vmatpush1.bf16.msra.mxu0 %v13118_v9  ;;  %v13201_v62 = vcombine.high %v4558_v50, %v4566_v53  ;;  %v4629_v53 = vld [vmem:[%s21341_s7 + $0xa40] sm:$0xff] }
 0x68a   :  { %7481 = vmatprep.subr.bf16.mxu0 %v13135_v15 }
 0x68b   :  { %v4235_v2 = vadd.f32 %v4234_v63, %v4232_v54  ;;  %7580 = vmatprep.subr.bf16.mxu1 %v13201_v62 }
 0x68d   :  { %4236 = vadd.xlane.f32.xlu1 %v4235_v2  ;;  %7482 = vmatpush1.bf16.msra.mxu0 %v13134_v14  ;;  %v4245_v2 = vld [vmem:[%s21371_s24] sm:$0xf] }
 0x68e   :  { %7483 = vmatprep.subr.bf16.mxu0 %v13151_v18  ;;  %v4254_v8 = vrot.slane %v4245_v2, %v16999_v46  ;;  %v4250_v3 = vrot.slane %v4245_v2, %v17155_v40  ;;  %v4262_v6 = vrot.slane %v4245_v2, %v17163_v43  ;;  %v4258_v7 = vrot.slane %v4245_v2, %v17175_v55  ;;  %v4637_v2 = vld [vmem:[%s21341_s7 + $0xa80] sm:$0xff] }
 0x691   :  { %7484 = vmatpush1.bf16.msra.mxu0 %v13150_v48 }
 0x692   :  { %7485 = vmatprep.subr.bf16.mxu0 %v13167_v0  ;;  %v4590_v0 = vld [vmem:[%s21341_s7 + $0x908] sm:$0xff] }
 0x693   :  { %v13232_v44 = vcombine.low %v4590_v0, %v4598_v28 }
 0x695   :  { %7486 = vmatpush1.bf16.msra.mxu0 %v13166_v5  ;;  %v13233_v5 = vcombine.high %v4590_v0, %v4598_v28  ;;  %v4694_v0 = vld [vmem:[%s21341_s7 + $0xc48] sm:$0xff] }
 0x696   :  { %7487 = vmatprep.subr.bf16.mxu0 %v13183_v38  ;;  %v4613_v38 = vld [vmem:[%s21341_s7 + $0x9c0] sm:$0xff] }
 0x697   :  { %v13247_v49 = vcombine.high %v4605_v35, %v4613_v38  ;;  %v13246_v62 = vcombine.low %v4605_v35, %v4613_v38  ;;  %v4709_v35 = vld [vmem:[%s21341_s7 + $0xcc0] sm:$0xff]  ;;  %v4702_v38 = vld [vmem:[%s21341_s7 + $0xc88] sm:$0xff] }
 0x699   :  { %7488 = vmatpush1.bf16.msra.mxu0 %v13182_v41  ;;  %v4614_v41 = vld [vmem:[%s21341_s7 + $0x9c8] sm:$0xff] }
 0x69a   :  { %7498 = vmatprep.subr.bf16.mxu0 %v13199_v51  ;;  %v13249_v50 = vcombine.high %v4606_v19, %v4614_v41  ;;  %v4621_v51 = vld [vmem:[%s21341_s7 + $0xa00] sm:$0xff] }
 0x71a   :  { %v4237_v52 = vpop.xlane.xlu1 %4236 }
 0x71b   :  { %v4238_v54 = vmul.f32 0.001953125, %v4237_v52  ;;  %v13248_v52 = vcombine.low %v4606_v19, %v4614_v41  ;;  %v4710_v19 = vld [vmem:[%s21341_s7 + $0xcc8] sm:$0xff] }
 0x71d   :  { %v4239_v63 = vadd.f32 1e-05, %v4238_v54  ;;  %v13263_v54 = vcombine.high %v4621_v51, %v4629_v53 }
 0x71f   :  { %15754 = vrsqrt.f32 %v4239_v63 }
 0x729   :  { %v15755_v9 = vpop.eup %15754 }
 0x72a   :  { %v4242_v45 = vmul.f32 %v15755_v9, %v17788_v57  ;;  %v4241_v13 = vmul.f32 %v15755_v9, %v17785_v56  ;;  %v4244_v14 = vmul.f32 %v15755_v9, %v17794_v59  ;;  %v4243_v15 = vmul.f32 %v15755_v9, %v17791_v58  ;;  %v4573_v57 = vld [vmem:[%s21341_s7 + $0x880] sm:$0xff]  ;;  %v4574_v59 = vld [vmem:[%s21341_s7 + $0x888] sm:$0xff] }
 0x72b   :  { %v4581_v58 = vld [vmem:[%s21341_s7 + $0x8c0] sm:$0xff]  ;;  %v13217_v48 = vcombine.high %v4574_v59, %v4582_v22  ;;  %v13216_v30 = vcombine.low %v4574_v59, %v4582_v22  ;;  %v13279_v9 = vcombine.high %v4637_v2, %v4645_v39 }
 0x72c   :  { %v4268_v16 = vmul.f32 %v4254_v8, %v4242_v45  ;;  %v4267_v11 = vmul.f32 %v4250_v3, %v4241_v13  ;;  %v4270_v33 = vmul.f32 %v4262_v6, %v4244_v14  ;;  %v4269_v17 = vmul.f32 %v4258_v7, %v4243_v15  ;;  %v4638_v8 = vld [vmem:[%s21341_s7 + $0xa88] sm:$0xff] }
 0x72d   :  { %v13215_v26 = vcombine.high %v4573_v57, %v4581_v58  ;;  %v13214_v29 = vcombine.low %v4573_v57, %v4581_v58  ;;  %v4646_v3 = vld [vmem:[%s21341_s7 + $0xac8] sm:$0xff]  ;;  %v13262_v6 = vcombine.low %v4621_v51, %v4629_v53  ;;  %v13278_v14 = vcombine.low %v4637_v2, %v4645_v39  ;;  %v4725_v51 = vld [vmem:[%s21341_s7 + $0xd40] sm:$0xff] }
 0x72e   :  { %v17894_v18 = vadd.f32 %v4280_v10, %v4268_v16  ;;  %v17896_v20 = vadd.f32 %v4276_v12, %v4267_v11  ;;  %v17901_v21 = vadd.f32 %v4284_v4, %v4269_v17  ;;  %v17903_v56 = vadd.f32 %v4288_v1, %v4270_v33  ;;  %v4653_v12 = vld [vmem:[%s21341_s7 + $0xb00] sm:$0xff]  ;;  %v4654_v45 = vld [vmem:[%s21341_s7 + $0xb08] sm:$0xff] }
 0x72f   :  { %v13281_v10 = vcombine.high %v4638_v8, %v4646_v3  ;;  %v4661_v4 = vld [vmem:[%s21341_s7 + $0xb40] sm:$0xff]  ;;  %v4662_v13 = vld [vmem:[%s21341_s7 + $0xb48] sm:$0xff]  ;;  %v13280_v15 = vcombine.low %v4638_v8, %v4646_v3 }
 0x730   :  { %v17916_v23 = vpack.c.bf16 %v17894_v18, %v17894_v18  ;;  %v17920_v24 = vpack.c.bf16 %v17896_v20, %v17896_v20  ;;  %v17940_v27 = vpack.c.bf16 %v17903_v56, %v17903_v56  ;;  %v13295_v1 = vcombine.high %v4653_v12, %v4661_v4  ;;  %v4669_v11 = vld [vmem:[%s21341_s7 + $0xb80] sm:$0xff]  ;;  %v4670_v17 = vld [vmem:[%s21341_s7 + $0xb88] sm:$0xff] }
 0x731   :  { %v13297_v16 = vcombine.high %v4654_v45, %v4662_v13  ;;  %v4677_v33 = vld [vmem:[%s21341_s7 + $0xbc0] sm:$0xff]  ;;  %v4678_v57 = vld [vmem:[%s21341_s7 + $0xbc8] sm:$0xff]  ;;  %v13294_v58 = vcombine.low %v4653_v12, %v4661_v4  ;;  %v13296_v59 = vcombine.low %v4654_v45, %v4662_v13 }
 0x732   :  { %7489 = vmatprep.mubr.bf16.mxu0 %v17916_v23  ;;  %7571 = vmatprep.mubr.bf16.mxu1 %v17916_v23  ;;  %v13311_v22 = vcombine.high %v4669_v11, %v4677_v33  ;;  %v13313_v25 = vcombine.high %v4670_v17, %v4678_v57  ;;  %v13310_v28 = vcombine.low %v4669_v11, %v4677_v33  ;;  %v4718_v53 = vld [vmem:[%s21341_s7 + $0xd08] sm:$0xff]  ;;  %v4741_v2 = vld [vmem:[%s21341_s7 + $0xdc0] sm:$0xff] }
 0x733   :  { %7490 = vmatmul.mubr.bf16.vlgmr.msra.gmra.mrb[24].mxu0 %v17920_v24  ;;  %7572 = vmatmul.mubr.bf16.vlgmr.msra.gmra.mrb[24].mxu1 %v17920_v24  ;;  %v4734_v39 = vld [vmem:[%s21341_s7 + $0xd88] sm:$0xff]  ;;  %v4757_v12 = vld [vmem:[%s21341_s7 + $0xe40] sm:$0xff] }
 0x734   :  { %7499 = vmatpush1.bf16.msra.mxu0 %v13198_v60  ;;  %7581 = vmatpush1.bf16.msra.mxu1 %v13200_v61  ;;  %v4622_v60 = vld [vmem:[%s21341_s7 + $0xa08] sm:$0xff]  ;;  %v4773_v11 = vld [vmem:[%s21341_s7 + $0xec0] sm:$0xff] }
 0x735   :  { %7530 = vmatprep.mubr.bf16.mxu0 %v17940_v27  ;;  %7612 = vmatprep.mubr.bf16.mxu1 %v17940_v27  ;;  %v4630_v61 = vld [vmem:[%s21341_s7 + $0xa48] sm:$0xff] }
 0x736   :  { %7500 = vmatprep.subr.bf16.mxu0 %v13215_v26  ;;  %7582 = vmatprep.subr.bf16.mxu1 %v13217_v48  ;;  %v13265_v63 = vcombine.high %v4622_v60, %v4630_v61  ;;  %v13264_v7 = vcombine.low %v4622_v60, %v4630_v61  ;;  %v4685_v26 = vld [vmem:[%s21341_s7 + $0xc00] sm:$0xff]  ;;  %v4726_v60 = vld [vmem:[%s21341_s7 + $0xd48] sm:$0xff] }
 0x737   :  { %v4693_v48 = vld [vmem:[%s21341_s7 + $0xc40] sm:$0xff]  ;;  %v4742_v8 = vld [vmem:[%s21341_s7 + $0xdc8] sm:$0xff] }
 0x738   :  { %7501 = vmatpush1.bf16.msra.mxu0 %v13214_v29  ;;  %7583 = vmatpush1.bf16.msra.mxu1 %v13216_v30  ;;  %v13312_v29 = vcombine.low %v4670_v17, %v4678_v57  ;;  %v13327_v30 = vcombine.high %v4685_v26, %v4693_v48  ;;  %v13326_v41 = vcombine.low %v4685_v26, %v4693_v48  ;;  %v4750_v4 = vld [vmem:[%s21341_s7 + $0xe08] sm:$0xff]  ;;  %v4789_v26 = vld [vmem:[%s21341_s7 + $0xf40] sm:$0xff] }
 0x739   :  { %7502 = vmatprep.subr.bf16.mxu0 %v13231_v31  ;;  %7584 = vmatprep.subr.bf16.mxu1 %v13233_v5  ;;  %v13329_v31 = vcombine.high %v4686_v34, %v4694_v0  ;;  %v4701_v5 = vld [vmem:[%s21341_s7 + $0xc80] sm:$0xff]  ;;  %v4758_v45 = vld [vmem:[%s21341_s7 + $0xe48] sm:$0xff] }
 0x73a   :  { %v13342_v61 = vcombine.low %v4701_v5, %v4709_v35  ;;  %v4766_v33 = vld [vmem:[%s21341_s7 + $0xe88] sm:$0xff] }
 0x73b   :  { %v4774_v17 = vld [vmem:[%s21341_s7 + $0xec8] sm:$0xff] }
 0x73c   :  { %7503 = vmatpush1.bf16.msra.mxu0 %v13230_v42  ;;  %7585 = vmatpush1.bf16.msra.mxu1 %v13232_v44  ;;  %v13328_v42 = vcombine.low %v4686_v34, %v4694_v0  ;;  %v13343_v44 = vcombine.high %v4701_v5, %v4709_v35  ;;  %v4782_v48 = vld [vmem:[%s21341_s7 + $0xf08] sm:$0xff]  ;;  %v4805_v5 = vld [vmem:[%s21341_s7 + $0xfc0] sm:$0xff] }
 0x73d   :  { %7504 = vmatprep.subr.bf16.mxu0 %v13247_v49  ;;  %7586 = vmatprep.subr.bf16.mxu1 %v13249_v50  ;;  %v13345_v49 = vcombine.high %v4702_v38, %v4710_v19  ;;  %v4717_v50 = vld [vmem:[%s21341_s7 + $0xd00] sm:$0xff]  ;;  %v4790_v34 = vld [vmem:[%s21341_s7 + $0xf48] sm:$0xff] }
 0x73e   :  { %v13358_v3 = vcombine.low %v4717_v50, %v4725_v51  ;;  %v4798_v35 = vld [vmem:[%s21341_s7 + $0xf88] sm:$0xff] }
 0x740   :  { %7505 = vmatpush1.bf16.msra.mxu0 %v13246_v62  ;;  %7587 = vmatpush1.bf16.msra.mxu1 %v13248_v52  ;;  %v13344_v62 = vcombine.low %v4702_v38, %v4710_v19  ;;  %v13359_v52 = vcombine.high %v4717_v50, %v4725_v51  ;;  %v4806_v38 = vld [vmem:[%s21341_s7 + $0xfc8] sm:$0xff]  ;;  %v4311_v50 = vld [vmem:[%s21341_s7 + $0x50] sm:$0xff]  ;;  %v4304_v51 = vld [vmem:[%s21341_s7 + $0x18] sm:$0xff] }
 0x741   :  { %7506 = vmatprep.subr.bf16.mxu0 %v13263_v54  ;;  %7588 = vmatprep.subr.bf16.mxu1 %v13265_v63  ;;  %v13361_v54 = vcombine.high %v4718_v53, %v4726_v60  ;;  %v4733_v63 = vld [vmem:[%s21341_s7 + $0xd80] sm:$0xff] }
 0x742   :  { %v13374_v13 = vcombine.low %v4733_v63, %v4741_v2 }
 0x744   :  { %7507 = vmatpush1.bf16.msra.mxu0 %v13262_v6  ;;  %7589 = vmatpush1.bf16.msra.mxu1 %v13264_v7  ;;  %v13360_v6 = vcombine.low %v4718_v53, %v4726_v60  ;;  %v13375_v7 = vcombine.high %v4733_v63, %v4741_v2  ;;  %v4312_v53 = vld [vmem:[%s21341_s7 + $0x58] sm:$0xff]  ;;  %v4327_v63 = vld [vmem:[%s21341_s7 + $0xd0] sm:$0xff] }
 0x745   :  { %7508 = vmatprep.subr.bf16.mxu0 %v13279_v9  ;;  %7590 = vmatprep.subr.bf16.mxu1 %v13281_v10  ;;  %v13377_v9 = vcombine.high %v4734_v39, %v4742_v8  ;;  %v4749_v10 = vld [vmem:[%s21341_s7 + $0xe00] sm:$0xff]  ;;  %v4320_v2 = vld [vmem:[%s21341_s7 + $0x98] sm:$0xff] }
 0x746   :  { %v13390_v57 = vcombine.low %v4749_v10, %v4757_v12 }
 0x748   :  { %7509 = vmatpush1.bf16.msra.mxu0 %v13278_v14  ;;  %7591 = vmatpush1.bf16.msra.mxu1 %v13280_v15  ;;  %v13376_v14 = vcombine.low %v4734_v39, %v4742_v8  ;;  %v13391_v15 = vcombine.high %v4749_v10, %v4757_v12  ;;  %v4328_v39 = vld [vmem:[%s21341_s7 + $0xd8] sm:$0xff]  ;;  %v4335_v10 = vld [vmem:[%s21341_s7 + $0x110] sm:$0xff] }
 0x749   :  { %7510 = vmatprep.subr.bf16.mxu0 %v13295_v1  ;;  %7592 = vmatprep.subr.bf16.mxu1 %v13297_v16  ;;  %v13393_v1 = vcombine.high %v4750_v4, %v4758_v45  ;;  %v4765_v16 = vld [vmem:[%s21341_s7 + $0xe80] sm:$0xff]  ;;  %v4343_v12 = vld [vmem:[%s21341_s7 + $0x150] sm:$0xff] }
 0x74a   :  { %v13406_v0 = vcombine.low %v4765_v16, %v4773_v11 }
 0x74c   :  { %7511 = vmatpush1.bf16.msra.mxu0 %v13294_v58  ;;  %7593 = vmatpush1.bf16.msra.mxu1 %v13296_v59  ;;  %v13392_v58 = vcombine.low %v4750_v4, %v4758_v45  ;;  %v13407_v59 = vcombine.high %v4765_v16, %v4773_v11  ;;  %v4336_v4 = vld [vmem:[%s21341_s7 + $0x118] sm:$0xff]  ;;  %v4351_v16 = vld [vmem:[%s21341_s7 + $0x190] sm:$0xff] }
 0x74d   :  { %7512 = vmatprep.subr.bf16.mxu0 %v13311_v22  ;;  %7594 = vmatprep.subr.bf16.mxu1 %v13313_v25  ;;  %v13409_v22 = vcombine.high %v4766_v33, %v4774_v17  ;;  %v4781_v25 = vld [vmem:[%s21341_s7 + $0xf00] sm:$0xff]  ;;  %v4344_v45 = vld [vmem:[%s21341_s7 + $0x158] sm:$0xff]  ;;  %v4359_v11 = vld [vmem:[%s21341_s7 + $0x1d0] sm:$0xff] }
 0x74e   :  { %v13422_v19 = vcombine.low %v4781_v25, %v4789_v26 }
 0x750   :  { %7513 = vmatpush1.bf16.msra.mxu0 %v13310_v28  ;;  %7595 = vmatpush1.bf16.msra.mxu1 %v13312_v29  ;;  %v13408_v28 = vcombine.low %v4766_v33, %v4774_v17  ;;  %v13423_v29 = vcombine.high %v4781_v25, %v4789_v26  ;;  %v4352_v33 = vld [vmem:[%s21341_s7 + $0x198] sm:$0xff]  ;;  %v4367_v25 = vld [vmem:[%s21341_s7 + $0x210] sm:$0xff] }
 0x751   :  { %7514 = vmatprep.subr.bf16.mxu0 %v13327_v30  ;;  %7596 = vmatprep.subr.bf16.mxu1 %v13329_v31  ;;  %v13425_v30 = vcombine.high %v4782_v48, %v4790_v34  ;;  %v4797_v31 = vld [vmem:[%s21341_s7 + $0xf80] sm:$0xff]  ;;  %v4360_v17 = vld [vmem:[%s21341_s7 + $0x1d8] sm:$0xff]  ;;  %v4375_v26 = vld [vmem:[%s21341_s7 + $0x250] sm:$0xff] }
 0x752   :  { %v13438_v60 = vcombine.low %v4797_v31, %v4805_v5 }
 0x754   :  { %7515 = vmatpush1.bf16.msra.mxu0 %v13326_v41  ;;  %7597 = vmatpush1.bf16.msra.mxu1 %v13328_v42  ;;  %v13424_v41 = vcombine.low %v4782_v48, %v4790_v34  ;;  %v13439_v42 = vcombine.high %v4797_v31, %v4805_v5  ;;  %v4368_v48 = vld [vmem:[%s21341_s7 + $0x218] sm:$0xff]  ;;  %v4383_v31 = vld [vmem:[%s21341_s7 + $0x290] sm:$0xff] }
 0x755   :  { %7516 = vmatprep.subr.bf16.mxu0 %v13343_v44  ;;  %7598 = vmatprep.subr.bf16.mxu1 %v13345_v49  ;;  %v13441_v44 = vcombine.high %v4798_v35, %v4806_v38  ;;  %v4303_v49 = vld [vmem:[%s21341_s7 + $0x10] sm:$0xff]  ;;  %v4376_v34 = vld [vmem:[%s21341_s7 + $0x258] sm:$0xff] }
 0x756   :  { %v12946_v8 = vcombine.low %v4303_v49, %v4311_v50  ;;  %v4391_v5 = vld [vmem:[%s21341_s7 + $0x2d0] sm:$0xff] }
 0x758   :  { %7517 = vmatpush1.bf16.msra.mxu0 %v13342_v61  ;;  %7599 = vmatpush1.bf16.msra.mxu1 %v13344_v62  ;;  %v13440_v61 = vcombine.low %v4798_v35, %v4806_v38  ;;  %v12947_v62 = vcombine.high %v4303_v49, %v4311_v50  ;;  %v4384_v35 = vld [vmem:[%s21341_s7 + $0x298] sm:$0xff]  ;;  %v4399_v49 = vld [vmem:[%s21341_s7 + $0x310] sm:$0xff] }
 0x759   :  { %7518 = vmatprep.subr.bf16.mxu0 %v13359_v52  ;;  %7600 = vmatprep.subr.bf16.mxu1 %v13361_v54  ;;  %v12949_v52 = vcombine.high %v4304_v51, %v4312_v53  ;;  %v4319_v54 = vld [vmem:[%s21341_s7 + $0x90] sm:$0xff]  ;;  %v4392_v38 = vld [vmem:[%s21341_s7 + $0x2d8] sm:$0xff] }
 0x75a   :  { %v4407_v50 = vld [vmem:[%s21341_s7 + $0x350] sm:$0xff] }
 0x75c   :  { %7519 = vmatpush1.bf16.msra.mxu0 %v13358_v3  ;;  %7601 = vmatpush1.bf16.msra.mxu1 %v13360_v6  ;;  %v18126_v3 = vpack.c.bf16 %v17901_v21, %v17901_v21  ;;  %v12948_v6 = vcombine.low %v4304_v51, %v4312_v53  ;;  %v4400_v51 = vld [vmem:[%s21341_s7 + $0x318] sm:$0xff] }
 0x75d   :  { %7520 = vmatprep.subr.bf16.mxu0 %v13375_v7  ;;  %7602 = vmatprep.subr.bf16.mxu1 %v13377_v9  ;;  %v12963_v7 = vcombine.high %v4319_v54, %v4327_v63  ;;  %v12965_v9 = vcombine.high %v4320_v2, %v4328_v39  ;;  %v4408_v53 = vld [vmem:[%s21341_s7 + $0x358] sm:$0xff] }
 0x760   :  { %7521 = vmatpush1.bf16.msra.mxu0 %v13374_v13  ;;  %7603 = vmatpush1.bf16.msra.mxu1 %v13376_v14  ;;  %v12962_v13 = vcombine.low %v4319_v54, %v4327_v63  ;;  %v12964_v14 = vcombine.low %v4320_v2, %v4328_v39  ;;  %v4415_v54 = vld [vmem:[%s21341_s7 + $0x390] sm:$0xff]  ;;  %v4416_v2 = vld [vmem:[%s21341_s7 + $0x398] sm:$0xff] }
 0x761   :  { %7522 = vmatprep.subr.bf16.mxu0 %v13391_v15  ;;  %7604 = vmatprep.subr.bf16.mxu1 %v13393_v1  ;;  %v12979_v15 = vcombine.high %v4335_v10, %v4343_v12  ;;  %v12981_v1 = vcombine.high %v4336_v4, %v4344_v45  ;;  %v4423_v63 = vld [vmem:[%s21341_s7 + $0x3d0] sm:$0xff]  ;;  %v4424_v39 = vld [vmem:[%s21341_s7 + $0x3d8] sm:$0xff] }
 0x764   :  { %7523 = vmatpush1.bf16.msra.mxu0 %v13390_v57  ;;  %7605 = vmatpush1.bf16.msra.mxu1 %v13392_v58  ;;  %v12978_v57 = vcombine.low %v4335_v10, %v4343_v12  ;;  %v12980_v58 = vcombine.low %v4336_v4, %v4344_v45  ;;  %v4431_v10 = vld [vmem:[%s21341_s7 + $0x410] sm:$0xff]  ;;  %v4432_v4 = vld [vmem:[%s21341_s7 + $0x418] sm:$0xff] }
 0x765   :  { %7524 = vmatprep.subr.bf16.mxu0 %v13407_v59  ;;  %7606 = vmatprep.subr.bf16.mxu1 %v13409_v22  ;;  %v12995_v59 = vcombine.high %v4351_v16, %v4359_v11  ;;  %v12997_v22 = vcombine.high %v4352_v33, %v4360_v17  ;;  %v4439_v12 = vld [vmem:[%s21341_s7 + $0x450] sm:$0xff]  ;;  %v4440_v45 = vld [vmem:[%s21341_s7 + $0x458] sm:$0xff] }
 0x768   :  { %7525 = vmatpush1.bf16.msra.mxu0 %v13406_v0  ;;  %7607 = vmatpush1.bf16.msra.mxu1 %v13408_v28  ;;  %v12994_v0 = vcombine.low %v4351_v16, %v4359_v11  ;;  %v12996_v28 = vcombine.low %v4352_v33, %v4360_v17  ;;  %v4447_v16 = vld [vmem:[%s21341_s7 + $0x490] sm:$0xff]  ;;  %v4448_v33 = vld [vmem:[%s21341_s7 + $0x498] sm:$0xff] }
 0x769   :  { %7526 = vmatprep.subr.bf16.mxu0 %v13423_v29  ;;  %7608 = vmatprep.subr.bf16.mxu1 %v13425_v30  ;;  %v13011_v29 = vcombine.high %v4367_v25, %v4375_v26  ;;  %v13013_v30 = vcombine.high %v4368_v48, %v4376_v34  ;;  %v4455_v11 = vld [vmem:[%s21341_s7 + $0x4d0] sm:$0xff]  ;;  %v4456_v17 = vld [vmem:[%s21341_s7 + $0x4d8] sm:$0xff] }
 0x76c   :  { %7527 = vmatpush1.bf16.msra.mxu0 %v13422_v19  ;;  %7609 = vmatpush1.bf16.msra.mxu1 %v13424_v41  ;;  %v13010_v19 = vcombine.low %v4367_v25, %v4375_v26  ;;  %v13012_v41 = vcombine.low %v4368_v48, %v4376_v34  ;;  %v4463_v25 = vld [vmem:[%s21341_s7 + $0x510] sm:$0xff]  ;;  %v4464_v48 = vld [vmem:[%s21341_s7 + $0x518] sm:$0xff] }
 0x76d   :  { %7528 = vmatprep.subr.bf16.mxu0 %v13439_v42  ;;  %7610 = vmatprep.subr.bf16.mxu1 %v13441_v44  ;;  %v13027_v42 = vcombine.high %v4383_v31, %v4391_v5  ;;  %v13029_v44 = vcombine.high %v4384_v35, %v4392_v38  ;;  %v4471_v26 = vld [vmem:[%s21341_s7 + $0x550] sm:$0xff]  ;;  %v4472_v34 = vld [vmem:[%s21341_s7 + $0x558] sm:$0xff] }
 0x770   :  { %7529 = vmatpush1.bf16.msra.mxu0 %v13438_v60  ;;  %7611 = vmatpush1.bf16.msra.mxu1 %v13440_v61  ;;  %v13026_v60 = vcombine.low %v4383_v31, %v4391_v5  ;;  %v13028_v61 = vcombine.low %v4384_v35, %v4392_v38  ;;  %v4479_v31 = vld [vmem:[%s21341_s7 + $0x590] sm:$0xff]  ;;  %v4480_v35 = vld [vmem:[%s21341_s7 + $0x598] sm:$0xff] }
 0x771   :  { %7621 = vmatprep.subr.bf16.mxu0 %v12947_v62  ;;  %7703 = vmatprep.subr.bf16.mxu1 %v12949_v52  ;;  %v13043_v62 = vcombine.high %v4399_v49, %v4407_v50  ;;  %v13045_v52 = vcombine.high %v4400_v51, %v4408_v53  ;;  %v4487_v5 = vld [vmem:[%s21341_s7 + $0x5d0] sm:$0xff]  ;;  %v4488_v38 = vld [vmem:[%s21341_s7 + $0x5d8] sm:$0xff] }
 0x773   :  { %7531 = vmatmul.mubr.bf16.vlgmr.msra.gmra.mrb[24].mxu0 %v18126_v3  ;;  %7613 = vmatmul.mubr.bf16.vlgmr.msra.gmra.mrb[24].mxu1 %v18126_v3 }
 0x774   :  { %7622 = vmatpush1.bf16.msra.mxu0 %v12946_v8  ;;  %7653 = vmatprep.mubr.bf16.mxu0 %v17916_v23  ;;  %v13042_v8 = vcombine.low %v4399_v49, %v4407_v50  ;;  %v4495_v49 = vld [vmem:[%s21341_s7 + $0x610] sm:$0xff] }
 0x775   :  { %7704 = vmatpush1.bf16.msra.mxu1 %v12948_v6  ;;  %7735 = vmatprep.mubr.bf16.mxu1 %v17916_v23  ;;  %v13044_v6 = vcombine.low %v4400_v51, %v4408_v53  ;;  %v4503_v50 = vld [vmem:[%s21341_s7 + $0x650] sm:$0xff]  ;;  %v4496_v51 = vld [vmem:[%s21341_s7 + $0x618] sm:$0xff] }
 0x776   :  { %7623 = vmatprep.subr.bf16.mxu0 %v12963_v7  ;;  %7705 = vmatprep.subr.bf16.mxu1 %v12965_v9  ;;  %v13059_v7 = vcombine.high %v4415_v54, %v4423_v63  ;;  %v13061_v9 = vcombine.high %v4416_v2, %v4424_v39  ;;  %v4504_v53 = vld [vmem:[%s21341_s7 + $0x658] sm:$0xff] }
 0x778   :  { %7624 = vmatpush1.bf16.msra.mxu0 %v12962_v13  ;;  %v13058_v13 = vcombine.low %v4415_v54, %v4423_v63  ;;  %v4511_v54 = vld [vmem:[%s21341_s7 + $0x690] sm:$0xff] }
 0x779   :  { %7706 = vmatpush1.bf16.msra.mxu1 %v12964_v14  ;;  %7625 = vmatprep.subr.bf16.mxu0 %v12979_v15  ;;  %v13060_v14 = vcombine.low %v4416_v2, %v4424_v39  ;;  %v13075_v15 = vcombine.high %v4431_v10, %v4439_v12  ;;  %v4519_v63 = vld [vmem:[%s21341_s7 + $0x6d0] sm:$0xff]  ;;  %v4512_v2 = vld [vmem:[%s21341_s7 + $0x698] sm:$0xff] }
 0x77a   :  { %7707 = vmatprep.subr.bf16.mxu1 %v12981_v1  ;;  %v13077_v1 = vcombine.high %v4432_v4, %v4440_v45  ;;  %v4520_v39 = vld [vmem:[%s21341_s7 + $0x6d8] sm:$0xff] }
 0x77c   :  { %7626 = vmatpush1.bf16.msra.mxu0 %v12978_v57  ;;  %v13074_v57 = vcombine.low %v4431_v10, %v4439_v12  ;;  %v4527_v10 = vld [vmem:[%s21341_s7 + $0x710] sm:$0xff] }
 0x77d   :  { %7708 = vmatpush1.bf16.msra.mxu1 %v12980_v58  ;;  %7627 = vmatprep.subr.bf16.mxu0 %v12995_v59  ;;  %v13076_v58 = vcombine.low %v4432_v4, %v4440_v45  ;;  %v13091_v59 = vcombine.high %v4447_v16, %v4455_v11  ;;  %v4535_v12 = vld [vmem:[%s21341_s7 + $0x750] sm:$0xff]  ;;  %v4528_v4 = vld [vmem:[%s21341_s7 + $0x718] sm:$0xff] }
 0x77e   :  { %7709 = vmatprep.subr.bf16.mxu1 %v12997_v22  ;;  %v13093_v22 = vcombine.high %v4448_v33, %v4456_v17  ;;  %v4536_v45 = vld [vmem:[%s21341_s7 + $0x758] sm:$0xff] }
 0x780   :  { %7628 = vmatpush1.bf16.msra.mxu0 %v12994_v0  ;;  %v13090_v0 = vcombine.low %v4447_v16, %v4455_v11  ;;  %v4543_v16 = vld [vmem:[%s21341_s7 + $0x790] sm:$0xff] }
 0x781   :  { %7710 = vmatpush1.bf16.msra.mxu1 %v12996_v28  ;;  %7629 = vmatprep.subr.bf16.mxu0 %v13011_v29  ;;  %v13092_v28 = vcombine.low %v4448_v33, %v4456_v17  ;;  %v13107_v29 = vcombine.high %v4463_v25, %v4471_v26  ;;  %v4551_v11 = vld [vmem:[%s21341_s7 + $0x7d0] sm:$0xff]  ;;  %v4544_v33 = vld [vmem:[%s21341_s7 + $0x798] sm:$0xff] }
 0x782   :  { %7711 = vmatprep.subr.bf16.mxu1 %v13013_v30  ;;  %v13109_v30 = vcombine.high %v4464_v48, %v4472_v34  ;;  %v4552_v17 = vld [vmem:[%s21341_s7 + $0x7d8] sm:$0xff] }
 0x784   :  { %7630 = vmatpush1.bf16.msra.mxu0 %v13010_v19  ;;  %v13106_v19 = vcombine.low %v4463_v25, %v4471_v26  ;;  %v4559_v25 = vld [vmem:[%s21341_s7 + $0x810] sm:$0xff] }
 0x785   :  { %7712 = vmatpush1.bf16.msra.mxu1 %v13012_v41  ;;  %7631 = vmatprep.subr.bf16.mxu0 %v13027_v42  ;;  %v13108_v41 = vcombine.low %v4464_v48, %v4472_v34  ;;  %v13123_v42 = vcombine.high %v4479_v31, %v4487_v5  ;;  %v4567_v26 = vld [vmem:[%s21341_s7 + $0x850] sm:$0xff]  ;;  %v4560_v48 = vld [vmem:[%s21341_s7 + $0x818] sm:$0xff] }
 0x786   :  { %7713 = vmatprep.subr.bf16.mxu1 %v13029_v44  ;;  %v13125_v44 = vcombine.high %v4480_v35, %v4488_v38  ;;  %v4568_v34 = vld [vmem:[%s21341_s7 + $0x858] sm:$0xff] }
 0x788   :  { %7632 = vmatpush1.bf16.msra.mxu0 %v13026_v60  ;;  %v13122_v60 = vcombine.low %v4479_v31, %v4487_v5  ;;  %v4575_v31 = vld [vmem:[%s21341_s7 + $0x890] sm:$0xff] }
 0x789   :  { %7714 = vmatpush1.bf16.msra.mxu1 %v13028_v61  ;;  %7633 = vmatprep.subr.bf16.mxu0 %v13043_v62  ;;  %v13124_v61 = vcombine.low %v4480_v35, %v4488_v38  ;;  %v13139_v62 = vcombine.high %v4495_v49, %v4503_v50  ;;  %v4583_v5 = vld [vmem:[%s21341_s7 + $0x8d0] sm:$0xff]  ;;  %v13202_v35 = vcombine.low %v4559_v25, %v4567_v26  ;;  %v4576_v38 = vld [vmem:[%s21341_s7 + $0x898] sm:$0xff] }
 0x78a   :  { %7715 = vmatprep.subr.bf16.mxu1 %v13045_v52  ;;  %v13141_v52 = vcombine.high %v4496_v51, %v4504_v53 }
 0x78c   :  { %7634 = vmatpush1.bf16.msra.mxu0 %v13042_v8  ;;  %v13138_v8 = vcombine.low %v4495_v49, %v4503_v50  ;;  %v4599_v49 = vld [vmem:[%s21341_s7 + $0x950] sm:$0xff] }
 0x78d   :  { %7716 = vmatpush1.bf16.msra.mxu1 %v13044_v6  ;;  %7635 = vmatprep.subr.bf16.mxu0 %v13059_v7  ;;  %v13140_v6 = vcombine.low %v4496_v51, %v4504_v53  ;;  %v13155_v7 = vcombine.high %v4511_v54, %v4519_v63  ;;  %v4592_v51 = vld [vmem:[%s21341_s7 + $0x918] sm:$0xff] }
 0x78e   :  { %7717 = vmatprep.subr.bf16.mxu1 %v13061_v9  ;;  %v13157_v9 = vcombine.high %v4512_v2, %v4520_v39  ;;  %v4600_v53 = vld [vmem:[%s21341_s7 + $0x958] sm:$0xff] }
 0x790   :  { %7636 = vmatpush1.bf16.msra.mxu0 %v13058_v13  ;;  %v13154_v13 = vcombine.low %v4511_v54, %v4519_v63  ;;  %v4607_v54 = vld [vmem:[%s21341_s7 + $0x990] sm:$0xff] }
 0x791   :  { %7718 = vmatpush1.bf16.msra.mxu1 %v13060_v14  ;;  %7637 = vmatprep.subr.bf16.mxu0 %v13075_v15  ;;  %v13156_v14 = vcombine.low %v4512_v2, %v4520_v39  ;;  %v13171_v15 = vcombine.high %v4527_v10, %v4535_v12  ;;  %v4615_v63 = vld [vmem:[%s21341_s7 + $0x9d0] sm:$0xff]  ;;  %v4608_v2 = vld [vmem:[%s21341_s7 + $0x998] sm:$0xff] }
 0x792   :  { %7719 = vmatprep.subr.bf16.mxu1 %v13077_v1  ;;  %v13173_v1 = vcombine.high %v4528_v4, %v4536_v45  ;;  %v4616_v39 = vld [vmem:[%s21341_s7 + $0x9d8] sm:$0xff] }
 0x794   :  { %7638 = vmatpush1.bf16.msra.mxu0 %v13074_v57  ;;  %v13170_v57 = vcombine.low %v4527_v10, %v4535_v12  ;;  %v4623_v10 = vld [vmem:[%s21341_s7 + $0xa10] sm:$0xff] }
 0x795   :  { %7720 = vmatpush1.bf16.msra.mxu1 %v13076_v58  ;;  %7639 = vmatprep.subr.bf16.mxu0 %v13091_v59  ;;  %v13172_v58 = vcombine.low %v4528_v4, %v4536_v45  ;;  %v13187_v59 = vcombine.high %v4543_v16, %v4551_v11  ;;  %v4631_v12 = vld [vmem:[%s21341_s7 + $0xa50] sm:$0xff]  ;;  %v4624_v4 = vld [vmem:[%s21341_s7 + $0xa18] sm:$0xff] }
 0x796   :  { %7721 = vmatprep.subr.bf16.mxu1 %v13093_v22  ;;  %v13189_v22 = vcombine.high %v4544_v33, %v4552_v17  ;;  %v4632_v45 = vld [vmem:[%s21341_s7 + $0xa58] sm:$0xff] }
 0x798   :  { %7640 = vmatpush1.bf16.msra.mxu0 %v13090_v0  ;;  %v13186_v0 = vcombine.low %v4543_v16, %v4551_v11  ;;  %v4639_v16 = vld [vmem:[%s21341_s7 + $0xa90] sm:$0xff] }
 0x799   :  { %7722 = vmatpush1.bf16.msra.mxu1 %v13092_v28  ;;  %7641 = vmatprep.subr.bf16.mxu0 %v13107_v29  ;;  %v13188_v28 = vcombine.low %v4544_v33, %v4552_v17  ;;  %v13203_v29 = vcombine.high %v4559_v25, %v4567_v26  ;;  %v4647_v11 = vld [vmem:[%s21341_s7 + $0xad0] sm:$0xff]  ;;  %v4640_v33 = vld [vmem:[%s21341_s7 + $0xa98] sm:$0xff] }
 0x79a   :  { %7723 = vmatprep.subr.bf16.mxu1 %v13109_v30  ;;  %v13205_v30 = vcombine.high %v4560_v48, %v4568_v34  ;;  %v4648_v17 = vld [vmem:[%s21341_s7 + $0xad8] sm:$0xff]  ;;  %v4655_v25 = vld [vmem:[%s21341_s7 + $0xb10] sm:$0xff] }
 0x79b   :  { %v4663_v26 = vld [vmem:[%s21341_s7 + $0xb50] sm:$0xff] }
 0x79c   :  { %7642 = vmatpush1.bf16.msra.mxu0 %v13106_v19  ;;  %v4584_v19 = vld [vmem:[%s21341_s7 + $0x8d8] sm:$0xff] }
 0x79d   :  { %7724 = vmatpush1.bf16.msra.mxu1 %v13108_v41  ;;  %7643 = vmatprep.subr.bf16.mxu0 %v13123_v42  ;;  %v13204_v41 = vcombine.low %v4560_v48, %v4568_v34  ;;  %v13219_v42 = vcombine.high %v4575_v31, %v4583_v5  ;;  %v13221_v50 = vcombine.high %v4576_v38, %v4584_v19  ;;  %v4656_v48 = vld [vmem:[%s21341_s7 + $0xb18] sm:$0xff] }
 0x79e   :  { %7725 = vmatprep.subr.bf16.mxu1 %v13125_v44  ;;  %v4591_v44 = vld [vmem:[%s21341_s7 + $0x910] sm:$0xff]  ;;  %v4664_v34 = vld [vmem:[%s21341_s7 + $0xb58] sm:$0xff] }
 0x7a0   :  { %7644 = vmatpush1.bf16.msra.mxu0 %v13122_v60  ;;  %v13218_v60 = vcombine.low %v4575_v31, %v4583_v5  ;;  %v4671_v31 = vld [vmem:[%s21341_s7 + $0xb90] sm:$0xff] }
 0x7a1   :  { %7726 = vmatpush1.bf16.msra.mxu1 %v13124_v61  ;;  %7645 = vmatprep.subr.bf16.mxu0 %v13139_v62  ;;  %v13220_v61 = vcombine.low %v4576_v38, %v4584_v19  ;;  %v13235_v62 = vcombine.high %v4591_v44, %v4599_v49  ;;  %v4679_v5 = vld [vmem:[%s21341_s7 + $0xbd0] sm:$0xff]  ;;  %v4680_v38 = vld [vmem:[%s21341_s7 + $0xbd8] sm:$0xff]  ;;  %v13298_v19 = vcombine.low %v4655_v25, %v4663_v26 }
 0x7a2   :  { %7727 = vmatprep.subr.bf16.mxu1 %v13141_v52  ;;  %v13237_v52 = vcombine.high %v4592_v51, %v4600_v53 }
 0x7a4   :  { %7646 = vmatpush1.bf16.msra.mxu0 %v13138_v8  ;;  %v13234_v8 = vcombine.low %v4591_v44, %v4599_v49  ;;  %v4687_v49 = vld [vmem:[%s21341_s7 + $0xc10] sm:$0xff] }
 0x7a5   :  { %7728 = vmatpush1.bf16.msra.mxu1 %v13140_v6  ;;  %7647 = vmatprep.subr.bf16.mxu0 %v13155_v7  ;;  %v13236_v6 = vcombine.low %v4592_v51, %v4600_v53  ;;  %v13251_v7 = vcombine.high %v4607_v54, %v4615_v63  ;;  %v4688_v51 = vld [vmem:[%s21341_s7 + $0xc18] sm:$0xff] }
 0x7a6   :  { %7729 = vmatprep.subr.bf16.mxu1 %v13157_v9  ;;  %v13253_v9 = vcombine.high %v4608_v2, %v4616_v39  ;;  %v4696_v53 = vld [vmem:[%s21341_s7 + $0xc58] sm:$0xff] }
 0x7a8   :  { %7648 = vmatpush1.bf16.msra.mxu0 %v13154_v13  ;;  %v13250_v13 = vcombine.low %v4607_v54, %v4615_v63  ;;  %v4703_v54 = vld [vmem:[%s21341_s7 + $0xc90] sm:$0xff] }
 0x7a9   :  { %7730 = vmatpush1.bf16.msra.mxu1 %v13156_v14  ;;  %7649 = vmatprep.subr.bf16.mxu0 %v13171_v15  ;;  %v13252_v14 = vcombine.low %v4608_v2, %v4616_v39  ;;  %v13267_v15 = vcombine.high %v4623_v10, %v4631_v12  ;;  %v4711_v63 = vld [vmem:[%s21341_s7 + $0xcd0] sm:$0xff]  ;;  %v4704_v2 = vld [vmem:[%s21341_s7 + $0xc98] sm:$0xff] }
 0x7aa   :  { %7731 = vmatprep.subr.bf16.mxu1 %v13173_v1  ;;  %v13269_v1 = vcombine.high %v4624_v4, %v4632_v45  ;;  %v4712_v39 = vld [vmem:[%s21341_s7 + $0xcd8] sm:$0xff] }
 0x7ac   :  { %7650 = vmatpush1.bf16.msra.mxu0 %v13170_v57  ;;  %v13266_v57 = vcombine.low %v4623_v10, %v4631_v12  ;;  %v4719_v10 = vld [vmem:[%s21341_s7 + $0xd10] sm:$0xff] }
 0x7ad   :  { %7732 = vmatpush1.bf16.msra.mxu1 %v13172_v58  ;;  %7651 = vmatprep.subr.bf16.mxu0 %v13187_v59  ;;  %v13268_v58 = vcombine.low %v4624_v4, %v4632_v45  ;;  %v13283_v59 = vcombine.high %v4639_v16, %v4647_v11  ;;  %v4727_v12 = vld [vmem:[%s21341_s7 + $0xd50] sm:$0xff]  ;;  %v4720_v4 = vld [vmem:[%s21341_s7 + $0xd18] sm:$0xff] }
 0x7ae   :  { %7733 = vmatprep.subr.bf16.mxu1 %v13189_v22  ;;  %v13285_v22 = vcombine.high %v4640_v33, %v4648_v17  ;;  %v4728_v45 = vld [vmem:[%s21341_s7 + $0xd58] sm:$0xff] }
 0x7b0   :  { %7652 = vmatpush1.bf16.msra.mxu0 %v13186_v0  ;;  %v13282_v0 = vcombine.low %v4639_v16, %v4647_v11  ;;  %v4735_v16 = vld [vmem:[%s21341_s7 + $0xd90] sm:$0xff] }
 0x7b1   :  { %7734 = vmatpush1.bf16.msra.mxu1 %v13188_v28  ;;  %7662 = vmatprep.subr.bf16.mxu0 %v13203_v29  ;;  %v13284_v28 = vcombine.low %v4640_v33, %v4648_v17  ;;  %v13299_v29 = vcombine.high %v4655_v25, %v4663_v26  ;;  %v4743_v11 = vld [vmem:[%s21341_s7 + $0xdd0] sm:$0xff]  ;;  %v4736_v33 = vld [vmem:[%s21341_s7 + $0xd98] sm:$0xff] }
 0x7b2   :  { %7744 = vmatprep.subr.bf16.mxu1 %v13205_v30  ;;  %v13301_v30 = vcombine.high %v4656_v48, %v4664_v34  ;;  %v4744_v17 = vld [vmem:[%s21341_s7 + $0xdd8] sm:$0xff]  ;;  %v4751_v25 = vld [vmem:[%s21341_s7 + $0xe10] sm:$0xff] }
 0x7b3   :  { %7654 = vmatmul.mubr.bf16.vlgmr.msra.gmra.mrb[28].mxu0 %v17920_v24  ;;  %v4759_v26 = vld [vmem:[%s21341_s7 + $0xe50] sm:$0xff] }
 0x7b4   :  { %7736 = vmatmul.mubr.bf16.vlgmr.msra.gmra.mrb[28].mxu1 %v17920_v24  ;;  %7663 = vmatpush1.bf16.msra.mxu0 %v13202_v35  ;;  %v4672_v35 = vld [vmem:[%s21341_s7 + $0xb98] sm:$0xff] }
 0x7b5   :  { %7694 = vmatprep.mubr.bf16.mxu0 %v17940_v27  ;;  %7745 = vmatpush1.bf16.msra.mxu1 %v13204_v41  ;;  %v13300_v41 = vcombine.low %v4656_v48, %v4664_v34  ;;  %v13317_v44 = vcombine.high %v4672_v35, %v4680_v38  ;;  %v4752_v48 = vld [vmem:[%s21341_s7 + $0xe18] sm:$0xff] }
 0x7b6   :  { %7776 = vmatprep.mubr.bf16.mxu1 %v17940_v27  ;;  %7664 = vmatprep.subr.bf16.mxu0 %v13219_v42  ;;  %v13315_v42 = vcombine.high %v4671_v31, %v4679_v5  ;;  %v4760_v34 = vld [vmem:[%s21341_s7 + $0xe58] sm:$0xff] }
 0x7b7   :  { %7746 = vmatprep.subr.bf16.mxu1 %v13221_v50  ;;  %v4695_v50 = vld [vmem:[%s21341_s7 + $0xc50] sm:$0xff] }
 0x7b8   :  { %7665 = vmatpush1.bf16.msra.mxu0 %v13218_v60  ;;  %v13314_v60 = vcombine.low %v4671_v31, %v4679_v5  ;;  %v4767_v31 = vld [vmem:[%s21341_s7 + $0xe90] sm:$0xff] }
 0x7b9   :  { %7747 = vmatpush1.bf16.msra.mxu1 %v13220_v61  ;;  %7666 = vmatprep.subr.bf16.mxu0 %v13235_v62  ;;  %v13316_v61 = vcombine.low %v4672_v35, %v4680_v38  ;;  %v13331_v62 = vcombine.high %v4687_v49, %v4695_v50  ;;  %v4775_v5 = vld [vmem:[%s21341_s7 + $0xed0] sm:$0xff]  ;;  %v4768_v35 = vld [vmem:[%s21341_s7 + $0xe98] sm:$0xff] }
 0x7ba   :  { %7748 = vmatprep.subr.bf16.mxu1 %v13237_v52  ;;  %v13333_v52 = vcombine.high %v4688_v51, %v4696_v53  ;;  %v4776_v38 = vld [vmem:[%s21341_s7 + $0xed8] sm:$0xff] }
 0x7bc   :  { %7667 = vmatpush1.bf16.msra.mxu0 %v13234_v8  ;;  %v13330_v8 = vcombine.low %v4687_v49, %v4695_v50  ;;  %v4783_v49 = vld [vmem:[%s21341_s7 + $0xf10] sm:$0xff] }
 0x7bd   :  { %7749 = vmatpush1.bf16.msra.mxu1 %v13236_v6  ;;  %7668 = vmatprep.subr.bf16.mxu0 %v13251_v7  ;;  %v13332_v6 = vcombine.low %v4688_v51, %v4696_v53  ;;  %v13347_v7 = vcombine.high %v4703_v54, %v4711_v63  ;;  %v4791_v50 = vld [vmem:[%s21341_s7 + $0xf50] sm:$0xff]  ;;  %v4784_v51 = vld [vmem:[%s21341_s7 + $0xf18] sm:$0xff] }
 0x7be   :  { %7750 = vmatprep.subr.bf16.mxu1 %v13253_v9  ;;  %v13349_v9 = vcombine.high %v4704_v2, %v4712_v39  ;;  %v4792_v53 = vld [vmem:[%s21341_s7 + $0xf58] sm:$0xff] }
 0x7c0   :  { %7669 = vmatpush1.bf16.msra.mxu0 %v13250_v13  ;;  %v13346_v13 = vcombine.low %v4703_v54, %v4711_v63  ;;  %v4799_v54 = vld [vmem:[%s21341_s7 + $0xf90] sm:$0xff] }
 0x7c1   :  { %7751 = vmatpush1.bf16.msra.mxu1 %v13252_v14  ;;  %7670 = vmatprep.subr.bf16.mxu0 %v13267_v15  ;;  %v13348_v14 = vcombine.low %v4704_v2, %v4712_v39  ;;  %v13363_v15 = vcombine.high %v4719_v10, %v4727_v12  ;;  %v4807_v63 = vld [vmem:[%s21341_s7 + $0xfd0] sm:$0xff]  ;;  %v4800_v2 = vld [vmem:[%s21341_s7 + $0xf98] sm:$0xff] }
 0x7c2   :  { %7752 = vmatprep.subr.bf16.mxu1 %v13269_v1  ;;  %v13365_v1 = vcombine.high %v4720_v4, %v4728_v45  ;;  %v4808_v39 = vld [vmem:[%s21341_s7 + $0xfd8] sm:$0xff] }
 0x7c4   :  { %7671 = vmatpush1.bf16.msra.mxu0 %v13266_v57  ;;  %v13362_v57 = vcombine.low %v4719_v10, %v4727_v12  ;;  %v4305_v10 = vld [vmem:[%s21341_s7 + $0x20] sm:$0xff] }
 0x7c5   :  { %7753 = vmatpush1.bf16.msra.mxu1 %v13268_v58  ;;  %7672 = vmatprep.subr.bf16.mxu0 %v13283_v59  ;;  %v13364_v58 = vcombine.low %v4720_v4, %v4728_v45  ;;  %v13379_v59 = vcombine.high %v4735_v16, %v4743_v11  ;;  %v4313_v12 = vld [vmem:[%s21341_s7 + $0x60] sm:$0xff]  ;;  %v4306_v4 = vld [vmem:[%s21341_s7 + $0x28] sm:$0xff] }
 0x7c6   :  { %7754 = vmatprep.subr.bf16.mxu1 %v13285_v22  ;;  %v13381_v22 = vcombine.high %v4736_v33, %v4744_v17  ;;  %v4314_v45 = vld [vmem:[%s21341_s7 + $0x68] sm:$0xff] }
 0x7c8   :  { %7673 = vmatpush1.bf16.msra.mxu0 %v13282_v0  ;;  %v13378_v0 = vcombine.low %v4735_v16, %v4743_v11  ;;  %v4321_v16 = vld [vmem:[%s21341_s7 + $0xa0] sm:$0xff] }
 0x7c9   :  { %7755 = vmatpush1.bf16.msra.mxu1 %v13284_v28  ;;  %7674 = vmatprep.subr.bf16.mxu0 %v13299_v29  ;;  %v13380_v28 = vcombine.low %v4736_v33, %v4744_v17  ;;  %v13395_v29 = vcombine.high %v4751_v25, %v4759_v26  ;;  %v4329_v11 = vld [vmem:[%s21341_s7 + $0xe0] sm:$0xff]  ;;  %v12950_v33 = vcombine.low %v4305_v10, %v4313_v12  ;;  %v4322_v17 = vld [vmem:[%s21341_s7 + $0xa8] sm:$0xff] }
 0x7ca   :  { %7756 = vmatprep.subr.bf16.mxu1 %v13301_v30  ;;  %v13397_v30 = vcombine.high %v4752_v48, %v4760_v34 }
 0x7cc   :  { %7675 = vmatpush1.bf16.msra.mxu0 %v13298_v19  ;;  %v13394_v19 = vcombine.low %v4751_v25, %v4759_v26  ;;  %v4345_v25 = vld [vmem:[%s21341_s7 + $0x160] sm:$0xff] }
 0x7cd   :  { %7757 = vmatpush1.bf16.msra.mxu1 %v13300_v41  ;;  %7676 = vmatprep.subr.bf16.mxu0 %v13315_v42  ;;  %v13396_v41 = vcombine.low %v4752_v48, %v4760_v34  ;;  %v13411_v42 = vcombine.high %v4767_v31, %v4775_v5  ;;  %v4338_v48 = vld [vmem:[%s21341_s7 + $0x128] sm:$0xff] }
 0x7ce   :  { %7758 = vmatprep.subr.bf16.mxu1 %v13317_v44  ;;  %v13413_v44 = vcombine.high %v4768_v35, %v4776_v38  ;;  %v4346_v34 = vld [vmem:[%s21341_s7 + $0x168] sm:$0xff] }
 0x7d0   :  { %7677 = vmatpush1.bf16.msra.mxu0 %v13314_v60  ;;  %v13410_v60 = vcombine.low %v4767_v31, %v4775_v5  ;;  %v4353_v31 = vld [vmem:[%s21341_s7 + $0x1a0] sm:$0xff] }
 0x7d1   :  { %7759 = vmatpush1.bf16.msra.mxu1 %v13316_v61  ;;  %7678 = vmatprep.subr.bf16.mxu0 %v13331_v62  ;;  %v13412_v61 = vcombine.low %v4768_v35, %v4776_v38  ;;  %v13427_v62 = vcombine.high %v4783_v49, %v4791_v50  ;;  %v4361_v5 = vld [vmem:[%s21341_s7 + $0x1e0] sm:$0xff]  ;;  %v4354_v35 = vld [vmem:[%s21341_s7 + $0x1a8] sm:$0xff] }
 0x7d2   :  { %7760 = vmatprep.subr.bf16.mxu1 %v13333_v52  ;;  %v13429_v52 = vcombine.high %v4784_v51, %v4792_v53  ;;  %v4362_v38 = vld [vmem:[%s21341_s7 + $0x1e8] sm:$0xff] }
 0x7d4   :  { %7679 = vmatpush1.bf16.msra.mxu0 %v13330_v8  ;;  %v13426_v8 = vcombine.low %v4783_v49, %v4791_v50  ;;  %v4369_v49 = vld [vmem:[%s21341_s7 + $0x220] sm:$0xff] }
 0x7d5   :  { %7761 = vmatpush1.bf16.msra.mxu1 %v13332_v6  ;;  %7680 = vmatprep.subr.bf16.mxu0 %v13347_v7  ;;  %v13428_v6 = vcombine.low %v4784_v51, %v4792_v53  ;;  %v13443_v7 = vcombine.high %v4799_v54, %v4807_v63  ;;  %v4377_v50 = vld [vmem:[%s21341_s7 + $0x260] sm:$0xff]  ;;  %v4370_v51 = vld [vmem:[%s21341_s7 + $0x228] sm:$0xff] }
 0x7d6   :  { %7762 = vmatprep.subr.bf16.mxu1 %v13349_v9  ;;  %v13445_v9 = vcombine.high %v4800_v2, %v4808_v39  ;;  %v4378_v53 = vld [vmem:[%s21341_s7 + $0x268] sm:$0xff] }
 0x7d8   :  { %7681 = vmatpush1.bf16.msra.mxu0 %v13346_v13  ;;  %v13442_v13 = vcombine.low %v4799_v54, %v4807_v63  ;;  %v4385_v54 = vld [vmem:[%s21341_s7 + $0x2a0] sm:$0xff] }
 0x7d9   :  { %7763 = vmatpush1.bf16.msra.mxu1 %v13348_v14  ;;  %7682 = vmatprep.subr.bf16.mxu0 %v13363_v15  ;;  %v13444_v14 = vcombine.low %v4800_v2, %v4808_v39  ;;  %v12951_v15 = vcombine.high %v4305_v10, %v4313_v12  ;;  %v4393_v63 = vld [vmem:[%s21341_s7 + $0x2e0] sm:$0xff]  ;;  %v4386_v2 = vld [vmem:[%s21341_s7 + $0x2a8] sm:$0xff] }
 0x7da   :  { %7764 = vmatprep.subr.bf16.mxu1 %v13365_v1  ;;  %v12953_v1 = vcombine.high %v4306_v4, %v4314_v45  ;;  %v4394_v39 = vld [vmem:[%s21341_s7 + $0x2e8] sm:$0xff]  ;;  %v4401_v10 = vld [vmem:[%s21341_s7 + $0x320] sm:$0xff] }
 0x7db   :  { %v4409_v12 = vld [vmem:[%s21341_s7 + $0x360] sm:$0xff] }
 0x7dc   :  { %7683 = vmatpush1.bf16.msra.mxu0 %v13362_v57  ;;  %v4330_v57 = vld [vmem:[%s21341_s7 + $0xe8] sm:$0xff] }
 0x7dd   :  { %7765 = vmatpush1.bf16.msra.mxu1 %v13364_v58  ;;  %7684 = vmatprep.subr.bf16.mxu0 %v13379_v59  ;;  %v12952_v58 = vcombine.low %v4306_v4, %v4314_v45  ;;  %v12967_v59 = vcombine.high %v4321_v16, %v4329_v11  ;;  %v12969_v26 = vcombine.high %v4322_v17, %v4330_v57  ;;  %v4402_v4 = vld [vmem:[%s21341_s7 + $0x328] sm:$0xff] }
 0x7de   :  { %7766 = vmatprep.subr.bf16.mxu1 %v13381_v22  ;;  %v4337_v22 = vld [vmem:[%s21341_s7 + $0x120] sm:$0xff]  ;;  %v4410_v45 = vld [vmem:[%s21341_s7 + $0x368] sm:$0xff] }
 0x7e0   :  { %7685 = vmatpush1.bf16.msra.mxu0 %v13378_v0  ;;  %v12966_v0 = vcombine.low %v4321_v16, %v4329_v11  ;;  %v4417_v16 = vld [vmem:[%s21341_s7 + $0x3a0] sm:$0xff] }
 0x7e1   :  { %7767 = vmatpush1.bf16.msra.mxu1 %v13380_v28  ;;  %7686 = vmatprep.subr.bf16.mxu0 %v13395_v29  ;;  %v12968_v28 = vcombine.low %v4322_v17, %v4330_v57  ;;  %v12983_v29 = vcombine.high %v4337_v22, %v4345_v25  ;;  %v4425_v11 = vld [vmem:[%s21341_s7 + $0x3e0] sm:$0xff]  ;;  %v4426_v17 = vld [vmem:[%s21341_s7 + $0x3e8] sm:$0xff]  ;;  %v13046_v57 = vcombine.low %v4401_v10, %v4409_v12 }
 0x7e2   :  { %7768 = vmatprep.subr.bf16.mxu1 %v13397_v30  ;;  %v12985_v30 = vcombine.high %v4338_v48, %v4346_v34 }
 0x7e4   :  { %7687 = vmatpush1.bf16.msra.mxu0 %v13394_v19  ;;  %v12982_v19 = vcombine.low %v4337_v22, %v4345_v25  ;;  %v4433_v25 = vld [vmem:[%s21341_s7 + $0x420] sm:$0xff] }
 0x7e5   :  { %7769 = vmatpush1.bf16.msra.mxu1 %v13396_v41  ;;  %7688 = vmatprep.subr.bf16.mxu0 %v13411_v42  ;;  %v12984_v41 = vcombine.low %v4338_v48, %v4346_v34  ;;  %v12999_v42 = vcombine.high %v4353_v31, %v4361_v5  ;;  %v4434_v48 = vld [vmem:[%s21341_s7 + $0x428] sm:$0xff] }
 0x7e6   :  { %7770 = vmatprep.subr.bf16.mxu1 %v13413_v44  ;;  %v13001_v44 = vcombine.high %v4354_v35, %v4362_v38  ;;  %v4442_v34 = vld [vmem:[%s21341_s7 + $0x468] sm:$0xff] }
 0x7e8   :  { %7689 = vmatpush1.bf16.msra.mxu0 %v13410_v60  ;;  %v12998_v60 = vcombine.low %v4353_v31, %v4361_v5  ;;  %v4449_v31 = vld [vmem:[%s21341_s7 + $0x4a0] sm:$0xff] }
 0x7e9   :  { %7771 = vmatpush1.bf16.msra.mxu1 %v13412_v61  ;;  %7690 = vmatprep.subr.bf16.mxu0 %v13427_v62  ;;  %v13000_v61 = vcombine.low %v4354_v35, %v4362_v38  ;;  %v13015_v62 = vcombine.high %v4369_v49, %v4377_v50  ;;  %v4457_v5 = vld [vmem:[%s21341_s7 + $0x4e0] sm:$0xff]  ;;  %v4450_v35 = vld [vmem:[%s21341_s7 + $0x4a8] sm:$0xff] }
 0x7ea   :  { %7772 = vmatprep.subr.bf16.mxu1 %v13429_v52  ;;  %v13017_v52 = vcombine.high %v4370_v51, %v4378_v53  ;;  %v4458_v38 = vld [vmem:[%s21341_s7 + $0x4e8] sm:$0xff] }
 0x7ec   :  { %7691 = vmatpush1.bf16.msra.mxu0 %v13426_v8  ;;  %v13014_v8 = vcombine.low %v4369_v49, %v4377_v50  ;;  %v4465_v49 = vld [vmem:[%s21341_s7 + $0x520] sm:$0xff] }
 0x7ed   :  { %7773 = vmatpush1.bf16.msra.mxu1 %v13428_v6  ;;  %7692 = vmatprep.subr.bf16.mxu0 %v13443_v7  ;;  %v13016_v6 = vcombine.low %v4370_v51, %v4378_v53  ;;  %v13031_v7 = vcombine.high %v4385_v54, %v4393_v63  ;;  %v4473_v50 = vld [vmem:[%s21341_s7 + $0x560] sm:$0xff]  ;;  %v4466_v51 = vld [vmem:[%s21341_s7 + $0x528] sm:$0xff] }
 0x7ee   :  { %7774 = vmatprep.subr.bf16.mxu1 %v13445_v9  ;;  %v13033_v9 = vcombine.high %v4386_v2, %v4394_v39  ;;  %v4474_v53 = vld [vmem:[%s21341_s7 + $0x568] sm:$0xff] }
 0x7f0   :  { %7693 = vmatpush1.bf16.msra.mxu0 %v13442_v13  ;;  %v13030_v13 = vcombine.low %v4385_v54, %v4393_v63  ;;  %v4481_v54 = vld [vmem:[%s21341_s7 + $0x5a0] sm:$0xff] }
 0x7f1   :  { %7775 = vmatpush1.bf16.msra.mxu1 %v13444_v14  ;;  %7785 = vmatprep.subr.bf16.mxu0 %v12951_v15  ;;  %v13032_v14 = vcombine.low %v4386_v2, %v4394_v39  ;;  %v13047_v15 = vcombine.high %v4401_v10, %v4409_v12  ;;  %v4489_v63 = vld [vmem:[%s21341_s7 + $0x5e0] sm:$0xff]  ;;  %v4482_v2 = vld [vmem:[%s21341_s7 + $0x5a8] sm:$0xff] }
 0x7f2   :  { %7867 = vmatprep.subr.bf16.mxu1 %v12953_v1  ;;  %v13049_v1 = vcombine.high %v4402_v4, %v4410_v45  ;;  %v4490_v39 = vld [vmem:[%s21341_s7 + $0x5e8] sm:$0xff]  ;;  %v4497_v10 = vld [vmem:[%s21341_s7 + $0x620] sm:$0xff] }
 0x7f3   :  { %7695 = vmatmul.mubr.bf16.vlgmr.msra.gmra.mrb[28].mxu0 %v18126_v3  ;;  %v4505_v12 = vld [vmem:[%s21341_s7 + $0x660] sm:$0xff] }
 0x7f4   :  { %7777 = vmatmul.mubr.bf16.vlgmr.msra.gmra.mrb[28].mxu1 %v18126_v3  ;;  %7786 = vmatpush1.bf16.msra.mxu0 %v12950_v33  ;;  %v4418_v33 = vld [vmem:[%s21341_s7 + $0x3a8] sm:$0xff] }
 0x7f5   :  { %7817 = vmatprep.mubr.bf16.mxu0 %v17916_v23  ;;  %7868 = vmatpush1.bf16.msra.mxu1 %v12952_v58  ;;  %v13048_v58 = vcombine.low %v4402_v4, %v4410_v45  ;;  %v13065_v22 = vcombine.high %v4418_v33, %v4426_v17  ;;  %v4498_v4 = vld [vmem:[%s21341_s7 + $0x628] sm:$0xff] }
 0x7f6   :  { %7899 = vmatprep.mubr.bf16.mxu1 %v17916_v23  ;;  %7787 = vmatprep.subr.bf16.mxu0 %v12967_v59  ;;  %v13063_v59 = vcombine.high %v4417_v16, %v4425_v11  ;;  %v4506_v45 = vld [vmem:[%s21341_s7 + $0x668] sm:$0xff] }
 0x7f7   :  { %7869 = vmatprep.subr.bf16.mxu1 %v12969_v26  ;;  %v4441_v26 = vld [vmem:[%s21341_s7 + $0x460] sm:$0xff] }
 0x7f8   :  { %7788 = vmatpush1.bf16.msra.mxu0 %v12966_v0  ;;  %v13062_v0 = vcombine.low %v4417_v16, %v4425_v11  ;;  %v4513_v16 = vld [vmem:[%s21341_s7 + $0x6a0] sm:$0xff] }
 0x7f9   :  { %7870 = vmatpush1.bf16.msra.mxu1 %v12968_v28  ;;  %7789 = vmatprep.subr.bf16.mxu0 %v12983_v29  ;;  %v13064_v28 = vcombine.low %v4418_v33, %v4426_v17  ;;  %v13079_v29 = vcombine.high %v4433_v25, %v4441_v26  ;;  %v4521_v11 = vld [vmem:[%s21341_s7 + $0x6e0] sm:$0xff]  ;;  %v4514_v33 = vld [vmem:[%s21341_s7 + $0x6a8] sm:$0xff] }
 0x7fa   :  { %7871 = vmatprep.subr.bf16.mxu1 %v12985_v30  ;;  %v13081_v30 = vcombine.high %v4434_v48, %v4442_v34  ;;  %v4522_v17 = vld [vmem:[%s21341_s7 + $0x6e8] sm:$0xff] }
 0x7fc   :  { %7790 = vmatpush1.bf16.msra.mxu0 %v12982_v19  ;;  %v13078_v19 = vcombine.low %v4433_v25, %v4441_v26  ;;  %v4529_v25 = vld [vmem:[%s21341_s7 + $0x720] sm:$0xff] }
 0x7fd   :  { %7872 = vmatpush1.bf16.msra.mxu1 %v12984_v41  ;;  %7791 = vmatprep.subr.bf16.mxu0 %v12999_v42  ;;  %v13080_v41 = vcombine.low %v4434_v48, %v4442_v34  ;;  %v13095_v42 = vcombine.high %v4449_v31, %v4457_v5  ;;  %v4537_v26 = vld [vmem:[%s21341_s7 + $0x760] sm:$0xff]  ;;  %v4530_v48 = vld [vmem:[%s21341_s7 + $0x728] sm:$0xff] }
 0x7fe   :  { %7873 = vmatprep.subr.bf16.mxu1 %v13001_v44  ;;  %v13097_v44 = vcombine.high %v4450_v35, %v4458_v38  ;;  %v4538_v34 = vld [vmem:[%s21341_s7 + $0x768] sm:$0xff] }
 0x800   :  { %7792 = vmatpush1.bf16.msra.mxu0 %v12998_v60  ;;  %v13094_v60 = vcombine.low %v4449_v31, %v4457_v5  ;;  %v4545_v31 = vld [vmem:[%s21341_s7 + $0x7a0] sm:$0xff] }
 0x801   :  { %7874 = vmatpush1.bf16.msra.mxu1 %v13000_v61  ;;  %7793 = vmatprep.subr.bf16.mxu0 %v13015_v62  ;;  %v13096_v61 = vcombine.low %v4450_v35, %v4458_v38  ;;  %v13111_v62 = vcombine.high %v4465_v49, %v4473_v50  ;;  %v4553_v5 = vld [vmem:[%s21341_s7 + $0x7e0] sm:$0xff]  ;;  %v4546_v35 = vld [vmem:[%s21341_s7 + $0x7a8] sm:$0xff] }
 0x802   :  { %7875 = vmatprep.subr.bf16.mxu1 %v13017_v52  ;;  %v13113_v52 = vcombine.high %v4466_v51, %v4474_v53  ;;  %v4554_v38 = vld [vmem:[%s21341_s7 + $0x7e8] sm:$0xff] }
 0x804   :  { %7794 = vmatpush1.bf16.msra.mxu0 %v13014_v8  ;;  %v13110_v8 = vcombine.low %v4465_v49, %v4473_v50  ;;  %v4561_v49 = vld [vmem:[%s21341_s7 + $0x820] sm:$0xff] }
 0x805   :  { %7876 = vmatpush1.bf16.msra.mxu1 %v13016_v6  ;;  %7795 = vmatprep.subr.bf16.mxu0 %v13031_v7  ;;  %v13112_v6 = vcombine.low %v4466_v51, %v4474_v53  ;;  %v13127_v7 = vcombine.high %v4481_v54, %v4489_v63  ;;  %v4569_v50 = vld [vmem:[%s21341_s7 + $0x860] sm:$0xff]  ;;  %v4562_v51 = vld [vmem:[%s21341_s7 + $0x828] sm:$0xff] }
 0x806   :  { %7877 = vmatprep.subr.bf16.mxu1 %v13033_v9  ;;  %v13129_v9 = vcombine.high %v4482_v2, %v4490_v39  ;;  %v4570_v53 = vld [vmem:[%s21341_s7 + $0x868] sm:$0xff] }
 0x808   :  { %7796 = vmatpush1.bf16.msra.mxu0 %v13030_v13  ;;  %v13126_v13 = vcombine.low %v4481_v54, %v4489_v63  ;;  %v4577_v54 = vld [vmem:[%s21341_s7 + $0x8a0] sm:$0xff] }
 0x809   :  { %7878 = vmatpush1.bf16.msra.mxu1 %v13032_v14  ;;  %7797 = vmatprep.subr.bf16.mxu0 %v13047_v15  ;;  %v13128_v14 = vcombine.low %v4482_v2, %v4490_v39  ;;  %v13143_v15 = vcombine.high %v4497_v10, %v4505_v12  ;;  %v4585_v63 = vld [vmem:[%s21341_s7 + $0x8e0] sm:$0xff]  ;;  %v13206_v2 = vcombine.low %v4561_v49, %v4569_v50  ;;  %v4578_v39 = vld [vmem:[%s21341_s7 + $0x8a8] sm:$0xff] }
 0x80a   :  { %7879 = vmatprep.subr.bf16.mxu1 %v13049_v1  ;;  %v13145_v1 = vcombine.high %v4498_v4, %v4506_v45 }
 0x80c   :  { %7798 = vmatpush1.bf16.msra.mxu0 %v13046_v57  ;;  %v13142_v57 = vcombine.low %v4497_v10, %v4505_v12  ;;  %v4601_v10 = vld [vmem:[%s21341_s7 + $0x960] sm:$0xff] }
 0x80d   :  { %7880 = vmatpush1.bf16.msra.mxu1 %v13048_v58  ;;  %7799 = vmatprep.subr.bf16.mxu0 %v13063_v59  ;;  %v13144_v58 = vcombine.low %v4498_v4, %v4506_v45  ;;  %v13159_v59 = vcombine.high %v4513_v16, %v4521_v11  ;;  %v4594_v4 = vld [vmem:[%s21341_s7 + $0x928] sm:$0xff] }
 0x80e   :  { %7881 = vmatprep.subr.bf16.mxu1 %v13065_v22  ;;  %v13161_v22 = vcombine.high %v4514_v33, %v4522_v17  ;;  %v4602_v45 = vld [vmem:[%s21341_s7 + $0x968] sm:$0xff] }
 0x810   :  { %7800 = vmatpush1.bf16.msra.mxu0 %v13062_v0  ;;  %v13158_v0 = vcombine.low %v4513_v16, %v4521_v11  ;;  %v4609_v16 = vld [vmem:[%s21341_s7 + $0x9a0] sm:$0xff] }
 0x811   :  { %7882 = vmatpush1.bf16.msra.mxu1 %v13064_v28  ;;  %7801 = vmatprep.subr.bf16.mxu0 %v13079_v29  ;;  %v13160_v28 = vcombine.low %v4514_v33, %v4522_v17  ;;  %v13175_v29 = vcombine.high %v4529_v25, %v4537_v26  ;;  %v4617_v11 = vld [vmem:[%s21341_s7 + $0x9e0] sm:$0xff]  ;;  %v4610_v33 = vld [vmem:[%s21341_s7 + $0x9a8] sm:$0xff] }
 0x812   :  { %7883 = vmatprep.subr.bf16.mxu1 %v13081_v30  ;;  %v13177_v30 = vcombine.high %v4530_v48, %v4538_v34  ;;  %v4618_v17 = vld [vmem:[%s21341_s7 + $0x9e8] sm:$0xff] }
 0x814   :  { %7802 = vmatpush1.bf16.msra.mxu0 %v13078_v19  ;;  %v13174_v19 = vcombine.low %v4529_v25, %v4537_v26  ;;  %v4625_v25 = vld [vmem:[%s21341_s7 + $0xa20] sm:$0xff] }
 0x815   :  { %7884 = vmatpush1.bf16.msra.mxu1 %v13080_v41  ;;  %7803 = vmatprep.subr.bf16.mxu0 %v13095_v42  ;;  %v13176_v41 = vcombine.low %v4530_v48, %v4538_v34  ;;  %v13191_v42 = vcombine.high %v4545_v31, %v4553_v5  ;;  %v4633_v26 = vld [vmem:[%s21341_s7 + $0xa60] sm:$0xff]  ;;  %v4626_v48 = vld [vmem:[%s21341_s7 + $0xa28] sm:$0xff] }
 0x816   :  { %7885 = vmatprep.subr.bf16.mxu1 %v13097_v44  ;;  %v13193_v44 = vcombine.high %v4546_v35, %v4554_v38  ;;  %v4634_v34 = vld [vmem:[%s21341_s7 + $0xa68] sm:$0xff] }
 0x818   :  { %7804 = vmatpush1.bf16.msra.mxu0 %v13094_v60  ;;  %v13190_v60 = vcombine.low %v4545_v31, %v4553_v5  ;;  %v4641_v31 = vld [vmem:[%s21341_s7 + $0xaa0] sm:$0xff] }
 0x819   :  { %7886 = vmatpush1.bf16.msra.mxu1 %v13096_v61  ;;  %7805 = vmatprep.subr.bf16.mxu0 %v13111_v62  ;;  %v13192_v61 = vcombine.low %v4546_v35, %v4554_v38  ;;  %v13207_v62 = vcombine.high %v4561_v49, %v4569_v50  ;;  %v4649_v5 = vld [vmem:[%s21341_s7 + $0xae0] sm:$0xff]  ;;  %v4642_v35 = vld [vmem:[%s21341_s7 + $0xaa8] sm:$0xff] }
 0x81a   :  { %7887 = vmatprep.subr.bf16.mxu1 %v13113_v52  ;;  %v13209_v52 = vcombine.high %v4562_v51, %v4570_v53  ;;  %v4650_v38 = vld [vmem:[%s21341_s7 + $0xae8] sm:$0xff]  ;;  %v4657_v49 = vld [vmem:[%s21341_s7 + $0xb20] sm:$0xff] }
 0x81b   :  { %v4665_v50 = vld [vmem:[%s21341_s7 + $0xb60] sm:$0xff] }
 0x81c   :  { %7806 = vmatpush1.bf16.msra.mxu0 %v13110_v8  ;;  %v4586_v8 = vld [vmem:[%s21341_s7 + $0x8e8] sm:$0xff] }
 0x81d   :  { %7888 = vmatpush1.bf16.msra.mxu1 %v13112_v6  ;;  %7807 = vmatprep.subr.bf16.mxu0 %v13127_v7  ;;  %v13208_v6 = vcombine.low %v4562_v51, %v4570_v53  ;;  %v13223_v7 = vcombine.high %v4577_v54, %v4585_v63  ;;  %v13225_v12 = vcombine.high %v4578_v39, %v4586_v8  ;;  %v4658_v51 = vld [vmem:[%s21341_s7 + $0xb28] sm:$0xff] }
 0x81e   :  { %7889 = vmatprep.subr.bf16.mxu1 %v13129_v9  ;;  %v4593_v9 = vld [vmem:[%s21341_s7 + $0x920] sm:$0xff]  ;;  %v4666_v53 = vld [vmem:[%s21341_s7 + $0xb68] sm:$0xff] }
 0x820   :  { %7808 = vmatpush1.bf16.msra.mxu0 %v13126_v13  ;;  %v13222_v13 = vcombine.low %v4577_v54, %v4585_v63  ;;  %v13305_v63 = vcombine.high %v4658_v51, %v4666_v53 }
 0x821   :  { %7890 = vmatpush1.bf16.msra.mxu1 %v13128_v14  ;;  %7809 = vmatprep.subr.bf16.mxu0 %v13143_v15  ;;  %v13224_v14 = vcombine.low %v4578_v39, %v4586_v8  ;;  %v13239_v15 = vcombine.high %v4593_v9, %v4601_v10  ;;  %v4681_v39 = vld [vmem:[%s21341_s7 + $0xbe0] sm:$0xff] }
 0x822   :  { %7891 = vmatprep.subr.bf16.mxu1 %v13145_v1  ;;  %v13241_v1 = vcombine.high %v4594_v4, %v4602_v45 }
 0x824   :  { %7810 = vmatpush1.bf16.msra.mxu0 %v13142_v57  ;;  %v13238_v57 = vcombine.low %v4593_v9, %v4601_v10  ;;  %v4682_v9 = vld [vmem:[%s21341_s7 + $0xbe8] sm:$0xff] }
 0x825   :  { %7892 = vmatpush1.bf16.msra.mxu1 %v13144_v58  ;;  %7811 = vmatprep.subr.bf16.mxu0 %v13159_v59  ;;  %v13240_v58 = vcombine.low %v4594_v4, %v4602_v45  ;;  %v13255_v59 = vcombine.high %v4609_v16, %v4617_v11  ;;  %v13302_v4 = vcombine.low %v4657_v49, %v4665_v50 }
 0x826   :  { %7893 = vmatprep.subr.bf16.mxu1 %v13161_v22  ;;  %v13257_v22 = vcombine.high %v4610_v33, %v4618_v17 }
 0x828   :  { %7812 = vmatpush1.bf16.msra.mxu0 %v13158_v0  ;;  %v13254_v0 = vcombine.low %v4609_v16, %v4617_v11  ;;  %v4689_v16 = vld [vmem:[%s21341_s7 + $0xc20] sm:$0xff] }
 0x829   :  { %7894 = vmatpush1.bf16.msra.mxu1 %v13160_v28  ;;  %7813 = vmatprep.subr.bf16.mxu0 %v13175_v29  ;;  %v13256_v28 = vcombine.low %v4610_v33, %v4618_v17  ;;  %v13271_v29 = vcombine.high %v4625_v25, %v4633_v26  ;;  %v4697_v11 = vld [vmem:[%s21341_s7 + $0xc60] sm:$0xff]  ;;  %v4690_v33 = vld [vmem:[%s21341_s7 + $0xc28] sm:$0xff] }
 0x82a   :  { %7895 = vmatprep.subr.bf16.mxu1 %v13177_v30  ;;  %v13273_v30 = vcombine.high %v4626_v48, %v4634_v34  ;;  %v4698_v17 = vld [vmem:[%s21341_s7 + $0xc68] sm:$0xff] }
 0x82c   :  { %7814 = vmatpush1.bf16.msra.mxu0 %v13174_v19  ;;  %v13270_v19 = vcombine.low %v4625_v25, %v4633_v26  ;;  %v4705_v25 = vld [vmem:[%s21341_s7 + $0xca0] sm:$0xff] }
 0x82d   :  { %7896 = vmatpush1.bf16.msra.mxu1 %v13176_v41  ;;  %7815 = vmatprep.subr.bf16.mxu0 %v13191_v42  ;;  %v13272_v41 = vcombine.low %v4626_v48, %v4634_v34  ;;  %v13287_v42 = vcombine.high %v4641_v31, %v4649_v5  ;;  %v4713_v26 = vld [vmem:[%s21341_s7 + $0xce0] sm:$0xff]  ;;  %v4706_v48 = vld [vmem:[%s21341_s7 + $0xca8] sm:$0xff] }
 0x82e   :  { %7897 = vmatprep.subr.bf16.mxu1 %v13193_v44  ;;  %v13289_v44 = vcombine.high %v4642_v35, %v4650_v38  ;;  %v4714_v34 = vld [vmem:[%s21341_s7 + $0xce8] sm:$0xff] }
 0x830   :  { %7816 = vmatpush1.bf16.msra.mxu0 %v13190_v60  ;;  %v13286_v60 = vcombine.low %v4641_v31, %v4649_v5  ;;  %v4721_v31 = vld [vmem:[%s21341_s7 + $0xd20] sm:$0xff] }
 0x831   :  { %7898 = vmatpush1.bf16.msra.mxu1 %v13192_v61  ;;  %7826 = vmatprep.subr.bf16.mxu0 %v13207_v62  ;;  %v13288_v61 = vcombine.low %v4642_v35, %v4650_v38  ;;  %v13303_v62 = vcombine.high %v4657_v49, %v4665_v50  ;;  %v4729_v5 = vld [vmem:[%s21341_s7 + $0xd60] sm:$0xff]  ;;  %v4722_v35 = vld [vmem:[%s21341_s7 + $0xd28] sm:$0xff] }
 0x832   :  { %7908 = vmatprep.subr.bf16.mxu1 %v13209_v52  ;;  %v4730_v38 = vld [vmem:[%s21341_s7 + $0xd68] sm:$0xff]  ;;  %v4737_v49 = vld [vmem:[%s21341_s7 + $0xda0] sm:$0xff] }
 0x833   :  { %7818 = vmatmul.mubr.bf16.vlgmr.msra.gmra.mrb[32].mxu0 %v17920_v24  ;;  %v4745_v50 = vld [vmem:[%s21341_s7 + $0xde0] sm:$0xff] }
 0x834   :  { %7900 = vmatmul.mubr.bf16.vlgmr.msra.gmra.mrb[32].mxu1 %v17920_v24  ;;  %7827 = vmatpush1.bf16.msra.mxu0 %v13206_v2  ;;  %v4673_v2 = vld [vmem:[%s21341_s7 + $0xba0] sm:$0xff] }
 0x835   :  { %7858 = vmatprep.mubr.bf16.mxu0 %v17940_v27  ;;  %7909 = vmatpush1.bf16.msra.mxu1 %v13208_v6 }
 0x836   :  { %7940 = vmatprep.mubr.bf16.mxu1 %v17940_v27  ;;  %7828 = vmatprep.subr.bf16.mxu0 %v13223_v7  ;;  %v4674_v7 = vld [vmem:[%s21341_s7 + $0xba8] sm:$0xff] }
 0x837   :  { %7910 = vmatprep.subr.bf16.mxu1 %v13225_v12 }
 0x838   :  { %7829 = vmatpush1.bf16.msra.mxu0 %v13222_v13 }
 0x839   :  { %7911 = vmatpush1.bf16.msra.mxu1 %v13224_v14  ;;  %7830 = vmatprep.subr.bf16.mxu0 %v13239_v15  ;;  %v13304_v14 = vcombine.low %v4658_v51, %v4666_v53  ;;  %v13319_v15 = vcombine.high %v4673_v2, %v4681_v39  ;;  %v4738_v51 = vld [vmem:[%s21341_s7 + $0xda8] sm:$0xff] }
 0x83a   :  { %7912 = vmatprep.subr.bf16.mxu1 %v13241_v1  ;;  %v13321_v1 = vcombine.high %v4674_v7, %v4682_v9  ;;  %v4746_v53 = vld [vmem:[%s21341_s7 + $0xde8] sm:$0xff] }
 0x83c   :  { %7831 = vmatpush1.bf16.msra.mxu0 %v13238_v57  ;;  %v13318_v57 = vcombine.low %v4673_v2, %v4681_v39  ;;  %v4753_v2 = vld [vmem:[%s21341_s7 + $0xe20] sm:$0xff] }
 0x83d   :  { %7913 = vmatpush1.bf16.msra.mxu1 %v13240_v58  ;;  %7832 = vmatprep.subr.bf16.mxu0 %v13255_v59  ;;  %v13320_v58 = vcombine.low %v4674_v7, %v4682_v9  ;;  %v13335_v59 = vcombine.high %v4689_v16, %v4697_v11  ;;  %v4761_v39 = vld [vmem:[%s21341_s7 + $0xe60] sm:$0xff]  ;;  %v4754_v7 = vld [vmem:[%s21341_s7 + $0xe28] sm:$0xff] }
 0x83e   :  { %7914 = vmatprep.subr.bf16.mxu1 %v13257_v22  ;;  %v13337_v22 = vcombine.high %v4690_v33, %v4698_v17  ;;  %v4762_v9 = vld [vmem:[%s21341_s7 + $0xe68] sm:$0xff] }
 0x840   :  { %7833 = vmatpush1.bf16.msra.mxu0 %v13254_v0  ;;  %v13334_v0 = vcombine.low %v4689_v16, %v4697_v11  ;;  %v13398_v16 = vcombine.low %v4753_v2, %v4761_v39  ;;  %v13400_v11 = vcombine.low %v4754_v7, %v4762_v9 }
 0x841   :  { %7915 = vmatpush1.bf16.msra.mxu1 %v13256_v28  ;;  %7834 = vmatprep.subr.bf16.mxu0 %v13271_v29  ;;  %v13336_v28 = vcombine.low %v4690_v33, %v4698_v17  ;;  %v13351_v29 = vcombine.high %v4705_v25, %v4713_v26 }
 0x842   :  { %7916 = vmatprep.subr.bf16.mxu1 %v13273_v30  ;;  %v13353_v30 = vcombine.high %v4706_v48, %v4714_v34 }
 0x844   :  { %7835 = vmatpush1.bf16.msra.mxu0 %v13270_v19  ;;  %v13350_v19 = vcombine.low %v4705_v25, %v4713_v26 }
 0x845   :  { %7917 = vmatpush1.bf16.msra.mxu1 %v13272_v41  ;;  %7836 = vmatprep.subr.bf16.mxu0 %v13287_v42  ;;  %v13352_v41 = vcombine.low %v4706_v48, %v4714_v34  ;;  %v13367_v42 = vcombine.high %v4721_v31, %v4729_v5 }
 0x846   :  { %v18780_v52 = vpop.f32.mrb[24].mxu0  ;;  %v18782_v54 = vpop.f32.mrb[24].mxu1  ;;  %7918 = vmatprep.subr.bf16.mxu1 %v13289_v44  ;;  %v13369_v44 = vcombine.high %v4722_v35, %v4730_v38 }
 0x847   :  { %v18790_v8 = vpop.f32.mrb[25].mxu0  ;;  %v18792_v6 = vpop.f32.mrb[25].mxu1 }
 0x848   :  { %v7536_v10 = vpop.f32.mrb[26].mxu0  ;;  %v7618_v12 = vpop.f32.mrb[26].mxu1  ;;  %7837 = vmatpush1.bf16.msra.mxu0 %v13286_v60  ;;  %v13366_v60 = vcombine.low %v4721_v31, %v4729_v5 }
 0x849   :  { %7919 = vmatpush1.bf16.msra.mxu1 %v13288_v61  ;;  %v7537_v45 = vpop.f32.mrb[27].mxu0  ;;  %v7619_v13 = vpop.f32.mrb[27].mxu1  ;;  %7838 = vmatprep.subr.bf16.mxu0 %v13303_v62  ;;  %v13368_v61 = vcombine.low %v4722_v35, %v4730_v38  ;;  %v13383_v62 = vcombine.high %v4737_v49, %v4745_v50  ;;  %v13382_v10 = vcombine.low %v4737_v49, %v4745_v50 }
 0x84a   :  { %7920 = vmatprep.subr.bf16.mxu1 %v13305_v63  ;;  %v13385_v63 = vcombine.high %v4738_v51, %v4746_v53  ;;  %v13384_v12 = vcombine.low %v4738_v51, %v4746_v53  ;;  %v13401_v45 = vcombine.high %v4754_v7, %v4762_v9  ;;  %v4769_v13 = vld [vmem:[%s21341_s7 + $0xea0] sm:$0xff]  ;;  %v4339_v9 = vld [vmem:[%s21341_s7 + $0x130] sm:$0xff] }
 0x84c   :  { %7839 = vmatpush1.bf16.msra.mxu0 %v13302_v4  ;;  %v13399_v4 = vcombine.high %v4753_v2, %v4761_v39  ;;  %v4332_v2 = vld [vmem:[%s21341_s7 + $0xf8] sm:$0xff] }
 0x84d   :  { %7921 = vmatpush1.bf16.msra.mxu1 %v13304_v14  ;;  %7840 = vmatprep.subr.bf16.mxu0 %v13319_v15  ;;  %v4777_v14 = vld [vmem:[%s21341_s7 + $0xee0] sm:$0xff]  ;;  %v4770_v15 = vld [vmem:[%s21341_s7 + $0xea8] sm:$0xff] }
 0x84e   :  { %7922 = vmatprep.subr.bf16.mxu1 %v13321_v1  ;;  %v4778_v1 = vld [vmem:[%s21341_s7 + $0xee8] sm:$0xff]  ;;  %v13415_v33 = vcombine.high %v4769_v13, %v4777_v14  ;;  %v13414_v25 = vcombine.low %v4769_v13, %v4777_v14 }
 0x84f   :  { %v13417_v17 = vcombine.high %v4770_v15, %v4778_v1  ;;  %v13416_v26 = vcombine.low %v4770_v15, %v4778_v1 }
 0x850   :  { %7841 = vmatpush1.bf16.msra.mxu0 %v13318_v57  ;;  %v4785_v57 = vld [vmem:[%s21341_s7 + $0xf20] sm:$0xff] }
 0x851   :  { %7923 = vmatpush1.bf16.msra.mxu1 %v13320_v58  ;;  %7842 = vmatprep.subr.bf16.mxu0 %v13335_v59  ;;  %v4793_v58 = vld [vmem:[%s21341_s7 + $0xf60] sm:$0xff]  ;;  %v4786_v59 = vld [vmem:[%s21341_s7 + $0xf28] sm:$0xff] }
 0x852   :  { %7924 = vmatprep.subr.bf16.mxu1 %v13337_v22  ;;  %v4794_v22 = vld [vmem:[%s21341_s7 + $0xf68] sm:$0xff]  ;;  %v13431_v48 = vcombine.high %v4785_v57, %v4793_v58  ;;  %v13430_v31 = vcombine.low %v4785_v57, %v4793_v58 }
 0x853   :  { %v13433_v34 = vcombine.high %v4786_v59, %v4794_v22  ;;  %v13432_v5 = vcombine.low %v4786_v59, %v4794_v22  ;;  %v4371_v22 = vld [vmem:[%s21341_s7 + $0x230] sm:$0xff] }
 0x854   :  { %7843 = vmatpush1.bf16.msra.mxu0 %v13334_v0  ;;  %v4801_v0 = vld [vmem:[%s21341_s7 + $0xfa0] sm:$0xff] }
 0x855   :  { %7925 = vmatpush1.bf16.msra.mxu1 %v13336_v28  ;;  %7844 = vmatprep.subr.bf16.mxu0 %v13351_v29  ;;  %v4809_v28 = vld [vmem:[%s21341_s7 + $0xfe0] sm:$0xff]  ;;  %v4802_v29 = vld [vmem:[%s21341_s7 + $0xfa8] sm:$0xff] }
 0x856   :  { %7926 = vmatprep.subr.bf16.mxu1 %v13353_v30  ;;  %v4810_v30 = vld [vmem:[%s21341_s7 + $0xfe8] sm:$0xff]  ;;  %v13447_v35 = vcombine.high %v4801_v0, %v4809_v28  ;;  %v13446_v49 = vcombine.low %v4801_v0, %v4809_v28 }
 0x857   :  { %v13449_v38 = vcombine.high %v4802_v29, %v4810_v30  ;;  %v13448_v50 = vcombine.low %v4802_v29, %v4810_v30  ;;  %v4387_v30 = vld [vmem:[%s21341_s7 + $0x2b0] sm:$0xff] }
 0x858   :  { %7845 = vmatpush1.bf16.msra.mxu0 %v13350_v19  ;;  %v4307_v19 = vld [vmem:[%s21341_s7 + $0x30] sm:$0xff] }
 0x859   :  { %7927 = vmatpush1.bf16.msra.mxu1 %v13352_v41  ;;  %7846 = vmatprep.subr.bf16.mxu0 %v13367_v42  ;;  %v4315_v41 = vld [vmem:[%s21341_s7 + $0x70] sm:$0xff]  ;;  %v4308_v42 = vld [vmem:[%s21341_s7 + $0x38] sm:$0xff] }
 0x85a   :  { %7928 = vmatprep.subr.bf16.mxu1 %v13369_v44  ;;  %v4316_v44 = vld [vmem:[%s21341_s7 + $0x78] sm:$0xff]  ;;  %v12955_v51 = vcombine.high %v4307_v19, %v4315_v41 }
 0x85b   :  { %v12957_v53 = vcombine.high %v4308_v42, %v4316_v44  ;;  %v12956_v39 = vcombine.low %v4308_v42, %v4316_v44  ;;  %v4403_v44 = vld [vmem:[%s21341_s7 + $0x330] sm:$0xff] }
 0x85c   :  { %7847 = vmatpush1.bf16.msra.mxu0 %v13366_v60  ;;  %v4323_v60 = vld [vmem:[%s21341_s7 + $0xb0] sm:$0xff] }
 0x85d   :  { %7929 = vmatpush1.bf16.msra.mxu1 %v13368_v61  ;;  %7848 = vmatprep.subr.bf16.mxu0 %v13383_v62  ;;  %v4331_v61 = vld [vmem:[%s21341_s7 + $0xf0] sm:$0xff]  ;;  %v12954_v62 = vcombine.low %v4307_v19, %v4315_v41 }
 0x85e   :  { %7930 = vmatprep.subr.bf16.mxu1 %v13385_v63  ;;  %v4324_v63 = vld [vmem:[%s21341_s7 + $0xb8] sm:$0xff]  ;;  %v12971_v7 = vcombine.high %v4323_v60, %v4331_v61  ;;  %v12970_v13 = vcombine.low %v4323_v60, %v4331_v61 }
 0x85f   :  { %v12972_v14 = vcombine.low %v4324_v63, %v4332_v2 }
 0x860   :  { %7849 = vmatpush1.bf16.msra.mxu0 %v13382_v10  ;;  %v4347_v10 = vld [vmem:[%s21341_s7 + $0x170] sm:$0xff] }
 0x861   :  { %7931 = vmatpush1.bf16.msra.mxu1 %v13384_v12  ;;  %7850 = vmatprep.subr.bf16.mxu0 %v13399_v4  ;;  %v12973_v12 = vcombine.high %v4324_v63, %v4332_v2  ;;  %v4340_v4 = vld [vmem:[%s21341_s7 + $0x138] sm:$0xff]  ;;  %v12987_v15 = vcombine.high %v4339_v9, %v4347_v10  ;;  %v4419_v63 = vld [vmem:[%s21341_s7 + $0x3b0] sm:$0xff] }
 0x862   :  { %7932 = vmatprep.subr.bf16.mxu1 %v13401_v45  ;;  %v4348_v45 = vld [vmem:[%s21341_s7 + $0x178] sm:$0xff]  ;;  %v4427_v2 = vld [vmem:[%s21341_s7 + $0x3f0] sm:$0xff] }
 0x863   :  { %v12989_v1 = vcombine.high %v4340_v4, %v4348_v45  ;;  %v12988_v57 = vcombine.low %v4340_v4, %v4348_v45  ;;  %v4435_v45 = vld [vmem:[%s21341_s7 + $0x430] sm:$0xff] }
 0x864   :  { %7851 = vmatpush1.bf16.msra.mxu0 %v13398_v16  ;;  %v4355_v16 = vld [vmem:[%s21341_s7 + $0x1b0] sm:$0xff] }
 0x865   :  { %7933 = vmatpush1.bf16.msra.mxu1 %v13400_v11  ;;  %7852 = vmatprep.subr.bf16.mxu0 %v13415_v33  ;;  %v4363_v11 = vld [vmem:[%s21341_s7 + $0x1f0] sm:$0xff]  ;;  %v4356_v33 = vld [vmem:[%s21341_s7 + $0x1b8] sm:$0xff] }
 0x866   :  { %7934 = vmatprep.subr.bf16.mxu1 %v13417_v17  ;;  %v4364_v17 = vld [vmem:[%s21341_s7 + $0x1f8] sm:$0xff]  ;;  %v13003_v58 = vcombine.high %v4355_v16, %v4363_v11 }
 0x867   :  { %v13005_v59 = vcombine.high %v4356_v33, %v4364_v17  ;;  %v13004_v0 = vcombine.low %v4356_v33, %v4364_v17  ;;  %v4451_v17 = vld [vmem:[%s21341_s7 + $0x4b0] sm:$0xff] }
 0x868   :  { %7853 = vmatpush1.bf16.msra.mxu0 %v13414_v25  ;;  %v4379_v25 = vld [vmem:[%s21341_s7 + $0x270] sm:$0xff] }
 0x869   :  { %7935 = vmatpush1.bf16.msra.mxu1 %v13416_v26  ;;  %7854 = vmatprep.subr.bf16.mxu0 %v13431_v48  ;;  %v4372_v26 = vld [vmem:[%s21341_s7 + $0x238] sm:$0xff]  ;;  %v13019_v28 = vcombine.high %v4371_v22, %v4379_v25 }
 0x86a   :  { %7936 = vmatprep.subr.bf16.mxu1 %v13433_v34  ;;  %v4380_v48 = vld [vmem:[%s21341_s7 + $0x278] sm:$0xff]  ;;  %v13002_v34 = vcombine.low %v4355_v16, %v4363_v11 }
 0x86b   :  { %v13021_v29 = vcombine.high %v4372_v26, %v4380_v48  ;;  %v13020_v19 = vcombine.low %v4372_v26, %v4380_v48  ;;  %v4467_v48 = vld [vmem:[%s21341_s7 + $0x530] sm:$0xff] }
 0x86c   :  { %7855 = vmatpush1.bf16.msra.mxu0 %v13430_v31  ;;  %v4395_v31 = vld [vmem:[%s21341_s7 + $0x2f0] sm:$0xff] }
 0x86d   :  { %7937 = vmatpush1.bf16.msra.mxu1 %v13432_v5  ;;  %7856 = vmatprep.subr.bf16.mxu0 %v13447_v35  ;;  %v4388_v5 = vld [vmem:[%s21341_s7 + $0x2b8] sm:$0xff]  ;;  %v13035_v41 = vcombine.high %v4387_v30, %v4395_v31 }
 0x86e   :  { %7938 = vmatprep.subr.bf16.mxu1 %v13449_v38  ;;  %v4396_v35 = vld [vmem:[%s21341_s7 + $0x2f8] sm:$0xff]  ;;  %v13018_v38 = vcombine.low %v4371_v22, %v4379_v25 }
 0x86f   :  { %v13037_v42 = vcombine.high %v4388_v5, %v4396_v35  ;;  %v13036_v60 = vcombine.low %v4388_v5, %v4396_v35  ;;  %v4483_v35 = vld [vmem:[%s21341_s7 + $0x5b0] sm:$0xff] }
 0x870   :  { %7857 = vmatpush1.bf16.msra.mxu0 %v13446_v49  ;;  %v4411_v49 = vld [vmem:[%s21341_s7 + $0x370] sm:$0xff] }
 0x871   :  { %7939 = vmatpush1.bf16.msra.mxu1 %v13448_v50  ;;  %7949 = vmatprep.subr.bf16.mxu0 %v12955_v51  ;;  %v4404_v50 = vld [vmem:[%s21341_s7 + $0x338] sm:$0xff]  ;;  %v13051_v61 = vcombine.high %v4403_v44, %v4411_v49 }
 0x872   :  { %8031 = vmatprep.subr.bf16.mxu1 %v12957_v53  ;;  %v4412_v51 = vld [vmem:[%s21341_s7 + $0x378] sm:$0xff]  ;;  %v13034_v53 = vcombine.low %v4387_v30, %v4395_v31 }
 0x873   :  { %7859 = vmatmul.mubr.bf16.vlgmr.msra.gmra.mrb[32].mxu0 %v18126_v3 }
 0x874   :  { %7941 = vmatmul.mubr.bf16.vlgmr.msra.gmra.mrb[32].mxu1 %v18126_v3  ;;  %7950 = vmatpush1.bf16.msra.mxu0 %v12954_v62  ;;  %v13053_v62 = vcombine.high %v4404_v50, %v4412_v51 }
 0x875   :  { %7981 = vmatprep.mubr.bf16.mxu0 %v17916_v23  ;;  %8032 = vmatpush1.bf16.msra.mxu1 %v12956_v39  ;;  %v4420_v39 = vld [vmem:[%s21341_s7 + $0x3b8] sm:$0xff] }
 0x876   :  { %8063 = vmatprep.mubr.bf16.mxu1 %v17916_v23  ;;  %7951 = vmatprep.subr.bf16.mxu0 %v12971_v7  ;;  %v12986_v23 = vcombine.low %v4339_v9, %v4347_v10  ;;  %v4428_v7 = vld [vmem:[%s21341_s7 + $0x3f8] sm:$0xff]  ;;  %v13050_v9 = vcombine.low %v4403_v44, %v4411_v49  ;;  %v13052_v10 = vcombine.low %v4404_v50, %v4412_v51  ;;  %v4499_v51 = vld [vmem:[%s21341_s7 + $0x630] sm:$0xff] }
 0x877   :  { %8033 = vmatprep.subr.bf16.mxu1 %v12973_v12  ;;  %v13067_v12 = vcombine.high %v4419_v63, %v4427_v2  ;;  %v13069_v4 = vcombine.high %v4420_v39, %v4428_v7  ;;  %v13068_v16 = vcombine.low %v4420_v39, %v4428_v7  ;;  %v4515_v7 = vld [vmem:[%s21341_s7 + $0x6b0] sm:$0xff] }
 0x878   :  { %7952 = vmatpush1.bf16.msra.mxu0 %v12970_v13  ;;  %v4443_v13 = vld [vmem:[%s21341_s7 + $0x470] sm:$0xff] }
 0x879   :  { %8034 = vmatpush1.bf16.msra.mxu1 %v12972_v14  ;;  %7953 = vmatprep.subr.bf16.mxu0 %v12987_v15  ;;  %v4436_v14 = vld [vmem:[%s21341_s7 + $0x438] sm:$0xff]  ;;  %v13083_v11 = vcombine.high %v4435_v45, %v4443_v13 }
 0x87a   :  { %8035 = vmatprep.subr.bf16.mxu1 %v12989_v1  ;;  %v4444_v15 = vld [vmem:[%s21341_s7 + $0x478] sm:$0xff]  ;;  %v13066_v1 = vcombine.low %v4419_v63, %v4427_v2 }
 0x87b   :  { %v13085_v33 = vcombine.high %v4436_v14, %v4444_v15  ;;  %v13084_v22 = vcombine.low %v4436_v14, %v4444_v15  ;;  %v4531_v15 = vld [vmem:[%s21341_s7 + $0x730] sm:$0xff] }
 0x87c   :  { %7954 = vmatpush1.bf16.msra.mxu0 %v12986_v23  ;;  %v4459_v23 = vld [vmem:[%s21341_s7 + $0x4f0] sm:$0xff] }
 0x87d   :  { %8036 = vmatpush1.bf16.msra.mxu1 %v12988_v57  ;;  %7955 = vmatprep.subr.bf16.mxu0 %v13003_v58  ;;  %v4452_v57 = vld [vmem:[%s21341_s7 + $0x4b8] sm:$0xff]  ;;  %v13099_v25 = vcombine.high %v4451_v17, %v4459_v23 }
 0x87e   :  { %8037 = vmatprep.subr.bf16.mxu1 %v13005_v59  ;;  %v4460_v58 = vld [vmem:[%s21341_s7 + $0x4f8] sm:$0xff]  ;;  %v13082_v59 = vcombine.low %v4435_v45, %v4443_v13 }
 0x87f   :  { %v13101_v26 = vcombine.high %v4452_v57, %v4460_v58  ;;  %v13100_v30 = vcombine.low %v4452_v57, %v4460_v58  ;;  %v4547_v58 = vld [vmem:[%s21341_s7 + $0x7b0] sm:$0xff] }
 0x880   :  { %7956 = vmatpush1.bf16.msra.mxu0 %v13002_v34  ;;  %v4475_v34 = vld [vmem:[%s21341_s7 + $0x570] sm:$0xff] }
 0x881   :  { %8038 = vmatpush1.bf16.msra.mxu1 %v13004_v0  ;;  %7957 = vmatprep.subr.bf16.mxu0 %v13019_v28  ;;  %v4468_v0 = vld [vmem:[%s21341_s7 + $0x538] sm:$0xff]  ;;  %v13115_v31 = vcombine.high %v4467_v48, %v4475_v34 }
 0x882   :  { %8039 = vmatprep.subr.bf16.mxu1 %v13021_v29  ;;  %v4476_v28 = vld [vmem:[%s21341_s7 + $0x578] sm:$0xff]  ;;  %v13098_v29 = vcombine.low %v4451_v17, %v4459_v23 }
 0x883   :  { %v13117_v5 = vcombine.high %v4468_v0, %v4476_v28  ;;  %v13116_v44 = vcombine.low %v4468_v0, %v4476_v28  ;;  %v4563_v28 = vld [vmem:[%s21341_s7 + $0x830] sm:$0xff] }
 0x884   :  { %7958 = vmatpush1.bf16.msra.mxu0 %v13018_v38  ;;  %v4491_v38 = vld [vmem:[%s21341_s7 + $0x5f0] sm:$0xff] }
 0x885   :  { %8040 = vmatpush1.bf16.msra.mxu1 %v13020_v19  ;;  %7959 = vmatprep.subr.bf16.mxu0 %v13035_v41  ;;  %v4484_v19 = vld [vmem:[%s21341_s7 + $0x5b8] sm:$0xff]  ;;  %v13131_v49 = vcombine.high %v4483_v35, %v4491_v38 }
 0x886   :  { %8041 = vmatprep.subr.bf16.mxu1 %v13037_v42  ;;  %v4492_v41 = vld [vmem:[%s21341_s7 + $0x5f8] sm:$0xff]  ;;  %v13114_v42 = vcombine.low %v4467_v48, %v4475_v34 }
 0x887   :  { %v13133_v50 = vcombine.high %v4484_v19, %v4492_v41  ;;  %v13132_v63 = vcombine.low %v4484_v19, %v4492_v41  ;;  %v4579_v41 = vld [vmem:[%s21341_s7 + $0x8b0] sm:$0xff] }
 0x888   :  { %7960 = vmatpush1.bf16.msra.mxu0 %v13034_v53  ;;  %v4507_v53 = vld [vmem:[%s21341_s7 + $0x670] sm:$0xff] }
 0x889   :  { %8042 = vmatpush1.bf16.msra.mxu1 %v13036_v60  ;;  %7961 = vmatprep.subr.bf16.mxu0 %v13051_v61  ;;  %v4500_v60 = vld [vmem:[%s21341_s7 + $0x638] sm:$0xff]  ;;  %v13147_v2 = vcombine.high %v4499_v51, %v4507_v53 }
 0x88a   :  { %8043 = vmatprep.subr.bf16.mxu1 %v13053_v62  ;;  %v4508_v61 = vld [vmem:[%s21341_s7 + $0x678] sm:$0xff]  ;;  %v13130_v62 = vcombine.low %v4483_v35, %v4491_v38 }
 0x88b   :  { %v13149_v39 = vcombine.high %v4500_v60, %v4508_v61  ;;  %v13148_v45 = vcombine.low %v4500_v60, %v4508_v61  ;;  %v4595_v60 = vld [vmem:[%s21341_s7 + $0x930] sm:$0xff] }
 0x88c   :  { %7962 = vmatpush1.bf16.msra.mxu0 %v13050_v9  ;;  %v4523_v9 = vld [vmem:[%s21341_s7 + $0x6f0] sm:$0xff] }
 0x88d   :  { %8044 = vmatpush1.bf16.msra.mxu1 %v13052_v10  ;;  %7963 = vmatprep.subr.bf16.mxu0 %v13067_v12  ;;  %v4516_v10 = vld [vmem:[%s21341_s7 + $0x6b8] sm:$0xff]  ;;  %v13163_v13 = vcombine.high %v4515_v7, %v4523_v9  ;;  %v4603_v61 = vld [vmem:[%s21341_s7 + $0x970] sm:$0xff] }
 0x88e   :  { %8045 = vmatprep.subr.bf16.mxu1 %v13069_v4  ;;  %v4524_v12 = vld [vmem:[%s21341_s7 + $0x6f8] sm:$0xff]  ;;  %v13146_v4 = vcombine.low %v4499_v51, %v4507_v53 }
 0x88f   :  { %v13165_v14 = vcombine.high %v4516_v10, %v4524_v12  ;;  %v13164_v17 = vcombine.low %v4516_v10, %v4524_v12  ;;  %v4611_v12 = vld [vmem:[%s21341_s7 + $0x9b0] sm:$0xff] }
 0x890   :  { %7964 = vmatpush1.bf16.msra.mxu0 %v13066_v1  ;;  %v4539_v1 = vld [vmem:[%s21341_s7 + $0x770] sm:$0xff] }
 0x891   :  { %8046 = vmatpush1.bf16.msra.mxu1 %v13068_v16  ;;  %7965 = vmatprep.subr.bf16.mxu0 %v13083_v11  ;;  %v4532_v16 = vld [vmem:[%s21341_s7 + $0x738] sm:$0xff]  ;;  %v13179_v23 = vcombine.high %v4531_v15, %v4539_v1 }
 0x892   :  { %8047 = vmatprep.subr.bf16.mxu1 %v13085_v33  ;;  %v4540_v11 = vld [vmem:[%s21341_s7 + $0x778] sm:$0xff]  ;;  %v13162_v33 = vcombine.low %v4515_v7, %v4523_v9  ;;  %v13243_v9 = vcombine.high %v4595_v60, %v4603_v61 }
 0x893   :  { %v13181_v57 = vcombine.high %v4532_v16, %v4540_v11  ;;  %v13180_v48 = vcombine.low %v4532_v16, %v4540_v11  ;;  %v4635_v16 = vld [vmem:[%s21341_s7 + $0xa70] sm:$0xff]  ;;  %v4628_v11 = vld [vmem:[%s21341_s7 + $0xa38] sm:$0xff] }
 0x894   :  { %7966 = vmatpush1.bf16.msra.mxu0 %v13082_v59  ;;  %v4555_v59 = vld [vmem:[%s21341_s7 + $0x7f0] sm:$0xff] }
 0x895   :  { %8048 = vmatpush1.bf16.msra.mxu1 %v13084_v22  ;;  %7967 = vmatprep.subr.bf16.mxu0 %v13099_v25  ;;  %v4548_v22 = vld [vmem:[%s21341_s7 + $0x7b8] sm:$0xff]  ;;  %v13195_v34 = vcombine.high %v4547_v58, %v4555_v59 }
 0x896   :  { %8049 = vmatprep.subr.bf16.mxu1 %v13101_v26  ;;  %v4556_v25 = vld [vmem:[%s21341_s7 + $0x7f8] sm:$0xff]  ;;  %v13178_v26 = vcombine.low %v4531_v15, %v4539_v1  ;;  %v4627_v1 = vld [vmem:[%s21341_s7 + $0xa30] sm:$0xff] }
 0x897   :  { %v13197_v0 = vcombine.high %v4548_v22, %v4556_v25  ;;  %v13196_v35 = vcombine.low %v4548_v22, %v4556_v25  ;;  %v4651_v22 = vld [vmem:[%s21341_s7 + $0xaf0] sm:$0xff]  ;;  %v4644_v25 = vld [vmem:[%s21341_s7 + $0xab8] sm:$0xff] }
 0x898   :  { %7968 = vmatpush1.bf16.msra.mxu0 %v13098_v29  ;;  %v4571_v29 = vld [vmem:[%s21341_s7 + $0x870] sm:$0xff] }
 0x899   :  { %8050 = vmatpush1.bf16.msra.mxu1 %v13100_v30  ;;  %7969 = vmatprep.subr.bf16.mxu0 %v13115_v31  ;;  %v4564_v30 = vld [vmem:[%s21341_s7 + $0x838] sm:$0xff]  ;;  %v13211_v38 = vcombine.high %v4563_v28, %v4571_v29 }
 0x89a   :  { %8051 = vmatprep.subr.bf16.mxu1 %v13117_v5  ;;  %v4572_v31 = vld [vmem:[%s21341_s7 + $0x878] sm:$0xff]  ;;  %v13194_v5 = vcombine.low %v4547_v58, %v4555_v59  ;;  %v4643_v59 = vld [vmem:[%s21341_s7 + $0xab0] sm:$0xff] }
 0x89b   :  { %v13213_v19 = vcombine.high %v4564_v30, %v4572_v31  ;;  %v13212_v51 = vcombine.low %v4564_v30, %v4572_v31  ;;  %v4667_v30 = vld [vmem:[%s21341_s7 + $0xb70] sm:$0xff]  ;;  %v4660_v31 = vld [vmem:[%s21341_s7 + $0xb38] sm:$0xff] }
 0x89c   :  { %7970 = vmatpush1.bf16.msra.mxu0 %v13114_v42  ;;  %v4587_v42 = vld [vmem:[%s21341_s7 + $0x8f0] sm:$0xff] }
 0x89d   :  { %8052 = vmatpush1.bf16.msra.mxu1 %v13116_v44  ;;  %7971 = vmatprep.subr.bf16.mxu0 %v13131_v49  ;;  %v13210_v44 = vcombine.low %v4563_v28, %v4571_v29  ;;  %v4580_v49 = vld [vmem:[%s21341_s7 + $0x8b8] sm:$0xff]  ;;  %v13227_v53 = vcombine.high %v4579_v41, %v4587_v42  ;;  %v4659_v29 = vld [vmem:[%s21341_s7 + $0xb30] sm:$0xff] }
 0x89e   :  { %8053 = vmatprep.subr.bf16.mxu1 %v13133_v50  ;;  %v4588_v50 = vld [vmem:[%s21341_s7 + $0x8f8] sm:$0xff] }
 0x89f   :  { %v13228_v7 = vcombine.low %v4580_v49, %v4588_v50 }
 0x8a0   :  { %7972 = vmatpush1.bf16.msra.mxu0 %v13130_v62  ;;  %v13229_v62 = vcombine.high %v4580_v49, %v4588_v50  ;;  %v4683_v49 = vld [vmem:[%s21341_s7 + $0xbf0] sm:$0xff] }
 0x8a1   :  { %8054 = vmatpush1.bf16.msra.mxu1 %v13132_v63  ;;  %7973 = vmatprep.subr.bf16.mxu0 %v13147_v2  ;;  %v4596_v63 = vld [vmem:[%s21341_s7 + $0x938] sm:$0xff] }
 0x8a2   :  { %8055 = vmatprep.subr.bf16.mxu1 %v13149_v39  ;;  %v4604_v2 = vld [vmem:[%s21341_s7 + $0x978] sm:$0xff]  ;;  %v13226_v39 = vcombine.low %v4579_v41, %v4587_v42 }
 0x8a3   :  { %v13245_v10 = vcombine.high %v4596_v63, %v4604_v2 }
 0x8a4   :  { %7974 = vmatpush1.bf16.msra.mxu0 %v13146_v4  ;;  %v4619_v4 = vld [vmem:[%s21341_s7 + $0x9f0] sm:$0xff] }
 0x8a5   :  { %8056 = vmatpush1.bf16.msra.mxu1 %v13148_v45  ;;  %7975 = vmatprep.subr.bf16.mxu0 %v13163_v13  ;;  %v4620_v45 = vld [vmem:[%s21341_s7 + $0x9f8] sm:$0xff]  ;;  %v13244_v13 = vcombine.low %v4596_v63, %v4604_v2  ;;  %v13306_v63 = vcombine.low %v4659_v29, %v4667_v30 }
 0x8a6   :  { %8057 = vmatprep.subr.bf16.mxu1 %v13165_v14  ;;  %v13259_v14 = vcombine.high %v4611_v12, %v4619_v4 }
 0x8a8   :  { %7976 = vmatpush1.bf16.msra.mxu0 %v13162_v33  ;;  %v4636_v33 = vld [vmem:[%s21341_s7 + $0xa78] sm:$0xff] }
 0x8a9   :  { %8058 = vmatpush1.bf16.msra.mxu1 %v13164_v17  ;;  %7977 = vmatprep.subr.bf16.mxu0 %v13179_v23  ;;  %v13258_v17 = vcombine.low %v4611_v12, %v4619_v4  ;;  %v13277_v58 = vcombine.high %v4628_v11, %v4636_v33  ;;  %v4691_v4 = vld [vmem:[%s21341_s7 + $0xc30] sm:$0xff] }
 0x8aa   :  { %8059 = vmatprep.subr.bf16.mxu1 %v13181_v57  ;;  %v13275_v57 = vcombine.high %v4627_v1, %v4635_v16 }
 0x8ac   :  { %7978 = vmatpush1.bf16.msra.mxu0 %v13178_v26  ;;  %v4652_v26 = vld [vmem:[%s21341_s7 + $0xaf8] sm:$0xff] }
 0x8ad   :  { %8060 = vmatpush1.bf16.msra.mxu1 %v13180_v48  ;;  %7979 = vmatprep.subr.bf16.mxu0 %v13195_v34  ;;  %v13274_v48 = vcombine.low %v4627_v1, %v4635_v16  ;;  %v13276_v34 = vcombine.low %v4628_v11, %v4636_v33  ;;  %v13293_v28 = vcombine.high %v4644_v25, %v4652_v26  ;;  %v4707_v16 = vld [vmem:[%s21341_s7 + $0xcb0] sm:$0xff]  ;;  %v4708_v33 = vld [vmem:[%s21341_s7 + $0xcb8] sm:$0xff] }
 0x8ae   :  { %8061 = vmatprep.subr.bf16.mxu1 %v13197_v0  ;;  %v13291_v0 = vcombine.high %v4643_v59, %v4651_v22  ;;  %v4715_v11 = vld [vmem:[%s21341_s7 + $0xcf0] sm:$0xff] }
 0x8b0   :  { %7980 = vmatpush1.bf16.msra.mxu0 %v13194_v5  ;;  %v4668_v5 = vld [vmem:[%s21341_s7 + $0xb78] sm:$0xff] }
 0x8b1   :  { %8062 = vmatpush1.bf16.msra.mxu1 %v13196_v35  ;;  %7990 = vmatprep.subr.bf16.mxu0 %v13211_v38  ;;  %v13290_v35 = vcombine.low %v4643_v59, %v4651_v22  ;;  %v13292_v38 = vcombine.low %v4644_v25, %v4652_v26  ;;  %v13309_v42 = vcombine.high %v4660_v31, %v4668_v5  ;;  %v4723_v22 = vld [vmem:[%s21341_s7 + $0xd30] sm:$0xff]  ;;  %v4724_v26 = vld [vmem:[%s21341_s7 + $0xd38] sm:$0xff] }
 0x8b2   :  { %8072 = vmatprep.subr.bf16.mxu1 %v13213_v19  ;;  %v13307_v19 = vcombine.high %v4659_v29, %v4667_v30  ;;  %v4731_v25 = vld [vmem:[%s21341_s7 + $0xd70] sm:$0xff] }
 0x8b3   :  { %7982 = vmatmul.mubr.bf16.vlgmr.msra.gmra.mrb[36].mxu0 %v17920_v24  ;;  %v4739_v30 = vld [vmem:[%s21341_s7 + $0xdb0] sm:$0xff] }
 0x8b4   :  { %8064 = vmatmul.mubr.bf16.vlgmr.msra.gmra.mrb[36].mxu1 %v17920_v24  ;;  %7991 = vmatpush1.bf16.msra.mxu0 %v13210_v44  ;;  %v4612_v24 = vld [vmem:[%s21341_s7 + $0x9b8] sm:$0xff]  ;;  %v4675_v44 = vld [vmem:[%s21341_s7 + $0xbb0] sm:$0xff] }
 0x8b5   :  { %8022 = vmatprep.mubr.bf16.mxu0 %v17940_v27  ;;  %8073 = vmatpush1.bf16.msra.mxu1 %v13212_v51  ;;  %v13261_v15 = vcombine.high %v4612_v24, %v4620_v45  ;;  %v13260_v23 = vcombine.low %v4612_v24, %v4620_v45  ;;  %v4699_v24 = vld [vmem:[%s21341_s7 + $0xc70] sm:$0xff]  ;;  %v4692_v45 = vld [vmem:[%s21341_s7 + $0xc38] sm:$0xff] }
 0x8b6   :  { %8104 = vmatprep.mubr.bf16.mxu1 %v17940_v27  ;;  %7992 = vmatprep.subr.bf16.mxu0 %v13227_v53  ;;  %v13242_v27 = vcombine.low %v4595_v60, %v4603_v61  ;;  %v4676_v53 = vld [vmem:[%s21341_s7 + $0xbb8] sm:$0xff] }
 0x8b7   :  { %8074 = vmatprep.subr.bf16.mxu1 %v13229_v62  ;;  %v4684_v60 = vld [vmem:[%s21341_s7 + $0xbf8] sm:$0xff] }
 0x8b8   :  { %7993 = vmatpush1.bf16.msra.mxu0 %v13226_v39  ;;  %v13325_v12 = vcombine.high %v4676_v53, %v4684_v60 }
 0x8b9   :  { %8075 = vmatpush1.bf16.msra.mxu1 %v13228_v7  ;;  %7994 = vmatprep.subr.bf16.mxu0 %v13243_v9  ;;  %v13308_v7 = vcombine.low %v4660_v31, %v4668_v5  ;;  %v13323_v9 = vcombine.high %v4675_v44, %v4683_v49  ;;  %v4747_v31 = vld [vmem:[%s21341_s7 + $0xdf0] sm:$0xff]  ;;  %v4740_v5 = vld [vmem:[%s21341_s7 + $0xdb8] sm:$0xff] }
 0x8ba   :  { %8076 = vmatprep.subr.bf16.mxu1 %v13245_v10 }
 0x8bc   :  { %7995 = vmatpush1.bf16.msra.mxu0 %v13242_v27  ;;  %v4700_v27 = vld [vmem:[%s21341_s7 + $0xc78] sm:$0xff] }
 0x8bd   :  { %8077 = vmatpush1.bf16.msra.mxu1 %v13244_v13  ;;  %7996 = vmatprep.subr.bf16.mxu0 %v13259_v14  ;;  %v13322_v13 = vcombine.low %v4675_v44, %v4683_v49  ;;  %v13324_v14 = vcombine.low %v4676_v53, %v4684_v60  ;;  %v13341_v1 = vcombine.high %v4692_v45, %v4700_v27  ;;  %v4755_v49 = vld [vmem:[%s21341_s7 + $0xe30] sm:$0xff]  ;;  %v4756_v60 = vld [vmem:[%s21341_s7 + $0xe38] sm:$0xff] }
 0x8be   :  { %8078 = vmatprep.subr.bf16.mxu1 %v13261_v15  ;;  %v13339_v15 = vcombine.high %v4691_v4, %v4699_v24  ;;  %v4763_v53 = vld [vmem:[%s21341_s7 + $0xe70] sm:$0xff] }
 0x8c0   :  { %7997 = vmatpush1.bf16.msra.mxu0 %v13258_v17  ;;  %v4716_v17 = vld [vmem:[%s21341_s7 + $0xcf8] sm:$0xff] }
 0x8c1   :  { %8079 = vmatpush1.bf16.msra.mxu1 %v13260_v23  ;;  %7998 = vmatprep.subr.bf16.mxu0 %v13275_v57  ;;  %v13338_v23 = vcombine.low %v4691_v4, %v4699_v24  ;;  %v13340_v57 = vcombine.low %v4692_v45, %v4700_v27  ;;  %v13357_v59 = vcombine.high %v4708_v33, %v4716_v17  ;;  %v4780_v4 = vld [vmem:[%s21341_s7 + $0xef8] sm:$0xff] }
 0x8c2   :  { %8080 = vmatprep.subr.bf16.mxu1 %v13277_v58  ;;  %v13355_v58 = vcombine.high %v4707_v16, %v4715_v11  ;;  %v13402_v24 = vcombine.low %v4755_v49, %v4763_v53 }
 0x8c4   :  { %7999 = vmatpush1.bf16.msra.mxu0 %v13274_v48  ;;  %v4732_v48 = vld [vmem:[%s21341_s7 + $0xd78] sm:$0xff] }
 0x8c5   :  { %8081 = vmatpush1.bf16.msra.mxu1 %v13276_v34  ;;  %8000 = vmatprep.subr.bf16.mxu0 %v13291_v0  ;;  %v13354_v34 = vcombine.low %v4707_v16, %v4715_v11  ;;  %v13356_v0 = vcombine.low %v4708_v33, %v4716_v17  ;;  %v13373_v29 = vcombine.high %v4724_v26, %v4732_v48  ;;  %v4796_v16 = vld [vmem:[%s21341_s7 + $0xf78] sm:$0xff]  ;;  %v19287_v11 = vld [vmem:[%s21342_s8] sm:$0xff] }
 0x8c6   :  { %v19180_v41 = vpop.f32.mrb[28].mxu0  ;;  %8082 = vmatprep.subr.bf16.mxu1 %v13293_v28  ;;  %v13371_v28 = vcombine.high %v4723_v22, %v4731_v25 }
 0x8c7   :  { %v19188_v50 = vpop.f32.mrb[28].mxu1  ;;  %v19190_v51 = vpop.f32.mrb[29].mxu0 }
 0x8c8   :  { %v19198_v61 = vpop.f32.mrb[29].mxu1  ;;  %v7700_v62 = vpop.f32.mrb[30].mxu0  ;;  %8001 = vmatpush1.bf16.msra.mxu0 %v13290_v35  ;;  %v4748_v35 = vld [vmem:[%s21341_s7 + $0xdf8] sm:$0xff] }
 0x8c9   :  { %v7782_v2 = vpop.f32.mrb[30].mxu1  ;;  %8083 = vmatpush1.bf16.msra.mxu1 %v13292_v38  ;;  %v7701_v39 = vpop.f32.mrb[31].mxu0  ;;  %8002 = vmatprep.subr.bf16.mxu0 %v13307_v19  ;;  %v13370_v38 = vcombine.low %v4723_v22, %v4731_v25  ;;  %v13372_v19 = vcombine.low %v4724_v26, %v4732_v48  ;;  %v13389_v44 = vcombine.high %v4740_v5, %v4748_v35  ;;  %v4764_v62 = vld [vmem:[%s21341_s7 + $0xe78] sm:$0xff] }
 0x8ca   :  { %v7783_v10 = vpop.f32.mrb[31].mxu1  ;;  %8084 = vmatprep.subr.bf16.mxu1 %v13309_v42  ;;  %v13387_v42 = vcombine.high %v4739_v30, %v4747_v31  ;;  %v13388_v2 = vcombine.low %v4740_v5, %v4748_v35  ;;  %v13403_v39 = vcombine.high %v4755_v49, %v4763_v53  ;;  %v13404_v45 = vcombine.low %v4756_v60, %v4764_v62  ;;  %v4804_v25 = vld [vmem:[%s21341_s7 + $0xfb8] sm:$0xff]  ;;  %v14986_v49 = vld [vmem:[%s21343_s9 + $0x24] ss:$16 sps:$4 sm:$0xff]  }
 0x8cb   :  { %v4779_v10 = vld [vmem:[%s21341_s7 + $0xef0] sm:$0xff]  ;;  %v4824_v22 = vrot.slane %v19287_v11, %v16999_v46  ;;  %v4812_v26 = vld [vmem:[%s21341_s7 + $0xff8] sm:$0xff]  ;;  %v4832_v48 = vrot.slane %v19287_v11, %v17163_v43 }
 0x8cc   :  { %8003 = vmatpush1.bf16.msra.mxu0 %v13306_v63  ;;  %v13386_v63 = vcombine.low %v4739_v30, %v4747_v31  ;;  %v13452_v35 = vcombine.low %v4804_v25, %v4812_v26 }
 0x8cd   :  { %8085 = vmatpush1.bf16.msra.mxu1 %v13308_v7  ;;  %8004 = vmatprep.subr.bf16.mxu0 %v13323_v9  ;;  %v13405_v7 = vcombine.high %v4756_v60, %v4764_v62  ;;  %v4771_v9 = vld [vmem:[%s21341_s7 + $0xeb0] sm:$0xff]  ;;  %v14119_v30 = vadd.f32 %v18790_v8, %v4824_v22  ;;  %v14121_v31 = vadd.f32 %v18792_v6, %v4832_v48 }
 0x8ce   :  { %8086 = vmatprep.subr.bf16.mxu1 %v13325_v12  ;;  %v4772_v12 = vld [vmem:[%s21341_s7 + $0xeb8] sm:$0xff]  ;;  %v13419_v27 = vcombine.high %v4771_v9, %v4779_v10  ;;  %v13418_v33 = vcombine.low %v4771_v9, %v4779_v10  ;;  %v14978_v8 = vld [vmem:[%s21343_s9] ss:$16 sps:$4 sm:$0xff]   ;;  %v14989_v60 = vld [vmem:[%s21343_s9 + $0x224] ss:$16 sps:$4 sm:$0xff]  }
 0x8cf   :  { %v13420_v17 = vcombine.low %v4772_v12, %v4780_v4  ;;  %v14981_v6 = vld [vmem:[%s21343_s9 + $0x200] ss:$16 sps:$4 sm:$0xff]   ;;  %v14998_v10 = vld [vmem:[%s21343_s9 + $0x64] ss:$16 sps:$4 sm:$0xff]  }
 0x8d0   :  { %8005 = vmatpush1.bf16.msra.mxu0 %v13322_v13  ;;  %v13421_v13 = vcombine.high %v4772_v12, %v4780_v4  ;;  %v14993_v9 = vld [vmem:[%s21343_s9 + $0x240] ss:$16 sps:$4 sm:$0xff]   ;;  %v15001_v12 = vld [vmem:[%s21343_s9 + $0x264] ss:$16 sps:$4 sm:$0xff]  }
 0x8d1   :  { %8087 = vmatpush1.bf16.msra.mxu1 %v13324_v14  ;;  %8006 = vmatprep.subr.bf16.mxu0 %v13339_v15  ;;  %v4787_v14 = vld [vmem:[%s21341_s7 + $0xf30] sm:$0xff] }
 0x8d2   :  { %8088 = vmatprep.subr.bf16.mxu1 %v13341_v1  ;;  %v4795_v15 = vld [vmem:[%s21341_s7 + $0xf70] sm:$0xff]  ;;  %v4788_v1 = vld [vmem:[%s21341_s7 + $0xf38] sm:$0xff] }
 0x8d3   :  { %v14996_v4 = vld [vmem:[%s21343_s9 + $0x60] ss:$16 sps:$4 sm:$0xff]   ;;  %v15025_v22 = vld [vmem:[%s21343_s9 + $0x2e4] ss:$16 sps:$4 sm:$0xff]  }
 0x8d4   :  { %8007 = vmatpush1.bf16.msra.mxu0 %v13338_v23  ;;  %v13435_v23 = vcombine.high %v4787_v14, %v4795_v15  ;;  %v15028_v48 = vld [vmem:[%s21343_s9 + $0x104] ss:$16 sps:$4 sm:$0xff]  }
 0x8d5   :  { %8089 = vmatpush1.bf16.msra.mxu1 %v13340_v57  ;;  %8008 = vmatprep.subr.bf16.mxu0 %v13355_v58  ;;  %v13437_v57 = vcombine.high %v4788_v1, %v4796_v16  ;;  %v4803_v58 = vld [vmem:[%s21341_s7 + $0xfb0] sm:$0xff] }
 0x8d6   :  { %8090 = vmatprep.subr.bf16.mxu1 %v13357_v59  ;;  %v4811_v59 = vld [vmem:[%s21341_s7 + $0xff0] sm:$0xff]  ;;  %s15826_s7 = smov 4  }
 0x8d7   :  { %v13450_v5 = vcombine.low %v4803_v58, %v4811_v59 }
 0x8d8   :  { %8009 = vmatpush1.bf16.msra.mxu0 %v13354_v34  ;;  %v13434_v34 = vcombine.low %v4787_v14, %v4795_v15  ;;  %v15005_v14 = vld [vmem:[%s21343_s9 + $0x280] ss:$16 sps:$4 sm:$0xff]   ;;  %v15010_v15 = vld [vmem:[%s21343_s9 + $0xa4] ss:$16 sps:$4 sm:$0xff]  }
 0x8d9   :  { %8091 = vmatpush1.bf16.msra.mxu1 %v13356_v0  ;;  %8010 = vmatprep.subr.bf16.mxu0 %v13371_v28  ;;  %v13436_v0 = vcombine.low %v4788_v1, %v4796_v16  ;;  %v13451_v28 = vcombine.high %v4803_v58, %v4811_v59  ;;  %v15013_v1 = vld [vmem:[%s21343_s9 + $0x2a4] ss:$16 sps:$4 sm:$0xff]   ;;  %v15008_v16 = vld [vmem:[%s21343_s9 + $0xa0] ss:$16 sps:$4 sm:$0xff]  }
 0x8da   :  { %8092 = vmatprep.subr.bf16.mxu1 %v13373_v29  ;;  %v13453_v29 = vcombine.high %v4804_v25, %v4812_v26  ;;  %v15017_v58 = vld [vmem:[%s21343_s9 + $0x2c0] ss:$16 sps:$4 sm:$0xff]   ;;  %v15022_v59 = vld [vmem:[%s21343_s9 + $0xe4] ss:$16 sps:$4 sm:$0xff]  }
 0x8db   :  { %v15020_v25 = vld [vmem:[%s21343_s9 + $0xe0] ss:$16 sps:$4 sm:$0xff]  }
 0x8dc   :  { %8011 = vmatpush1.bf16.msra.mxu0 %v13370_v38  ;;  %v14980_v38 = vld [vmem:[%s21343_s9 + $0x4] ss:$16 sps:$4 sm:$0xff]   ;;  %v15023_v26 = vld [vmem:[%s21343_s9 + $0x2e0] ss:$16 sps:$4 sm:$0xff]  }
 0x8dd   :  { %8093 = vmatpush1.bf16.msra.mxu1 %v13372_v19  ;;  %8012 = vmatprep.subr.bf16.mxu0 %v13387_v42  ;;  %v14983_v19 = vld [vmem:[%s21343_s9 + $0x204] ss:$16 sps:$4 sm:$0xff]   ;;  %v8114_v42 = vmax.f32 %v14119_v30, 0.0 }
 0x8de   :  { %8094 = vmatprep.subr.bf16.mxu1 %v13389_v44  ;;  %v8116_v44 = vmax.f32 %v14121_v31, 0.0  ;;  %v15037_v30 = vld [vmem:[%s21343_s9 + $0x324] ss:$16 sps:$4 sm:$0xff]   ;;  %v15032_v31 = vld [vmem:[%s21343_s9 + $0x120] ss:$16 sps:$4 sm:$0xff]  }
 0x8df   :  { %v19322_v53 = vpack.c.bf16 %v8114_v42, %v8114_v42  ;;  %v15041_v42 = vld [vmem:[%s21343_s9 + $0x340] ss:$16 sps:$4 sm:$0xff]  }
 0x8e0   :  { %8013 = vmatpush1.bf16.msra.mxu0 %v13386_v63  ;;  %v19328_v62 = vpack.c.bf16 %v8116_v44, %v8116_v44  ;;  %v14984_v63 = vld [vmem:[%s21343_s9 + $0x20] ss:$16 sps:$4 sm:$0xff]   ;;  %v15046_v44 = vld [vmem:[%s21343_s9 + $0x164] ss:$16 sps:$4 sm:$0xff]  }
 0x8e1   :  { %8095 = vmatpush1.bf16.msra.mxu1 %v13388_v2  ;;  %8014 = vmatprep.subr.bf16.mxu0 %v13403_v39  ;;  %v14987_v2 = vld [vmem:[%s21343_s9 + $0x220] ss:$16 sps:$4 sm:$0xff]   ;;  %v14992_v39 = vld [vmem:[%s21343_s9 + $0x44] ss:$16 sps:$4 sm:$0xff]  }
 0x8e2   :  { %8096 = vmatprep.subr.bf16.mxu1 %v13405_v7  ;;  %v14990_v7 = vld [vmem:[%s21343_s9 + $0x40] ss:$16 sps:$4 sm:$0xff]  }
 0x8e4   :  { %8015 = vmatpush1.bf16.msra.mxu0 %v13402_v24  ;;  %v14999_v24 = vld [vmem:[%s21343_s9 + $0x260] ss:$16 sps:$4 sm:$0xff]  }
 0x8e5   :  { %8097 = vmatpush1.bf16.msra.mxu1 %v13404_v45  ;;  %8016 = vmatprep.subr.bf16.mxu0 %v13419_v27  ;;  %v15004_v45 = vld [vmem:[%s21343_s9 + $0x84] ss:$16 sps:$4 sm:$0xff]  }
 0x8e6   :  { %8098 = vmatprep.subr.bf16.mxu1 %v13421_v13  ;;  %v15007_v27 = vld [vmem:[%s21343_s9 + $0x284] ss:$16 sps:$4 sm:$0xff]   ;;  %v15002_v13 = vld [vmem:[%s21343_s9 + $0x80] ss:$16 sps:$4 sm:$0xff]  }
 0x8e8   :  { %8017 = vmatpush1.bf16.msra.mxu0 %v13418_v33  ;;  %v15011_v33 = vld [vmem:[%s21343_s9 + $0x2a0] ss:$16 sps:$4 sm:$0xff]  }
 0x8e9   :  { %8099 = vmatpush1.bf16.msra.mxu1 %v13420_v17  ;;  %8018 = vmatprep.subr.bf16.mxu0 %v13435_v23  ;;  %v15016_v17 = vld [vmem:[%s21343_s9 + $0xc4] ss:$16 sps:$4 sm:$0xff]  }
 0x8ea   :  { %8100 = vmatprep.subr.bf16.mxu1 %v13437_v57  ;;  %v15019_v23 = vld [vmem:[%s21343_s9 + $0x2c4] ss:$16 sps:$4 sm:$0xff]   ;;  %v15014_v57 = vld [vmem:[%s21343_s9 + $0xc0] ss:$16 sps:$4 sm:$0xff]  }
 0x8ec   :  { %8019 = vmatpush1.bf16.msra.mxu0 %v13434_v34  ;;  %v15031_v34 = vld [vmem:[%s21343_s9 + $0x304] ss:$16 sps:$4 sm:$0xff]  }
 0x8ed   :  { %8101 = vmatpush1.bf16.msra.mxu1 %v13436_v0  ;;  %8020 = vmatprep.subr.bf16.mxu0 %v13451_v28  ;;  %v15026_v0 = vld [vmem:[%s21343_s9 + $0x100] ss:$16 sps:$4 sm:$0xff]  }
 0x8ee   :  { %8102 = vmatprep.subr.bf16.mxu1 %v13453_v29  ;;  %v15029_v28 = vld [vmem:[%s21343_s9 + $0x300] ss:$16 sps:$4 sm:$0xff]   ;;  %v15034_v29 = vld [vmem:[%s21343_s9 + $0x124] ss:$16 sps:$4 sm:$0xff]  }
 0x8f0   :  { %8021 = vmatpush1.bf16.msra.mxu0 %v13450_v5  ;;  %v15035_v5 = vld [vmem:[%s21343_s9 + $0x320] ss:$16 sps:$4 sm:$0xff]  }
 0x8f1   :  { %8103 = vmatpush1.bf16.msra.mxu1 %v13452_v35  ;;  %11239 = vmatprep.subr.bf16.mxu0 %v14980_v38  ;;  %v15040_v35 = vld [vmem:[%s21343_s9 + $0x144] ss:$16 sps:$4 sm:$0xff]  }
 0x8f2   :  { %11280 = vmatprep.subr.bf16.mxu1 %v14983_v19  ;;  %v15043_v38 = vld [vmem:[%s21343_s9 + $0x344] ss:$16 sps:$4 sm:$0xff]   ;;  %v15038_v19 = vld [vmem:[%s21343_s9 + $0x140] ss:$16 sps:$4 sm:$0xff]  }
 0x8f3   :  { %8023 = vmatmul.mubr.bf16.vlgmr.msra.gmra.mrb[36].mxu0 %v18126_v3 }
 0x8f4   :  { %8105 = vmatmul.mubr.bf16.vlgmr.msra.gmra.mrb[36].mxu1 %v18126_v3  ;;  %11240 = vmatpush1.bf16.msra.mxu0 %v14978_v8  ;;  %v14995_v3 = vld [vmem:[%s21343_s9 + $0x244] ss:$16 sps:$4 sm:$0xff]  }
 0x8f5   :  { %11271 = vmatprep.mubr.bf16.mxu0 %v19322_v53  ;;  %11281 = vmatpush1.bf16.msra.mxu1 %v14981_v6  ;;  %v15049_v8 = vld [vmem:[%s21343_s9 + $0x364] ss:$16 sps:$4 sm:$0xff]   ;;  %v15044_v6 = vld [vmem:[%s21343_s9 + $0x160] ss:$16 sps:$4 sm:$0xff]  }
 0x8f6   :  { %11312 = vmatprep.mubr.bf16.mxu1 %v19328_v62  ;;  %11241 = vmatprep.subr.bf16.mxu0 %v14986_v49  ;;  %v15047_v49 = vld [vmem:[%s21343_s9 + $0x360] ss:$16 sps:$4 sm:$0xff]  }
 0x8f7   :  { %11282 = vmatprep.subr.bf16.mxu1 %v14989_v60  ;;  %v15052_v60 = vld [vmem:[%s21343_s9 + $0x184] ss:$16 sps:$4 sm:$0xff]  }
 0x8f8   :  { %11242 = vmatpush1.bf16.msra.mxu0 %v14984_v63  ;;  %v15055_v63 = vld [vmem:[%s21343_s9 + $0x384] ss:$16 sps:$4 sm:$0xff]  }
 0x8f9   :  { %11283 = vmatpush1.bf16.msra.mxu1 %v14987_v2  ;;  %11243 = vmatprep.subr.bf16.mxu0 %v14992_v39  ;;  %v15050_v2 = vld [vmem:[%s21343_s9 + $0x180] ss:$16 sps:$4 sm:$0xff]  }
 0x8fa   :  { %11284 = vmatprep.subr.bf16.mxu1 %v14995_v3  ;;  %v15053_v39 = vld [vmem:[%s21343_s9 + $0x380] ss:$16 sps:$4 sm:$0xff]   ;;  %v15058_v3 = vld [vmem:[%s21343_s9 + $0x1a4] ss:$16 sps:$4 sm:$0xff]  }
 0x8fc   :  { %11244 = vmatpush1.bf16.msra.mxu0 %v14990_v7  ;;  %v15061_v7 = vld [vmem:[%s21343_s9 + $0x3a4] ss:$16 sps:$4 sm:$0xff]  }
 0x8fd   :  { %11285 = vmatpush1.bf16.msra.mxu1 %v14993_v9  ;;  %11245 = vmatprep.subr.bf16.mxu0 %v14998_v10  ;;  %v15056_v9 = vld [vmem:[%s21343_s9 + $0x1a0] ss:$16 sps:$4 sm:$0xff]   ;;  %v4820_v10 = vrot.slane %v19287_v11, %v17155_v40 }
 0x8fe   :  { %11286 = vmatprep.subr.bf16.mxu1 %v15001_v12  ;;  %v15059_v12 = vld [vmem:[%s21343_s9 + $0x3a0] ss:$16 sps:$4 sm:$0xff]  }
 0x900   :  { %11246 = vmatpush1.bf16.msra.mxu0 %v14996_v4  ;;  %v15064_v4 = vld [vmem:[%s21343_s9 + $0x1c4] ss:$16 sps:$4 sm:$0xff]  }
 0x901   :  { %11287 = vmatpush1.bf16.msra.mxu1 %v14999_v24  ;;  %11247 = vmatprep.subr.bf16.mxu0 %v15004_v45  ;;  %v4828_v24 = vrot.slane %v19287_v11, %v17175_v55  ;;  %v15067_v45 = vld [vmem:[%s21343_s9 + $0x3c4] ss:$16 sps:$4 sm:$0xff]  }
 0x902   :  { %11288 = vmatprep.subr.bf16.mxu1 %v15007_v27  ;;  %v4840_v27 = vrot.slane %v19287_v11, %v17140_v32 }
 0x904   :  { %11248 = vmatpush1.bf16.msra.mxu0 %v15002_v13  ;;  %v4848_v13 = vrot.slane %v19287_v11, %v17149_v37 }
 0x905   :  { %11289 = vmatpush1.bf16.msra.mxu1 %v15005_v14  ;;  %11249 = vmatprep.subr.bf16.mxu0 %v15010_v15  ;;  %v15062_v14 = vld [vmem:[%s21343_s9 + $0x1c0] ss:$16 sps:$4 sm:$0xff]   ;;  %v14118_v15 = vadd.f32 %v18780_v52, %v4820_v10 }
 0x906   :  { %11290 = vmatprep.subr.bf16.mxu1 %v15013_v1  ;;  %v15065_v1 = vld [vmem:[%s21343_s9 + $0x3c0] ss:$16 sps:$4 sm:$0xff]   ;;  %v14125_v52 = vadd.f32 %v19198_v61, %v4848_v13 }
 0x907   :  { %v15104_v10 = vld [vmem:[%s21343_s9 + $0x4a0] ss:$16 sps:$4 sm:$0xff]  }
 0x908   :  { %11250 = vmatpush1.bf16.msra.mxu0 %v15008_v16  ;;  %v15070_v16 = vld [vmem:[%s21343_s9 + $0x1e4] ss:$16 sps:$4 sm:$0xff]  }
 0x909   :  { %11291 = vmatpush1.bf16.msra.mxu1 %v15011_v33  ;;  %11251 = vmatprep.subr.bf16.mxu0 %v15016_v17  ;;  %v14120_v33 = vadd.f32 %v18782_v54, %v4828_v24  ;;  %v15073_v17 = vld [vmem:[%s21343_s9 + $0x3e4] ss:$16 sps:$4 sm:$0xff]   ;;  %v15071_v54 = vld [vmem:[%s21343_s9 + $0x3e0] ss:$16 sps:$4 sm:$0xff]  }
 0x90a   :  { %11292 = vmatprep.subr.bf16.mxu1 %v15019_v23  ;;  %v14123_v23 = vadd.f32 %v19190_v51, %v4840_v27  ;;  %v15079_v51 = vld [vmem:[%s21343_s9 + $0x604] ss:$16 sps:$4 sm:$0xff]  }
 0x90c   :  { %11252 = vmatpush1.bf16.msra.mxu0 %v15014_v57  ;;  %v15068_v57 = vld [vmem:[%s21343_s9 + $0x1e0] ss:$16 sps:$4 sm:$0xff]   ;;  %v8118_v61 = vmax.f32 %v14123_v23, 0.0  ;;  %v15118_v23 = vld [vmem:[%s21343_s9 + $0x4e4] ss:$16 sps:$4 sm:$0xff]  }
 0x90d   :  { %11293 = vmatpush1.bf16.msra.mxu1 %v15017_v58  ;;  %11253 = vmatprep.subr.bf16.mxu0 %v15022_v59  ;;  %v8113_v58 = vmax.f32 %v14118_v15, 0.0  ;;  %v15076_v59 = vld [vmem:[%s21343_s9 + $0x404] ss:$16 sps:$4 sm:$0xff]  }
 0x90e   :  { %11294 = vmatprep.subr.bf16.mxu1 %v15025_v22  ;;  %v8115_v22 = vmax.f32 %v14120_v33, 0.0 }
 0x910   :  { %11254 = vmatpush1.bf16.msra.mxu0 %v15020_v25  ;;  %v8120_v25 = vmax.f32 %v14125_v52, 0.0 }
 0x911   :  { %11295 = vmatpush1.bf16.msra.mxu1 %v15023_v26  ;;  %11255 = vmatprep.subr.bf16.mxu0 %v15028_v48  ;;  %v15074_v26 = vld [vmem:[%s21343_s9 + $0x400] ss:$16 sps:$4 sm:$0xff]   ;;  %v19528_v48 = vpack.c.bf16 %v8113_v58, %v8113_v58 }
 0x912   :  { %11296 = vmatprep.subr.bf16.mxu1 %v15031_v34  ;;  %v15077_v34 = vld [vmem:[%s21343_s9 + $0x600] ss:$16 sps:$4 sm:$0xff]  }
 0x913   :  { %v15116_v58 = vld [vmem:[%s21343_s9 + $0x4e0] ss:$16 sps:$4 sm:$0xff]  }
 0x914   :  { %11256 = vmatpush1.bf16.msra.mxu0 %v15026_v0  ;;  %v19533_v0 = vpack.c.bf16 %v8115_v22, %v8115_v22  ;;  %v15127_v22 = vld [vmem:[%s21343_s9 + $0x704] ss:$16 sps:$4 sm:$0xff]  }
 0x915   :  { %11297 = vmatpush1.bf16.msra.mxu1 %v15029_v28  ;;  %11257 = vmatprep.subr.bf16.mxu0 %v15034_v29  ;;  %v15082_v28 = vld [vmem:[%s21343_s9 + $0x424] ss:$16 sps:$4 sm:$0xff]   ;;  %v19538_v29 = vpack.c.bf16 %v8118_v61, %v8118_v61  ;;  %v15125_v61 = vld [vmem:[%s21343_s9 + $0x700] ss:$16 sps:$4 sm:$0xff]  }
 0x916   :  { %11298 = vmatprep.subr.bf16.mxu1 %v15037_v30  ;;  %v15085_v30 = vld [vmem:[%s21343_s9 + $0x624] ss:$16 sps:$4 sm:$0xff]  }
 0x918   :  { %11258 = vmatpush1.bf16.msra.mxu0 %v15032_v31  ;;  %v19544_v31 = vpack.c.bf16 %v8120_v25, %v8120_v25  ;;  %v15130_v25 = vld [vmem:[%s21343_s9 + $0x524] ss:$16 sps:$4 sm:$0xff]  }
 0x919   :  { %11299 = vmatpush1.bf16.msra.mxu1 %v15035_v5  ;;  %11259 = vmatprep.subr.bf16.mxu0 %v15040_v35  ;;  %v15080_v5 = vld [vmem:[%s21343_s9 + $0x420] ss:$16 sps:$4 sm:$0xff]  }
 0x91a   :  { %11300 = vmatprep.subr.bf16.mxu1 %v15043_v38  ;;  %v15083_v35 = vld [vmem:[%s21343_s9 + $0x620] ss:$16 sps:$4 sm:$0xff]   ;;  %v15088_v38 = vld [vmem:[%s21343_s9 + $0x444] ss:$16 sps:$4 sm:$0xff]  }
 0x91c   :  { %11260 = vmatpush1.bf16.msra.mxu0 %v15038_v19  ;;  %v15091_v19 = vld [vmem:[%s21343_s9 + $0x644] ss:$16 sps:$4 sm:$0xff]  }
 0x91d   :  { %11301 = vmatpush1.bf16.msra.mxu1 %v15041_v42  ;;  %11261 = vmatprep.subr.bf16.mxu0 %v15046_v44  ;;  %v15086_v42 = vld [vmem:[%s21343_s9 + $0x440] ss:$16 sps:$4 sm:$0xff]  }
 0x91e   :  { %11302 = vmatprep.subr.bf16.mxu1 %v15049_v8  ;;  %v15089_v44 = vld [vmem:[%s21343_s9 + $0x640] ss:$16 sps:$4 sm:$0xff]   ;;  %v15094_v8 = vld [vmem:[%s21343_s9 + $0x464] ss:$16 sps:$4 sm:$0xff]  }
 0x920   :  { %11262 = vmatpush1.bf16.msra.mxu0 %v15044_v6  ;;  %v15097_v6 = vld [vmem:[%s21343_s9 + $0x664] ss:$16 sps:$4 sm:$0xff]  }
 0x921   :  { %11303 = vmatpush1.bf16.msra.mxu1 %v15047_v49  ;;  %11263 = vmatprep.subr.bf16.mxu0 %v15052_v60  ;;  %v15092_v49 = vld [vmem:[%s21343_s9 + $0x460] ss:$16 sps:$4 sm:$0xff]  }
 0x922   :  { %11304 = vmatprep.subr.bf16.mxu1 %v15055_v63  ;;  %v15095_v60 = vld [vmem:[%s21343_s9 + $0x660] ss:$16 sps:$4 sm:$0xff]   ;;  %v15100_v63 = vld [vmem:[%s21343_s9 + $0x484] ss:$16 sps:$4 sm:$0xff]  }
 0x924   :  { %11264 = vmatpush1.bf16.msra.mxu0 %v15050_v2  ;;  %v15103_v2 = vld [vmem:[%s21343_s9 + $0x684] ss:$16 sps:$4 sm:$0xff]  }
 0x925   :  { %11305 = vmatpush1.bf16.msra.mxu1 %v15053_v39  ;;  %11265 = vmatprep.subr.bf16.mxu0 %v15058_v3  ;;  %v15098_v39 = vld [vmem:[%s21343_s9 + $0x480] ss:$16 sps:$4 sm:$0xff]  }
 0x926   :  { %11306 = vmatprep.subr.bf16.mxu1 %v15061_v7  ;;  %v15101_v3 = vld [vmem:[%s21343_s9 + $0x680] ss:$16 sps:$4 sm:$0xff]   ;;  %v15106_v7 = vld [vmem:[%s21343_s9 + $0x4a4] ss:$16 sps:$4 sm:$0xff]  }
 0x928   :  { %11266 = vmatpush1.bf16.msra.mxu0 %v15056_v9  ;;  %v15109_v9 = vld [vmem:[%s21343_s9 + $0x6a4] ss:$16 sps:$4 sm:$0xff]  }
 0x929   :  { %11307 = vmatpush1.bf16.msra.mxu1 %v15059_v12  ;;  %11267 = vmatprep.subr.bf16.mxu0 %v15064_v4  ;;  %v15107_v12 = vld [vmem:[%s21343_s9 + $0x6a0] ss:$16 sps:$4 sm:$0xff]   ;;  %v15112_v4 = vld [vmem:[%s21343_s9 + $0x4c4] ss:$16 sps:$4 sm:$0xff]  }
 0x92a   :  { %11308 = vmatprep.subr.bf16.mxu1 %v15067_v45  ;;  %v15115_v45 = vld [vmem:[%s21343_s9 + $0x6c4] ss:$16 sps:$4 sm:$0xff]  }
 0x92c   :  { %11268 = vmatpush1.bf16.msra.mxu0 %v15062_v14 }
 0x92d   :  { %11309 = vmatpush1.bf16.msra.mxu1 %v15065_v1  ;;  %11269 = vmatprep.subr.bf16.mxu0 %v15070_v16  ;;  %v15110_v1 = vld [vmem:[%s21343_s9 + $0x4c0] ss:$16 sps:$4 sm:$0xff]  }
 0x92e   :  { %11310 = vmatprep.subr.bf16.mxu1 %v15073_v17  ;;  %v15113_v17 = vld [vmem:[%s21343_s9 + $0x6c0] ss:$16 sps:$4 sm:$0xff]  }
 0x930   :  { %11270 = vmatpush1.bf16.msra.mxu0 %v15068_v57  ;;  %v15121_v57 = vld [vmem:[%s21343_s9 + $0x6e4] ss:$16 sps:$4 sm:$0xff]  }
 0x931   :  { %11311 = vmatpush1.bf16.msra.mxu1 %v15071_v54  ;;  %11321 = vmatprep.subr.bf16.mxu0 %v15076_v59  ;;  %v15119_v54 = vld [vmem:[%s21343_s9 + $0x6e0] ss:$16 sps:$4 sm:$0xff]   ;;  %v15124_v59 = vld [vmem:[%s21343_s9 + $0x504] ss:$16 sps:$4 sm:$0xff]  }
 0x932   :  { %11362 = vmatprep.subr.bf16.mxu1 %v15079_v51  ;;  %v15122_v51 = vld [vmem:[%s21343_s9 + $0x500] ss:$16 sps:$4 sm:$0xff]  }
 0x933   :  { %11272 = vmatmul.mubr.bf16.vlgmr.msra.gmra.mrb[40].mxu0 %v19528_v48 }
 0x934   :  { %11313 = vmatmul.mubr.bf16.vlgmr.msra.gmra.mrb[40].mxu1 %v19533_v0  ;;  %11322 = vmatpush1.bf16.msra.mxu0 %v15074_v26  ;;  %v15133_v26 = vld [vmem:[%s21343_s9 + $0x724] ss:$16 sps:$4 sm:$0xff]  }
 0x935   :  { %11353 = vmatprep.mubr.bf16.mxu0 %v19538_v29  ;;  %11363 = vmatpush1.bf16.msra.mxu1 %v15077_v34  ;;  %v15128_v34 = vld [vmem:[%s21343_s9 + $0x520] ss:$16 sps:$4 sm:$0xff]  }
 0x936   :  { %11394 = vmatprep.mubr.bf16.mxu1 %v19544_v31  ;;  %11323 = vmatprep.subr.bf16.mxu0 %v15082_v28  ;;  %v15131_v28 = vld [vmem:[%s21343_s9 + $0x720] ss:$16 sps:$4 sm:$0xff]  }
 0x937   :  { %11364 = vmatprep.subr.bf16.mxu1 %v15085_v30  ;;  %v15136_v30 = vld [vmem:[%s21343_s9 + $0x544] ss:$16 sps:$4 sm:$0xff]  }
 0x938   :  { %11324 = vmatpush1.bf16.msra.mxu0 %v15080_v5  ;;  %v15139_v5 = vld [vmem:[%s21343_s9 + $0x744] ss:$16 sps:$4 sm:$0xff]  }
 0x939   :  { %11365 = vmatpush1.bf16.msra.mxu1 %v15083_v35  ;;  %11325 = vmatprep.subr.bf16.mxu0 %v15088_v38  ;;  %v15134_v35 = vld [vmem:[%s21343_s9 + $0x540] ss:$16 sps:$4 sm:$0xff]  }
 0x93a   :  { %11366 = vmatprep.subr.bf16.mxu1 %v15091_v19  ;;  %v15137_v38 = vld [vmem:[%s21343_s9 + $0x740] ss:$16 sps:$4 sm:$0xff]   ;;  %v15142_v19 = vld [vmem:[%s21343_s9 + $0x564] ss:$16 sps:$4 sm:$0xff]  }
 0x93c   :  { %11326 = vmatpush1.bf16.msra.mxu0 %v15086_v42  ;;  %v15145_v42 = vld [vmem:[%s21343_s9 + $0x764] ss:$16 sps:$4 sm:$0xff]  }
 0x93d   :  { %11367 = vmatpush1.bf16.msra.mxu1 %v15089_v44  ;;  %11327 = vmatprep.subr.bf16.mxu0 %v15094_v8  ;;  %v15140_v44 = vld [vmem:[%s21343_s9 + $0x560] ss:$16 sps:$4 sm:$0xff]  }
 0x93e   :  { %11368 = vmatprep.subr.bf16.mxu1 %v15097_v6  ;;  %v15143_v8 = vld [vmem:[%s21343_s9 + $0x760] ss:$16 sps:$4 sm:$0xff]   ;;  %v15148_v6 = vld [vmem:[%s21343_s9 + $0x584] ss:$16 sps:$4 sm:$0xff]  }
 0x940   :  { %11328 = vmatpush1.bf16.msra.mxu0 %v15092_v49  ;;  %v15151_v49 = vld [vmem:[%s21343_s9 + $0x784] ss:$16 sps:$4 sm:$0xff]  }
 0x941   :  { %11369 = vmatpush1.bf16.msra.mxu1 %v15095_v60  ;;  %11329 = vmatprep.subr.bf16.mxu0 %v15100_v63  ;;  %v15146_v60 = vld [vmem:[%s21343_s9 + $0x580] ss:$16 sps:$4 sm:$0xff]  }
 0x942   :  { %11370 = vmatprep.subr.bf16.mxu1 %v15103_v2  ;;  %v15149_v63 = vld [vmem:[%s21343_s9 + $0x780] ss:$16 sps:$4 sm:$0xff]   ;;  %v15154_v2 = vld [vmem:[%s21343_s9 + $0x5a4] ss:$16 sps:$4 sm:$0xff]  }
 0x944   :  { %11330 = vmatpush1.bf16.msra.mxu0 %v15098_v39  ;;  %v15157_v39 = vld [vmem:[%s21343_s9 + $0x7a4] ss:$16 sps:$4 sm:$0xff]  }
 0x945   :  { %11371 = vmatpush1.bf16.msra.mxu1 %v15101_v3  ;;  %11331 = vmatprep.subr.bf16.mxu0 %v15106_v7  ;;  %v19704_v3 = vld [vmem:[%s21342_s8 + $0x8] sm:$0xff]  ;;  %v15152_v7 = vld [vmem:[%s21343_s9 + $0x5a0] ss:$16 sps:$4 sm:$0xff]  }
 0x946   :  { %v19606_v24 = vpop.f32.mrb[32].mxu0  ;;  %11372 = vmatprep.subr.bf16.mxu1 %v15109_v9  ;;  %v4836_v9 = vrot.slane %v19287_v11, %v17146_v36 }
 0x947   :  { %v19611_v27 = vpop.f32.mrb[32].mxu1  ;;  %v19613_v13 = vpop.f32.mrb[33].mxu0 }
 0x948   :  { %v19615_v14 = vpop.f32.mrb[33].mxu1  ;;  %v7864_v15 = vpop.f32.mrb[34].mxu0  ;;  %11332 = vmatpush1.bf16.msra.mxu0 %v15104_v10  ;;  %v15155_v10 = vld [vmem:[%s21343_s9 + $0x7a0] ss:$16 sps:$4 sm:$0xff]  }
 0x949   :  { %v7946_v16 = vpop.f32.mrb[34].mxu1  ;;  %11373 = vmatpush1.bf16.msra.mxu1 %v15107_v12  ;;  %v7865_v33 = vpop.f32.mrb[35].mxu0  ;;  %11333 = vmatprep.subr.bf16.mxu0 %v15112_v4  ;;  %v15160_v12 = vld [vmem:[%s21343_s9 + $0x5c4] ss:$16 sps:$4 sm:$0xff]   ;;  %v4844_v4 = vrot.slane %v19287_v11, %v17168_v47  ;;  %v4856_v15 = vrot.slane %v19704_v3, %v16999_v46  ;;  %v15161_v11 = vld [vmem:[%s21343_s9 + $0x7c0] ss:$16 sps:$4 sm:$0xff]  }
 0x94a   :  { %v7947_v52 = vpop.f32.mrb[35].mxu1  ;;  %11374 = vmatprep.subr.bf16.mxu1 %v15115_v45  ;;  %v15163_v45 = vld [vmem:[%s21343_s9 + $0x7c4] ss:$16 sps:$4 sm:$0xff]   ;;  %v15158_v16 = vld [vmem:[%s21343_s9 + $0x5c0] ss:$16 sps:$4 sm:$0xff]   ;;  %v14122_v33 = vadd.f32 %v19180_v41, %v4836_v9 }
 0x94b   :  { %v15169_v52 = vld [vmem:[%s21343_s9 + $0x7e4] ss:$16 sps:$4 sm:$0xff]   ;;  %v15194_v9 = vld [vmem:[%s21343_s9 + $0x880] ss:$16 sps:$4 sm:$0xff]  }
 0x94c   :  { %11334 = vmatpush1.bf16.msra.mxu0 %v15110_v1  ;;  %v4864_v1 = vrot.slane %v19704_v3, %v17163_v43 }
 0x94d   :  { %11375 = vmatpush1.bf16.msra.mxu1 %v15113_v17  ;;  %11335 = vmatprep.subr.bf16.mxu0 %v15118_v23  ;;  %v15166_v17 = vld [vmem:[%s21343_s9 + $0x5e4] ss:$16 sps:$4 sm:$0xff]   ;;  %v14124_v23 = vadd.f32 %v19188_v50, %v4844_v4  ;;  %v15167_v50 = vld [vmem:[%s21343_s9 + $0x7e0] ss:$16 sps:$4 sm:$0xff]  }
 0x94e   :  { %11376 = vmatprep.subr.bf16.mxu1 %v15121_v57  ;;  %v14127_v57 = vadd.f32 %v19613_v13, %v4856_v15  ;;  %v14129_v41 = vadd.f32 %v19615_v14, %v4864_v1  ;;  %v15175_v13 = vld [vmem:[%s21343_s9 + $0xa04] ss:$16 sps:$4 sm:$0xff]   ;;  %v15203_v15 = vld [vmem:[%s21343_s9 + $0xaa0] ss:$16 sps:$4 sm:$0xff]  }
 0x94f   :  { %v15205_v4 = vld [vmem:[%s21343_s9 + $0xaa4] ss:$16 sps:$4 sm:$0xff]  }
 0x950   :  { %11336 = vmatpush1.bf16.msra.mxu0 %v15116_v58  ;;  %v15164_v58 = vld [vmem:[%s21343_s9 + $0x5e0] ss:$16 sps:$4 sm:$0xff]   ;;  %v8122_v14 = vmax.f32 %v14127_v57, 0.0  ;;  %v15208_v1 = vld [vmem:[%s21343_s9 + $0x8c4] ss:$16 sps:$4 sm:$0xff]  }
 0x951   :  { %11377 = vmatpush1.bf16.msra.mxu1 %v15119_v54  ;;  %11337 = vmatprep.subr.bf16.mxu0 %v15124_v59  ;;  %v8117_v54 = vmax.f32 %v14122_v33, 0.0  ;;  %v15172_v59 = vld [vmem:[%s21343_s9 + $0x804] ss:$16 sps:$4 sm:$0xff]   ;;  %v15206_v33 = vld [vmem:[%s21343_s9 + $0x8c0] ss:$16 sps:$4 sm:$0xff]  }
 0x952   :  { %11378 = vmatprep.subr.bf16.mxu1 %v15127_v22  ;;  %v8119_v22 = vmax.f32 %v14124_v23, 0.0  ;;  %v15217_v23 = vld [vmem:[%s21343_s9 + $0xae4] ss:$16 sps:$4 sm:$0xff]   ;;  %v15215_v57 = vld [vmem:[%s21343_s9 + $0xae0] ss:$16 sps:$4 sm:$0xff]  }
 0x954   :  { %11338 = vmatpush1.bf16.msra.mxu0 %v15122_v51  ;;  %v8124_v51 = vmax.f32 %v14129_v41, 0.0  ;;  %v15220_v41 = vld [vmem:[%s21343_s9 + $0x904] ss:$16 sps:$4 sm:$0xff]  }
 0x955   :  { %11379 = vmatpush1.bf16.msra.mxu1 %v15125_v61  ;;  %11339 = vmatprep.subr.bf16.mxu0 %v15130_v25  ;;  %v15170_v61 = vld [vmem:[%s21343_s9 + $0x800] ss:$16 sps:$4 sm:$0xff]   ;;  %v19757_v25 = vpack.c.bf16 %v8117_v54, %v8117_v54 }
 0x956   :  { %11380 = vmatprep.subr.bf16.mxu1 %v15133_v26  ;;  %v15173_v26 = vld [vmem:[%s21343_s9 + $0xa00] ss:$16 sps:$4 sm:$0xff]  }
 0x957   :  { %v15218_v54 = vld [vmem:[%s21343_s9 + $0x900] ss:$16 sps:$4 sm:$0xff]  }
 0x958   :  { %11340 = vmatpush1.bf16.msra.mxu0 %v15128_v34  ;;  %v19762_v34 = vpack.c.bf16 %v8119_v22, %v8119_v22  ;;  %v15229_v22 = vld [vmem:[%s21343_s9 + $0xb24] ss:$16 sps:$4 sm:$0xff]  }
 0x959   :  { %11381 = vmatpush1.bf16.msra.mxu1 %v15131_v28  ;;  %11341 = vmatprep.subr.bf16.mxu0 %v15136_v30  ;;  %v15178_v28 = vld [vmem:[%s21343_s9 + $0x824] ss:$16 sps:$4 sm:$0xff]   ;;  %v19767_v30 = vpack.c.bf16 %v8122_v14, %v8122_v14  ;;  %v15227_v14 = vld [vmem:[%s21343_s9 + $0xb20] ss:$16 sps:$4 sm:$0xff]  }
 0x95a   :  { %11382 = vmatprep.subr.bf16.mxu1 %v15139_v5  ;;  %v15181_v5 = vld [vmem:[%s21343_s9 + $0xa24] ss:$16 sps:$4 sm:$0xff]  }
 0x95c   :  { %11342 = vmatpush1.bf16.msra.mxu0 %v15134_v35  ;;  %v19773_v35 = vpack.c.bf16 %v8124_v51, %v8124_v51  ;;  %v15232_v51 = vld [vmem:[%s21343_s9 + $0x944] ss:$16 sps:$4 sm:$0xff]  }
 0x95d   :  { %11383 = vmatpush1.bf16.msra.mxu1 %v15137_v38  ;;  %11343 = vmatprep.subr.bf16.mxu0 %v15142_v19  ;;  %v15176_v38 = vld [vmem:[%s21343_s9 + $0x820] ss:$16 sps:$4 sm:$0xff]  }
 0x95e   :  { %11384 = vmatprep.subr.bf16.mxu1 %v15145_v42  ;;  %v15179_v19 = vld [vmem:[%s21343_s9 + $0xa20] ss:$16 sps:$4 sm:$0xff]   ;;  %v15184_v42 = vld [vmem:[%s21343_s9 + $0x844] ss:$16 sps:$4 sm:$0xff]  }
 0x960   :  { %11344 = vmatpush1.bf16.msra.mxu0 %v15140_v44  ;;  %v15187_v44 = vld [vmem:[%s21343_s9 + $0xa44] ss:$16 sps:$4 sm:$0xff]  }
 0x961   :  { %11385 = vmatpush1.bf16.msra.mxu1 %v15143_v8  ;;  %11345 = vmatprep.subr.bf16.mxu0 %v15148_v6  ;;  %v15182_v8 = vld [vmem:[%s21343_s9 + $0x840] ss:$16 sps:$4 sm:$0xff]  }
 0x962   :  { %11386 = vmatprep.subr.bf16.mxu1 %v15151_v49  ;;  %v15185_v6 = vld [vmem:[%s21343_s9 + $0xa40] ss:$16 sps:$4 sm:$0xff]   ;;  %v15190_v49 = vld [vmem:[%s21343_s9 + $0x864] ss:$16 sps:$4 sm:$0xff]  }
 0x964   :  { %11346 = vmatpush1.bf16.msra.mxu0 %v15146_v60  ;;  %v15193_v60 = vld [vmem:[%s21343_s9 + $0xa64] ss:$16 sps:$4 sm:$0xff]  }
 0x965   :  { %11387 = vmatpush1.bf16.msra.mxu1 %v15149_v63  ;;  %11347 = vmatprep.subr.bf16.mxu0 %v15154_v2  ;;  %v15188_v63 = vld [vmem:[%s21343_s9 + $0x860] ss:$16 sps:$4 sm:$0xff]  }
 0x966   :  { %11388 = vmatprep.subr.bf16.mxu1 %v15157_v39  ;;  %v15191_v2 = vld [vmem:[%s21343_s9 + $0xa60] ss:$16 sps:$4 sm:$0xff]   ;;  %v15196_v39 = vld [vmem:[%s21343_s9 + $0x884] ss:$16 sps:$4 sm:$0xff]  }
 0x968   :  { %11348 = vmatpush1.bf16.msra.mxu0 %v15152_v7  ;;  %v15199_v7 = vld [vmem:[%s21343_s9 + $0xa84] ss:$16 sps:$4 sm:$0xff]  }
 0x969   :  { %11389 = vmatpush1.bf16.msra.mxu1 %v15155_v10  ;;  %11349 = vmatprep.subr.bf16.mxu0 %v15160_v12  ;;  %v15197_v10 = vld [vmem:[%s21343_s9 + $0xa80] ss:$16 sps:$4 sm:$0xff]   ;;  %v15202_v12 = vld [vmem:[%s21343_s9 + $0x8a4] ss:$16 sps:$4 sm:$0xff]  }
 0x96a   :  { %11390 = vmatprep.subr.bf16.mxu1 %v15163_v45  ;;  %v15200_v45 = vld [vmem:[%s21343_s9 + $0x8a0] ss:$16 sps:$4 sm:$0xff]  }
 0x96c   :  { %11350 = vmatpush1.bf16.msra.mxu0 %v15158_v16  ;;  %v15211_v16 = vld [vmem:[%s21343_s9 + $0xac4] ss:$16 sps:$4 sm:$0xff]  }
 0x96d   :  { %11391 = vmatpush1.bf16.msra.mxu1 %v15161_v11  ;;  %11351 = vmatprep.subr.bf16.mxu0 %v15166_v17  ;;  %v15209_v11 = vld [vmem:[%s21343_s9 + $0xac0] ss:$16 sps:$4 sm:$0xff]   ;;  %v15214_v17 = vld [vmem:[%s21343_s9 + $0x8e4] ss:$16 sps:$4 sm:$0xff]  }
 0x96e   :  { %11392 = vmatprep.subr.bf16.mxu1 %v15169_v52  ;;  %v15212_v52 = vld [vmem:[%s21343_s9 + $0x8e0] ss:$16 sps:$4 sm:$0xff]  }
 0x970   :  { %11352 = vmatpush1.bf16.msra.mxu0 %v15164_v58  ;;  %v15223_v58 = vld [vmem:[%s21343_s9 + $0xb04] ss:$16 sps:$4 sm:$0xff]  }
 0x971   :  { %11393 = vmatpush1.bf16.msra.mxu1 %v15167_v50  ;;  %11403 = vmatprep.subr.bf16.mxu0 %v15172_v59  ;;  %v15221_v50 = vld [vmem:[%s21343_s9 + $0xb00] ss:$16 sps:$4 sm:$0xff]   ;;  %v15226_v59 = vld [vmem:[%s21343_s9 + $0x924] ss:$16 sps:$4 sm:$0xff]  }
 0x972   :  { %11444 = vmatprep.subr.bf16.mxu1 %v15175_v13  ;;  %v15224_v13 = vld [vmem:[%s21343_s9 + $0x920] ss:$16 sps:$4 sm:$0xff]  }
 0x973   :  { %11354 = vmatmul.mubr.bf16.vlgmr.msra.gmra.mrb[44].mxu0 %v19757_v25 }
 0x974   :  { %11395 = vmatmul.mubr.bf16.vlgmr.msra.gmra.mrb[44].mxu1 %v19762_v34  ;;  %11404 = vmatpush1.bf16.msra.mxu0 %v15170_v61  ;;  %v15235_v61 = vld [vmem:[%s21343_s9 + $0xb44] ss:$16 sps:$4 sm:$0xff]  }
 0x975   :  { %11435 = vmatprep.mubr.bf16.mxu0 %v19767_v30  ;;  %11445 = vmatpush1.bf16.msra.mxu1 %v15173_v26  ;;  %v15230_v26 = vld [vmem:[%s21343_s9 + $0x940] ss:$16 sps:$4 sm:$0xff]  }
 0x976   :  { %11476 = vmatprep.mubr.bf16.mxu1 %v19773_v35  ;;  %11405 = vmatprep.subr.bf16.mxu0 %v15178_v28  ;;  %v15233_v28 = vld [vmem:[%s21343_s9 + $0xb40] ss:$16 sps:$4 sm:$0xff]  }
 0x977   :  { %11446 = vmatprep.subr.bf16.mxu1 %v15181_v5  ;;  %v15238_v5 = vld [vmem:[%s21343_s9 + $0x964] ss:$16 sps:$4 sm:$0xff]  }
 0x978   :  { %11406 = vmatpush1.bf16.msra.mxu0 %v15176_v38  ;;  %v15241_v38 = vld [vmem:[%s21343_s9 + $0xb64] ss:$16 sps:$4 sm:$0xff]  }
 0x979   :  { %11447 = vmatpush1.bf16.msra.mxu1 %v15179_v19  ;;  %11407 = vmatprep.subr.bf16.mxu0 %v15184_v42  ;;  %v15236_v19 = vld [vmem:[%s21343_s9 + $0x960] ss:$16 sps:$4 sm:$0xff]  }
 0x97a   :  { %11448 = vmatprep.subr.bf16.mxu1 %v15187_v44  ;;  %v15239_v42 = vld [vmem:[%s21343_s9 + $0xb60] ss:$16 sps:$4 sm:$0xff]   ;;  %v15244_v44 = vld [vmem:[%s21343_s9 + $0x984] ss:$16 sps:$4 sm:$0xff]  }
 0x97c   :  { %11408 = vmatpush1.bf16.msra.mxu0 %v15182_v8  ;;  %v15247_v8 = vld [vmem:[%s21343_s9 + $0xb84] ss:$16 sps:$4 sm:$0xff]  }
 0x97d   :  { %11449 = vmatpush1.bf16.msra.mxu1 %v15185_v6  ;;  %11409 = vmatprep.subr.bf16.mxu0 %v15190_v49  ;;  %v15242_v6 = vld [vmem:[%s21343_s9 + $0x980] ss:$16 sps:$4 sm:$0xff]  }
 0x97e   :  { %11450 = vmatprep.subr.bf16.mxu1 %v15193_v60  ;;  %v15245_v49 = vld [vmem:[%s21343_s9 + $0xb80] ss:$16 sps:$4 sm:$0xff]   ;;  %v15250_v60 = vld [vmem:[%s21343_s9 + $0x9a4] ss:$16 sps:$4 sm:$0xff]  }
 0x980   :  { %11410 = vmatpush1.bf16.msra.mxu0 %v15188_v63  ;;  %v15253_v63 = vld [vmem:[%s21343_s9 + $0xba4] ss:$16 sps:$4 sm:$0xff]  }
 0x981   :  { %11451 = vmatpush1.bf16.msra.mxu1 %v15191_v2  ;;  %11411 = vmatprep.subr.bf16.mxu0 %v15196_v39  ;;  %v15248_v2 = vld [vmem:[%s21343_s9 + $0x9a0] ss:$16 sps:$4 sm:$0xff]   ;;  %v4852_v39 = vrot.slane %v19704_v3, %v17155_v40 }
 0x982   :  { %11452 = vmatprep.subr.bf16.mxu1 %v15199_v7  ;;  %v15251_v7 = vld [vmem:[%s21343_s9 + $0xba0] ss:$16 sps:$4 sm:$0xff]  }
 0x984   :  { %11412 = vmatpush1.bf16.msra.mxu0 %v15194_v9  ;;  %v15256_v9 = vld [vmem:[%s21343_s9 + $0x9c4] ss:$16 sps:$4 sm:$0xff]  }
 0x985   :  { %11453 = vmatpush1.bf16.msra.mxu1 %v15197_v10  ;;  %11413 = vmatprep.subr.bf16.mxu0 %v15202_v12  ;;  %v4860_v10 = vrot.slane %v19704_v3, %v17175_v55  ;;  %v15259_v12 = vld [vmem:[%s21343_s9 + $0xbc4] ss:$16 sps:$4 sm:$0xff]  }
 0x986   :  { %11454 = vmatprep.subr.bf16.mxu1 %v15205_v4  ;;  %v15254_v4 = vld [vmem:[%s21343_s9 + $0x9c0] ss:$16 sps:$4 sm:$0xff]  }
 0x988   :  { %11414 = vmatpush1.bf16.msra.mxu0 %v15200_v45  ;;  %v14126_v45 = vadd.f32 %v19606_v24, %v4852_v39  ;;  %v15260_v24 = vld [vmem:[%s21343_s9 + $0x9e0] ss:$16 sps:$4 sm:$0xff]   ;;  %v4880_v39 = vrot.slane %v19704_v3, %v17149_v37 }
 0x989   :  { %11455 = vmatpush1.bf16.msra.mxu1 %v15203_v15  ;;  %11415 = vmatprep.subr.bf16.mxu0 %v15208_v1  ;;  %v15257_v15 = vld [vmem:[%s21343_s9 + $0xbc0] ss:$16 sps:$4 sm:$0xff]   ;;  %v15262_v1 = vld [vmem:[%s21343_s9 + $0x9e4] ss:$16 sps:$4 sm:$0xff]  }
 0x98a   :  { %11456 = vmatprep.subr.bf16.mxu1 %v15211_v16  ;;  %v14128_v16 = vadd.f32 %v19611_v27, %v4860_v10  ;;  %v15268_v27 = vld [vmem:[%s21343_s9 + $0xc04] ss:$16 sps:$4 sm:$0xff]  }
 0x98c   :  { %11416 = vmatpush1.bf16.msra.mxu0 %v15206_v33  ;;  %v15265_v33 = vld [vmem:[%s21343_s9 + $0xbe4] ss:$16 sps:$4 sm:$0xff]  }
 0x98d   :  { %11457 = vmatpush1.bf16.msra.mxu1 %v15209_v11  ;;  %11417 = vmatprep.subr.bf16.mxu0 %v15214_v17  ;;  %v8121_v11 = vmax.f32 %v14126_v45, 0.0  ;;  %v15263_v17 = vld [vmem:[%s21343_s9 + $0xbe0] ss:$16 sps:$4 sm:$0xff]  }
 0x98e   :  { %11458 = vmatprep.subr.bf16.mxu1 %v15217_v23  ;;  %v8123_v23 = vmax.f32 %v14128_v16, 0.0 }
 0x990   :  { %11418 = vmatpush1.bf16.msra.mxu0 %v15212_v52  ;;  %v15271_v52 = vld [vmem:[%s21343_s9 + $0xe04] ss:$16 sps:$4 sm:$0xff]  }
 0x991   :  { %11459 = vmatpush1.bf16.msra.mxu1 %v15215_v57  ;;  %11419 = vmatprep.subr.bf16.mxu0 %v15220_v41  ;;  %v15266_v57 = vld [vmem:[%s21343_s9 + $0xc00] ss:$16 sps:$4 sm:$0xff]   ;;  %v19967_v41 = vpack.c.bf16 %v8121_v11, %v8121_v11 }
 0x992   :  { %11460 = vmatprep.subr.bf16.mxu1 %v15223_v58  ;;  %v15269_v58 = vld [vmem:[%s21343_s9 + $0xe00] ss:$16 sps:$4 sm:$0xff]  }
 0x993   :  { %v15305_v11 = vld [vmem:[%s21343_s9 + $0xec0] ss:$16 sps:$4 sm:$0xff]  }
 0x994   :  { %11420 = vmatpush1.bf16.msra.mxu0 %v15218_v54  ;;  %v15274_v54 = vld [vmem:[%s21343_s9 + $0xc24] ss:$16 sps:$4 sm:$0xff]  }
 0x995   :  { %11461 = vmatpush1.bf16.msra.mxu1 %v15221_v50  ;;  %11421 = vmatprep.subr.bf16.mxu0 %v15226_v59  ;;  %v19975_v50 = vpack.c.bf16 %v8123_v23, %v8123_v23  ;;  %v15277_v59 = vld [vmem:[%s21343_s9 + $0xe24] ss:$16 sps:$4 sm:$0xff]  }
 0x996   :  { %11462 = vmatprep.subr.bf16.mxu1 %v15229_v22  ;;  %v15272_v22 = vld [vmem:[%s21343_s9 + $0xc20] ss:$16 sps:$4 sm:$0xff]  }
 0x998   :  { %11422 = vmatpush1.bf16.msra.mxu0 %v15224_v13  ;;  %v15275_v13 = vld [vmem:[%s21343_s9 + $0xe20] ss:$16 sps:$4 sm:$0xff]  }
 0x999   :  { %11463 = vmatpush1.bf16.msra.mxu1 %v15227_v14  ;;  %11423 = vmatprep.subr.bf16.mxu0 %v15232_v51  ;;  %v15280_v14 = vld [vmem:[%s21343_s9 + $0xc44] ss:$16 sps:$4 sm:$0xff]  }
 0x99a   :  { %11464 = vmatprep.subr.bf16.mxu1 %v15235_v61  ;;  %v15283_v51 = vld [vmem:[%s21343_s9 + $0xe44] ss:$16 sps:$4 sm:$0xff]   ;;  %v15278_v61 = vld [vmem:[%s21343_s9 + $0xc40] ss:$16 sps:$4 sm:$0xff]  }
 0x99c   :  { %11424 = vmatpush1.bf16.msra.mxu0 %v15230_v26  ;;  %v15281_v26 = vld [vmem:[%s21343_s9 + $0xe40] ss:$16 sps:$4 sm:$0xff]  }
 0x99d   :  { %11465 = vmatpush1.bf16.msra.mxu1 %v15233_v28  ;;  %11425 = vmatprep.subr.bf16.mxu0 %v15238_v5  ;;  %v15286_v28 = vld [vmem:[%s21343_s9 + $0xc64] ss:$16 sps:$4 sm:$0xff]  }
 0x99e   :  { %11466 = vmatprep.subr.bf16.mxu1 %v15241_v38  ;;  %v15289_v5 = vld [vmem:[%s21343_s9 + $0xe64] ss:$16 sps:$4 sm:$0xff]   ;;  %v15284_v38 = vld [vmem:[%s21343_s9 + $0xc60] ss:$16 sps:$4 sm:$0xff]  }
 0x9a0   :  { %11426 = vmatpush1.bf16.msra.mxu0 %v15236_v19  ;;  %v15287_v19 = vld [vmem:[%s21343_s9 + $0xe60] ss:$16 sps:$4 sm:$0xff]  }
 0x9a1   :  { %11467 = vmatpush1.bf16.msra.mxu1 %v15239_v42  ;;  %11427 = vmatprep.subr.bf16.mxu0 %v15244_v44  ;;  %v15292_v42 = vld [vmem:[%s21343_s9 + $0xc84] ss:$16 sps:$4 sm:$0xff]  }
 0x9a2   :  { %11468 = vmatprep.subr.bf16.mxu1 %v15247_v8  ;;  %v15295_v44 = vld [vmem:[%s21343_s9 + $0xe84] ss:$16 sps:$4 sm:$0xff]   ;;  %v15290_v8 = vld [vmem:[%s21343_s9 + $0xc80] ss:$16 sps:$4 sm:$0xff]  }
 0x9a4   :  { %11428 = vmatpush1.bf16.msra.mxu0 %v15242_v6  ;;  %v15293_v6 = vld [vmem:[%s21343_s9 + $0xe80] ss:$16 sps:$4 sm:$0xff]  }
 0x9a5   :  { %11469 = vmatpush1.bf16.msra.mxu1 %v15245_v49  ;;  %11429 = vmatprep.subr.bf16.mxu0 %v15250_v60  ;;  %v15298_v49 = vld [vmem:[%s21343_s9 + $0xca4] ss:$16 sps:$4 sm:$0xff]  }
 0x9a6   :  { %11470 = vmatprep.subr.bf16.mxu1 %v15253_v63  ;;  %v15301_v60 = vld [vmem:[%s21343_s9 + $0xea4] ss:$16 sps:$4 sm:$0xff]   ;;  %v4872_v63 = vrot.slane %v19704_v3, %v17140_v32 }
 0x9a7   :  { %v15307_v32 = vld [vmem:[%s21343_s9 + $0xec4] ss:$16 sps:$4 sm:$0xff]  }
 0x9a8   :  { %11430 = vmatpush1.bf16.msra.mxu0 %v15248_v2  ;;  %v15296_v2 = vld [vmem:[%s21343_s9 + $0xca0] ss:$16 sps:$4 sm:$0xff]  }
 0x9a9   :  { %11471 = vmatpush1.bf16.msra.mxu1 %v15251_v7  ;;  %11431 = vmatprep.subr.bf16.mxu0 %v15256_v9  ;;  %v15299_v7 = vld [vmem:[%s21343_s9 + $0xea0] ss:$16 sps:$4 sm:$0xff]   ;;  %v15304_v9 = vld [vmem:[%s21343_s9 + $0xcc4] ss:$16 sps:$4 sm:$0xff]  }
 0x9aa   :  { %11472 = vmatprep.subr.bf16.mxu1 %v15259_v12 }
 0x9ac   :  { %11432 = vmatpush1.bf16.msra.mxu0 %v15254_v4 }
 0x9ad   :  { %11473 = vmatpush1.bf16.msra.mxu1 %v15257_v15  ;;  %11433 = vmatprep.subr.bf16.mxu0 %v15262_v1  ;;  %v15302_v1 = vld [vmem:[%s21343_s9 + $0xcc0] ss:$16 sps:$4 sm:$0xff]  }
 0x9ae   :  { %11474 = vmatprep.subr.bf16.mxu1 %v15265_v33 }
 0x9b0   :  { %11434 = vmatpush1.bf16.msra.mxu0 %v15260_v24 }
 0x9b1   :  { %11475 = vmatpush1.bf16.msra.mxu1 %v15263_v17  ;;  %11485 = vmatprep.subr.bf16.mxu0 %v15268_v27  ;;  %v15310_v17 = vld [vmem:[%s21343_s9 + $0xce4] ss:$16 sps:$4 sm:$0xff]  }
 0x9b2   :  { %11526 = vmatprep.subr.bf16.mxu1 %v15271_v52  ;;  %v15313_v52 = vld [vmem:[%s21343_s9 + $0xee4] ss:$16 sps:$4 sm:$0xff]  }
 0x9b3   :  { %11436 = vmatmul.mubr.bf16.vlgmr.msra.gmra.mrb[48].mxu0 %v19967_v41 }
 0x9b4   :  { %11477 = vmatmul.mubr.bf16.vlgmr.msra.gmra.mrb[48].mxu1 %v19975_v50  ;;  %11486 = vmatpush1.bf16.msra.mxu0 %v15266_v57 }
 0x9b5   :  { %11527 = vmatpush1.bf16.msra.mxu1 %v15269_v58  ;;  %11487 = vmatprep.subr.bf16.mxu0 %v15274_v54  ;;  %v15308_v54 = vld [vmem:[%s21343_s9 + $0xce0] ss:$16 sps:$4 sm:$0xff]  }
 0x9b6   :  { %11528 = vmatprep.subr.bf16.mxu1 %v15277_v59 }
 0x9b8   :  { %11488 = vmatpush1.bf16.msra.mxu0 %v15272_v22  ;;  %v15311_v22 = vld [vmem:[%s21343_s9 + $0xee0] ss:$16 sps:$4 sm:$0xff]  }
 0x9b9   :  { %11529 = vmatpush1.bf16.msra.mxu1 %v15275_v13  ;;  %11489 = vmatprep.subr.bf16.mxu0 %v15280_v14  ;;  %v15316_v13 = vld [vmem:[%s21343_s9 + $0xd04] ss:$16 sps:$4 sm:$0xff]  }
 0x9ba   :  { %11530 = vmatprep.subr.bf16.mxu1 %v15283_v51  ;;  %v15319_v14 = vld [vmem:[%s21343_s9 + $0xf04] ss:$16 sps:$4 sm:$0xff]   ;;  %v15314_v51 = vld [vmem:[%s21343_s9 + $0xd00] ss:$16 sps:$4 sm:$0xff]  }
 0x9bc   :  { %11490 = vmatpush1.bf16.msra.mxu0 %v15278_v61  ;;  %v15317_v61 = vld [vmem:[%s21343_s9 + $0xf00] ss:$16 sps:$4 sm:$0xff]  }
 0x9bd   :  { %11531 = vmatpush1.bf16.msra.mxu1 %v15281_v26  ;;  %11491 = vmatprep.subr.bf16.mxu0 %v15286_v28  ;;  %v15322_v26 = vld [vmem:[%s21343_s9 + $0xd24] ss:$16 sps:$4 sm:$0xff]  }
 0x9be   :  { %11532 = vmatprep.subr.bf16.mxu1 %v15289_v5  ;;  %v15325_v28 = vld [vmem:[%s21343_s9 + $0xf24] ss:$16 sps:$4 sm:$0xff]   ;;  %v15320_v5 = vld [vmem:[%s21343_s9 + $0xd20] ss:$16 sps:$4 sm:$0xff]  }
 0x9c0   :  { %11492 = vmatpush1.bf16.msra.mxu0 %v15284_v38  ;;  %v15323_v38 = vld [vmem:[%s21343_s9 + $0xf20] ss:$16 sps:$4 sm:$0xff]  }
 0x9c1   :  { %11533 = vmatpush1.bf16.msra.mxu1 %v15287_v19  ;;  %11493 = vmatprep.subr.bf16.mxu0 %v15292_v42  ;;  %v15328_v19 = vld [vmem:[%s21343_s9 + $0xd44] ss:$16 sps:$4 sm:$0xff]  }
 0x9c2   :  { %11534 = vmatprep.subr.bf16.mxu1 %v15295_v44  ;;  %v15331_v42 = vld [vmem:[%s21343_s9 + $0xf44] ss:$16 sps:$4 sm:$0xff]   ;;  %v15326_v44 = vld [vmem:[%s21343_s9 + $0xd40] ss:$16 sps:$4 sm:$0xff]  }
 0x9c4   :  { %11494 = vmatpush1.bf16.msra.mxu0 %v15290_v8  ;;  %v15329_v8 = vld [vmem:[%s21343_s9 + $0xf40] ss:$16 sps:$4 sm:$0xff]  }
 0x9c5   :  { %11535 = vmatpush1.bf16.msra.mxu1 %v15293_v6  ;;  %11495 = vmatprep.subr.bf16.mxu0 %v15298_v49  ;;  %v15334_v6 = vld [vmem:[%s21343_s9 + $0xd64] ss:$16 sps:$4 sm:$0xff]  }
 0x9c6   :  { %v20043_v10 = vpop.f32.mrb[36].mxu0  ;;  %11536 = vmatprep.subr.bf16.mxu1 %v15301_v60  ;;  %v15337_v49 = vld [vmem:[%s21343_s9 + $0xf64] ss:$16 sps:$4 sm:$0xff]   ;;  %v15332_v60 = vld [vmem:[%s21343_s9 + $0xd60] ss:$16 sps:$4 sm:$0xff]  }
 0x9c7   :  { %v20048_v12 = vpop.f32.mrb[36].mxu1  ;;  %v8026_v4 = vpop.f32.mrb[37].mxu0 }
 0x9c8   :  { %v14131_v37 = vadd.f32 %v8026_v4, %v4872_v63  ;;  %v8108_v45 = vpop.f32.mrb[37].mxu1  ;;  %v8028_v15 = vpop.f32.mrb[38].mxu0  ;;  %11496 = vmatpush1.bf16.msra.mxu0 %v15296_v2  ;;  %v15335_v63 = vld [vmem:[%s21343_s9 + $0xf60] ss:$16 sps:$4 sm:$0xff]   ;;  %v15340_v2 = vld [vmem:[%s21343_s9 + $0xd84] ss:$16 sps:$4 sm:$0xff]  }
 0x9c9   :  { %v14133_v16 = vadd.f32 %v8108_v45, %v4880_v39  ;;  %v8110_v33 = vpop.f32.mrb[38].mxu1  ;;  %11537 = vmatpush1.bf16.msra.mxu1 %v15299_v7  ;;  %v8029_v24 = vpop.f32.mrb[39].mxu0  ;;  %11497 = vmatprep.subr.bf16.mxu0 %v15304_v9  ;;  %v15343_v39 = vld [vmem:[%s21343_s9 + $0xf84] ss:$16 sps:$4 sm:$0xff]   ;;  %v15338_v7 = vld [vmem:[%s21343_s9 + $0xd80] ss:$16 sps:$4 sm:$0xff]   ;;  %v4868_v45 = vrot.slane %v19704_v3, %v17146_v36 }
 0x9ca   :  { %v8126_v27 = vmax.f32 %v14131_v37, 0.0  ;;  %v8111_v23 = vpop.f32.mrb[39].mxu1  ;;  %11538 = vmatprep.subr.bf16.mxu1 %v15307_v32  ;;  %v15341_v9 = vld [vmem:[%s21343_s9 + $0xf80] ss:$16 sps:$4 sm:$0xff]   ;;  %v15346_v32 = vld [vmem:[%s21343_s9 + $0xda4] ss:$16 sps:$4 sm:$0xff]  }
 0x9cb   :  { %v8128_v57 = vmax.f32 %v14133_v16, 0.0  ;;  %v15349_v4 = vld [vmem:[%s21343_s9 + $0xfa4] ss:$16 sps:$4 sm:$0xff]   ;;  %v15344_v37 = vld [vmem:[%s21343_s9 + $0xda0] ss:$16 sps:$4 sm:$0xff]   ;;  %v4876_v16 = vrot.slane %v19704_v3, %v17168_v47  ;;  %v14130_v24 = vadd.f32 %v20043_v10, %v4868_v45 }
 0x9cc   :  { %v20062_v58 = vpack.c.bf16 %v8126_v27, %v8126_v27  ;;  %11498 = vmatpush1.bf16.msra.mxu0 %v15302_v1  ;;  %v15347_v15 = vld [vmem:[%s21343_s9 + $0xfa0] ss:$16 sps:$4 sm:$0xff]   ;;  %v15352_v1 = vld [vmem:[%s21343_s9 + $0xdc4] ss:$16 sps:$4 sm:$0xff]   ;;  %v15400_v45 = vld [vmem:[%s21343_s9 + $0xcc] ss:$16 sps:$4 sm:$0xff]  }
 0x9cd   :  { %v20067_v59 = vpack.c.bf16 %v8128_v57, %v8128_v57  ;;  %11539 = vmatpush1.bf16.msra.mxu1 %v15305_v11  ;;  %11499 = vmatprep.subr.bf16.mxu0 %v15310_v17  ;;  %v15355_v33 = vld [vmem:[%s21343_s9 + $0xfc4] ss:$16 sps:$4 sm:$0xff]   ;;  %v15350_v36 = vld [vmem:[%s21343_s9 + $0xdc0] ss:$16 sps:$4 sm:$0xff]   ;;  %v14132_v3 = vadd.f32 %v20048_v12, %v4876_v16  ;;  %v8125_v27 = vmax.f32 %v14130_v24, 0.0 }
 0x9ce   :  { %11517 = vmatprep.mubr.bf16.mxu0 %v20062_v58  ;;  %11540 = vmatprep.subr.bf16.mxu1 %v15313_v52  ;;  %v15353_v11 = vld [vmem:[%s21343_s9 + $0xfc0] ss:$16 sps:$4 sm:$0xff]   ;;  %v15358_v47 = vld [vmem:[%s21343_s9 + $0xde4] ss:$16 sps:$4 sm:$0xff]   ;;  %v15364_v12 = vld [vmem:[%s21343_s9 + $0xc] ss:$16 sps:$4 sm:$0xff]  }
 0x9cf   :  { %11558 = vmatprep.mubr.bf16.mxu1 %v20067_v59  ;;  %v15361_v17 = vld [vmem:[%s21343_s9 + $0xfe4] ss:$16 sps:$4 sm:$0xff]   ;;  %v15356_v10 = vld [vmem:[%s21343_s9 + $0xde0] ss:$16 sps:$4 sm:$0xff]   ;;  %v8127_v52 = vmax.f32 %v14132_v3, 0.0 }
 0x9d0   :  { %11500 = vmatpush1.bf16.msra.mxu0 %v15308_v54  ;;  %v15359_v23 = vld [vmem:[%s21343_s9 + $0xfe0] ss:$16 sps:$4 sm:$0xff]   ;;  %v15367_v57 = vld [vmem:[%s21343_s9 + $0x20c] ss:$16 sps:$4 sm:$0xff]   ;;  %v15362_v54 = vld [vmem:[%s21343_s9 + $0x8] ss:$16 sps:$4 sm:$0xff]  }
 0x9d1   :  { %11541 = vmatpush1.bf16.msra.mxu1 %v15311_v22  ;;  %11501 = vmatprep.subr.bf16.mxu0 %v15316_v13  ;;  %v20185_v22 = vpack.c.bf16 %v8125_v27, %v8125_v27  ;;  %v15365_v13 = vld [vmem:[%s21343_s9 + $0x208] ss:$16 sps:$4 sm:$0xff]  }
 0x9d2   :  { %11542 = vmatprep.subr.bf16.mxu1 %v15319_v14  ;;  %v20190_v14 = vpack.c.bf16 %v8127_v52, %v8127_v52  ;;  %v15398_v3 = vld [vmem:[%s21343_s9 + $0xc8] ss:$16 sps:$4 sm:$0xff]  }
 0x9d4   :  { %11502 = vmatpush1.bf16.msra.mxu0 %v15314_v51  ;;  %v15370_v51 = vld [vmem:[%s21343_s9 + $0x2c] ss:$16 sps:$4 sm:$0xff]  }
 0x9d5   :  { %11543 = vmatpush1.bf16.msra.mxu1 %v15317_v61  ;;  %11503 = vmatprep.subr.bf16.mxu0 %v15322_v26  ;;  %v15373_v61 = vld [vmem:[%s21343_s9 + $0x22c] ss:$16 sps:$4 sm:$0xff]   ;;  %v15368_v26 = vld [vmem:[%s21343_s9 + $0x28] ss:$16 sps:$4 sm:$0xff]  }
 0x9d6   :  { %11544 = vmatprep.subr.bf16.mxu1 %v15325_v28  ;;  %v15371_v28 = vld [vmem:[%s21343_s9 + $0x228] ss:$16 sps:$4 sm:$0xff]  }
 0x9d8   :  { %11504 = vmatpush1.bf16.msra.mxu0 %v15320_v5  ;;  %v15376_v5 = vld [vmem:[%s21343_s9 + $0x4c] ss:$16 sps:$4 sm:$0xff]  }
 0x9d9   :  { %11545 = vmatpush1.bf16.msra.mxu1 %v15323_v38  ;;  %11505 = vmatprep.subr.bf16.mxu0 %v15328_v19  ;;  %v15379_v38 = vld [vmem:[%s21343_s9 + $0x24c] ss:$16 sps:$4 sm:$0xff]   ;;  %v15377_v19 = vld [vmem:[%s21343_s9 + $0x248] ss:$16 sps:$4 sm:$0xff]  }
 0x9da   :  { %11546 = vmatprep.subr.bf16.mxu1 %v15331_v42  ;;  %v15385_v42 = vld [vmem:[%s21343_s9 + $0x26c] ss:$16 sps:$4 sm:$0xff]  }
 0x9dc   :  { %11506 = vmatpush1.bf16.msra.mxu0 %v15326_v44  ;;  %v15380_v44 = vld [vmem:[%s21343_s9 + $0x68] ss:$16 sps:$4 sm:$0xff]  }
 0x9dd   :  { %11547 = vmatpush1.bf16.msra.mxu1 %v15329_v8  ;;  %11507 = vmatprep.subr.bf16.mxu0 %v15334_v6  ;;  %v15383_v8 = vld [vmem:[%s21343_s9 + $0x268] ss:$16 sps:$4 sm:$0xff]   ;;  %v15388_v6 = vld [vmem:[%s21343_s9 + $0x8c] ss:$16 sps:$4 sm:$0xff]  }
 0x9de   :  { %11548 = vmatprep.subr.bf16.mxu1 %v15337_v49  ;;  %v15391_v49 = vld [vmem:[%s21343_s9 + $0x28c] ss:$16 sps:$4 sm:$0xff]  }
 0x9e0   :  { %11508 = vmatpush1.bf16.msra.mxu0 %v15332_v60  ;;  %v15386_v60 = vld [vmem:[%s21343_s9 + $0x88] ss:$16 sps:$4 sm:$0xff]  }
 0x9e1   :  { %11549 = vmatpush1.bf16.msra.mxu1 %v15335_v63  ;;  %11509 = vmatprep.subr.bf16.mxu0 %v15340_v2  ;;  %v8657_v63 = vld [vmem:[%s21344_s10] sm:$0xf]  ;;  %v15389_v2 = vld [vmem:[%s21343_s9 + $0x288] ss:$16 sps:$4 sm:$0xff]  }
 0x9e2   :  { %11550 = vmatprep.subr.bf16.mxu1 %v15343_v39  ;;  %v15394_v39 = vld [vmem:[%s21343_s9 + $0xac] ss:$16 sps:$4 sm:$0xff]  }
 0x9e4   :  { %11510 = vmatpush1.bf16.msra.mxu0 %v15338_v7  ;;  %v15397_v7 = vld [vmem:[%s21343_s9 + $0x2ac] ss:$16 sps:$4 sm:$0xff]  }
 0x9e5   :  { %11551 = vmatpush1.bf16.msra.mxu1 %v15341_v9  ;;  %11511 = vmatprep.subr.bf16.mxu0 %v15346_v32  ;;  %v8662_v9 = vrot.slane %v8657_v63, %v17155_v40  ;;  %v8666_v32 = vrot.slane %v8657_v63, %v16999_v46  ;;  %v15428_v63 = vld [vmem:[%s21343_s9 + $0x168] ss:$16 sps:$4 sm:$0xff]  }
 0x9e6   :  { %11552 = vmatprep.subr.bf16.mxu1 %v15349_v4  ;;  %v15392_v4 = vld [vmem:[%s21343_s9 + $0xa8] ss:$16 sps:$4 sm:$0xff]  }
 0x9e8   :  { %11512 = vmatpush1.bf16.msra.mxu0 %v15344_v37  ;;  %v15395_v37 = vld [vmem:[%s21343_s9 + $0x2a8] ss:$16 sps:$4 sm:$0xff]  }
 0x9e9   :  { %11553 = vmatpush1.bf16.msra.mxu1 %v15347_v15  ;;  %11513 = vmatprep.subr.bf16.mxu0 %v15352_v1  ;;  %v15403_v1 = vld [vmem:[%s21343_s9 + $0x2cc] ss:$16 sps:$4 sm:$0xff]  }
 0x9ea   :  { %11554 = vmatprep.subr.bf16.mxu1 %v15355_v33 }
 0x9ec   :  { %11514 = vmatpush1.bf16.msra.mxu0 %v15350_v36 }
 0x9ed   :  { %11555 = vmatpush1.bf16.msra.mxu1 %v15353_v11  ;;  %11515 = vmatprep.subr.bf16.mxu0 %v15358_v47 }
 0x9ee   :  { %11556 = vmatprep.subr.bf16.mxu1 %v15361_v17 }
 0x9f0   :  { %11516 = vmatpush1.bf16.msra.mxu0 %v15356_v10 }
 0x9f1   :  { %11557 = vmatpush1.bf16.msra.mxu1 %v15359_v23  ;;  %11567 = vmatprep.subr.bf16.mxu0 %v15364_v12  ;;  %v15401_v23 = vld [vmem:[%s21343_s9 + $0x2c8] ss:$16 sps:$4 sm:$0xff]   ;;  %v15406_v12 = vld [vmem:[%s21343_s9 + $0xec] ss:$16 sps:$4 sm:$0xff]  }
 0x9f2   :  { %11608 = vmatprep.subr.bf16.mxu1 %v15367_v57 }
 0x9f3   :  { %11518 = vmatmul.mubr.bf16.vlgmr.msra.gmra.mrb[52].mxu0 %v20185_v22 }
 0x9f4   :  { %11559 = vmatmul.mubr.bf16.vlgmr.msra.gmra.mrb[52].mxu1 %v20190_v14  ;;  %11568 = vmatpush1.bf16.msra.mxu0 %v15362_v54  ;;  %v15409_v54 = vld [vmem:[%s21343_s9 + $0x2ec] ss:$16 sps:$4 sm:$0xff]  }
 0x9f5   :  { %11599 = vmatprep.mubr.bf16.mxu0 %v19322_v53  ;;  %11609 = vmatpush1.bf16.msra.mxu1 %v15365_v13  ;;  %v15374_v53 = vld [vmem:[%s21343_s9 + $0x48] ss:$16 sps:$4 sm:$0xff]  }
 0x9f6   :  { %11640 = vmatprep.mubr.bf16.mxu1 %v19328_v62  ;;  %11569 = vmatprep.subr.bf16.mxu0 %v15370_v51  ;;  %v15382_v62 = vld [vmem:[%s21343_s9 + $0x6c] ss:$16 sps:$4 sm:$0xff]   ;;  %v15404_v13 = vld [vmem:[%s21343_s9 + $0xe8] ss:$16 sps:$4 sm:$0xff]  }
 0x9f7   :  { %11610 = vmatprep.subr.bf16.mxu1 %v15373_v61  ;;  %v15407_v51 = vld [vmem:[%s21343_s9 + $0x2e8] ss:$16 sps:$4 sm:$0xff]   ;;  %v15412_v61 = vld [vmem:[%s21343_s9 + $0x10c] ss:$16 sps:$4 sm:$0xff]  }
 0x9f8   :  { %11570 = vmatpush1.bf16.msra.mxu0 %v15368_v26  ;;  %v15415_v26 = vld [vmem:[%s21343_s9 + $0x30c] ss:$16 sps:$4 sm:$0xff]  }
 0x9f9   :  { %11611 = vmatpush1.bf16.msra.mxu1 %v15371_v28  ;;  %11571 = vmatprep.subr.bf16.mxu0 %v15376_v5  ;;  %v15410_v28 = vld [vmem:[%s21343_s9 + $0x108] ss:$16 sps:$4 sm:$0xff]  }
 0x9fa   :  { %11612 = vmatprep.subr.bf16.mxu1 %v15379_v38  ;;  %v15413_v5 = vld [vmem:[%s21343_s9 + $0x308] ss:$16 sps:$4 sm:$0xff]   ;;  %v15418_v38 = vld [vmem:[%s21343_s9 + $0x12c] ss:$16 sps:$4 sm:$0xff]  }
 0x9fc   :  { %11572 = vmatpush1.bf16.msra.mxu0 %v15374_v53  ;;  %v15421_v53 = vld [vmem:[%s21343_s9 + $0x32c] ss:$16 sps:$4 sm:$0xff]  }
 0x9fd   :  { %11613 = vmatpush1.bf16.msra.mxu1 %v15377_v19  ;;  %11573 = vmatprep.subr.bf16.mxu0 %v15382_v62  ;;  %v15416_v19 = vld [vmem:[%s21343_s9 + $0x128] ss:$16 sps:$4 sm:$0xff]  }
 0x9fe   :  { %11614 = vmatprep.subr.bf16.mxu1 %v15385_v42  ;;  %v15419_v62 = vld [vmem:[%s21343_s9 + $0x328] ss:$16 sps:$4 sm:$0xff]   ;;  %v15424_v42 = vld [vmem:[%s21343_s9 + $0x14c] ss:$16 sps:$4 sm:$0xff]  }
 0xa00   :  { %11574 = vmatpush1.bf16.msra.mxu0 %v15380_v44  ;;  %v15427_v44 = vld [vmem:[%s21343_s9 + $0x34c] ss:$16 sps:$4 sm:$0xff]  }
 0xa01   :  { %11615 = vmatpush1.bf16.msra.mxu1 %v15383_v8  ;;  %11575 = vmatprep.subr.bf16.mxu0 %v15388_v6  ;;  %v15422_v8 = vld [vmem:[%s21343_s9 + $0x148] ss:$16 sps:$4 sm:$0xff]  }
 0xa02   :  { %11616 = vmatprep.subr.bf16.mxu1 %v15391_v49  ;;  %v15425_v6 = vld [vmem:[%s21343_s9 + $0x348] ss:$16 sps:$4 sm:$0xff]   ;;  %v15430_v49 = vld [vmem:[%s21343_s9 + $0x16c] ss:$16 sps:$4 sm:$0xff]  }
 0xa04   :  { %11576 = vmatpush1.bf16.msra.mxu0 %v15386_v60  ;;  %v15433_v60 = vld [vmem:[%s21343_s9 + $0x36c] ss:$16 sps:$4 sm:$0xff]  }
 0xa05   :  { %11617 = vmatpush1.bf16.msra.mxu1 %v15389_v2  ;;  %11577 = vmatprep.subr.bf16.mxu0 %v15394_v39  ;;  %v15431_v2 = vld [vmem:[%s21343_s9 + $0x368] ss:$16 sps:$4 sm:$0xff]   ;;  %v15436_v39 = vld [vmem:[%s21343_s9 + $0x18c] ss:$16 sps:$4 sm:$0xff]  }
 0xa06   :  { %v11273_v15 = vpop.f32.mrb[40].mxu0  ;;  %11618 = vmatprep.subr.bf16.mxu1 %v15397_v7  ;;  %v15439_v7 = vld [vmem:[%s21343_s9 + $0x38c] ss:$16 sps:$4 sm:$0xff]  }
 0xa07   :  { %v11274_v16 = vadd.f32 %v11273_v15, %v8662_v9  ;;  %v11314_v33 = vpop.f32.mrb[40].mxu1  ;;  %v11275_v36 = vpop.f32.mrb[41].mxu0  ;;  %v15434_v9 = vld [vmem:[%s21343_s9 + $0x188] ss:$16 sps:$4 sm:$0xff]  }
 0xa08   :  { %v11276_v24 = vadd.f32 %v11275_v36, %v8666_v32  ;;  %v11316_v11 = vpop.f32.mrb[41].mxu1  ;;  %v11277_v47 = vpop.f32.mrb[42].mxu0  ;;  %11578 = vmatpush1.bf16.msra.mxu0 %v15392_v4  ;;  %v15437_v32 = vld [vmem:[%s21343_s9 + $0x388] ss:$16 sps:$4 sm:$0xff]   ;;  %v15442_v4 = vld [vmem:[%s21343_s9 + $0x1ac] ss:$16 sps:$4 sm:$0xff]  }
 0xa09   :  { %v20270_v17 = vadd.f32 %v11314_v33, %v11274_v16  ;;  %v11318_v10 = vpop.f32.mrb[42].mxu1  ;;  %11619 = vmatpush1.bf16.msra.mxu1 %v15395_v37  ;;  %v11278_v27 = vpop.f32.mrb[43].mxu0  ;;  %11579 = vmatprep.subr.bf16.mxu0 %v15400_v45  ;;  %v15445_v37 = vld [vmem:[%s21343_s9 + $0x3ac] ss:$16 sps:$4 sm:$0xff]   ;;  %v15440_v45 = vld [vmem:[%s21343_s9 + $0x1a8] ss:$16 sps:$4 sm:$0xff]  }
 0xa0a   :  { %v20278_v52 = vadd.f32 %v11316_v11, %v11276_v24  ;;  %v11319_v57 = vpop.f32.mrb[43].mxu1  ;;  %11620 = vmatprep.subr.bf16.mxu1 %v15403_v1  ;;  %v15443_v15 = vld [vmem:[%s21343_s9 + $0x3a8] ss:$16 sps:$4 sm:$0xff]   ;;  %v15448_v1 = vld [vmem:[%s21343_s9 + $0x1cc] ss:$16 sps:$4 sm:$0xff]  }
 0xa0b   :  { %v15451_v16 = vld [vmem:[%s21343_s9 + $0x3cc] ss:$16 sps:$4 sm:$0xff]   ;;  %v15446_v33 = vld [vmem:[%s21343_s9 + $0x1c8] ss:$16 sps:$4 sm:$0xff]  }
 0xa0c   :  { %11580 = vmatpush1.bf16.msra.mxu0 %v15398_v3  ;;  %v15449_v36 = vld [vmem:[%s21343_s9 + $0x3c8] ss:$16 sps:$4 sm:$0xff]   ;;  %v15454_v24 = vld [vmem:[%s21343_s9 + $0x1ec] ss:$16 sps:$4 sm:$0xff]  }
 0xa0d   :  { %11621 = vmatpush1.bf16.msra.mxu1 %v15401_v23  ;;  %11581 = vmatprep.subr.bf16.mxu0 %v15406_v12  ;;  %v15457_v11 = vld [vmem:[%s21343_s9 + $0x3ec] ss:$16 sps:$4 sm:$0xff]   ;;  %v15452_v47 = vld [vmem:[%s21343_s9 + $0x1e8] ss:$16 sps:$4 sm:$0xff]  }
 0xa0e   :  { %11622 = vmatprep.subr.bf16.mxu1 %v15409_v54  ;;  %v15455_v3 = vld [vmem:[%s21343_s9 + $0x3e8] ss:$16 sps:$4 sm:$0xff]   ;;  %v15460_v10 = vld [vmem:[%s21343_s9 + $0x40c] ss:$16 sps:$4 sm:$0xff]  }
 0xa0f   :  { %v15463_v27 = vld [vmem:[%s21343_s9 + $0x60c] ss:$16 sps:$4 sm:$0xff]   ;;  %v15458_v23 = vld [vmem:[%s21343_s9 + $0x408] ss:$16 sps:$4 sm:$0xff]  }
 0xa10   :  { %11582 = vmatpush1.bf16.msra.mxu0 %v15404_v13  ;;  %v15461_v12 = vld [vmem:[%s21343_s9 + $0x608] ss:$16 sps:$4 sm:$0xff]   ;;  %v15466_v57 = vld [vmem:[%s21343_s9 + $0x42c] ss:$16 sps:$4 sm:$0xff]  }
 0xa11   :  { %11623 = vmatpush1.bf16.msra.mxu1 %v15407_v51  ;;  %11583 = vmatprep.subr.bf16.mxu0 %v15412_v61  ;;  %v15469_v54 = vld [vmem:[%s21343_s9 + $0x62c] ss:$16 sps:$4 sm:$0xff]   ;;  %v15464_v13 = vld [vmem:[%s21343_s9 + $0x428] ss:$16 sps:$4 sm:$0xff]  }
 0xa12   :  { %11624 = vmatprep.subr.bf16.mxu1 %v15415_v26  ;;  %v15467_v51 = vld [vmem:[%s21343_s9 + $0x628] ss:$16 sps:$4 sm:$0xff]   ;;  %v15481_v26 = vld [vmem:[%s21343_s9 + $0x66c] ss:$16 sps:$4 sm:$0xff]  }
 0xa13   :  { %v15473_v61 = vld [vmem:[%s21343_s9 + $0x648] ss:$16 sps:$4 sm:$0xff]  }
 0xa14   :  { %11584 = vmatpush1.bf16.msra.mxu0 %v15410_v28  ;;  %v15476_v28 = vld [vmem:[%s21343_s9 + $0x468] ss:$16 sps:$4 sm:$0xff]  }
 0xa15   :  { %11625 = vmatpush1.bf16.msra.mxu1 %v15413_v5  ;;  %11585 = vmatprep.subr.bf16.mxu0 %v15418_v38  ;;  %v15479_v5 = vld [vmem:[%s21343_s9 + $0x668] ss:$16 sps:$4 sm:$0xff]   ;;  %v15484_v38 = vld [vmem:[%s21343_s9 + $0x48c] ss:$16 sps:$4 sm:$0xff]  }
 0xa16   :  { %11626 = vmatprep.subr.bf16.mxu1 %v15421_v53  ;;  %v15487_v53 = vld [vmem:[%s21343_s9 + $0x68c] ss:$16 sps:$4 sm:$0xff]  }
 0xa18   :  { %11586 = vmatpush1.bf16.msra.mxu0 %v15416_v19  ;;  %v15482_v19 = vld [vmem:[%s21343_s9 + $0x488] ss:$16 sps:$4 sm:$0xff]  }
 0xa19   :  { %11627 = vmatpush1.bf16.msra.mxu1 %v15419_v62  ;;  %11587 = vmatprep.subr.bf16.mxu0 %v15424_v42  ;;  %v15485_v62 = vld [vmem:[%s21343_s9 + $0x688] ss:$16 sps:$4 sm:$0xff]   ;;  %v15490_v42 = vld [vmem:[%s21343_s9 + $0x4ac] ss:$16 sps:$4 sm:$0xff]  }
 0xa1a   :  { %11628 = vmatprep.subr.bf16.mxu1 %v15427_v44  ;;  %v15493_v44 = vld [vmem:[%s21343_s9 + $0x6ac] ss:$16 sps:$4 sm:$0xff]  }
 0xa1c   :  { %11588 = vmatpush1.bf16.msra.mxu0 %v15422_v8  ;;  %v15488_v8 = vld [vmem:[%s21343_s9 + $0x4a8] ss:$16 sps:$4 sm:$0xff]  }
 0xa1d   :  { %11629 = vmatpush1.bf16.msra.mxu1 %v15425_v6  ;;  %11589 = vmatprep.subr.bf16.mxu0 %v15430_v49  ;;  %v15491_v6 = vld [vmem:[%s21343_s9 + $0x6a8] ss:$16 sps:$4 sm:$0xff]   ;;  %v15496_v49 = vld [vmem:[%s21343_s9 + $0x4cc] ss:$16 sps:$4 sm:$0xff]  }
 0xa1e   :  { %11630 = vmatprep.subr.bf16.mxu1 %v15433_v60 }
 0xa20   :  { %11590 = vmatpush1.bf16.msra.mxu0 %v15428_v63  ;;  %v15499_v63 = vld [vmem:[%s21343_s9 + $0x6cc] ss:$16 sps:$4 sm:$0xff]  }
 0xa21   :  { %11631 = vmatpush1.bf16.msra.mxu1 %v15431_v2  ;;  %11591 = vmatprep.subr.bf16.mxu0 %v15436_v39 }
 0xa22   :  { %11632 = vmatprep.subr.bf16.mxu1 %v15439_v7 }
 0xa24   :  { %11592 = vmatpush1.bf16.msra.mxu0 %v15434_v9 }
 0xa25   :  { %11633 = vmatpush1.bf16.msra.mxu1 %v15437_v32  ;;  %11593 = vmatprep.subr.bf16.mxu0 %v15442_v4 }
 0xa26   :  { %11634 = vmatprep.subr.bf16.mxu1 %v15445_v37  ;;  %v15494_v37 = vld [vmem:[%s21343_s9 + $0x4c8] ss:$16 sps:$4 sm:$0xff]  }
 0xa28   :  { %11594 = vmatpush1.bf16.msra.mxu0 %v15440_v45 }
 0xa29   :  { %11635 = vmatpush1.bf16.msra.mxu1 %v15443_v15  ;;  %11595 = vmatprep.subr.bf16.mxu0 %v15448_v1 }
 0xa2a   :  { %11636 = vmatprep.subr.bf16.mxu1 %v15451_v16 }
 0xa2c   :  { %11596 = vmatpush1.bf16.msra.mxu0 %v15446_v33 }
 0xa2d   :  { %11637 = vmatpush1.bf16.msra.mxu1 %v15449_v36  ;;  %11597 = vmatprep.subr.bf16.mxu0 %v15454_v24  ;;  %v15505_v36 = vld [vmem:[%s21343_s9 + $0x6ec] ss:$16 sps:$4 sm:$0xff]   ;;  %v15500_v24 = vld [vmem:[%s21343_s9 + $0x4e8] ss:$16 sps:$4 sm:$0xff]  }
 0xa2e   :  { %11638 = vmatprep.subr.bf16.mxu1 %v15457_v11  ;;  %v15503_v11 = vld [vmem:[%s21343_s9 + $0x6e8] ss:$16 sps:$4 sm:$0xff]  }
 0xa30   :  { %11598 = vmatpush1.bf16.msra.mxu0 %v15452_v47  ;;  %v15508_v47 = vld [vmem:[%s21343_s9 + $0x50c] ss:$16 sps:$4 sm:$0xff]  }
 0xa31   :  { %11639 = vmatpush1.bf16.msra.mxu1 %v15455_v3  ;;  %11649 = vmatprep.subr.bf16.mxu0 %v15460_v10  ;;  %v15511_v3 = vld [vmem:[%s21343_s9 + $0x70c] ss:$16 sps:$4 sm:$0xff]   ;;  %v15506_v10 = vld [vmem:[%s21343_s9 + $0x508] ss:$16 sps:$4 sm:$0xff]  }
 0xa32   :  { %11690 = vmatprep.subr.bf16.mxu1 %v15463_v27  ;;  %v15509_v27 = vld [vmem:[%s21343_s9 + $0x708] ss:$16 sps:$4 sm:$0xff]  }
 0xa33   :  { %11600 = vmatmul.mubr.bf16.vlgmr.msra.gmra.mrb[56].mxu0 %v19528_v48  ;;  %v15472_v48 = vld [vmem:[%s21343_s9 + $0x44c] ss:$16 sps:$4 sm:$0xff]  }
 0xa34   :  { %11641 = vmatmul.mubr.bf16.vlgmr.msra.gmra.mrb[56].mxu1 %v19533_v0  ;;  %11650 = vmatpush1.bf16.msra.mxu0 %v15458_v23  ;;  %v15475_v0 = vld [vmem:[%s21343_s9 + $0x64c] ss:$16 sps:$4 sm:$0xff]  }
 0xa35   :  { %11681 = vmatprep.mubr.bf16.mxu0 %v19538_v29  ;;  %11691 = vmatpush1.bf16.msra.mxu1 %v15461_v12  ;;  %v15470_v29 = vld [vmem:[%s21343_s9 + $0x448] ss:$16 sps:$4 sm:$0xff]   ;;  %v15514_v23 = vld [vmem:[%s21343_s9 + $0x52c] ss:$16 sps:$4 sm:$0xff]  }
 0xa36   :  { %11722 = vmatprep.mubr.bf16.mxu1 %v19544_v31  ;;  %11651 = vmatprep.subr.bf16.mxu0 %v15466_v57  ;;  %v15478_v31 = vld [vmem:[%s21343_s9 + $0x46c] ss:$16 sps:$4 sm:$0xff]   ;;  %v15512_v57 = vld [vmem:[%s21343_s9 + $0x528] ss:$16 sps:$4 sm:$0xff]  }
 0xa37   :  { %11692 = vmatprep.subr.bf16.mxu1 %v15469_v54  ;;  %v15517_v12 = vld [vmem:[%s21343_s9 + $0x72c] ss:$16 sps:$4 sm:$0xff]   ;;  %v15515_v54 = vld [vmem:[%s21343_s9 + $0x728] ss:$16 sps:$4 sm:$0xff]  }
 0xa38   :  { %11652 = vmatpush1.bf16.msra.mxu0 %v15464_v13  ;;  %v15520_v13 = vld [vmem:[%s21343_s9 + $0x54c] ss:$16 sps:$4 sm:$0xff]  }
 0xa39   :  { %11693 = vmatpush1.bf16.msra.mxu1 %v15467_v51  ;;  %11653 = vmatprep.subr.bf16.mxu0 %v15472_v48  ;;  %v15523_v51 = vld [vmem:[%s21343_s9 + $0x74c] ss:$16 sps:$4 sm:$0xff]   ;;  %v15518_v48 = vld [vmem:[%s21343_s9 + $0x548] ss:$16 sps:$4 sm:$0xff]  }
 0xa3a   :  { %11694 = vmatprep.subr.bf16.mxu1 %v15475_v0  ;;  %v15521_v0 = vld [vmem:[%s21343_s9 + $0x748] ss:$16 sps:$4 sm:$0xff]  }
 0xa3c   :  { %11654 = vmatpush1.bf16.msra.mxu0 %v15470_v29  ;;  %v15526_v29 = vld [vmem:[%s21343_s9 + $0x56c] ss:$16 sps:$4 sm:$0xff]  }
 0xa3d   :  { %11695 = vmatpush1.bf16.msra.mxu1 %v15473_v61  ;;  %11655 = vmatprep.subr.bf16.mxu0 %v15478_v31  ;;  %v15529_v61 = vld [vmem:[%s21343_s9 + $0x76c] ss:$16 sps:$4 sm:$0xff]   ;;  %v15524_v31 = vld [vmem:[%s21343_s9 + $0x568] ss:$16 sps:$4 sm:$0xff]  }
 0xa3e   :  { %11696 = vmatprep.subr.bf16.mxu1 %v15481_v26  ;;  %v15527_v26 = vld [vmem:[%s21343_s9 + $0x768] ss:$16 sps:$4 sm:$0xff]  }
 0xa40   :  { %11656 = vmatpush1.bf16.msra.mxu0 %v15476_v28  ;;  %v15532_v28 = vld [vmem:[%s21343_s9 + $0x58c] ss:$16 sps:$4 sm:$0xff]  }
 0xa41   :  { %11697 = vmatpush1.bf16.msra.mxu1 %v15479_v5  ;;  %11657 = vmatprep.subr.bf16.mxu0 %v15484_v38  ;;  %v15535_v5 = vld [vmem:[%s21343_s9 + $0x78c] ss:$16 sps:$4 sm:$0xff]   ;;  %v15530_v38 = vld [vmem:[%s21343_s9 + $0x588] ss:$16 sps:$4 sm:$0xff]  }
 0xa42   :  { %11698 = vmatprep.subr.bf16.mxu1 %v15487_v53  ;;  %v15533_v53 = vld [vmem:[%s21343_s9 + $0x788] ss:$16 sps:$4 sm:$0xff]  }
 0xa44   :  { %11658 = vmatpush1.bf16.msra.mxu0 %v15482_v19  ;;  %v15538_v19 = vld [vmem:[%s21343_s9 + $0x5ac] ss:$16 sps:$4 sm:$0xff]  }
 0xa45   :  { %11699 = vmatpush1.bf16.msra.mxu1 %v15485_v62  ;;  %11659 = vmatprep.subr.bf16.mxu0 %v15490_v42  ;;  %v15541_v62 = vld [vmem:[%s21343_s9 + $0x7ac] ss:$16 sps:$4 sm:$0xff]   ;;  %v15536_v42 = vld [vmem:[%s21343_s9 + $0x5a8] ss:$16 sps:$4 sm:$0xff]  }
 0xa46   :  { %v11355_v60 = vpop.f32.mrb[44].mxu0  ;;  %11700 = vmatprep.subr.bf16.mxu1 %v15493_v44  ;;  %v15539_v44 = vld [vmem:[%s21343_s9 + $0x7a8] ss:$16 sps:$4 sm:$0xff]  }
 0xa47   :  { %v11356_v2 = vadd.f32 %v11355_v60, %v20270_v17  ;;  %v11396_v39 = vpop.f32.mrb[44].mxu1  ;;  %v11357_v7 = vpop.f32.mrb[45].mxu0  ;;  %v15497_v17 = vld [vmem:[%s21343_s9 + $0x6c8] ss:$16 sps:$4 sm:$0xff]  }
 0xa48   :  { %v11358_v9 = vadd.f32 %v11357_v7, %v20278_v52  ;;  %v11398_v32 = vpop.f32.mrb[45].mxu1  ;;  %v11359_v4 = vpop.f32.mrb[46].mxu0  ;;  %11660 = vmatpush1.bf16.msra.mxu0 %v15488_v8  ;;  %v15502_v52 = vld [vmem:[%s21343_s9 + $0x4ec] ss:$16 sps:$4 sm:$0xff]   ;;  %v15545_v60 = vld [vmem:[%s21343_s9 + $0x7c8] ss:$16 sps:$4 sm:$0xff]  }
 0xa49   :  { %v20472_v45 = vadd.f32 %v11396_v39, %v11356_v2  ;;  %v11400_v15 = vpop.f32.mrb[46].mxu1  ;;  %11701 = vmatpush1.bf16.msra.mxu1 %v15491_v6  ;;  %v11360_v1 = vpop.f32.mrb[47].mxu0  ;;  %11661 = vmatprep.subr.bf16.mxu0 %v15496_v49  ;;  %v15544_v8 = vld [vmem:[%s21343_s9 + $0x5cc] ss:$16 sps:$4 sm:$0xff]   ;;  %v15542_v49 = vld [vmem:[%s21343_s9 + $0x5c8] ss:$16 sps:$4 sm:$0xff]  }
 0xa4a   :  { %v20480_v16 = vadd.f32 %v11398_v32, %v11358_v9  ;;  %v11401_v33 = vpop.f32.mrb[47].mxu1  ;;  %11702 = vmatprep.subr.bf16.mxu1 %v15499_v63  ;;  %v15547_v6 = vld [vmem:[%s21343_s9 + $0x7cc] ss:$16 sps:$4 sm:$0xff]   ;;  %v15548_v39 = vld [vmem:[%s21343_s9 + $0x5e8] ss:$16 sps:$4 sm:$0xff]  }
 0xa4b   :  { %v15550_v63 = vld [vmem:[%s21343_s9 + $0x5ec] ss:$16 sps:$4 sm:$0xff]   ;;  %v15551_v7 = vld [vmem:[%s21343_s9 + $0x7e8] ss:$16 sps:$4 sm:$0xff]  }
 0xa4c   :  { %11662 = vmatpush1.bf16.msra.mxu0 %v15494_v37  ;;  %v15553_v2 = vld [vmem:[%s21343_s9 + $0x7ec] ss:$16 sps:$4 sm:$0xff]   ;;  %v15554_v4 = vld [vmem:[%s21343_s9 + $0x808] ss:$16 sps:$4 sm:$0xff]  }
 0xa4d   :  { %11703 = vmatpush1.bf16.msra.mxu1 %v15497_v17  ;;  %11663 = vmatprep.subr.bf16.mxu0 %v15502_v52  ;;  %v15556_v9 = vld [vmem:[%s21343_s9 + $0x80c] ss:$16 sps:$4 sm:$0xff]   ;;  %v15557_v37 = vld [vmem:[%s21343_s9 + $0xa08] ss:$16 sps:$4 sm:$0xff]  }
 0xa4e   :  { %11704 = vmatprep.subr.bf16.mxu1 %v15505_v36  ;;  %v15559_v32 = vld [vmem:[%s21343_s9 + $0xa0c] ss:$16 sps:$4 sm:$0xff]   ;;  %v15560_v17 = vld [vmem:[%s21343_s9 + $0x828] ss:$16 sps:$4 sm:$0xff]  }
 0xa4f   :  { %v15562_v15 = vld [vmem:[%s21343_s9 + $0x82c] ss:$16 sps:$4 sm:$0xff]   ;;  %v15563_v52 = vld [vmem:[%s21343_s9 + $0xa28] ss:$16 sps:$4 sm:$0xff]  }
 0xa50   :  { %11664 = vmatpush1.bf16.msra.mxu0 %v15500_v24  ;;  %v15565_v1 = vld [vmem:[%s21343_s9 + $0xa2c] ss:$16 sps:$4 sm:$0xff]   ;;  %v15569_v33 = vld [vmem:[%s21343_s9 + $0xa48] ss:$16 sps:$4 sm:$0xff]  }
 0xa51   :  { %11705 = vmatpush1.bf16.msra.mxu1 %v15503_v11  ;;  %11665 = vmatprep.subr.bf16.mxu0 %v15508_v47  ;;  %v15577_v36 = vld [vmem:[%s21343_s9 + $0xa6c] ss:$16 sps:$4 sm:$0xff]   ;;  %v15572_v24 = vld [vmem:[%s21343_s9 + $0x868] ss:$16 sps:$4 sm:$0xff]  }
 0xa52   :  { %11706 = vmatprep.subr.bf16.mxu1 %v15511_v3  ;;  %v15575_v11 = vld [vmem:[%s21343_s9 + $0xa68] ss:$16 sps:$4 sm:$0xff]   ;;  %v15580_v47 = vld [vmem:[%s21343_s9 + $0x88c] ss:$16 sps:$4 sm:$0xff]  }
 0xa53   :  { %v15583_v3 = vld [vmem:[%s21343_s9 + $0xa8c] ss:$16 sps:$4 sm:$0xff]  }
 0xa54   :  { %11666 = vmatpush1.bf16.msra.mxu0 %v15506_v10  ;;  %v15578_v10 = vld [vmem:[%s21343_s9 + $0x888] ss:$16 sps:$4 sm:$0xff]  }
 0xa55   :  { %11707 = vmatpush1.bf16.msra.mxu1 %v15509_v27  ;;  %11667 = vmatprep.subr.bf16.mxu0 %v15514_v23  ;;  %v15581_v27 = vld [vmem:[%s21343_s9 + $0xa88] ss:$16 sps:$4 sm:$0xff]   ;;  %v15586_v23 = vld [vmem:[%s21343_s9 + $0x8ac] ss:$16 sps:$4 sm:$0xff]  }
 0xa56   :  { %11708 = vmatprep.subr.bf16.mxu1 %v15517_v12  ;;  %v15589_v12 = vld [vmem:[%s21343_s9 + $0xaac] ss:$16 sps:$4 sm:$0xff]  }
 0xa58   :  { %11668 = vmatpush1.bf16.msra.mxu0 %v15512_v57  ;;  %v15584_v57 = vld [vmem:[%s21343_s9 + $0x8a8] ss:$16 sps:$4 sm:$0xff]  }
 0xa59   :  { %11709 = vmatpush1.bf16.msra.mxu1 %v15515_v54  ;;  %11669 = vmatprep.subr.bf16.mxu0 %v15520_v13  ;;  %v15587_v54 = vld [vmem:[%s21343_s9 + $0xaa8] ss:$16 sps:$4 sm:$0xff]   ;;  %v15592_v13 = vld [vmem:[%s21343_s9 + $0x8cc] ss:$16 sps:$4 sm:$0xff]  }
 0xa5a   :  { %11710 = vmatprep.subr.bf16.mxu1 %v15523_v51 }
 0xa5c   :  { %11670 = vmatpush1.bf16.msra.mxu0 %v15518_v48  ;;  %v15595_v48 = vld [vmem:[%s21343_s9 + $0xacc] ss:$16 sps:$4 sm:$0xff]  }
 0xa5d   :  { %11711 = vmatpush1.bf16.msra.mxu1 %v15521_v0  ;;  %11671 = vmatprep.subr.bf16.mxu0 %v15526_v29 }
 0xa5e   :  { %11712 = vmatprep.subr.bf16.mxu1 %v15529_v61 }
 0xa60   :  { %11672 = vmatpush1.bf16.msra.mxu0 %v15524_v31 }
 0xa61   :  { %11713 = vmatpush1.bf16.msra.mxu1 %v15527_v26  ;;  %11673 = vmatprep.subr.bf16.mxu0 %v15532_v28 }
 0xa62   :  { %11714 = vmatprep.subr.bf16.mxu1 %v15535_v5  ;;  %v15590_v5 = vld [vmem:[%s21343_s9 + $0x8c8] ss:$16 sps:$4 sm:$0xff]  }
 0xa64   :  { %11674 = vmatpush1.bf16.msra.mxu0 %v15530_v38 }
 0xa65   :  { %11715 = vmatpush1.bf16.msra.mxu1 %v15533_v53  ;;  %11675 = vmatprep.subr.bf16.mxu0 %v15538_v19 }
 0xa66   :  { %11716 = vmatprep.subr.bf16.mxu1 %v15541_v62 }
 0xa68   :  { %11676 = vmatpush1.bf16.msra.mxu0 %v15536_v42 }
 0xa69   :  { %11717 = vmatpush1.bf16.msra.mxu1 %v15539_v44  ;;  %11677 = vmatprep.subr.bf16.mxu0 %v15544_v8  ;;  %v15601_v44 = vld [vmem:[%s21343_s9 + $0xaec] ss:$16 sps:$4 sm:$0xff]   ;;  %v15596_v8 = vld [vmem:[%s21343_s9 + $0x8e8] ss:$16 sps:$4 sm:$0xff]  }
 0xa6a   :  { %11718 = vmatprep.subr.bf16.mxu1 %v15547_v6  ;;  %v15599_v6 = vld [vmem:[%s21343_s9 + $0xae8] ss:$16 sps:$4 sm:$0xff]  }
 0xa6c   :  { %11678 = vmatpush1.bf16.msra.mxu0 %v15542_v49  ;;  %v15604_v49 = vld [vmem:[%s21343_s9 + $0x90c] ss:$16 sps:$4 sm:$0xff]  }
 0xa6d   :  { %11719 = vmatpush1.bf16.msra.mxu1 %v15545_v60  ;;  %11679 = vmatprep.subr.bf16.mxu0 %v15550_v63  ;;  %v15607_v60 = vld [vmem:[%s21343_s9 + $0xb0c] ss:$16 sps:$4 sm:$0xff]   ;;  %v15602_v63 = vld [vmem:[%s21343_s9 + $0x908] ss:$16 sps:$4 sm:$0xff]  }
 0xa6e   :  { %11720 = vmatprep.subr.bf16.mxu1 %v15553_v2  ;;  %v15605_v2 = vld [vmem:[%s21343_s9 + $0xb08] ss:$16 sps:$4 sm:$0xff]  }
 0xa70   :  { %11680 = vmatpush1.bf16.msra.mxu0 %v15548_v39  ;;  %v15610_v39 = vld [vmem:[%s21343_s9 + $0x92c] ss:$16 sps:$4 sm:$0xff]  }
 0xa71   :  { %11721 = vmatpush1.bf16.msra.mxu1 %v15551_v7  ;;  %11731 = vmatprep.subr.bf16.mxu0 %v15556_v9  ;;  %v15613_v7 = vld [vmem:[%s21343_s9 + $0xb2c] ss:$16 sps:$4 sm:$0xff]   ;;  %v15608_v9 = vld [vmem:[%s21343_s9 + $0x928] ss:$16 sps:$4 sm:$0xff]  }
 0xa72   :  { %11772 = vmatprep.subr.bf16.mxu1 %v15559_v32  ;;  %v15611_v32 = vld [vmem:[%s21343_s9 + $0xb28] ss:$16 sps:$4 sm:$0xff]  }
 0xa73   :  { %11682 = vmatmul.mubr.bf16.vlgmr.msra.gmra.mrb[60].mxu0 %v19757_v25  ;;  %v15568_v25 = vld [vmem:[%s21343_s9 + $0x84c] ss:$16 sps:$4 sm:$0xff]  }
 0xa74   :  { %11723 = vmatmul.mubr.bf16.vlgmr.msra.gmra.mrb[60].mxu1 %v19762_v34  ;;  %11732 = vmatpush1.bf16.msra.mxu0 %v15554_v4  ;;  %v15571_v34 = vld [vmem:[%s21343_s9 + $0xa4c] ss:$16 sps:$4 sm:$0xff]  }
 0xa75   :  { %11763 = vmatprep.mubr.bf16.mxu0 %v19767_v30  ;;  %11773 = vmatpush1.bf16.msra.mxu1 %v15557_v37  ;;  %v15566_v30 = vld [vmem:[%s21343_s9 + $0x848] ss:$16 sps:$4 sm:$0xff]   ;;  %v15616_v4 = vld [vmem:[%s21343_s9 + $0x94c] ss:$16 sps:$4 sm:$0xff]  }
 0xa76   :  { %11804 = vmatprep.mubr.bf16.mxu1 %v19773_v35  ;;  %11733 = vmatprep.subr.bf16.mxu0 %v15562_v15  ;;  %v15574_v35 = vld [vmem:[%s21343_s9 + $0x86c] ss:$16 sps:$4 sm:$0xff]   ;;  %v15614_v15 = vld [vmem:[%s21343_s9 + $0x948] ss:$16 sps:$4 sm:$0xff]  }
 0xa77   :  { %11774 = vmatprep.subr.bf16.mxu1 %v15565_v1  ;;  %v15619_v37 = vld [vmem:[%s21343_s9 + $0xb4c] ss:$16 sps:$4 sm:$0xff]   ;;  %v15617_v1 = vld [vmem:[%s21343_s9 + $0xb48] ss:$16 sps:$4 sm:$0xff]  }
 0xa78   :  { %11734 = vmatpush1.bf16.msra.mxu0 %v15560_v17  ;;  %v15622_v17 = vld [vmem:[%s21343_s9 + $0x96c] ss:$16 sps:$4 sm:$0xff]  }
 0xa79   :  { %11775 = vmatpush1.bf16.msra.mxu1 %v15563_v52  ;;  %11735 = vmatprep.subr.bf16.mxu0 %v15568_v25  ;;  %v15625_v52 = vld [vmem:[%s21343_s9 + $0xb6c] ss:$16 sps:$4 sm:$0xff]   ;;  %v15620_v25 = vld [vmem:[%s21343_s9 + $0x968] ss:$16 sps:$4 sm:$0xff]  }
 0xa7a   :  { %11776 = vmatprep.subr.bf16.mxu1 %v15571_v34  ;;  %v15623_v34 = vld [vmem:[%s21343_s9 + $0xb68] ss:$16 sps:$4 sm:$0xff]  }
 0xa7c   :  { %11736 = vmatpush1.bf16.msra.mxu0 %v15566_v30  ;;  %v15628_v30 = vld [vmem:[%s21343_s9 + $0x98c] ss:$16 sps:$4 sm:$0xff]  }
 0xa7d   :  { %11777 = vmatpush1.bf16.msra.mxu1 %v15569_v33  ;;  %11737 = vmatprep.subr.bf16.mxu0 %v15574_v35  ;;  %v15631_v33 = vld [vmem:[%s21343_s9 + $0xb8c] ss:$16 sps:$4 sm:$0xff]   ;;  %v15626_v35 = vld [vmem:[%s21343_s9 + $0x988] ss:$16 sps:$4 sm:$0xff]  }
 0xa7e   :  { %11778 = vmatprep.subr.bf16.mxu1 %v15577_v36  ;;  %v15629_v36 = vld [vmem:[%s21343_s9 + $0xb88] ss:$16 sps:$4 sm:$0xff]  }
 0xa80   :  { %11738 = vmatpush1.bf16.msra.mxu0 %v15572_v24  ;;  %v15634_v24 = vld [vmem:[%s21343_s9 + $0x9ac] ss:$16 sps:$4 sm:$0xff]  }
 0xa81   :  { %11779 = vmatpush1.bf16.msra.mxu1 %v15575_v11  ;;  %11739 = vmatprep.subr.bf16.mxu0 %v15580_v47  ;;  %v15637_v11 = vld [vmem:[%s21343_s9 + $0xbac] ss:$16 sps:$4 sm:$0xff]   ;;  %v15632_v47 = vld [vmem:[%s21343_s9 + $0x9a8] ss:$16 sps:$4 sm:$0xff]  }
 0xa82   :  { %11780 = vmatprep.subr.bf16.mxu1 %v15583_v3  ;;  %v15635_v3 = vld [vmem:[%s21343_s9 + $0xba8] ss:$16 sps:$4 sm:$0xff]  }
 0xa84   :  { %11740 = vmatpush1.bf16.msra.mxu0 %v15578_v10  ;;  %v15640_v10 = vld [vmem:[%s21343_s9 + $0x9cc] ss:$16 sps:$4 sm:$0xff]  }
 0xa85   :  { %11781 = vmatpush1.bf16.msra.mxu1 %v15581_v27  ;;  %11741 = vmatprep.subr.bf16.mxu0 %v15586_v23  ;;  %v15643_v27 = vld [vmem:[%s21343_s9 + $0xbcc] ss:$16 sps:$4 sm:$0xff]   ;;  %v15638_v23 = vld [vmem:[%s21343_s9 + $0x9c8] ss:$16 sps:$4 sm:$0xff]  }
 0xa86   :  { %v11437_v51 = vpop.f32.mrb[48].mxu0  ;;  %11782 = vmatprep.subr.bf16.mxu1 %v15589_v12  ;;  %v15641_v12 = vld [vmem:[%s21343_s9 + $0xbc8] ss:$16 sps:$4 sm:$0xff]  }
 0xa87   :  { %v11438_v0 = vadd.f32 %v11437_v51, %v20472_v45  ;;  %v11478_v29 = vpop.f32.mrb[48].mxu1  ;;  %v11439_v61 = vpop.f32.mrb[49].mxu0  ;;  %v15593_v45 = vld [vmem:[%s21343_s9 + $0xac8] ss:$16 sps:$4 sm:$0xff]  }
 0xa88   :  { %v11440_v31 = vadd.f32 %v11439_v61, %v20480_v16  ;;  %v11480_v26 = vpop.f32.mrb[49].mxu1  ;;  %v11441_v28 = vpop.f32.mrb[50].mxu0  ;;  %11742 = vmatpush1.bf16.msra.mxu0 %v15584_v57  ;;  %v15598_v16 = vld [vmem:[%s21343_s9 + $0x8ec] ss:$16 sps:$4 sm:$0xff]   ;;  %v15647_v51 = vld [vmem:[%s21343_s9 + $0xbe8] ss:$16 sps:$4 sm:$0xff]  }
 0xa89   :  { %v20674_v38 = vadd.f32 %v11478_v29, %v11438_v0  ;;  %v11482_v53 = vpop.f32.mrb[50].mxu1  ;;  %11783 = vmatpush1.bf16.msra.mxu1 %v15587_v54  ;;  %v11442_v19 = vpop.f32.mrb[51].mxu0  ;;  %11743 = vmatprep.subr.bf16.mxu0 %v15592_v13  ;;  %v15646_v57 = vld [vmem:[%s21343_s9 + $0x9ec] ss:$16 sps:$4 sm:$0xff]   ;;  %v15644_v13 = vld [vmem:[%s21343_s9 + $0x9e8] ss:$16 sps:$4 sm:$0xff]  }
 0xa8a   :  { %v20682_v62 = vadd.f32 %v11480_v26, %v11440_v31  ;;  %v11483_v42 = vpop.f32.mrb[51].mxu1  ;;  %11784 = vmatprep.subr.bf16.mxu1 %v15595_v48  ;;  %v15649_v54 = vld [vmem:[%s21343_s9 + $0xbec] ss:$16 sps:$4 sm:$0xff]   ;;  %v15650_v29 = vld [vmem:[%s21343_s9 + $0xc08] ss:$16 sps:$4 sm:$0xff]  }
 0xa8b   :  { %v15652_v48 = vld [vmem:[%s21343_s9 + $0xc0c] ss:$16 sps:$4 sm:$0xff]   ;;  %v15653_v61 = vld [vmem:[%s21343_s9 + $0xe08] ss:$16 sps:$4 sm:$0xff]  }
 0xa8c   :  { %11744 = vmatpush1.bf16.msra.mxu0 %v15590_v5  ;;  %v15655_v0 = vld [vmem:[%s21343_s9 + $0xe0c] ss:$16 sps:$4 sm:$0xff]   ;;  %v15656_v28 = vld [vmem:[%s21343_s9 + $0xc28] ss:$16 sps:$4 sm:$0xff]  }
 0xa8d   :  { %11785 = vmatpush1.bf16.msra.mxu1 %v15593_v45  ;;  %11745 = vmatprep.subr.bf16.mxu0 %v15598_v16  ;;  %v15658_v31 = vld [vmem:[%s21343_s9 + $0xc2c] ss:$16 sps:$4 sm:$0xff]   ;;  %v15659_v5 = vld [vmem:[%s21343_s9 + $0xe28] ss:$16 sps:$4 sm:$0xff]  }
 0xa8e   :  { %11786 = vmatprep.subr.bf16.mxu1 %v15601_v44  ;;  %v15661_v26 = vld [vmem:[%s21343_s9 + $0xe2c] ss:$16 sps:$4 sm:$0xff]   ;;  %v15665_v53 = vld [vmem:[%s21343_s9 + $0xe48] ss:$16 sps:$4 sm:$0xff]  }
 0xa8f   :  { %v15673_v19 = vld [vmem:[%s21343_s9 + $0xe6c] ss:$16 sps:$4 sm:$0xff]   ;;  %v15668_v45 = vld [vmem:[%s21343_s9 + $0xc68] ss:$16 sps:$4 sm:$0xff]  }
 0xa90   :  { %11746 = vmatpush1.bf16.msra.mxu0 %v15596_v8  ;;  %v15671_v16 = vld [vmem:[%s21343_s9 + $0xe68] ss:$16 sps:$4 sm:$0xff]   ;;  %v15676_v42 = vld [vmem:[%s21343_s9 + $0xc8c] ss:$16 sps:$4 sm:$0xff]  }
 0xa91   :  { %11787 = vmatpush1.bf16.msra.mxu1 %v15599_v6  ;;  %11747 = vmatprep.subr.bf16.mxu0 %v15604_v49  ;;  %v15679_v44 = vld [vmem:[%s21343_s9 + $0xe8c] ss:$16 sps:$4 sm:$0xff]   ;;  %v15674_v8 = vld [vmem:[%s21343_s9 + $0xc88] ss:$16 sps:$4 sm:$0xff]  }
 0xa92   :  { %11788 = vmatprep.subr.bf16.mxu1 %v15607_v60  ;;  %v15677_v6 = vld [vmem:[%s21343_s9 + $0xe88] ss:$16 sps:$4 sm:$0xff]   ;;  %v15682_v49 = vld [vmem:[%s21343_s9 + $0xcac] ss:$16 sps:$4 sm:$0xff]  }
 0xa93   :  { %v15685_v60 = vld [vmem:[%s21343_s9 + $0xeac] ss:$16 sps:$4 sm:$0xff]  }
 0xa94   :  { %11748 = vmatpush1.bf16.msra.mxu0 %v15602_v63  ;;  %v15680_v63 = vld [vmem:[%s21343_s9 + $0xca8] ss:$16 sps:$4 sm:$0xff]  }
 0xa95   :  { %11789 = vmatpush1.bf16.msra.mxu1 %v15605_v2  ;;  %11749 = vmatprep.subr.bf16.mxu0 %v15610_v39  ;;  %v15683_v2 = vld [vmem:[%s21343_s9 + $0xea8] ss:$16 sps:$4 sm:$0xff]   ;;  %v15688_v39 = vld [vmem:[%s21343_s9 + $0xccc] ss:$16 sps:$4 sm:$0xff]  }
 0xa96   :  { %11790 = vmatprep.subr.bf16.mxu1 %v15613_v7 }
 0xa98   :  { %11750 = vmatpush1.bf16.msra.mxu0 %v15608_v9  ;;  %v15691_v9 = vld [vmem:[%s21343_s9 + $0xecc] ss:$16 sps:$4 sm:$0xff]  }
 0xa99   :  { %11791 = vmatpush1.bf16.msra.mxu1 %v15611_v32  ;;  %11751 = vmatprep.subr.bf16.mxu0 %v15616_v4 }
 0xa9a   :  { %11792 = vmatprep.subr.bf16.mxu1 %v15619_v37 }
 0xa9c   :  { %11752 = vmatpush1.bf16.msra.mxu0 %v15614_v15 }
 0xa9d   :  { %11793 = vmatpush1.bf16.msra.mxu1 %v15617_v1  ;;  %11753 = vmatprep.subr.bf16.mxu0 %v15622_v17 }
 0xa9e   :  { %11794 = vmatprep.subr.bf16.mxu1 %v15625_v52  ;;  %v15686_v52 = vld [vmem:[%s21343_s9 + $0xcc8] ss:$16 sps:$4 sm:$0xff]  }
 0xaa0   :  { %11754 = vmatpush1.bf16.msra.mxu0 %v15620_v25 }
 0xaa1   :  { %11795 = vmatpush1.bf16.msra.mxu1 %v15623_v34  ;;  %11755 = vmatprep.subr.bf16.mxu0 %v15628_v30 }
 0xaa2   :  { %11796 = vmatprep.subr.bf16.mxu1 %v15631_v33 }
 0xaa4   :  { %11756 = vmatpush1.bf16.msra.mxu0 %v15626_v35 }
 0xaa5   :  { %11797 = vmatpush1.bf16.msra.mxu1 %v15629_v36  ;;  %11757 = vmatprep.subr.bf16.mxu0 %v15634_v24  ;;  %v15697_v36 = vld [vmem:[%s21343_s9 + $0xeec] ss:$16 sps:$4 sm:$0xff]   ;;  %v15692_v24 = vld [vmem:[%s21343_s9 + $0xce8] ss:$16 sps:$4 sm:$0xff]  }
 0xaa6   :  { %11798 = vmatprep.subr.bf16.mxu1 %v15637_v11  ;;  %v15695_v11 = vld [vmem:[%s21343_s9 + $0xee8] ss:$16 sps:$4 sm:$0xff]  }
 0xaa8   :  { %11758 = vmatpush1.bf16.msra.mxu0 %v15632_v47  ;;  %v15700_v47 = vld [vmem:[%s21343_s9 + $0xd0c] ss:$16 sps:$4 sm:$0xff]  }
 0xaa9   :  { %11799 = vmatpush1.bf16.msra.mxu1 %v15635_v3  ;;  %11759 = vmatprep.subr.bf16.mxu0 %v15640_v10  ;;  %v15703_v3 = vld [vmem:[%s21343_s9 + $0xf0c] ss:$16 sps:$4 sm:$0xff]   ;;  %v15698_v10 = vld [vmem:[%s21343_s9 + $0xd08] ss:$16 sps:$4 sm:$0xff]  }
 0xaaa   :  { %11800 = vmatprep.subr.bf16.mxu1 %v15643_v27  ;;  %v15701_v27 = vld [vmem:[%s21343_s9 + $0xf08] ss:$16 sps:$4 sm:$0xff]  }
 0xaac   :  { %11760 = vmatpush1.bf16.msra.mxu0 %v15638_v23  ;;  %v15706_v23 = vld [vmem:[%s21343_s9 + $0xd2c] ss:$16 sps:$4 sm:$0xff]  }
 0xaad   :  { %11801 = vmatpush1.bf16.msra.mxu1 %v15641_v12  ;;  %11761 = vmatprep.subr.bf16.mxu0 %v15646_v57  ;;  %v15709_v12 = vld [vmem:[%s21343_s9 + $0xf2c] ss:$16 sps:$4 sm:$0xff]   ;;  %v15704_v57 = vld [vmem:[%s21343_s9 + $0xd28] ss:$16 sps:$4 sm:$0xff]  }
 0xaae   :  { %11802 = vmatprep.subr.bf16.mxu1 %v15649_v54  ;;  %v15707_v54 = vld [vmem:[%s21343_s9 + $0xf28] ss:$16 sps:$4 sm:$0xff]  }
 0xab0   :  { %11762 = vmatpush1.bf16.msra.mxu0 %v15644_v13  ;;  %v15712_v13 = vld [vmem:[%s21343_s9 + $0xd4c] ss:$16 sps:$4 sm:$0xff]  }
 0xab1   :  { %11803 = vmatpush1.bf16.msra.mxu1 %v15647_v51  ;;  %11813 = vmatprep.subr.bf16.mxu0 %v15652_v48  ;;  %v15715_v51 = vld [vmem:[%s21343_s9 + $0xf4c] ss:$16 sps:$4 sm:$0xff]   ;;  %v15710_v48 = vld [vmem:[%s21343_s9 + $0xd48] ss:$16 sps:$4 sm:$0xff]  }
 0xab2   :  { %11854 = vmatprep.subr.bf16.mxu1 %v15655_v0  ;;  %v15713_v0 = vld [vmem:[%s21343_s9 + $0xf48] ss:$16 sps:$4 sm:$0xff]  }
 0xab3   :  { %11764 = vmatmul.mubr.bf16.vlgmr.msra.gmra.mrb[64].mxu0 %v19967_v41  ;;  %v15664_v41 = vld [vmem:[%s21343_s9 + $0xc4c] ss:$16 sps:$4 sm:$0xff]  }
 0xab4   :  { %11805 = vmatmul.mubr.bf16.vlgmr.msra.gmra.mrb[64].mxu1 %v19975_v50  ;;  %11814 = vmatpush1.bf16.msra.mxu0 %v15650_v29  ;;  %v15667_v50 = vld [vmem:[%s21343_s9 + $0xe4c] ss:$16 sps:$4 sm:$0xff]  }
 0xab5   :  { %11845 = vmatprep.mubr.bf16.mxu0 %v20062_v58  ;;  %11855 = vmatpush1.bf16.msra.mxu1 %v15653_v61  ;;  %v15662_v58 = vld [vmem:[%s21343_s9 + $0xc48] ss:$16 sps:$4 sm:$0xff]   ;;  %v15718_v29 = vld [vmem:[%s21343_s9 + $0xd6c] ss:$16 sps:$4 sm:$0xff]  }
 0xab6   :  { %11886 = vmatprep.mubr.bf16.mxu1 %v20067_v59  ;;  %11815 = vmatprep.subr.bf16.mxu0 %v15658_v31  ;;  %v15670_v59 = vld [vmem:[%s21343_s9 + $0xc6c] ss:$16 sps:$4 sm:$0xff]   ;;  %v15716_v31 = vld [vmem:[%s21343_s9 + $0xd68] ss:$16 sps:$4 sm:$0xff]  }
 0xab7   :  { %11856 = vmatprep.subr.bf16.mxu1 %v15661_v26  ;;  %v15721_v61 = vld [vmem:[%s21343_s9 + $0xf6c] ss:$16 sps:$4 sm:$0xff]   ;;  %v15719_v26 = vld [vmem:[%s21343_s9 + $0xf68] ss:$16 sps:$4 sm:$0xff]  }
 0xab8   :  { %11816 = vmatpush1.bf16.msra.mxu0 %v15656_v28  ;;  %v15724_v28 = vld [vmem:[%s21343_s9 + $0xd8c] ss:$16 sps:$4 sm:$0xff]  }
 0xab9   :  { %11857 = vmatpush1.bf16.msra.mxu1 %v15659_v5  ;;  %11817 = vmatprep.subr.bf16.mxu0 %v15664_v41  ;;  %v15727_v5 = vld [vmem:[%s21343_s9 + $0xf8c] ss:$16 sps:$4 sm:$0xff]   ;;  %v15722_v41 = vld [vmem:[%s21343_s9 + $0xd88] ss:$16 sps:$4 sm:$0xff]  }
 0xaba   :  { %11858 = vmatprep.subr.bf16.mxu1 %v15667_v50  ;;  %v15725_v50 = vld [vmem:[%s21343_s9 + $0xf88] ss:$16 sps:$4 sm:$0xff]  }
 0xabc   :  { %11818 = vmatpush1.bf16.msra.mxu0 %v15662_v58  ;;  %v15730_v58 = vld [vmem:[%s21343_s9 + $0xdac] ss:$16 sps:$4 sm:$0xff]  }
 0xabd   :  { %11859 = vmatpush1.bf16.msra.mxu1 %v15665_v53  ;;  %11819 = vmatprep.subr.bf16.mxu0 %v15670_v59  ;;  %v15733_v53 = vld [vmem:[%s21343_s9 + $0xfac] ss:$16 sps:$4 sm:$0xff]   ;;  %v15728_v59 = vld [vmem:[%s21343_s9 + $0xda8] ss:$16 sps:$4 sm:$0xff]  }
 0xabe   :  { %11860 = vmatprep.subr.bf16.mxu1 %v15673_v19  ;;  %v15731_v19 = vld [vmem:[%s21343_s9 + $0xfa8] ss:$16 sps:$4 sm:$0xff]  }
 0xac0   :  { %11820 = vmatpush1.bf16.msra.mxu0 %v15668_v45  ;;  %v15736_v45 = vld [vmem:[%s21343_s9 + $0xdcc] ss:$16 sps:$4 sm:$0xff]  }
 0xac1   :  { %11861 = vmatpush1.bf16.msra.mxu1 %v15671_v16  ;;  %11821 = vmatprep.subr.bf16.mxu0 %v15676_v42  ;;  %v15739_v16 = vld [vmem:[%s21343_s9 + $0xfcc] ss:$16 sps:$4 sm:$0xff]   ;;  %v15734_v42 = vld [vmem:[%s21343_s9 + $0xdc8] ss:$16 sps:$4 sm:$0xff]  }
 0xac2   :  { %11862 = vmatprep.subr.bf16.mxu1 %v15679_v44  ;;  %v15737_v44 = vld [vmem:[%s21343_s9 + $0xfc8] ss:$16 sps:$4 sm:$0xff]  }
 0xac4   :  { %11822 = vmatpush1.bf16.msra.mxu0 %v15674_v8  ;;  %v15742_v8 = vld [vmem:[%s21343_s9 + $0xdec] ss:$16 sps:$4 sm:$0xff]  }
 0xac5   :  { %11863 = vmatpush1.bf16.msra.mxu1 %v15677_v6  ;;  %11823 = vmatprep.subr.bf16.mxu0 %v15682_v49  ;;  %v15745_v6 = vld [vmem:[%s21343_s9 + $0xfec] ss:$16 sps:$4 sm:$0xff]   ;;  %v15740_v49 = vld [vmem:[%s21343_s9 + $0xde8] ss:$16 sps:$4 sm:$0xff]  }
 0xac6   :  { %v11519_v7 = vpop.f32.mrb[52].mxu0  ;;  %11864 = vmatprep.subr.bf16.mxu1 %v15685_v60  ;;  %v15743_v60 = vld [vmem:[%s21343_s9 + $0xfe8] ss:$16 sps:$4 sm:$0xff]  }
 0xac7   :  { %v11520_v32 = vadd.f32 %v11519_v7, %v20674_v38  ;;  %v11560_v4 = vpop.f32.mrb[52].mxu1  ;;  %v11521_v37 = vpop.f32.mrb[53].mxu0  ;;  %v15689_v38 = vld [vmem:[%s21343_s9 + $0xec8] ss:$16 sps:$4 sm:$0xff]  }
 0xac8   :  { %v11522_v15 = vadd.f32 %v11521_v37, %v20682_v62  ;;  %v11562_v1 = vpop.f32.mrb[53].mxu1  ;;  %v11523_v17 = vpop.f32.mrb[54].mxu0  ;;  %11824 = vmatpush1.bf16.msra.mxu0 %v15680_v63  ;;  %v15694_v62 = vld [vmem:[%s21343_s9 + $0xcec] ss:$16 sps:$4 sm:$0xff]   ;;  %v15794_v63 = vld [vmem:[%s21344_s10] sm:$0xf] }
 0xac9   :  { %v20876_v25 = vadd.f32 %v11560_v4, %v11520_v32  ;;  %v11564_v34 = vpop.f32.mrb[54].mxu1  ;;  %11865 = vmatpush1.bf16.msra.mxu1 %v15683_v2  ;;  %v11524_v30 = vpop.f32.mrb[55].mxu0  ;;  %11825 = vmatprep.subr.bf16.mxu0 %v15688_v39  ;;  %v8670_v2 = vrot.slane %v15794_v63, %v17175_v55  ;;  %v8674_v39 = vrot.slane %v15794_v63, %v17163_v43  ;;  %v11993_v63 = vld [vmem:[%s21347_s13 + $0x80] sm:$0xff] }
 0xaca   :  { %v20884_v33 = vadd.f32 %v11562_v1, %v11522_v15  ;;  %v11565_v35 = vpop.f32.mrb[55].mxu1  ;;  %11866 = vmatprep.subr.bf16.mxu1 %v15691_v9 }
 0xacc   :  { %11826 = vmatpush1.bf16.msra.mxu0 %v15686_v52 }
 0xacd   :  { %11867 = vmatpush1.bf16.msra.mxu1 %v15689_v38  ;;  %11827 = vmatprep.subr.bf16.mxu0 %v15694_v62 }
 0xace   :  { %11868 = vmatprep.subr.bf16.mxu1 %v15697_v36 }
 0xad0   :  { %11828 = vmatpush1.bf16.msra.mxu0 %v15692_v24 }
 0xad1   :  { %11869 = vmatpush1.bf16.msra.mxu1 %v15695_v11  ;;  %11829 = vmatprep.subr.bf16.mxu0 %v15700_v47 }
 0xad2   :  { %11870 = vmatprep.subr.bf16.mxu1 %v15703_v3 }
 0xad4   :  { %11830 = vmatpush1.bf16.msra.mxu0 %v15698_v10 }
 0xad5   :  { %11871 = vmatpush1.bf16.msra.mxu1 %v15701_v27  ;;  %11831 = vmatprep.subr.bf16.mxu0 %v15706_v23 }
 0xad6   :  { %11872 = vmatprep.subr.bf16.mxu1 %v15709_v12 }
 0xad8   :  { %11832 = vmatpush1.bf16.msra.mxu0 %v15704_v57 }
 0xad9   :  { %11873 = vmatpush1.bf16.msra.mxu1 %v15707_v54  ;;  %11833 = vmatprep.subr.bf16.mxu0 %v15712_v13 }
 0xada   :  { %11874 = vmatprep.subr.bf16.mxu1 %v15715_v51 }
 0xadc   :  { %11834 = vmatpush1.bf16.msra.mxu0 %v15710_v48 }
 0xadd   :  { %11875 = vmatpush1.bf16.msra.mxu1 %v15713_v0  ;;  %11835 = vmatprep.subr.bf16.mxu0 %v15718_v29 }
 0xade   :  { %11876 = vmatprep.subr.bf16.mxu1 %v15721_v61 }
 0xae0   :  { %11836 = vmatpush1.bf16.msra.mxu0 %v15716_v31 }
 0xae1   :  { %11877 = vmatpush1.bf16.msra.mxu1 %v15719_v26  ;;  %11837 = vmatprep.subr.bf16.mxu0 %v15724_v28 }
 0xae2   :  { %11878 = vmatprep.subr.bf16.mxu1 %v15727_v5 }
 0xae4   :  { %11838 = vmatpush1.bf16.msra.mxu0 %v15722_v41  ;;  %v21000_v41 = vadd.f32 %v20876_v25, %v17896_v20 }
 0xae5   :  { %11879 = vmatpush1.bf16.msra.mxu1 %v15725_v50  ;;  %11839 = vmatprep.subr.bf16.mxu0 %v15730_v58  ;;  %v21004_v50 = vadd.f32 %v20884_v33, %v17894_v18 }
 0xae6   :  { %11880 = vmatprep.subr.bf16.mxu1 %v15733_v53 }
 0xae8   :  { %11840 = vmatpush1.bf16.msra.mxu0 %v15728_v59 }
 0xae9   :  { %11881 = vmatpush1.bf16.msra.mxu1 %v15731_v19  ;;  %11841 = vmatprep.subr.bf16.mxu0 %v15736_v45 }
 0xaea   :  { %11882 = vmatprep.subr.bf16.mxu1 %v15739_v16 }
 0xaec   :  { %11842 = vmatpush1.bf16.msra.mxu0 %v15734_v42 }
 0xaed   :  { %11883 = vmatpush1.bf16.msra.mxu1 %v15737_v44  ;;  %11843 = vmatprep.subr.bf16.mxu0 %v15742_v8 }
 0xaee   :  { %11884 = vmatprep.subr.bf16.mxu1 %v15745_v6 }
 0xaf0   :  { %11844 = vmatpush1.bf16.msra.mxu0 %v15740_v49 }
 0xaf1   :  { %11885 = vmatpush1.bf16.msra.mxu1 %v15743_v60  ;;  %v11899_v60 = vadd.f32 %v21004_v50, %v21000_v41 }
 0xaf3   :  { %11846 = vmatmul.mubr.bf16.vlgmr.msra.gmra.mrb[68].mxu0 %v20185_v22 }
 0xaf4   :  { %11887 = vmatmul.mubr.bf16.vlgmr.msra.gmra.mrb[68].mxu1 %v20190_v14 }
 0xb06   :  { %v11601_v7 = vpop.f32.mrb[56].mxu0 }
 0xb07   :  { %v11602_v9 = vadd.f32 %v11601_v7, %v8670_v2  ;;  %v11642_v32 = vpop.f32.mrb[56].mxu1  ;;  %v11603_v4 = vpop.f32.mrb[57].mxu0  ;;  %v11994_v2 = vld [vmem:[%s21347_s13 + $0x88] sm:$0xff] }
 0xb08   :  { %v11604_v37 = vadd.f32 %v11603_v4, %v8674_v39  ;;  %v11644_v15 = vpop.f32.mrb[57].mxu1  ;;  %v11605_v1 = vpop.f32.mrb[58].mxu0  ;;  %v12025_v39 = vld [vmem:[%s21347_s13 + $0x180] sm:$0xff]  ;;  %v14042_v7 = vpack.c.bf16 %v11994_v2, %v11993_v63 }
 0xb09   :  { %v11643_v17 = vadd.f32 %v11642_v32, %v11602_v9  ;;  %v11646_v52 = vpop.f32.mrb[58].mxu1  ;;  %v11606_v22 = vpop.f32.mrb[59].mxu0  ;;  %v11978_v9 = vld [vmem:[%s21347_s13 + $0x8] sm:$0xff]  ;;  %v11995_v1 = vld [vmem:[%s21347_s13 + $0x90] sm:$0xff]  ;;  %v12001_v2 = vld [vmem:[%s21347_s13 + $0xc0] sm:$0xff] }
 0xb0a   :  { %v11645_v34 = vadd.f32 %v11644_v15, %v11604_v37  ;;  %v11647_v14 = vpop.f32.mrb[59].mxu1  ;;  %v12009_v37 = vld [vmem:[%s21347_s13 + $0x100] sm:$0xff]  ;;  %v12010_v15 = vld [vmem:[%s21347_s13 + $0x108] sm:$0xff]  ;;  %14043 = vmatprep.subr.bf16.mxu0 %v14042_v7  ;;  %v11996_v52 = vld [vmem:[%s21347_s13 + $0x98] sm:$0xff] }
 0xb0b   :  { %v12027_v22 = vld [vmem:[%s21347_s13 + $0x190] sm:$0xff]  ;;  %v14046_v14 = vpack.c.bf16 %v11996_v52, %v11995_v1  ;;  %v12033_v7 = vld [vmem:[%s21347_s13 + $0x1c0] sm:$0xff]  ;;  %v12018_v1 = vld [vmem:[%s21347_s13 + $0x148] sm:$0xff] }
 0xb46   :  { %v11683_v30 = vpop.f32.mrb[60].mxu0 }
 0xb47   :  { %v11684_v38 = vadd.f32 %v11683_v30, %v11643_v17  ;;  %v11724_v62 = vpop.f32.mrb[60].mxu1  ;;  %v11685_v35 = vpop.f32.mrb[61].mxu0  ;;  %v14076_v17 = vpack.c.bf16 %v12010_v15, %v12009_v37  ;;  %v12017_v15 = vld [vmem:[%s21347_s13 + $0x140] sm:$0xff] }
 0xb48   :  { %v11686_v36 = vadd.f32 %v11685_v35, %v11645_v34  ;;  %v11726_v24 = vpop.f32.mrb[61].mxu1  ;;  %v11687_v11 = vpop.f32.mrb[62].mxu0  ;;  %v12028_v34 = vld [vmem:[%s21347_s13 + $0x198] sm:$0xff]  ;;  %v12011_v35 = vld [vmem:[%s21347_s13 + $0x110] sm:$0xff]  ;;  %v14092_v52 = vpack.c.bf16 %v12018_v1, %v12017_v15 }
 0xb49   :  { %v11725_v47 = vadd.f32 %v11724_v62, %v11684_v38  ;;  %v11728_v3 = vpop.f32.mrb[62].mxu1  ;;  %v11688_v10 = vpop.f32.mrb[63].mxu0  ;;  %v14078_v30 = vpack.c.bf16 %v12028_v34, %v12027_v22  ;;  %v11979_v38 = vld [vmem:[%s21347_s13 + $0x10] sm:$0xff]  ;;  %v11980_v62 = vld [vmem:[%s21347_s13 + $0x18] sm:$0xff]  ;;  %v11997_v11 = vld [vmem:[%s21347_s13 + $0xa0] sm:$0xff] }
 0xb4a   :  { %v11727_v27 = vadd.f32 %v11726_v24, %v11686_v36  ;;  %v11729_v23 = vpop.f32.mrb[63].mxu1  ;;  %v14048_v36 = vpack.c.bf16 %v11980_v62, %v11979_v38  ;;  %v12012_v24 = vld [vmem:[%s21347_s13 + $0x118] sm:$0xff]  ;;  %v12035_v34 = vld [vmem:[%s21347_s13 + $0x1d0] sm:$0xff] }
 0xb4b   :  { %v14080_v3 = vpack.c.bf16 %v12012_v24, %v12011_v35  ;;  %v12030_v23 = vld [vmem:[%s21347_s13 + $0x1a8] sm:$0xff]  ;;  %v12004_v22 = vld [vmem:[%s21347_s13 + $0xd8] sm:$0xff]  ;;  %v11987_v62 = vld [vmem:[%s21347_s13 + $0x50] sm:$0xff] }
 0xb4c   :  { %v11988_v35 = vld [vmem:[%s21347_s13 + $0x58] sm:$0xff] }
 0xb4d   :  { %v14064_v24 = vpack.c.bf16 %v11988_v35, %v11987_v62 }
 0xb86   :  { %v11765_v12 = vpop.f32.mrb[64].mxu0 }
 0xb87   :  { %v11766_v57 = vadd.f32 %v11765_v12, %v11725_v47  ;;  %v11806_v54 = vpop.f32.mrb[64].mxu1  ;;  %v11767_v13 = vpop.f32.mrb[65].mxu0  ;;  %v11998_v47 = vld [vmem:[%s21347_s13 + $0xa8] sm:$0xff]  ;;  %v11981_v12 = vld [vmem:[%s21347_s13 + $0x20] sm:$0xff] }
 0xb88   :  { %v11768_v51 = vadd.f32 %v11767_v13, %v11727_v27  ;;  %v11808_v48 = vpop.f32.mrb[65].mxu1  ;;  %v11769_v0 = vpop.f32.mrb[66].mxu0  ;;  %v14050_v10 = vpack.c.bf16 %v11998_v47, %v11997_v11  ;;  %v12029_v27 = vld [vmem:[%s21347_s13 + $0x1a0] sm:$0xff]  ;;  %v12020_v11 = vld [vmem:[%s21347_s13 + $0x158] sm:$0xff] }
 0xb89   :  { %v11807_v29 = vadd.f32 %v11806_v54, %v11766_v57  ;;  %v11810_v61 = vpop.f32.mrb[66].mxu1  ;;  %v11770_v31 = vpop.f32.mrb[67].mxu0  ;;  %v14082_v57 = vpack.c.bf16 %v12030_v23, %v12029_v27  ;;  %v11982_v54 = vld [vmem:[%s21347_s13 + $0x28] sm:$0xff]  ;;  %v12013_v13 = vld [vmem:[%s21347_s13 + $0x120] sm:$0xff] }
 0xb8a   :  { %v11809_v26 = vadd.f32 %v11808_v48, %v11768_v51  ;;  %v11811_v28 = vpop.f32.mrb[67].mxu1  ;;  %v12014_v51 = vld [vmem:[%s21347_s13 + $0x128] sm:$0xff]  ;;  %v14052_v48 = vpack.c.bf16 %v11982_v54, %v11981_v12  ;;  %v12005_v47 = vld [vmem:[%s21347_s13 + $0xe0] sm:$0xff] }
 0xb8b   :  { %v14084_v0 = vpack.c.bf16 %v12014_v51, %v12013_v13  ;;  %v12037_v23 = vld [vmem:[%s21347_s13 + $0x1e0] sm:$0xff]  ;;  %v12038_v12 = vld [vmem:[%s21347_s13 + $0x1e8] sm:$0xff] }
 0xb8c   :  { %v14098_v54 = vpack.c.bf16 %v12038_v12, %v12037_v23  ;;  %v11990_v13 = vld [vmem:[%s21347_s13 + $0x68] sm:$0xff]  ;;  %v12021_v51 = vld [vmem:[%s21347_s13 + $0x160] sm:$0xff] }
 0xbc6   :  { %v11847_v5 = vpop.f32.mrb[68].mxu0 }
 0xbc7   :  { %v11848_v58 = vadd.f32 %v11847_v5, %v11807_v29  ;;  %v11888_v53 = vpop.f32.mrb[68].mxu1  ;;  %v11849_v59 = vpop.f32.mrb[69].mxu0 }
 0xbc8   :  { %v11850_v19 = vadd.f32 %v11849_v59, %v11809_v26  ;;  %v11890_v45 = vpop.f32.mrb[69].mxu1  ;;  %v11851_v16 = vpop.f32.mrb[70].mxu0 }
 0xbc9   :  { %v11889_v42 = vadd.f32 %v11888_v53, %v11848_v58  ;;  %v11892_v44 = vpop.f32.mrb[70].mxu1  ;;  %v11852_v8 = vpop.f32.mrb[71].mxu0  ;;  %v11999_v16 = vld [vmem:[%s21347_s13 + $0xb0] sm:$0xff] }
 0xbca   :  { %v11891_v6 = vadd.f32 %v11890_v45, %v11850_v19  ;;  %v11893_v49 = vpop.f32.mrb[71].mxu1  ;;  %v12031_v44 = vld [vmem:[%s21347_s13 + $0x1b0] sm:$0xff] }
 0xbcb   :  { %v11897_v20 = vadd.f32 %v11889_v42, %v17901_v21  ;;  %v12026_v21 = vld [vmem:[%s21347_s13 + $0x188] sm:$0xff]  ;;  %v12000_v42 = vld [vmem:[%s21347_s13 + $0xb8] sm:$0xff]  ;;  %v11983_v49 = vld [vmem:[%s21347_s13 + $0x30] sm:$0xff] }
 0xbcc   :  { %v11898_v25 = vadd.f32 %v11891_v6, %v17903_v56  ;;  %v11977_v56 = vld [vmem:[%s21347_s13] sm:$0xff]  ;;  %v14074_v32 = vpack.c.bf16 %v12026_v21, %v12025_v39  ;;  %v14054_v8 = vpack.c.bf16 %v12000_v42, %v11999_v16  ;;  %v12032_v6 = vld [vmem:[%s21347_s13 + $0x1b8] sm:$0xff]  ;;  %v12002_v39 = vld [vmem:[%s21347_s13 + $0xc8] sm:$0xff] }
 0xbcd   :  { %v11900_v18 = vadd.f32 %v11899_v60, %v11897_v20  ;;  %v14044_v4 = vpack.c.bf16 %v11978_v9, %v11977_v56  ;;  %v11984_v60 = vld [vmem:[%s21347_s13 + $0x38] sm:$0xff]  ;;  %v14058_v21 = vpack.c.bf16 %v12002_v39, %v12001_v2  ;;  %v12034_v56 = vld [vmem:[%s21347_s13 + $0x1c8] sm:$0xff]  ;;  %v11985_v9 = vld [vmem:[%s21347_s13 + $0x40] sm:$0xff] }
 0xbce   :  { %14075 = vmatprep.subr.bf16.mxu1 %v14074_v32  ;;  %v11986_v32 = vld [vmem:[%s21347_s13 + $0x48] sm:$0xff]  ;;  %v12023_v16 = vld [vmem:[%s21347_s13 + $0x170] sm:$0xff]  ;;  %v12024_v42 = vld [vmem:[%s21347_s13 + $0x178] sm:$0xff] }
 0xbcf   :  { %v11901_v33 = vadd.f32 %v11900_v18, %v11898_v25  ;;  %14045 = vmatpush3.bf16.msra.mxu0 %v14044_v4  ;;  %14077 = vmatpush3.bf16.msra.mxu1 %v14076_v17  ;;  %v12015_v18 = vld [vmem:[%s21347_s13 + $0x130] sm:$0xff]  ;;  %v14090_v4 = vpack.c.bf16 %v12034_v56, %v12033_v7  ;;  %v14060_v37 = vpack.c.bf16 %v11986_v32, %v11985_v9 }
 0xbd0   :  { %14047 = vmatprep.subr.bf16.mxu0 %v14046_v14  ;;  %14079 = vmatprep.subr.bf16.mxu1 %v14078_v30  ;;  %v12003_v17 = vld [vmem:[%s21347_s13 + $0xd0] sm:$0xff]  ;;  %v12036_v14 = vld [vmem:[%s21347_s13 + $0x1d8] sm:$0xff] }
 0xbd1   :  { %11902 = vadd.xlane.f32.xlu0 %v11901_v33  ;;  %v12016_v33 = vld [vmem:[%s21347_s13 + $0x138] sm:$0xff]  ;;  %v14062_v30 = vpack.c.bf16 %v12004_v22, %v12003_v17  ;;  %v14094_v38 = vpack.c.bf16 %v12036_v14, %v12035_v34 }
 0xbd2   :  { %v14088_v63 = vpack.c.bf16 %v12016_v33, %v12015_v18  ;;  %v11925_v33 = vld [vmem:[%s21345_s11] sm:$0xf] }
 0xbd3   :  { %14049 = vmatpush3.bf16.msra.mxu0 %v14048_v36  ;;  %14081 = vmatpush3.bf16.msra.mxu1 %v14080_v3  ;;  %v12019_v36 = vld [vmem:[%s21347_s13 + $0x150] sm:$0xff]  ;;  %v12006_v3 = vld [vmem:[%s21347_s13 + $0xe8] sm:$0xff]  ;;  %v11934_v2 = vrot.slane %v11925_v33, %v16999_v46  ;;  %v11942_v39 = vrot.slane %v11925_v33, %v17163_v43  ;;  %v11930_v7 = vrot.slane %v11925_v33, %v17155_v40 }
 0xbd4   :  { %14051 = vmatprep.subr.bf16.mxu0 %v14050_v10  ;;  %14083 = vmatprep.subr.bf16.mxu1 %v14082_v57  ;;  %v14096_v10 = vpack.c.bf16 %v12020_v11, %v12019_v36  ;;  %v14066_v27 = vpack.c.bf16 %v12006_v3, %v12005_v47  ;;  %v11989_v57 = vld [vmem:[%s21347_s13 + $0x60] sm:$0xff] }
 0xbd7   :  { %14053 = vmatpush3.bf16.msra.mxu0 %v14052_v48  ;;  %14085 = vmatpush3.bf16.msra.mxu1 %v14084_v0  ;;  %v12022_v48 = vld [vmem:[%s21347_s13 + $0x168] sm:$0xff]  ;;  %v12007_v0 = vld [vmem:[%s21347_s13 + $0xf0] sm:$0xff] }
 0xbd8   :  { %14055 = vmatprep.subr.bf16.mxu0 %v14054_v8  ;;  %v14104_v8 = vpack.c.bf16 %v12024_v42, %v12023_v16  ;;  %v12191_v42 = vld [vmem:[%s21354_s20 + $0x1] sm:$0x1] }
 0xc5e   :  { %v11903_v29 = vpop.xlane.xlu0 %11902 }
 0xc5f   :  { %v11904_v61 = vmul.f32 0.001953125, %v11903_v29  ;;  %v12008_v29 = vld [vmem:[%s21347_s13 + $0xf8] sm:$0xff] }
 0xc61   :  { %v21083_v31 = vsub.f32 %v21000_v41, %v11904_v61  ;;  %v21086_v26 = vsub.f32 %v21004_v50, %v11904_v61  ;;  %v21088_v28 = vsub.f32 %v11897_v20, %v11904_v61  ;;  %v21090_v5 = vsub.f32 %v11898_v25, %v11904_v61  ;;  %v12039_v61 = vld [vmem:[%s21347_s13 + $0x1f0] sm:$0xff] }
 0xc62   :  { %v14086_v20 = vpack.c.bf16 %v12032_v6, %v12031_v44  ;;  %v14056_v25 = vpack.c.bf16 %v11984_v60, %v11983_v49  ;;  %v12188_v6 = vld [vmem:[%s21353_s19] sm:$0x1]  ;;  %v15821_v49 = vmov 1   ;;  %v15822_v60 = vmov 0  }
 0xc63   :  { %v11909_v58 = vmul.f32 %v21083_v31, %v21083_v31  ;;  %v11910_v53 = vmul.f32 %v21086_v26, %v21086_v26  ;;  %v11911_v59 = vmul.f32 %v21088_v28, %v21088_v28  ;;  %v11912_v41 = vmul.f32 %v21090_v5, %v21090_v5  ;;  %14202 = vset.pattern.permute.xlu1 %v15821_v49 }
 0xc64   :  { %14087 = vmatprep.subr.bf16.mxu1 %v14086_v20  ;;  %14057 = vmatpush3.bf16.msra.mxu0 %v14056_v25 }
 0xc65   :  { %v11913_v19 = vadd.f32 %v11910_v53, %v11909_v58  ;;  %14089 = vmatpush3.bf16.msra.mxu1 %v14088_v63  ;;  %14059 = vmatprep.subr.bf16.mxu0 %v14058_v21  ;;  %v14068_v58 = vpack.c.bf16 %v11990_v13, %v11989_v57  ;;  %v12040_v53 = vld [vmem:[%s21347_s13 + $0x1f8] sm:$0xff]  ;;  %v11951_v63 = vld [vmem:[%s21346_s12] sm:$0xf]  ;;  %v11938_v21 = vrot.slane %v11925_v33, %v17175_v55 }
 0xc66   :  { %14091 = vmatprep.subr.bf16.mxu1 %v14090_v4  ;;  %14201 = vset.pattern.permute.xlu0 %v15822_v60  ;;  %v11960_v9 = vrot.slane %v11951_v63, %v16999_v46  ;;  %v11968_v32 = vrot.slane %v11951_v63, %v17163_v43  ;;  %v11956_v4 = vrot.slane %v11951_v63, %v17155_v40  ;;  %v12199_v40 = vld [vmem:[%s21349_s15 + $0x1] sm:$0x1]  ;;  %v12189_v13 = vld [vmem:[%s21354_s20] sm:$0x1] }
 0xc67   :  { %v11914_v45 = vadd.f32 %v11913_v19, %v11911_v59  ;;  %v14100_v59 = vpack.c.bf16 %v12022_v48, %v12021_v51  ;;  %v14070_v19 = vpack.c.bf16 %v12008_v29, %v12007_v0  ;;  %12195 = vperm.xlu0 %14201, %v12188_v6   ;;  %v12242_v33 = vld [vmem:[%s21350_s16 + $0x1] sm:$0x1] }
 0xc68   :  { %14061 = vmatpush3.bf16.msra.mxu0 %v14060_v37  ;;  %v11964_v37 = vrot.slane %v11951_v63, %v17175_v55 }
 0xc69   :  { %v11915_v50 = vadd.f32 %v11914_v45, %v11912_v41  ;;  %14093 = vmatpush3.bf16.msra.mxu1 %v14092_v52  ;;  %14063 = vmatprep.subr.bf16.mxu0 %v14062_v30  ;;  %v11991_v41 = vld [vmem:[%s21347_s13 + $0x70] sm:$0xff]  ;;  %v11992_v45 = vld [vmem:[%s21347_s13 + $0x78] sm:$0xff] }
 0xc6a   :  { %14095 = vmatprep.subr.bf16.mxu1 %v14094_v38  ;;  %v14072_v44 = vpack.c.bf16 %v11992_v45, %v11991_v41  ;;  %v15825_v45 = vmov 6  }
 0xc6b   :  { %11916 = vadd.xlane.f32.xlu1 %v11915_v50  ;;  %v14102_v50 = vpack.c.bf16 %v12040_v53, %v12039_v61  ;;  %14206 = vset.pattern.permute.xlu0 %v15821_v49 }
 0xc6c   :  { %14065 = vmatpush3.bf16.msra.mxu0 %v14064_v24  ;;  %v13966_v24 = vld [vmem:[%s21348_s14] ss:$0 sm:$0xff]  ;;  %s15824_s14 = smov 2  }
 0xc6d   :  { %14097 = vmatpush3.bf16.msra.mxu1 %v14096_v10  ;;  %14067 = vmatprep.subr.bf16.mxu0 %v14066_v27 }
 0xc6e   :  { %14099 = vmatprep.subr.bf16.mxu1 %v14098_v54 }
 0xc70   :  { %14069 = vmatpush3.bf16.msra.mxu0 %v14068_v58 }
 0xc71   :  { %14101 = vmatpush3.bf16.msra.mxu1 %v14100_v59  ;;  %14071 = vmatprep.subr.bf16.mxu0 %v14070_v19 }
 0xc72   :  { %14103 = vmatprep.subr.bf16.mxu1 %v14102_v50  ;;  %v12190_v50 = vld [vmem:[%s21353_s19 + $0x1] sm:$0x1] }
 0xc73   :  { %12258 = vperm.xlu0 %14206, %v12190_v50  }
 0xc74   :  { %14073 = vmatpush3.bf16.msra.mxu0 %v14072_v44  ;;  %v15827_v44 = vmov 7  }
 0xc75   :  { %14105 = vmatpush3.bf16.msra.mxu1 %v14104_v8 }
 0xc77   :  { %12274 = vrot.lane.b32.xlu0 %v12191_v42, %s15824_s14 }
 0xc78   :  { %14208 = vset.pattern.permute.xlu0 %v15827_v44 }
 0xc7c   :  { %12201 = vperm.xlu1 %14202, %v12188_v6  }
 0xc80   :  { %14203 = vset.pattern.permute.xlu1 %v15825_v45 }
 0xcf8   :  { %v11917_v20 = vpop.xlane.xlu1 %11916 }
 0xcf9   :  { %v11918_v25 = vmul.f32 0.001953125, %v11917_v20  ;;  %v12302_v20 = vld [vmem:[%s21349_s15 + $0x1] sm:$0x1] }
 0xcfb   :  { %v11919_v18 = vadd.f32 1e-05, %v11918_v25 }
 0xcfc   :  { %v12202_v55 = vpop.permute.xlu1 %12201 }
 0xcfd   :  { %15756 = vrsqrt.f32 %v11919_v18  ;;  %v12204_v35 = vmul.f32 %v12202_v55, %v12199_v40  ;;  %v12300_v18 = vld [vmem:[%s21349_s15] sm:$0x1] }
 0xd07   :  { %v15757_v56 = vpop.eup %15756 }
 0xd08   :  { %v11922_v15 = vmul.f32 %v15757_v56, %v21086_v26  ;;  %v11924_v1 = vmul.f32 %v15757_v56, %v21090_v5  ;;  %v11921_v17 = vmul.f32 %v15757_v56, %v21083_v31  ;;  %v11923_v52 = vmul.f32 %v15757_v56, %v21088_v28  ;;  %v12192_v31 = vld [vmem:[%s21349_s15] sm:$0x1]  ;;  %v12196_v26 = vpop.permute.xlu0 %12195 }
 0xd09   :  { %v12198_v36 = vmul.f32 %v12196_v26, %v12192_v31 }
 0xd0a   :  { %v11948_v22 = vmul.f32 %v11934_v2, %v11922_v15  ;;  %v11950_v34 = vmul.f32 %v11942_v39, %v11924_v1  ;;  %v11947_v14 = vmul.f32 %v11930_v7, %v11921_v17  ;;  %v11949_v30 = vmul.f32 %v11938_v21, %v11923_v52  ;;  %v12235_v39 = vld [vmem:[%s21350_s16] sm:$0x1] }
 0xd0b   :  { %v12205_v23 = vadd.f32 %v12204_v35, %v12198_v36  ;;  %v12249_v7 = vld [vmem:[%s21351_s17] sm:$0x1] }
 0xd0c   :  { %v11974_v38 = vadd.f32 %v11960_v9, %v11948_v22  ;;  %v11976_v46 = vadd.f32 %v11968_v32, %v11950_v34  ;;  %v11973_v62 = vadd.f32 %v11956_v4, %v11947_v14  ;;  %v11975_v43 = vadd.f32 %v11964_v37, %v11949_v30  ;;  %v12259_v63 = vpop.permute.xlu0 %12258  ;;  %v12264_v52 = vld [vmem:[%s21352_s18] sm:$0x1] }
 0xd0e   :  { %12112 = vmatprep.mubr.f32.mxu0 %v11974_v38  ;;  %12182 = vmatprep.mubr.f32.mxu1 %v11976_v46 }
 0xd0f   :  { %12113 = vmatmul.mubr.f32.vlgmr.msra.gmra.mrb[72].mxu0 %v11973_v62  ;;  %12183 = vmatmul.mubr.f32.vlgmr.msra.gmra.mrb[72].mxu1 %v11975_v43 }
 0xde2   :  { %v14004_v28 = vpop.f32.mrb[72].mxu0  ;;  %v14039_v5 = vpop.f32.mrb[72].mxu1 }
 0xde3   :  { %v14005_v11 = vpop.f32.mrb[73].mxu0  ;;  %v14040_v47 = vpop.f32.mrb[73].mxu1 }
 0xde4   :  { %v14006_v3 = vadd.f32 %v14005_v11, %v14004_v28  ;;  %v14041_v10 = vadd.f32 %v14040_v47, %v14039_v5  ;;  %v12275_v47 = vpop.permute.xlu0 %12274 }
 0xde6   :  { %v12115_v27 = vadd.f32 %v14006_v3, %v13966_v24 }
 0xde8   :  { %v21251_v12 = vadd.f32 %v14041_v10, %v12115_v27 }
 0xdea   :  { %v12206_v57 = vadd.f32 %v12205_v23, %v21251_v12 }
 0xdec   :  { %15758 = vtanh.f32 %v12206_v57  ;;  %v13967_v51 = vmul.f32 -1.442695, %v12206_v57 }
 0xdee   :  { %15760 = vpow2.f32 %v13967_v51 }
 0xdf6   :  { %v15759_v54 = vpop.eup %15758 }
 0xdf7   :  { %12220 = vrot.lane.b32.xlu1 %v15759_v54, %s15823_s29 }
 0xdf8   :  { %v15761_v48 = vpop.eup %15760 }
 0xdf9   :  { %v12210_v0 = vadd.f32 1.0, %v15761_v48 }
 0xdfb   :  { %12215 = vrot.lane.b32.xlu1 %v12189_v13, %s15824_s14  ;;  %15762 = vrcp.f32 %v12210_v0 }
 0xe05   :  { %v15763_v29 = vpop.eup %15762 }
 0xe69   :  { %v12221_v61 = vpop.permute.xlu1 %12220 }
 0xe6a   :  { %v12223_v58 = vmul.f32 %v15763_v29, %v12221_v61 }
 0xe6c   :  { %12225 = vrot.lane.b32.xlu1 %v12223_v58, %s15824_s14 }
 0xe6d   :  { %v12216_v53 = vpop.permute.xlu1 %12215 }
 0xe6e   :  { %v12218_v59 = vmul.f32 %v15763_v29, %v12216_v53  ;;  %v12356_v53 = vld [vmem:[%s21351_s17] sm:$0x1] }
 0xede   :  { %v12226_v19 = vpop.permute.xlu1 %12225 }
 0xedf   :  { %v21260_v41 = vadd.f32 %v12226_v19, %v12218_v59  ;;  %v12362_v59 = vld [vmem:[%s21351_s17 + $0x1] sm:$0x1] }
 0xee1   :  { %15764 = vtanh.f32 %v21260_v41  ;;  %v12317_v27 = vrot.slane %v21260_v41, 7  ;;  %v12336_v41 = vld [vmem:[%s21350_s16] sm:$0x1] }
 0xeeb   :  { %v15765_v16 = vpop.eup %15764 }
 0xeec   :  { %12231 = vrot.lane.b32.xlu1 %v15765_v16, %s15826_s7 }
 0xf5e   :  { %v12232_v8 = vpop.permute.xlu1 %12231 }
 0xf5f   :  { %v12234_v6 = vmul.f32 %v15763_v29, %v12232_v8 }
 0xf61   :  { %12238 = vperm.xlu1 %14203, %v12234_v6  }
 0xf65   :  { %14204 = vset.pattern.permute.xlu1 %v15827_v44 }
 0xf66   :  { %12244 = vperm.xlu1 %14204, %v12234_v6  }
 0xf6a   :  { %14205 = vset.pattern.permute.xlu1 %v15822_v60  ;;  %v12256_v60 = vld [vmem:[%s21351_s17 + $0x1] sm:$0x1] }
 0xf6b   :  { %12252 = vperm.xlu1 %14205, %v12190_v50   ;;  %v12261_v9 = vmul.f32 %v12259_v63, %v12256_v60  ;;  %v13970_v60 = vld [vmem:[%s21352_s18] ss:$0 sm:$0xff]  ;;  %s15829_s18 = smov [#allocation2]  }
 0xf6f   :  { %14207 = vset.pattern.permute.xlu1 %v15825_v45  ;;  %v12346_v45 = vld [vmem:[%s21350_s16 + $0x1] sm:$0x1]  ;;  %s15828_s16 = smov 122  }
 0xf70   :  { %v12352_v8 = vrot.slane %v12346_v45, 7 }
 0xfe0   :  { %v12239_v49 = vpop.permute.xlu1 %12238 }
 0xfe1   :  { %v12301_v21 = vmul.f32 %v12300_v18, %v12239_v49  ;;  %v12241_v4 = vmul.f32 %v12239_v49, %v12235_v39 }
 0xfe5   :  { %v12245_v25 = vpop.permute.xlu1 %12244 }
 0xfe6   :  { %v12303_v2 = vmul.f32 %v12302_v20, %v12245_v25  ;;  %v12247_v56 = vmul.f32 %v12245_v25, %v12242_v33 }
 0xfe8   :  { %v12304_v37 = vadd.f32 %v12303_v2, %v12301_v21  ;;  %v12248_v1 = vadd.f32 %v12247_v56, %v12241_v4 }
 0xfea   :  { %v12253_v32 = vpop.permute.xlu1 %12252  ;;  %v12306_v22 = vrot.slane %v12304_v37, 7 }
 0xfeb   :  { %v12255_v15 = vmul.f32 %v12253_v32, %v12249_v7 }
 0xfec   :  { %v12308_v30 = vadd.f32 %v12306_v22, %v21251_v12 }
 0xfed   :  { %v12262_v17 = vadd.f32 %v12261_v9, %v12255_v15 }
 0xfee   :  { %v13969_v43 = vmul.f32 -1.442695, %v12308_v30 }
 0xfef   :  { %v12263_v34 = vadd.f32 %v12262_v17, %v12248_v1 }
 0xff1   :  { %v12265_v14 = vadd.f32 %v12264_v52, %v12263_v34 }
 0xff3   :  { %15766 = vtanh.f32 %v12265_v14  ;;  %v13968_v62 = vmul.f32 -1.442695, %v12265_v14 }
 0xff4   :  { %15768 = vtanh.f32 %v12308_v30 }
 0xff5   :  { %15770 = vpow2.f32 %v13968_v62 }
 0xff6   :  { %15772 = vpow2.f32 %v13969_v43 }
 0xffd   :  { %v15767_v38 = vpop.eup %15766 }
 0xffe   :  { %12279 = vrot.lane.b32.xlu1 %v15767_v38, %s15823_s29  ;;  %v15769_v46 = vpop.eup %15768 }
 0xfff   :  { %v15771_v40 = vpop.eup %15770 }
0x1000   :  { %v12269_v55 = vadd.f32 1.0, %v15771_v40  ;;  %v15773_v31 = vpop.eup %15772 }
0x1001   :  { %v12312_v26 = vadd.f32 1.0, %v15773_v31 }
0x1002   :  { %12321 = vrot.lane.b32.xlu1 %v15769_v46, %s15823_s29  ;;  %15774 = vrcp.f32 %v12269_v55 }
0x1003   :  { %15776 = vrcp.f32 %v12312_v26 }
0x100c   :  { %v15775_v28 = vpop.eup %15774 }
0x100d   :  { %v15777_v36 = vpop.eup %15776  ;;  %v12277_v3 = vmul.f32 %v15775_v28, %v12275_v47 }
0x100e   :  { %v12319_v12 = vmul.f32 %v15777_v36, %v12317_v27 }
0x1070   :  { %v12280_v5 = vpop.permute.xlu1 %12279 }
0x1071   :  { %v12282_v35 = vmul.f32 %v15775_v28, %v12280_v5 }
0x1073   :  { %12284 = vrot.lane.b32.xlu1 %v12282_v35, %s15824_s14 }
0x1074   :  { %v12322_v24 = vpop.permute.xlu1 %12321 }
0x1075   :  { %v12324_v11 = vmul.f32 %v15777_v36, %v12322_v24 }
0x1077   :  { %12326 = vrot.lane.b32.xlu0 %v12324_v11, %s15824_s14 }
0x10e5   :  { %v12285_v10 = vpop.permute.xlu1 %12284 }
0x10e6   :  { %v12287_v23 = vadd.f32 %v12285_v10, %v12277_v3 }
0x10e8   :  { %15778 = vtanh.f32 %v12287_v23  ;;  %v12389_v37 = vrot.slane %v12287_v23, 7 }
0x10e9   :  { %v12327_v57 = vpop.permute.xlu0 %12326 }
0x10ea   :  { %v12329_v54 = vadd.f32 %v12327_v57, %v12319_v12 }
0x10ec   :  { %15780 = vtanh.f32 %v12329_v54 }
0x10f2   :  { %v15779_v13 = vpop.eup %15778 }
0x10f3   :  { %12290 = vrot.lane.b32.xlu1 %v15779_v13, %s15826_s7 }
0x10f6   :  { %v15781_v51 = vpop.eup %15780 }
0x10f7   :  { %12332 = vrot.lane.b32.xlu0 %v15781_v51, %s15826_s7 }
0x1165   :  { %v12291_v48 = vpop.permute.xlu1 %12290 }
0x1166   :  { %v12293_v0 = vmul.f32 %v15775_v28, %v12291_v48 }
0x1168   :  { %12358 = vperm.xlu1 %14207, %v12293_v0   ;;  %12364 = vperm.xlu0 %14208, %v12293_v0  }
0x1169   :  { %v12333_v29 = vpop.permute.xlu0 %12332 }
0x116a   :  { %v12335_v61 = vmul.f32 %v15777_v36, %v12333_v29 }
0x116c   :  { %12339 = vperm.xlu1 %14207, %v12335_v61  }
0x1170   :  { %14209 = vset.pattern.permute.xlu1 %v15827_v44  ;;  %v12343_v44 = vrot.slane %v12336_v41, 7 }
0x1171   :  { %12348 = vperm.xlu1 %14209, %v12335_v61  }
0x11e7   :  { %v12359_v58 = vpop.permute.xlu1 %12358  ;;  %v12365_v19 = vpop.permute.xlu0 %12364 }
0x11e8   :  { %v12361_v50 = vmul.f32 %v12359_v58, %v12356_v53  ;;  %v12367_v16 = vmul.f32 %v12365_v19, %v12362_v59 }
0x11ea   :  { %v12368_v6 = vadd.f32 %v12367_v16, %v12361_v50 }
0x11eb   :  { %v12340_v42 = vpop.permute.xlu1 %12339 }
0x11ec   :  { %v12345_v20 = vmul.f32 %v12343_v44, %v12340_v42  ;;  %v12370_v18 = vrot.slane %v12368_v6, 7 }
0x11f0   :  { %v12349_v49 = vpop.permute.xlu1 %12348 }
0x11f1   :  { %v12354_v25 = vmul.f32 %v12352_v8, %v12349_v49 }
0x11f3   :  { %v12355_v33 = vadd.f32 %v12354_v25, %v12345_v20 }
0x11f5   :  { %v12372_v63 = vadd.f32 %v12370_v18, %v12355_v33 }
0x11f7   :  { %v12380_v2 = vadd.f32 %v13970_v60, %v12372_v63 }
0x11f9   :  { %15782 = vtanh.f32 %v12380_v2  ;;  %v13971_v7 = vmul.f32 -1.442695, %v12380_v2 }
0x11fb   :  { %15784 = vpow2.f32 %v13971_v7 }
0x1203   :  { %v15783_v39 = vpop.eup %15782 }
0x1204   :  { %12393 = vrot.lane.b32.xlu0 %v15783_v39, %s15823_s29  ;;  %s12420_s29 = sshll.u32 %s15829_s18, 4  ;;  %s12421_s29 = int_to_ptr.vmem [resolvable:$true] %s12420_s29 }
0x1205   :  { %v15785_v21 = vpop.eup %15784  ;;  %p15800_p1 = scmp.lt.s32.totalorder %s12421_s29, %s12421_s29 }
0x1206   :  { %v12384_v56 = vadd.f32 1.0, %v15785_v21 }
0x1208   :  { %15786 = vrcp.f32 %v12384_v56 }
0x1212   :  { %v15787_v9 = vpop.eup %15786 }
0x1213   :  { %v12391_v15 = vmul.f32 %v15787_v9, %v12389_v37 }
0x1276   :  { %v12394_v32 = vpop.permute.xlu0 %12393 }
0x1277   :  { %v12396_v4 = vmul.f32 %v15787_v9, %v12394_v32 }
0x1279   :  { %12398 = vrot.lane.b32.xlu1 %v12396_v4, %s15824_s14  ;;  %s15795_s14 = scalar_lea.vmem %s12421_s29, 32 }
0x127a   :  { %p15796_p0 = scmp.ne.s32.totalorder %s12421_s29, %s15795_s14  ;;  %p15801_p2 = scmp.lt.s32.totalorder %s15795_s14, %s15795_s14 }
0x127c   :  { %p15802_p3 = por %p15801_p2, %p15800_p1 }
0x127d   :  { %12295 = vrot.lane.b32.xlu1 %v12293_v0, %s15828_s16 }
0x127e   :  { %p15803_p4 = pnand %p15802_p3, %p15796_p0 }
0x12eb   :  { %v12399_v1 = vpop.permute.xlu1 %12398 }
0x12ec   :  { %v12401_v17 = vadd.f32 %v12399_v1, %v12391_v15 }
0x12ee   :  { %15788 = vtanh.f32 %v12401_v17 }
0x12ef   :  { %v12296_v52 = vpop.permute.xlu1 %12295 }
0x12f0   :  { %12299 = vst.msk [vmem:[#allocation2] sm:$0x1] %vm12298_vm2, %v12296_v52 }
0x12f8   :  { %v15789_v22 = vpop.eup %15788 }
0x12f9   :  { %12404 = vrot.lane.b32.xlu0 %v15789_v22, %s15826_s7 }
0x136b   :  { %v12405_v34 = vpop.permute.xlu0 %12404 }
0x136c   :  { %v12407_v14 = vmul.f32 %v15787_v9, %v12405_v34 }
0x136e   :  { %12409 = vrot.lane.b32.xlu0 %v12407_v14, %s15828_s16 }
0x13e0   :  { %v12410_v30 = vpop.permute.xlu0 %12409 }
0x13e1   :  { %12413 = vst.msk [vmem:[#allocation2] sm:$0x2] %vm12412_vm3, %v12410_v30 }
0x13e2   :  { %15806 = shalt.err (!%p15803_p4)
}
0x13e3   :  { %s15807_s7 = scalar_lea.hbm %s21355_s21, 32 }
0x13e4   :  { %p15808_p5 = scmp.ne.s32.totalorder %s21355_s21, %s15807_s7  ;;  %p15811_p6 = scmp.lt.u32.totalorder %s15807_s7, %s21355_s21 }
0x13e6   :  { %p15813_p7 = pnand %p15811_p6, %p15808_p5 }
0x13e8   :  { %15816 = shalt.err (!%p15813_p7)
}
0x13e9   :  { %12423 = dma.vmem_to_hbm [thread:$0]  %s12421_s29, 32, %s21355_s21, [#allocation3]  }
0x13ea   :  { %15817 = dma.done.wait [#allocation3], 32  }
0x13eb   :  { %15818 = vsyncadd [#allocation3], 4294967264 }
0x13ec   :  { %12427 = vsyncpa [#allocation3], 1 }

</bundles_post_ra>
